<compile_context>
chip_gen: v5e
topology: v5e:2x2
jax: 0.10.0
libtpu: 0.0.40
codegen_flags: <defaults>
</compile_context>

<pallas_src>
import functools

import jax
import jax.numpy as jnp
from jax.experimental import pallas as pl
from jax.experimental.pallas import tpu as pltpu


def _round_up(n, m):
    return ((n + m - 1) // m) * m


# ---------------------------------------------------------------------------
# Kernels
# ---------------------------------------------------------------------------
def _mlp_tail(h1_pre, b1_ref, w2_ref, b2_ref, w3_ref, b3_ref, w4_ref, b4_ref,
              o_ref):
    """Bias+ReLU of layer 1 and layers 2..4 + sigmoid.

    Computed in transposed ([feature, batch]) orientation so the final result
    is a lane-dense (1, tile_b) row.  h1_pre: (tile_b, 1024) f32.
    """
    h1 = jnp.maximum(h1_pre + b1_ref[...], 0.0)                 # (tb, 1024) f32
    # One aligned transpose (XLU, hidden under the MXU work), then bf16.
    h1t = jnp.transpose(h1).astype(jnp.bfloat16)                # (1024, tb)
    h2t = jnp.dot(w2_ref[...], h1t,
                  preferred_element_type=jnp.float32) + b2_ref[...]
    h2t = jnp.maximum(h2t, 0.0).astype(jnp.bfloat16)            # (128, tb)
    h3t = jnp.dot(w3_ref[...], h2t,
                  preferred_element_type=jnp.float32) + b3_ref[...]
    h3t = jnp.maximum(h3t, 0.0)                                 # (16, tb) f32
    # 16 -> 1 head: VPU multiply + small sublane reduce (an MXU pass with M=1
    # would waste the systolic array).
    z = jnp.sum(h3t * w4_ref[...], axis=0, keepdims=True) + b4_ref[...]
    o_ref[...] = jax.nn.sigmoid(z)                              # (1, tb)


def _disc_kernel_fused(x_ref, w1_ref, b1_ref, w2_ref, b2_ref, w3_ref, b3_ref,
                       w4_ref, b4_ref, o_ref):
    # f32 -> bf16 cast of the activation tile happens here (no-op if the
    # wrapper already produced a padded bf16 x).
    x = x_ref[...].astype(jnp.bfloat16)
    h1_pre = jnp.dot(x, w1_ref[...], preferred_element_type=jnp.float32)
    _mlp_tail(h1_pre, b1_ref, w2_ref, b2_ref, w3_ref, b3_ref, w4_ref, b4_ref,
              o_ref)


def _disc_kernel_ktiled(x_ref, w1_ref, b1_ref, w2_ref, b2_ref, w3_ref, b3_ref,
                        w4_ref, b4_ref, o_ref, acc_ref):
    """Layer-1 K-tiled variant (huge itemCount / v7x 64 MiB VMEM escape hatch)."""
    k = pl.program_id(1)

    @pl.when(k == 0)
    def _():
        acc_ref[...] = jnp.zeros_like(acc_ref)

    x = x_ref[...].astype(jnp.bfloat16)
    acc_ref[...] += jnp.dot(x, w1_ref[...], preferred_element_type=jnp.float32)

    @pl.when(k == pl.num_programs(1) - 1)
    def _():
        _mlp_tail(acc_ref[...], b1_ref, w2_ref, b2_ref, w3_ref, b3_ref,
                  w4_ref, b4_ref, o_ref)


# ---------------------------------------------------------------------------
# pallas_call builders
# ---------------------------------------------------------------------------
def _const_spec(shape, single_buffer):
    index_map = lambda *_: (0,) * len(shape)
    if single_buffer:
        # Constant block index across the grid -> one resident copy is enough.
        return pl.BlockSpec(shape, index_map, pipeline_mode=pl.Buffered(1))
    return pl.BlockSpec(shape, index_map)


def _build_fused_call(B_pad, Fp, tile_b, vmem_limit, single_buffer):
    const = lambda shape: _const_spec(shape, single_buffer)
    grid_spec = pltpu.PrefetchScalarGridSpec(
        num_scalar_prefetch=0,
        grid=(B_pad // tile_b,),
        in_specs=[
            pl.BlockSpec((tile_b, Fp), lambda i: (i, 0)),   # x tile (pipelined)
            const((Fp, 1024)),    # w1 [in, out]            (resident)
            const((1, 1024)),     # b1
            const((128, 1024)),   # w2 torch-native [out, in]
            const((128, 1)),      # b2 (column)
            const((16, 128)),     # w3 [out, in]
            const((16, 1)),       # b3 (column)
            const((16, 1)),       # w4 (column)
            const((1, 1)),        # b4
        ],
        out_specs=pl.BlockSpec((1, tile_b), lambda i: (0, i)),   # lane-dense row
    )
    return pl.pallas_call(
        _disc_kernel_fused,
        out_shape=jax.ShapeDtypeStruct((1, B_pad), jnp.float32),
        grid_spec=grid_spec,
        compiler_params=pltpu.CompilerParams(
            dimension_semantics=("parallel",),
            vmem_limit_bytes=vmem_limit),
    )


def _build_ktiled_call(B_pad, Fp, tile_b, tile_k, vmem_limit, single_buffer):
    const = lambda shape: _const_spec(shape, single_buffer)
    grid_spec = pltpu.PrefetchScalarGridSpec(
        num_scalar_prefetch=0,
        grid=(B_pad // tile_b, Fp // tile_k),
        in_specs=[
            pl.BlockSpec((tile_b, tile_k), lambda i, k: (i, k)),   # x tile
            pl.BlockSpec((tile_k, 1024), lambda i, k: (k, 0)),     # W1 streamed over K
            const((1, 1024)),
            const((128, 1024)),
            const((128, 1)),
            const((16, 128)),
            const((16, 1)),
            const((16, 1)),
            const((1, 1)),
        ],
        out_specs=pl.BlockSpec((1, tile_b), lambda i, k: (0, i)),
        scratch_shapes=[pltpu.VMEM((tile_b, 1024), jnp.float32)],  # layer-1 acc
    )
    return pl.pallas_call(
        _disc_kernel_ktiled,
        out_shape=jax.ShapeDtypeStruct((1, B_pad), jnp.float32),
        grid_spec=grid_spec,
        compiler_params=pltpu.CompilerParams(
            dimension_semantics=("parallel", "arbitrary"),
            vmem_limit_bytes=vmem_limit),
    )


# ---------------------------------------------------------------------------
# Sizing heuristics
# ---------------------------------------------------------------------------
_SMALL_WEIGHT_BYTES = 2 * ((128 * 1024 + 16 * 128) * 2
                           + (1024 + 128 + 16 + 16 + 1) * 4)
_ACT_BYTES_PER_ROW = 2 * (1024 * 4 + 1024 * 2 + 128 * 4 + 16 * 4)


def _fused_vmem_estimate(tile_b, Fp, x_itemsize):
    # Conservative: assume W1 ends up double-buffered (fallback path).
    return (2 * Fp * 1024 * 2 + _SMALL_WEIGHT_BYTES
            + 2 * tile_b * Fp * x_itemsize + 2 * tile_b * 4
            + tile_b * _ACT_BYTES_PER_ROW)


def _ktiled_vmem_estimate(tile_b, tile_k, x_itemsize):
    return (2 * tile_k * 1024 * 2 + _SMALL_WEIGHT_BYTES
            + 2 * tile_b * tile_k * x_itemsize + 2 * tile_b * 4
            + tile_b * 1024 * 4 + tile_b * _ACT_BYTES_PER_ROW)


def _vmem_hard_cap():
    """Generation-aware usable-VMEM ceiling (~112 MiB on 128 MiB parts, ~56 MiB on v7x)."""
    try:
        cap = int(pltpu.get_tpu_info().vmem_capacity_bytes)
    except (AttributeError, NotImplementedError, RuntimeError, TypeError,
            ValueError):
        cap = 64 << 20            # conservative (v7x-sized) default
    cap = max(cap, 32 << 20)
    return cap - max(cap // 8, 8 << 20)


def _choose_tile_b(B, requested=None):
    """Biggest 128-multiple tile (<=1024) that keeps >=2 grid steps (feeds both
    v7x TensorCores / overlaps x DMA) without excessive batch padding."""
    cap = max(128, _round_up(B, 128))
    if requested is not None:
        return min(max(128, _round_up(requested, 128)), cap, 1024)
    for t in (1024, 512, 256, 128):
        if t > cap:
            continue
        b_pad = _round_up(B, t)
        if t == 128 or (b_pad // t >= 2 and (b_pad - B) * 4 <= b_pad):
            return t
    return 128


_FALLBACK_ERRORS = (TypeError, ValueError, NotImplementedError, RuntimeError,
                    getattr(pltpu, "LoweringException", TypeError))


# ---------------------------------------------------------------------------
# Public wrapper
# ---------------------------------------------------------------------------
def discriminator_forward(x, params, *, tile_b=None, k_tile=None):
    """CFGAN discriminator forward.

    x: [B, itemCount] float32 (or bfloat16).
    params layout (see init_params): w1 [in,1024], b1 [1,1024],
      w2 [128,1024] (torch-native [out,in]), b2 [128,1], w3 [16,128],
      b3 [16,1], w4 [16,1], b4 [1,1].
    Returns [B, 1] float32 sigmoid scores.
    """
    B, F = x.shape
    tile_b = _choose_tile_b(B, tile_b)
    B_pad = _round_up(B, tile_b)
    hard_cap = _vmem_hard_cap()

    # Layer-1 strategy: resident W1 (fused) if it fits this generation's VMEM,
    # otherwise stream W1 over a K grid axis.
    Fp_fused = _round_up(F, 128)
    use_ktiled = k_tile is not None
    if not use_ktiled:
        use_ktiled = _fused_vmem_estimate(tile_b, Fp_fused, 4) > hard_cap

    if use_ktiled:
        tile_k = _round_up(min(k_tile or 512, _round_up(F, 128)), 128)
        Fp = _round_up(F, tile_k)
    else:
        tile_k = None
        Fp = Fp_fused

    # x: when no padding is needed, pass f32 straight through and cast inside
    # the kernel (saves a whole wrapper-side HBM pass over x).  Otherwise fuse
    # cast+pad into a single wrapper op.
    # TODO(synk): move the unaligned-itemCount zero-pad in-kernel once the
    # unaligned-K MXU contraction is validated on the target Mosaic build.
    need_pad = (B_pad != B) or (Fp != F)
    if need_pad:
        x_in = jnp.pad(x.astype(jnp.bfloat16), ((0, B_pad - B), (0, Fp - F)))
    else:
        x_in = x

    w1 = params["w1"].astype(jnp.bfloat16)
    if Fp != F:
        w1 = jnp.pad(w1, ((0, Fp - F), (0, 0)))
    w2 = params["w2"].astype(jnp.bfloat16)
    w3 = params["w3"].astype(jnp.bfloat16)
    b1 = params["b1"].astype(jnp.float32).reshape(1, 1024)
    b2 = params["b2"].astype(jnp.float32).reshape(128, 1)
    b3 = params["b3"].astype(jnp.float32).reshape(16, 1)
    w4 = params["w4"].astype(jnp.float32).reshape(16, 1)
    b4 = params["b4"].astype(jnp.float32).reshape(1, 1)

    itemsize = jnp.dtype(x_in.dtype).itemsize
    if use_ktiled:
        est = _ktiled_vmem_estimate(tile_b, tile_k, itemsize)
        builder = functools.partial(_build_ktiled_call, B_pad, Fp, tile_b, tile_k)
    else:
        est = _fused_vmem_estimate(tile_b, Fp, itemsize)
        builder = functools.partial(_build_fused_call, B_pad, Fp, tile_b)
    vmem_limit = int(min(hard_cap, max(est * 5 // 4, 32 << 20)))

    args = (x_in, w1, b1, w2, b2, w3, b3, w4, b4)
    try:
        out = builder(vmem_limit, True)(*args)      # single-resident weights
    except _FALLBACK_ERRORS:
        # Only the constant-block buffering mode differs here; a genuine kernel
        # bug would re-raise from the default-buffered build.
        out = builder(vmem_limit, False)(*args)

    return out.reshape(-1)[:B].reshape(B, 1)


# ---------------------------------------------------------------------------
# Params + references
# ---------------------------------------------------------------------------
def init_params(key, item_count):
    """torch.nn.Linear-style U(-1/sqrt(fan_in), 1/sqrt(fan_in)) init in the
    layouts the kernel consumes (w1/w4 stored [in, out]; w2/w3 torch [out, in])."""
    def lin(k, fan_in, shape):
        bound = 1.0 / (fan_in ** 0.5)
        return jax.random.uniform(k, shape, jnp.float32, -bound, bound)

    ks = jax.random.split(key, 8)
    return {
        "w1": lin(ks[0], item_count, (item_count, 1024)),
        "b1": lin(ks[1], item_count, (1, 1024)),
        "w2": lin(ks[2], 1024, (128, 1024)),
        "b2": lin(ks[3], 1024, (128, 1)),
        "w3": lin(ks[4], 128, (16, 128)),
        "b3": lin(ks[5], 128, (16, 1)),
        "w4": lin(ks[6], 16, (16, 1)),
        "b4": lin(ks[7], 16, (1, 1)),
    }


def reference_forward_bf16(x, params):
    """Pure-JAX reference mirroring the kernel's bf16-operand / f32-accum math."""
    bf = jnp.bfloat16
    h = jnp.dot(x.astype(bf), params["w1"].astype(bf),
                preferred_element_type=jnp.float32) + params["b1"]
    h = jnp.maximum(h, 0.0).astype(bf)
    h = jnp.dot(h, params["w2"].astype(bf).T,
                preferred_element_type=jnp.float32) + params["b2"].reshape(1, -1)
    h = jnp.maximum(h, 0.0).astype(bf)
    h = jnp.dot(h, params["w3"].astype(bf).T,
                preferred_element_type=jnp.float32) + params["b3"].reshape(1, -1)
    h = jnp.maximum(h, 0.0)
    z = jnp.sum(h * params["w4"].reshape(1, -1), axis=-1, keepdims=True) + params["b4"]
    return jax.nn.sigmoid(z)


def reference_forward_f32(x, params):
    h = jnp.maximum(x @ params["w1"] + params["b1"], 0.0)
    h = jnp.maximum(h @ params["w2"].T + params["b2"].reshape(1, -1), 0.0)
    h = jnp.maximum(h @ params["w3"].T + params["b3"].reshape(1, -1), 0.0)
    z = h @ params["w4"] + params["b4"]
    return jax.nn.sigmoid(z)


# ---------------------------------------------------------------------------
if __name__ == "__main__":
    root_key = jax.random.PRNGKey(0)

    def run_case(item_count, batch, **kw):
        case_key = jax.random.fold_in(root_key, item_count * 131 + batch)
        kp, kx = jax.random.split(case_key)
        params = init_params(kp, item_count)
        x = jax.random.normal(kx, (batch, item_count), jnp.float32)

        out = jax.block_until_ready(discriminator_forward(x, params, **kw))
        assert out.shape == (batch, 1)

        ref16 = reference_forward_bf16(x, params)
        assert jnp.allclose(out, ref16, atol=1e-2, rtol=1e-2), \
            f"mismatch vs bf16-mirrored reference (itemCount={item_count})"
        reff = reference_forward_f32(x, params)
        assert jnp.allclose(out, reff, atol=6e-2, rtol=6e-2), \
            f"mismatch vs f32 reference (itemCount={item_count})"

    # 1) 128-aligned itemCount: f32 x passes straight through, cast in-kernel.
    run_case(384, 512)
    # 2) unaligned itemCount (like real CFGAN datasets): wrapper bf16 cast+pad path.
    run_case(300, 512)
    # 3) forced K-tiled layer 1 (large-itemCount / v7x escape hatch), small shapes.
    run_case(384, 256, k_tile=128)

    print("KERNEL_OK")
</pallas_src>

<mosaic_0001>
module attributes {stable_mosaic.version = 11 : i64} {
  func.func @_disc_kernel_fused(%arg0: i32, %arg1: memref<256x384xf32, #tpu.memory_space<vmem>>, %arg2: memref<384x1024xbf16, #tpu.memory_space<vmem>>, %arg3: memref<1x1024xf32, #tpu.memory_space<vmem>>, %arg4: memref<128x1024xbf16, #tpu.memory_space<vmem>>, %arg5: memref<128x1xf32, #tpu.memory_space<vmem>>, %arg6: memref<16x128xbf16, #tpu.memory_space<vmem>>, %arg7: memref<16x1xf32, #tpu.memory_space<vmem>>, %arg8: memref<16x1xf32, #tpu.memory_space<vmem>>, %arg9: memref<1x1xf32, #tpu.memory_space<vmem>>, %arg10: memref<1x256xf32, #tpu.memory_space<vmem>>) attributes {dimension_semantics = [#tpu.dimension_semantics<parallel>], iteration_bounds = array<i64: 2>, scalar_prefetch = 0 : i64, scratch_operands = 0 : i64, tpu.core_type = #tpu.core_type<tc>, window_params = [{transform_indices = @transform_0, window_bounds = array<i64: 256, 384>}, {pipeline_mode = #tpu.pipeline_mode<synchronous>, transform_indices = @transform_1, window_bounds = array<i64: 384, 1024>}, {pipeline_mode = #tpu.pipeline_mode<synchronous>, transform_indices = @transform_2, window_bounds = array<i64: 1, 1024>}, {pipeline_mode = #tpu.pipeline_mode<synchronous>, transform_indices = @transform_3, window_bounds = array<i64: 128, 1024>}, {pipeline_mode = #tpu.pipeline_mode<synchronous>, transform_indices = @transform_4, window_bounds = array<i64: 128, 1>}, {pipeline_mode = #tpu.pipeline_mode<synchronous>, transform_indices = @transform_5, window_bounds = array<i64: 16, 128>}, {pipeline_mode = #tpu.pipeline_mode<synchronous>, transform_indices = @transform_6, window_bounds = array<i64: 16, 1>}, {pipeline_mode = #tpu.pipeline_mode<synchronous>, transform_indices = @transform_7, window_bounds = array<i64: 16, 1>}, {pipeline_mode = #tpu.pipeline_mode<synchronous>, transform_indices = @transform_8, window_bounds = array<i64: 1, 1>}, {transform_indices = @transform_9, window_bounds = array<i64: 1, 256>}]} {
    %c0 = arith.constant 0 : index
    %c0_0 = arith.constant 0 : index
    %0 = vector.load %arg1[%c0, %c0_0] : memref<256x384xf32, #tpu.memory_space<vmem>>, vector<256x384xf32>
    %1 = arith.truncf %0 : vector<256x384xf32> to vector<256x384xbf16>
    %c0_1 = arith.constant 0 : index
    %c0_2 = arith.constant 0 : index
    %2 = vector.load %arg2[%c0_1, %c0_2] : memref<384x1024xbf16, #tpu.memory_space<vmem>>, vector<384x1024xbf16>
    %cst = arith.constant dense<0.000000e+00> : vector<256x1024xf32>
    %3 = tpu.matmul %1, %2, %cst {dimension_numbers = #tpu.dot_dimension_numbers<[1], [0], [0], [1], [0, 0, 1, 1], [], []>} : vector<256x384xbf16>, vector<384x1024xbf16>, vector<256x1024xf32> -> vector<256x1024xf32>
    %c0_3 = arith.constant 0 : index
    %c0_4 = arith.constant 0 : index
    %4 = vector.load %arg3[%c0_3, %c0_4] : memref<1x1024xf32, #tpu.memory_space<vmem>>, vector<1x1024xf32>
    %5 = vector.broadcast %4 : vector<1x1024xf32> to vector<256x1024xf32>
    %6 = arith.addf %3, %5 : vector<256x1024xf32>
    %cst_5 = arith.constant 0.000000e+00 : f32
    %7 = vector.broadcast %cst_5 : f32 to vector<256x1024xf32>
    %8 = arith.maximumf %6, %7 : vector<256x1024xf32>
    %9 = tpu.transpose %8, [1, 0] : vector<256x1024xf32> -> vector<1024x256xf32>
    %10 = arith.truncf %9 : vector<1024x256xf32> to vector<1024x256xbf16>
    %c0_6 = arith.constant 0 : index
    %c0_7 = arith.constant 0 : index
    %11 = vector.load %arg4[%c0_6, %c0_7] : memref<128x1024xbf16, #tpu.memory_space<vmem>>, vector<128x1024xbf16>
    %cst_8 = arith.constant dense<0.000000e+00> : vector<128x256xf32>
    %12 = tpu.matmul %11, %10, %cst_8 {dimension_numbers = #tpu.dot_dimension_numbers<[1], [0], [0], [1], [0, 0, 1, 1], [], []>} : vector<128x1024xbf16>, vector<1024x256xbf16>, vector<128x256xf32> -> vector<128x256xf32>
    %c0_9 = arith.constant 0 : index
    %c0_10 = arith.constant 0 : index
    %13 = vector.load %arg5[%c0_9, %c0_10] : memref<128x1xf32, #tpu.memory_space<vmem>>, vector<128x1xf32>
    %14 = vector.broadcast %13 : vector<128x1xf32> to vector<128x256xf32>
    %15 = arith.addf %12, %14 : vector<128x256xf32>
    %cst_11 = arith.constant 0.000000e+00 : f32
    %16 = vector.broadcast %cst_11 : f32 to vector<128x256xf32>
    %17 = arith.maximumf %15, %16 : vector<128x256xf32>
    %18 = arith.truncf %17 : vector<128x256xf32> to vector<128x256xbf16>
    %c0_12 = arith.constant 0 : index
    %c0_13 = arith.constant 0 : index
    %19 = vector.load %arg6[%c0_12, %c0_13] : memref<16x128xbf16, #tpu.memory_space<vmem>>, vector<16x128xbf16>
    %cst_14 = arith.constant dense<0.000000e+00> : vector<16x256xf32>
    %20 = tpu.matmul %19, %18, %cst_14 {dimension_numbers = #tpu.dot_dimension_numbers<[1], [0], [0], [1], [0, 0, 1, 1], [], []>} : vector<16x128xbf16>, vector<128x256xbf16>, vector<16x256xf32> -> vector<16x256xf32>
    %c0_15 = arith.constant 0 : index
    %c0_16 = arith.constant 0 : index
    %21 = vector.load %arg7[%c0_15, %c0_16] : memref<16x1xf32, #tpu.memory_space<vmem>>, vector<16x1xf32>
    %22 = vector.broadcast %21 : vector<16x1xf32> to vector<16x256xf32>
    %23 = arith.addf %20, %22 : vector<16x256xf32>
    %cst_17 = arith.constant 0.000000e+00 : f32
    %24 = vector.broadcast %cst_17 : f32 to vector<16x256xf32>
    %25 = arith.maximumf %23, %24 : vector<16x256xf32>
    %c0_18 = arith.constant 0 : index
    %c0_19 = arith.constant 0 : index
    %26 = vector.load %arg8[%c0_18, %c0_19] : memref<16x1xf32, #tpu.memory_space<vmem>>, vector<16x1xf32>
    %27 = vector.broadcast %26 : vector<16x1xf32> to vector<16x256xf32>
    %28 = arith.mulf %25, %27 : vector<16x256xf32>
    %cst_20 = arith.constant dense<0.000000e+00> : vector<256xf32>
    %29 = vector.multi_reduction <add>, %28, %cst_20 [0] : vector<16x256xf32> to vector<256xf32>
    %30 = vector.shape_cast %29 : vector<256xf32> to vector<1x256xf32>
    %c0_21 = arith.constant 0 : index
    %c0_22 = arith.constant 0 : index
    %31 = vector.load %arg9[%c0_21, %c0_22] : memref<1x1xf32, #tpu.memory_space<vmem>>, vector<1x1xf32>
    %32 = vector.broadcast %31 : vector<1x1xf32> to vector<1x256xf32>
    %33 = arith.addf %30, %32 : vector<1x256xf32>
    %34 = arith.negf %33 : vector<1x256xf32>
    %35 = math.exp %34 : vector<1x256xf32>
    %cst_23 = arith.constant 1.000000e+00 : f32
    %36 = vector.broadcast %cst_23 : f32 to vector<1x256xf32>
    %37 = arith.addf %36, %35 : vector<1x256xf32>
    %38 = arith.divf %36, %37 : vector<1x256xf32>
    %c0_24 = arith.constant 0 : index
    %c0_25 = arith.constant 0 : index
    %39 = vector.load %arg10[%c0_24, %c0_25] : memref<1x256xf32, #tpu.memory_space<vmem>>, vector<1x256xf32>
    tpu.vector_store %arg10[%c0_24, %c0_25], %38 {strides = array<i32>} : memref<1x256xf32, #tpu.memory_space<vmem>>, vector<1x256xf32>,
    return
  }
  func.func @transform_0(%arg0: i32) -> (i32, i32) {
    %c0_i32 = arith.constant 0 : i32
    %c0_i32_0 = arith.constant 0 : i32
    return %arg0, %c0_i32 : i32, i32
  }
  func.func @transform_1(%arg0: i32) -> (i32, i32) {
    %c0_i32 = arith.constant 0 : i32
    %c0_i32_0 = arith.constant 0 : i32
    %c0_i32_1 = arith.constant 0 : i32
    return %c0_i32, %c0_i32_0 : i32, i32
  }
  func.func @transform_2(%arg0: i32) -> (i32, i32) {
    %c0_i32 = arith.constant 0 : i32
    %c0_i32_0 = arith.constant 0 : i32
    %c0_i32_1 = arith.constant 0 : i32
    return %c0_i32, %c0_i32_0 : i32, i32
  }
  func.func @transform_3(%arg0: i32) -> (i32, i32) {
    %c0_i32 = arith.constant 0 : i32
    %c0_i32_0 = arith.constant 0 : i32
    %c0_i32_1 = arith.constant 0 : i32
    return %c0_i32, %c0_i32_0 : i32, i32
  }
  func.func @transform_4(%arg0: i32) -> (i32, i32) {
    %c0_i32 = arith.constant 0 : i32
    %c0_i32_0 = arith.constant 0 : i32
    %c0_i32_1 = arith.constant 0 : i32
    return %c0_i32, %c0_i32_0 : i32, i32
  }
  func.func @transform_5(%arg0: i32) -> (i32, i32) {
    %c0_i32 = arith.constant 0 : i32
    %c0_i32_0 = arith.constant 0 : i32
    %c0_i32_1 = arith.constant 0 : i32
    return %c0_i32, %c0_i32_0 : i32, i32
  }
  func.func @transform_6(%arg0: i32) -> (i32, i32) {
    %c0_i32 = arith.constant 0 : i32
    %c0_i32_0 = arith.constant 0 : i32
    %c0_i32_1 = arith.constant 0 : i32
    return %c0_i32, %c0_i32_0 : i32, i32
  }
  func.func @transform_7(%arg0: i32) -> (i32, i32) {
    %c0_i32 = arith.constant 0 : i32
    %c0_i32_0 = arith.constant 0 : i32
    %c0_i32_1 = arith.constant 0 : i32
    return %c0_i32, %c0_i32_0 : i32, i32
  }
  func.func @transform_8(%arg0: i32) -> (i32, i32) {
    %c0_i32 = arith.constant 0 : i32
    %c0_i32_0 = arith.constant 0 : i32
    %c0_i32_1 = arith.constant 0 : i32
    return %c0_i32, %c0_i32_0 : i32, i32
  }
  func.func @transform_9(%arg0: i32) -> (i32, i32) {
    %c0_i32 = arith.constant 0 : i32
    %c0_i32_0 = arith.constant 0 : i32
    return %c0_i32, %arg0 : i32, i32
  }
}

</mosaic_0001>

<bundles_post_ra>
// kernel: tpu_custom_call.1
= control target key start
LH: loop header
LB: loop body
LE: loop exit
PB: predicated region body
PF: predicated region fallthrough
CT: control target
= control target key end

     0   :  { %s11928_s0 = inlined_call_operand.hbm [shape: f32[512,384], index: 0, kind: input, shape index: {}]   ;;  %s11929_s1 = inlined_call_operand.hbm [shape: bf16[384,1024], index: 1, kind: input, shape index: {}]   ;;  %s11930_s2 = inlined_call_operand.vmem [shape: f32[1,1024], index: 2, kind: input, shape index: {}]   ;;  %s11931_s3 = inlined_call_operand.hbm [shape: bf16[128,1024], index: 3, kind: input, shape index: {}]   ;;  %s11932_s4 = inlined_call_operand.vmem [shape: f32[128,1], index: 4, kind: input, shape index: {}]   ;;  %s11933_s5 = inlined_call_operand.vmem [shape: bf16[16,128], index: 5, kind: input, shape index: {}]   ;;  %s11934_s6 = inlined_call_operand.vmem [shape: f32[16,1], index: 6, kind: input, shape index: {}]   ;;  %s11935_s7 = inlined_call_operand.vmem [shape: f32[16,1], index: 7, kind: input, shape index: {}]   ;;  %s11936_s8 = inlined_call_operand.<no memory space> [shape: f32[1,1], index: 8, kind: input, shape index: {}]   ;;  %s11937_s9 = inlined_call_operand.hbm [shape: f32[1,512], index: 9, kind: output, shape index: {}]  }
   0x1   :  { %12139 = sst [smem:[#allocation146_spill]] %s11929_s1  ;;  %v14_v0 = vstv %s11936_s8 }
   0x2   :  { %12140 = sst [smem:[#allocation147_spill]] %s11931_s3  ;;  %15 = vst [vmem:[#allocation2] sm:$0x1] %v14_v0 }
   0x3   :  { %16 = vsyncpa [#allocation4], 0 }
   0x4   :  { %18 = vsyncpa [#allocation4 + $0x1], 0 }
   0x5   :  { %19 = vsyncpa [#allocation7], 0 }
   0x6   :  { %20 = vsyncpa [#allocation5], 0 }
   0x7   :  { %22 = vsyncpa [#allocation5 + $0x1], 0  ;;  %s8804_s11 = smov 0   ;;  %s8806_s12 = smov 0  }
   0x8   :  { %s8808_s13 = smov 0   ;;  %s8810_s14 = smov 0  }
   0x9 LB: > { %12141 = sst [smem:[#allocation13_spill]] %s8738_s13  ;;  %s8825_s8 = sadd.s32 4294967295, %s8742_s14   ;;  %s8742_s14 = sphi %s8810_s14, %s12945_s14   ;;  %s8738_s13 = sphi %s8808_s13, %s12942_s13   ;;  %s8734_s12 = sphi %s8806_s12, %s12944_s12   ;;  %s8730_s11 = sphi %s8804_s11, %s12943_s11  }
   0xa   : > { %s6294_s15 = sadd.s32 4294967294, %s8742_s14   ;;  %p48_p0 = scmp.ne.s32.totalorder %s8734_s12, %s8730_s11 }
   0xb   : > { %p49_p1 = scmp.eq.s32.totalorder %s8825_s8, 0  ;;  %p240_p2 = scmp.eq.s32.totalorder %s8825_s8, 1 }
   0xc   : > { %p246_p3 = scmp.eq.s32.totalorder %s6294_s15, 1  ;;  %p6295_p5 = scmp.ge.s32.totalorder %s8742_s14, 1 }
   0xd   : > { %p8834_p4 = por %p49_p1, %p48_p0  ;;  %p253_p7 = scmp.lt.s32.totalorder %s8742_s14, 3 }
   0xe   : > { %p8839_p6 = por %p246_p3, %p48_p0  ;;  %s12144_s1 = sld [smem:[#allocation146_spill]] }
   0xf   : > { %p8847_p8 = pnand %p6295_p5, %p253_p7  ;;  %s8744_s22 = smov [#allocation6]  }
  0x10   : > { %s266_s23 = sshll.u32 %s8744_s22, 4  ;;  %s12146_s3 = sld [smem:[#allocation147_spill]]  ;;  %s267_s23 = int_to_ptr.vmem [resolvable:$true] %s266_s23 }
  0x11   : > { %p7612_p9 = pneg %p8847_p8  ;;  %s8745_s27 = smov 512  }
  0x12   : > { %s8746_s28 = smov 32   ;;  %s8747_s29 = smov [#allocation8]  }
  0x13   : > { %p7613_p10 = pnand %p7612_p9, %p49_p1  ;;  %s283_s30 = sshll.u32 %s8747_s29, 4  ;;  %s284_s30 = int_to_ptr.vmem [resolvable:$true] %s283_s30 }
  0x14   : > { %s264_s20 = sshll.u32 %s12144_s1, 4  ;;  %s8860_s10 = sadd.s32 1, %s8742_s14   ;;  %s265_s20 = int_to_ptr.hbm [resolvable:$true] %s264_s20 }
  0x15   : > { %7615 = dma.hbm_to_vmem [thread:$0]  (!%p7613_p10), %s265_s20, 24576, %s267_s23, [#allocation7], %s8745_s27, %s8745_s27, %s8746_s28  }
  0x16   : > { %s281_s26 = sshll.u32 %s12146_s3, 4  ;;  %s35_s15 = sadd.s32 1, %s8738_s13  ;;  %s282_s26 = int_to_ptr.hbm [resolvable:$true] %s281_s26 }
  0x17   : > { %7618 = dma.hbm_to_vmem [thread:$0]  (!%p7613_p10), %s282_s26, 8192, %s284_s30, [#allocation7], %s8745_s27, %s8745_s27, %s8746_s28  }
  0x18   : > { %s32_s18 = ssub.s32 %s8742_s14, %s8860_s10  ;;  %p42_p12 = scmp.ne.s32.totalorder %s8738_s13, %s8734_s12 }
  0x19   : > { %p33_p13 = scmp.eq.s32.totalorder %s32_s18, 0  ;;  %p43_p0 = scmp.eq.s32.totalorder %s8742_s14, 0 }
  0x1a   : > { %p8870_p3 = por %p240_p2, %p42_p12  ;;  %p7629_p5 = scmp.lt.s32.totalorder %s8742_s14, 2 }
  0x1b   : > { %s8876_s20 = scalar_select %p33_p13, %s8738_s13, %s35_s15  }
  0x1c   : > { %p44_p7 = por %p43_p0, %p42_p12  ;;  %s312_s22 = sand.u32 1, %s8738_s13  }
  0x1d   : > { %12148 = sst [smem:[#allocation14_spill]] %s8876_s20  ;;  %s7597_s23 = smul.u32 768, %s312_s22 }
  0x1e   : > { %s7598_s24 = smul.u32 768, %s8742_s14  ;;  %p8880_p9 = pnand %p7629_p5, %p44_p7 }
  0x1f   : > { %s316_s29 = scalar_lea.vmem [#allocation3], %s7597_s23  ;;  %s313_s15 = scalar_lea.sflag [#allocation4], %s312_s22 }
  0x20   : > { %s322_s28 = scalar_lea.hbm %s11928_s0, %s7598_s24  ;;  %s325_s30 = sshll.u32 %s316_s29, 4  ;;  %s326_s30 = int_to_ptr.vmem [resolvable:$true] %s325_s30 }
  0x21   : > { %s323_s18 = sshll.u32 %s322_s28, 4  ;;  %p8646_p10 = pneg %p8880_p9  ;;  %s324_s18 = int_to_ptr.hbm [resolvable:$true] %s323_s18 }
  0x22   : > { %s8642_s1 = sshra.s32 %s324_s18, 4  ;;  %s8649_s26 = scalar_lea.hbm %s11928_s0, 1536  ;;  %s8643_s1 = int_to_ptr.hbm [resolvable:$true] %s8642_s1 }
  0x23   : > { %s8644_s3 = scalar_lea.hbm %s8643_s1, 768  ;;  %p8650_p0 = scmp.lt.s32.totalorder %s8643_s1, %s11928_s0 }
  0x24   : > { %p8645_p2 = scmp.ne.s32.totalorder %s8643_s1, %s8644_s3  ;;  %p8651_p5 = scmp.lt.s32.totalorder %s8649_s26, %s8644_s3 }
  0x26   : > { %p8647_p12 = pnand %p8646_p10, %p8645_p2  ;;  %p8652_p7 = por %p8651_p5, %p8650_p0 }
  0x28   : > { %p8648_p13 = pneg %p8647_p12 }
  0x2a   : > { %p8653_p11 = pnand %p8652_p7, %p8648_p13 }
  0x2c   : > { %8656 = shalt.err (!%p8653_p11)
}
  0x2d   : > { %s8748_s22 = smov 384   ;;  %s8749_s23 = smov 24  }
  0x2e   : > { %7622 = dma.hbm_to_vmem [thread:$0]  (!%p8880_p9), %s324_s18, 12288, %s326_s30, %s313_s15, %s8748_s22, %s8748_s22, %s8749_s23  }
  0x2f   : > { %337 = sbr.rel (%p8847_p8) target bundleno = 2590 (0xa1e), region = 56 }
  0x34   : > { %s8900_s13 = sand.u32 1, %s8734_s12  }
  0x35   : > { %s7599_s20 = smul.u32 768, %s8900_s13  ;;  %s340_s1 = scalar_lea.sflag [#allocation4], %s8900_s13 }
  0x37   : > { %s8904_s3 = scalar_lea.vmem [#allocation3], %s7599_s20 }
  0x38   : > { %8717 = dma.done.wait (%p8834_p4), %s340_s1, 12288  }
  0x39   : > { %8719 = vsyncadd (%p8834_p4), %s340_s1, 4294955008 }
  0x3a   : > { %8721 = dma.done.wait (%p49_p1), [#allocation7], 32768  }
  0x3b   : > { %8723 = vsyncadd (%p49_p1), [#allocation7], 4294934528  ;;  %v6532_v1 = vld [vmem:[#allocation6 + $0x1c0] sm:$0xf]  ;;  %v7396_v10 = vld [vmem:[#allocation6 + $0x1c4] sm:$0xf] }
  0x3c   : > { %v7400_v2 = vld [vmem:[#allocation6 + $0x1dc] sm:$0xf0]  ;;  %v6534_v11 = vld [vmem:[#allocation6 + $0x1e0] sm:$0xf0]  ;;  %s6305_s25 = sshll.u32 %s8900_s13, 1  ;;  %s7337_s28 = sshll.u32 %s8825_s8, 1 }
  0x3d   : > { %v6788_v3 = vld [vmem:[#allocation6 + $0x3c0] sm:$0xf]  ;;  %v6533_v4 = vor.u32 %v7400_v2, %v6532_v1  ;;  %v6537_v13 = vor.u32 %v7396_v10, %v6534_v11  ;;  %v7388_v21 = vld [vmem:[#allocation6 + $0x184] sm:$0xf]  ;;  %s6200_s18 = scalar_lea.hbm %s11937_s9, %s7337_s28  ;;  %s388_s8 = scalar_lea.vmem [#allocation9], %s6305_s25  ;;  %vm6181_vm7 = vcmask 1040384  }
  0x3e   : > { %v7464_v5 = vld [vmem:[#allocation6 + $0x3dc] sm:$0xf0]  ;;  %v6502_v23 = vld [vmem:[#allocation6 + $0x1a0] sm:$0xf0]  ;;  %s6202_s15 = sshll.u32 %s388_s8, 4  ;;  %s6204_s26 = sshll.u32 %s6200_s18, 4  ;;  %s6203_s15 = int_to_ptr.vmem [resolvable:$true] %s6202_s15  ;;  %s6205_s26 = int_to_ptr.hbm [resolvable:$true] %s6204_s26 }
  0x3f   : > { %v7044_v6 = vld [vmem:[#allocation6 + $0x5c0] sm:$0xf]  ;;  %v6789_v8 = vor.u32 %v7464_v5, %v6788_v3  ;;  %1705 = vmatpush.bf16.msra.mxu0 %v6533_v4  ;;  %1972 = vmatpush.bf16.msra.mxu3 %v6537_v13  ;;  %v6505_v26 = vor.u32 %v7388_v21, %v6502_v23  ;;  %v7380_v32 = vld [vmem:[#allocation6 + $0x144] sm:$0xf]  ;;  %s6190_s27 = scalar_lea.sflag [#allocation5], %s8900_s13  ;;  %s8686_s24 = sshra.s32 %s6205_s26, 4  ;;  %s8687_s24 = int_to_ptr.hbm [resolvable:$true] %s8686_s24 }
  0x40   : > { %v7528_v7 = vld [vmem:[#allocation6 + $0x5dc] sm:$0xf0]  ;;  %v6470_v33 = vld [vmem:[#allocation6 + $0x160] sm:$0xf0]  ;;  %s8688_s22 = scalar_lea.hbm %s8687_s24, 2  ;;  %s8692_s1 = scalar_lea.hbm %s11937_s9, 4 }
  0x41   : > { %v7045_v9 = vor.u32 %v7528_v7, %v7044_v6  ;;  %v6500_v12 = vld [vmem:[#allocation6 + $0x180] sm:$0xf]  ;;  %1794 = vmatpush.bf16.msra.mxu1 %v6789_v8  ;;  %v6473_v39 = vor.u32 %v7380_v32, %v6470_v33  ;;  %v7372_v43 = vld [vmem:[#allocation6 + $0x104] sm:$0xf]  ;;  %v392_v32 = vld [vmem:[%s8904_s3 + $0x8] sm:$0xff]  ;;  %p8689_p1 = scmp.ne.s32.totalorder %s8687_s24, %s8688_s22  ;;  %p8693_p11 = scmp.lt.s32.totalorder %s8687_s24, %s11937_s9 }
  0x42   : > { %v7392_v14 = vld [vmem:[#allocation6 + $0x19c] sm:$0xf0]  ;;  %v6438_v44 = vld [vmem:[#allocation6 + $0x120] sm:$0xf0]  ;;  %p8694_p9 = scmp.lt.s32.totalorder %s8692_s1, %s8688_s22 }
  0x43   : > { %v6756_v15 = vld [vmem:[#allocation6 + $0x380] sm:$0xf]  ;;  %1883 = vmatpush.bf16.msra.mxu2 %v7045_v9  ;;  %v6501_v17 = vor.u32 %v7392_v14, %v6500_v12  ;;  %1973 = vmatpush.bf16.msra.mxu3 %v6505_v26  ;;  %v6441_v51 = vor.u32 %v7372_v43, %v6438_v44  ;;  %v7364_v55 = vld [vmem:[#allocation6 + $0xc4] sm:$0xf]  ;;  %v400_v43 = vld [vmem:[%s8904_s3 + $0x48] sm:$0xff]  ;;  %p8690_p4 = pnand %p8689_p1, %p8870_p3 }
  0x44   : > { %v7456_v16 = vld [vmem:[#allocation6 + $0x39c] sm:$0xf0]  ;;  %v6406_v56 = vld [vmem:[#allocation6 + $0xe0] sm:$0xf0]  ;;  %v398_v44 = vld [vmem:[%s8904_s3 + $0x38] sm:$0xff]  ;;  %p8695_p2 = por %p8694_p9, %p8693_p11 }
  0x45   : > { %v6757_v18 = vor.u32 %v7456_v16, %v6756_v15  ;;  %v7012_v19 = vld [vmem:[#allocation6 + $0x580] sm:$0xf]  ;;  %1706 = vmatpush.bf16.msra.mxu0 %v6501_v17  ;;  %v6409_v63 = vor.u32 %v7364_v55, %v6406_v56  ;;  %v7356_v3 = vld [vmem:[#allocation6 + $0x84] sm:$0xf]  ;;  %v405_v55 = vld [vmem:[%s8904_s3 + $0x70] sm:$0xff]  ;;  %p8691_p8 = pneg %p8690_p4 }
  0x46   : > { %v7520_v20 = vld [vmem:[#allocation6 + $0x59c] sm:$0xf0]  ;;  %v6374_v4 = vld [vmem:[#allocation6 + $0xa0] sm:$0xf0]  ;;  %v408_v56 = vld [vmem:[%s8904_s3 + $0x88] sm:$0xff] }
  0x47   : > { %v7013_v22 = vor.u32 %v7520_v20, %v7012_v19  ;;  %v6468_v24 = vld [vmem:[#allocation6 + $0x140] sm:$0xf]  ;;  %1795 = vmatpush.bf16.msra.mxu1 %v6757_v18  ;;  %1974 = vmatpush.bf16.msra.mxu3 %v6473_v39  ;;  %v6377_v11 = vor.u32 %v7356_v3, %v6374_v4  ;;  %v7348_v15 = vld [vmem:[#allocation6 + $0x44] sm:$0xf]  ;;  %p8696_p10 = pnand %p8695_p2, %p8691_p8 }
  0x48   : > { %v7384_v25 = vld [vmem:[#allocation6 + $0x15c] sm:$0xf0]  ;;  %v6342_v16 = vld [vmem:[#allocation6 + $0x60] sm:$0xf0] }
  0x49   : > { %v6724_v27 = vld [vmem:[#allocation6 + $0x340] sm:$0xf]  ;;  %v6469_v30 = vor.u32 %v7384_v25, %v6468_v24  ;;  %1884 = vmatpush.bf16.msra.mxu2 %v7013_v22  ;;  %v6345_v23 = vor.u32 %v7348_v15, %v6342_v16  ;;  %v7401_v15 = vld [vmem:[#allocation6 + $0x1e4] sm:$0xf0] }
  0x4a   : > { %v7448_v28 = vld [vmem:[#allocation6 + $0x35c] sm:$0xf0]  ;;  %v6796_v16 = vld [vmem:[#allocation6 + $0x3c8] sm:$0xf] }
  0x4b   : > { %v6980_v29 = vld [vmem:[#allocation6 + $0x540] sm:$0xf]  ;;  %v6725_v34 = vor.u32 %v7448_v28, %v6724_v27  ;;  %1707 = vmatpush.bf16.msra.mxu0 %v6469_v30  ;;  %1975 = vmatpush.bf16.msra.mxu3 %v6441_v51  ;;  %v7340_v27 = vld [vmem:[#allocation6 + $0x4] sm:$0xf] }
  0x4c   : > { %v7512_v31 = vld [vmem:[#allocation6 + $0x55c] sm:$0xf0]  ;;  %v6310_v28 = vld [vmem:[#allocation6 + $0x20] sm:$0xf0] }
  0x4d   : > { %v6981_v35 = vor.u32 %v7512_v31, %v6980_v29  ;;  %v6436_v36 = vld [vmem:[#allocation6 + $0x100] sm:$0xf]  ;;  %1796 = vmatpush.bf16.msra.mxu1 %v6725_v34  ;;  %v394_v31 = vld [vmem:[%s8904_s3 + $0x18] sm:$0xff] }
  0x4e   : > { %v7376_v37 = vld [vmem:[#allocation6 + $0x11c] sm:$0xf0] }
  0x4f   : > { %v6692_v38 = vld [vmem:[#allocation6 + $0x300] sm:$0xf]  ;;  %v6437_v45 = vor.u32 %v7376_v37, %v6436_v36  ;;  %1885 = vmatpush.bf16.msra.mxu2 %v6981_v35  ;;  %1976 = vmatpush.bf16.msra.mxu3 %v6409_v63  ;;  %v393_v36 = vld [vmem:[%s8904_s3 + $0x10] sm:$0xff]  ;;  %v396_v37 = vld [vmem:[%s8904_s3 + $0x28] sm:$0xff] }
  0x50   : > { %v7440_v40 = vld [vmem:[#allocation6 + $0x31c] sm:$0xf0]  ;;  %v413_v63 = vld [vmem:[%s8904_s3 + $0xb0] sm:$0xff] }
  0x51   : > { %v6948_v41 = vld [vmem:[#allocation6 + $0x500] sm:$0xf]  ;;  %v6693_v46 = vor.u32 %v7440_v40, %v6692_v38  ;;  %1708 = vmatpush.bf16.msra.mxu0 %v6437_v45  ;;  %v6313_v38 = vor.u32 %v7340_v27, %v6310_v28  ;;  %v401_v45 = vld [vmem:[%s8904_s3 + $0x50] sm:$0xff]  ;;  %v426_v28 = vld [vmem:[%s8904_s3 + $0x118] sm:$0xff] }
  0x52   : > { %v7504_v42 = vld [vmem:[#allocation6 + $0x51c] sm:$0xf0] }
  0x53   : > { %v6949_v47 = vor.u32 %v7504_v42, %v6948_v41  ;;  %v6404_v48 = vld [vmem:[#allocation6 + $0xc0] sm:$0xf]  ;;  %1797 = vmatpush.bf16.msra.mxu1 %v6693_v46  ;;  %1977 = vmatpush.bf16.msra.mxu3 %v6377_v11  ;;  %v8924_v41 = vpack.c.bf16 %v396_v37, %v393_v36  ;;  %v397_v42 = vld [vmem:[%s8904_s3 + $0x30] sm:$0xff]  ;;  %v430_v36 = vld [vmem:[%s8904_s3 + $0x138] sm:$0xff] }
  0x54   : > { %v7368_v49 = vld [vmem:[#allocation6 + $0xdc] sm:$0xf0]  ;;  %v428_v37 = vld [vmem:[%s8904_s3 + $0x128] sm:$0xff] }
  0x55   : > { %v6660_v50 = vld [vmem:[#allocation6 + $0x2c0] sm:$0xf]  ;;  %v6405_v57 = vor.u32 %v7368_v49, %v6404_v48  ;;  %1886 = vmatpush.bf16.msra.mxu2 %v6949_v47  ;;  %v402_v47 = vld [vmem:[%s8904_s3 + $0x58] sm:$0xff]  ;;  %v8936_v48 = vpack.c.bf16 %v400_v43, %v397_v42  ;;  %v8938_v49 = vpack.c.bf16 %v401_v45, %v398_v44  ;;  %v429_v42 = vld [vmem:[%s8904_s3 + $0x130] sm:$0xff] }
  0x56   : > { %v7432_v52 = vld [vmem:[#allocation6 + $0x2dc] sm:$0xf0]  ;;  %v432_v43 = vld [vmem:[%s8904_s3 + $0x148] sm:$0xff] }
  0x57   : > { %v6916_v53 = vld [vmem:[#allocation6 + $0x4c0] sm:$0xf]  ;;  %v6661_v58 = vor.u32 %v7432_v52, %v6660_v50  ;;  %1709 = vmatpush.bf16.msra.mxu0 %v6405_v57  ;;  %1978 = vmatpush.bf16.msra.mxu3 %v6345_v23  ;;  %12150 = vst [vmem:[#allocation15_spill] sm:$0xff] %v8936_v48  ;;  %v406_v52 = vld [vmem:[%s8904_s3 + $0x78] sm:$0xff]  ;;  %v421_v23 = vld [vmem:[%s8904_s3 + $0xf0] sm:$0xff] }
  0x58   : > { %v7496_v54 = vld [vmem:[#allocation6 + $0x4dc] sm:$0xf0]  ;;  %12151 = vst [vmem:[#allocation16_spill] sm:$0xff] %v8938_v49 }
  0x59   : > { %v6917_v59 = vor.u32 %v7496_v54, %v6916_v53  ;;  %v6372_v60 = vld [vmem:[#allocation6 + $0x80] sm:$0xf]  ;;  %1798 = vmatpush.bf16.msra.mxu1 %v6661_v58  ;;  %v404_v53 = vld [vmem:[%s8904_s3 + $0x68] sm:$0xff] }
  0x5a   : > { %v7360_v61 = vld [vmem:[#allocation6 + $0x9c] sm:$0xf0] }
  0x5b   : > { %v6628_v62 = vld [vmem:[#allocation6 + $0x280] sm:$0xf]  ;;  %v6373_v5 = vor.u32 %v7360_v61, %v6372_v60  ;;  %1887 = vmatpush.bf16.msra.mxu2 %v6917_v59  ;;  %1979 = vmatpush.bf16.msra.mxu3 %v6313_v38  ;;  %v8956_v59 = vpack.c.bf16 %v408_v56, %v405_v55  ;;  %v409_v60 = vld [vmem:[%s8904_s3 + $0x90] sm:$0xff]  ;;  %v412_v61 = vld [vmem:[%s8904_s3 + $0xa8] sm:$0xff] }
  0x5c   : > { %v7424_v0 = vld [vmem:[#allocation6 + $0x29c] sm:$0xf0]  ;;  %v7516_v56 = vld [vmem:[#allocation6 + $0x584] sm:$0xf] }
  0x5d   : > { %v6884_v1 = vld [vmem:[#allocation6 + $0x480] sm:$0xf]  ;;  %v6629_v6 = vor.u32 %v7424_v0, %v6628_v62  ;;  %1710 = vmatpush.bf16.msra.mxu0 %v6373_v5  ;;  %12155 = vst [vmem:[#allocation20_spill] sm:$0xff] %v8956_v59  ;;  %v410_v62 = vld [vmem:[%s8904_s3 + $0x98] sm:$0xff] }
  0x5e   : > { %v7488_v2 = vld [vmem:[#allocation6 + $0x49c] sm:$0xf0]  ;;  %v8970_v3 = vpack.c.bf16 %v413_v63, %v410_v62  ;;  %v436_v62 = vld [vmem:[%s8904_s3 + $0x168] sm:$0xff]  ;;  %v434_v63 = vld [vmem:[%s8904_s3 + $0x158] sm:$0xff] }
  0x5f   : > { %v6885_v7 = vor.u32 %v7488_v2, %v6884_v1  ;;  %v6340_v8 = vld [vmem:[#allocation6 + $0x40] sm:$0xf]  ;;  %1799 = vmatpush.bf16.msra.mxu1 %v6629_v6  ;;  %v414_v1 = vld [vmem:[%s8904_s3 + $0xb8] sm:$0xff]  ;;  %v8968_v2 = vpack.c.bf16 %v412_v61, %v409_v60  ;;  %v7014_v60 = vld [vmem:[#allocation6 + $0x5a0] sm:$0xf0] }
  0x60   : > { %v7352_v9 = vld [vmem:[#allocation6 + $0x5c] sm:$0xf0]  ;;  %12157 = vst [vmem:[#allocation22_spill] sm:$0xff] %v8970_v3  ;;  %v418_v6 = vld [vmem:[%s8904_s3 + $0xd8] sm:$0xff]  ;;  %v433_v61 = vld [vmem:[%s8904_s3 + $0x150] sm:$0xff] }
  0x61   : > { %v6596_v10 = vld [vmem:[#allocation6 + $0x240] sm:$0xf]  ;;  %v6341_v17 = vor.u32 %v7352_v9, %v6340_v8  ;;  %1888 = vmatpush.bf16.msra.mxu2 %v6885_v7  ;;  %12156 = vst [vmem:[#allocation21_spill] sm:$0xff] %v8968_v2  ;;  %v416_v7 = vld [vmem:[%s8904_s3 + $0xc8] sm:$0xff]  ;;  %v417_v9 = vld [vmem:[%s8904_s3 + $0xd0] sm:$0xff] }
  0x62   : > { %v7416_v12 = vld [vmem:[#allocation6 + $0x25c] sm:$0xf0] }
  0x63   : > { %v6852_v13 = vld [vmem:[#allocation6 + $0x440] sm:$0xf]  ;;  %v6597_v18 = vor.u32 %v7416_v12, %v6596_v10  ;;  %1711 = vmatpush.bf16.msra.mxu0 %v6341_v17  ;;  %v420_v10 = vld [vmem:[%s8904_s3 + $0xe8] sm:$0xff] }
  0x64   : > { %v7480_v14 = vld [vmem:[#allocation6 + $0x45c] sm:$0xf0] }
  0x65   : > { %v6853_v19 = vor.u32 %v7480_v14, %v6852_v13  ;;  %v6308_v20 = vld [vmem:[#allocation6] sm:$0xf]  ;;  %1800 = vmatpush.bf16.msra.mxu1 %v6597_v18  ;;  %v8988_v13 = vpack.c.bf16 %v420_v10, %v417_v9  ;;  %v6540_v14 = vld [vmem:[#allocation6 + $0x1c8] sm:$0xf]  ;;  %v7452_v10 = vld [vmem:[#allocation6 + $0x384] sm:$0xf] }
  0x66   : > { %v7344_v21 = vld [vmem:[#allocation6 + $0x1c] sm:$0xf0]  ;;  %v6541_v17 = vor.u32 %v7401_v15, %v6540_v14  ;;  %v7465_v18 = vld [vmem:[#allocation6 + $0x3e4] sm:$0xf0]  ;;  %v6758_v14 = vld [vmem:[#allocation6 + $0x3a0] sm:$0xf0] }
  0x67   : > { %v6564_v22 = vld [vmem:[#allocation6 + $0x200] sm:$0xf]  ;;  %v6309_v29 = vor.u32 %v7344_v21, %v6308_v20  ;;  %1889 = vmatpush.bf16.msra.mxu2 %v6853_v19  ;;  %12161 = vst [vmem:[#allocation26_spill] sm:$0xff] %v8988_v13  ;;  %v7524_v19 = vld [vmem:[#allocation6 + $0x5c4] sm:$0xf]  ;;  %v6797_v21 = vor.u32 %v7465_v18, %v6796_v16  ;;  %v6761_v15 = vor.u32 %v7452_v10, %v6758_v14  ;;  %v442_v18 = vld [vmem:[%s8904_s3 + $0x198] sm:$0xff] }
  0x68   : > { %v7408_v24 = vld [vmem:[#allocation6 + $0x21c] sm:$0xf0]  ;;  %v7046_v20 = vld [vmem:[#allocation6 + $0x5e0] sm:$0xf0] }
  0x69   : > { %v6820_v25 = vld [vmem:[#allocation6 + $0x400] sm:$0xf]  ;;  %v6565_v33 = vor.u32 %v7408_v24, %v6564_v22  ;;  %1712 = vmatpush.bf16.msra.mxu0 %v6309_v29  ;;  %v7049_v22 = vor.u32 %v7524_v19, %v7046_v20  ;;  %2328 = vmatpush.bf16.msrb.mxu3 %v6797_v21  ;;  %v424_v24 = vld [vmem:[%s8904_s3 + $0x108] sm:$0xff] }
  0x6a   : > { %v7472_v26 = vld [vmem:[#allocation6 + $0x41c] sm:$0xf0]  ;;  %v9000_v29 = vpack.c.bf16 %v424_v24, %v421_v23  ;;  %v440_v19 = vld [vmem:[%s8904_s3 + $0x188] sm:$0xff] }
  0x6b   : > { %v391_v30 = vld [vmem:[%s8904_s3] sm:$0xff]  ;;  %v6821_v34 = vor.u32 %v7472_v26, %v6820_v25  ;;  %1801 = vmatpush.bf16.msra.mxu1 %v6565_v33  ;;  %v422_v25 = vld [vmem:[%s8904_s3 + $0xf8] sm:$0xff]  ;;  %v425_v26 = vld [vmem:[%s8904_s3 + $0x110] sm:$0xff] }
  0x6c   : > { %v395_v35 = vld [vmem:[%s8904_s3 + $0x20] sm:$0xff]  ;;  %v8920_v39 = vpack.c.bf16 %v394_v31, %v391_v30  ;;  %12162 = vst [vmem:[#allocation27_spill] sm:$0xff] %v9000_v29  ;;  %v9002_v30 = vpack.c.bf16 %v425_v26, %v422_v25  ;;  %v444_v23 = vld [vmem:[%s8904_s3 + $0x1a8] sm:$0xff] }
  0x6d   : > { %v8922_v40 = vpack.c.bf16 %v395_v35, %v392_v32  ;;  %1890 = vmatpush.bf16.msra.mxu2 %v6821_v34  ;;  %v399_v46 = vld [vmem:[%s8904_s3 + $0x40] sm:$0xff] }
  0x6e   : > { %1713 = vmatmul.bf16.vlgmr.msra.gmra.mxu0 %v8920_v39  ;;  %1980 = vmatmul.bf16.vlgmr.msra.gmra.mxu3 %v8920_v39  ;;  %v8940_v50 = vpack.c.bf16 %v402_v47, %v399_v46  ;;  %v403_v51 = vld [vmem:[%s8904_s3 + $0x60] sm:$0xff]  ;;  %12163 = vst [vmem:[#allocation28_spill] sm:$0xff] %v9002_v30  ;;  %v9020_v46 = vpack.c.bf16 %v432_v43, %v429_v42  ;;  %v6508_v47 = vld [vmem:[#allocation6 + $0x188] sm:$0xf] }
  0x6f   : > { %1802 = vmatmul.bf16.vlgmr.msra.gmra.mxu1 %v8922_v40  ;;  %v407_v54 = vld [vmem:[%s8904_s3 + $0x80] sm:$0xff]  ;;  %v8952_v57 = vpack.c.bf16 %v406_v52, %v403_v51  ;;  %v7393_v51 = vld [vmem:[#allocation6 + $0x1a4] sm:$0xf0] }
  0x70   : > { %1891 = vmatmul.bf16.vlgmr.msra.gmra.mxu2 %v8924_v41  ;;  %12152 = vst [vmem:[#allocation17_spill] sm:$0xff] %v8940_v50  ;;  %v8954_v58 = vpack.c.bf16 %v407_v54, %v404_v53  ;;  %v411_v0 = vld [vmem:[%s8904_s3 + $0xa0] sm:$0xff]  ;;  %2150 = vmatpush.bf16.msrb.mxu1 %v7049_v22  ;;  %v6509_v52 = vor.u32 %v7393_v51, %v6508_v47  ;;  %v6764_v53 = vld [vmem:[#allocation6 + $0x388] sm:$0xf]  ;;  %v441_v22 = vld [vmem:[%s8904_s3 + $0x190] sm:$0xff] }
  0x71   : > { %12153 = vst [vmem:[#allocation18_spill] sm:$0xff] %v8952_v57  ;;  %v8972_v4 = vpack.c.bf16 %v414_v1, %v411_v0  ;;  %v415_v5 = vld [vmem:[%s8904_s3 + $0xc0] sm:$0xff]  ;;  %2239 = vmatpush.bf16.msrb.mxu2 %v6541_v17  ;;  %v7457_v54 = vld [vmem:[#allocation6 + $0x3a4] sm:$0xf0]  ;;  %v7017_v0 = vor.u32 %v7516_v56, %v7014_v60  ;;  %v437_v1 = vld [vmem:[%s8904_s3 + $0x170] sm:$0xff] }
  0x72   : > { %12154 = vst [vmem:[#allocation19_spill] sm:$0xff] %v8954_v58  ;;  %v419_v8 = vld [vmem:[%s8904_s3 + $0xe0] sm:$0xff]  ;;  %v8984_v11 = vpack.c.bf16 %v418_v6, %v415_v5  ;;  %v6765_v55 = vor.u32 %v7457_v54, %v6764_v53  ;;  %v438_v6 = vld [vmem:[%s8904_s3 + $0x178] sm:$0xff]  ;;  %v7449_v53 = vld [vmem:[#allocation6 + $0x364] sm:$0xf0] }
  0x73   : > { %12158 = vst [vmem:[#allocation23_spill] sm:$0xff] %v8972_v4  ;;  %v8986_v12 = vpack.c.bf16 %v419_v8, %v416_v7  ;;  %v423_v27 = vld [vmem:[%s8904_s3 + $0x100] sm:$0xff]  ;;  %v9032_v7 = vpack.c.bf16 %v436_v62, %v433_v61  ;;  %v9034_v8 = vpack.c.bf16 %v437_v1, %v434_v63  ;;  %v445_v61 = vld [vmem:[%s8904_s3 + $0x1b0] sm:$0xff]  ;;  %v448_v62 = vld [vmem:[%s8904_s3 + $0x1c8] sm:$0xff] }
  0x74   : > { %12159 = vst [vmem:[#allocation24_spill] sm:$0xff] %v8984_v11  ;;  %v9004_v31 = vpack.c.bf16 %v426_v28, %v423_v27  ;;  %v7460_v32 = vld [vmem:[#allocation6 + $0x3c4] sm:$0xf]  ;;  %2329 = vmatpush.bf16.msrb.mxu3 %v6765_v55  ;;  %2151 = vmatpush.bf16.msrb.mxu1 %v7017_v0  ;;  %v9060_v27 = vpack.c.bf16 %v444_v23, %v441_v22  ;;  %v446_v63 = vld [vmem:[%s8904_s3 + $0x1b8] sm:$0xff]  ;;  %v449_v1 = vld [vmem:[%s8904_s3 + $0x1d0] sm:$0xff] }
  0x75   : > { %12160 = vst [vmem:[#allocation25_spill] sm:$0xff] %v8986_v12  ;;  %v6790_v33 = vld [vmem:[#allocation6 + $0x3e0] sm:$0xf0]  ;;  %2240 = vmatpush.bf16.msrb.mxu2 %v6509_v52  ;;  %v6732_v52 = vld [vmem:[#allocation6 + $0x348] sm:$0xf]  ;;  %v9078_v14 = vpack.c.bf16 %v448_v62, %v445_v61 }
  0x76   : > { %12164 = vst [vmem:[#allocation29_spill] sm:$0xff] %v9004_v31  ;;  %v6793_v34 = vor.u32 %v7460_v32, %v6790_v33  ;;  %v427_v35 = vld [vmem:[%s8904_s3 + $0x120] sm:$0xff]  ;;  %v6733_v55 = vor.u32 %v7449_v53, %v6732_v52  ;;  %v454_v53 = vld [vmem:[%s8904_s3 + $0x1f8] sm:$0xff] }
  0x77   : > { %v431_v38 = vld [vmem:[%s8904_s3 + $0x140] sm:$0xff]  ;;  %v9016_v44 = vpack.c.bf16 %v430_v36, %v427_v35  ;;  %12167 = vst [vmem:[#allocation32_spill] sm:$0xff] %v9020_v46  ;;  %v7385_v35 = vld [vmem:[#allocation6 + $0x164] sm:$0xf0] }
  0x78   : > { %2061 = vmatpush.bf16.msrb.mxu0 %v6793_v34  ;;  %v9018_v45 = vpack.c.bf16 %v431_v38, %v428_v37  ;;  %v435_v5 = vld [vmem:[%s8904_s3 + $0x160] sm:$0xff]  ;;  %12168 = vst [vmem:[#allocation33_spill] sm:$0xff] %v9032_v7  ;;  %v6476_v34 = vld [vmem:[#allocation6 + $0x148] sm:$0xf]  ;;  %2330 = vmatpush.bf16.msrb.mxu3 %v6733_v55 }
  0x79   : > { %12165 = vst [vmem:[#allocation30_spill] sm:$0xff] %v9016_v44  ;;  %v9036_v9 = vpack.c.bf16 %v438_v6, %v435_v5  ;;  %v9045_v16 = vld [vmem:[%s11930_s2] sm:$0xff]  ;;  %v6477_v36 = vor.u32 %v7385_v35, %v6476_v34 }
  0x7a   : > { %12166 = vst [vmem:[#allocation31_spill] sm:$0xff] %v9018_v45  ;;  %v439_v17 = vld [vmem:[%s8904_s3 + $0x180] sm:$0xff]  ;;  %v9051_v20 = vperm.slane %v9045_v16, 0  ;;  %v450_v6 = vld [vmem:[%s8904_s3 + $0x1d8] sm:$0xff] }
  0x7b   : > { %12169 = vst [vmem:[#allocation34_spill] sm:$0xff] %v9034_v8  ;;  %v443_v21 = vld [vmem:[%s8904_s3 + $0x1a0] sm:$0xff]  ;;  %v9056_v24 = vpack.c.bf16 %v442_v18, %v439_v17  ;;  %2241 = vmatpush.bf16.msrb.mxu2 %v6477_v36 }
  0x7c   : > { %12170 = vst [vmem:[#allocation35_spill] sm:$0xff] %v9036_v9  ;;  %2062 = vmatpush.bf16.msrb.mxu0 %v6761_v15  ;;  %v9058_v26 = vpack.c.bf16 %v443_v21, %v440_v19  ;;  %v7508_v56 = vld [vmem:[#allocation6 + $0x544] sm:$0xf]  ;;  %v9084_v19 = vpack.c.bf16 %v449_v1, %v446_v63 }
  0x7d   : > { %12171 = vst [vmem:[#allocation36_spill] sm:$0xff] %v9056_v24  ;;  %v6982_v60 = vld [vmem:[#allocation6 + $0x560] sm:$0xf0] }
  0x7e   : > { %1718 = vmatmul.bf16.gmra.mxu0 %v8936_v48  ;;  %1985 = vmatmul.bf16.gmra.mxu3 %v8936_v48  ;;  %12172 = vst [vmem:[#allocation37_spill] sm:$0xff] %v9058_v26  ;;  %v6985_v0 = vor.u32 %v7508_v56, %v6982_v60  ;;  %v447_v5 = vld [vmem:[%s8904_s3 + $0x1c0] sm:$0xff]  ;;  %v453_v56 = vld [vmem:[%s8904_s3 + $0x1f0] sm:$0xff]  ;;  %v456_v60 = vld [vmem:[%s8904_s3 + $0x208] sm:$0xff] }
  0x7f   : > { %1807 = vmatmul.bf16.gmra.mxu1 %v8938_v49  ;;  %12173 = vst [vmem:[#allocation38_spill] sm:$0xff] %v9060_v27  ;;  %v9086_v21 = vpack.c.bf16 %v450_v6, %v447_v5  ;;  %v451_v52 = vld [vmem:[%s8904_s3 + $0x1e0] sm:$0xff]  ;;  %v9112_v6 = vpack.c.bf16 %v456_v60, %v453_v56  ;;  %v457_v60 = vld [vmem:[%s8904_s3 + $0x210] sm:$0xff] }
  0x80   : > { %1896 = vmatmul.bf16.gmra.mxu2 %v8940_v50  ;;  %2152 = vmatpush.bf16.msrb.mxu1 %v6985_v0  ;;  %12175 = vst [vmem:[#allocation40_spill] sm:$0xff] %v9078_v14  ;;  %v455_v55 = vld [vmem:[%s8904_s3 + $0x200] sm:$0xff]  ;;  %v9104_v62 = vpack.c.bf16 %v454_v53, %v451_v52  ;;  %v7441_v52 = vld [vmem:[#allocation6 + $0x324] sm:$0xf0] }
  0x81   : > { %12177 = vst [vmem:[#allocation42_spill] sm:$0xff] %v9084_v19  ;;  %v6950_v56 = vld [vmem:[#allocation6 + $0x520] sm:$0xf0] }
  0x82   : > { %12178 = vst [vmem:[#allocation43_spill] sm:$0xff] %v9086_v21 }
  0x83   : > { %12180 = vst [vmem:[#allocation45_spill] sm:$0xff] %v9104_v62 }
  0x84   : > { %12183 = vst [vmem:[#allocation48_spill] sm:$0xff] %v9112_v6 }
  0x8e   : > { %1723 = vmatmul.bf16.gmra.mxu0 %v8952_v57  ;;  %1990 = vmatmul.bf16.gmra.mxu3 %v8952_v57 }
  0x8f   : > { %1812 = vmatmul.bf16.gmra.mxu1 %v8954_v58 }
  0x90   : > { %1901 = vmatmul.bf16.gmra.mxu2 %v8956_v59 }
  0x9e   : > { %1728 = vmatmul.bf16.gmra.mxu0 %v8968_v2  ;;  %1995 = vmatmul.bf16.gmra.mxu3 %v8968_v2 }
  0x9f   : > { %1817 = vmatmul.bf16.gmra.mxu1 %v8970_v3 }
  0xa0   : > { %1906 = vmatmul.bf16.gmra.mxu2 %v8972_v4 }
  0xae   : > { %1733 = vmatmul.bf16.gmra.mxu0 %v8984_v11  ;;  %2000 = vmatmul.bf16.gmra.mxu3 %v8984_v11 }
  0xaf   : > { %1822 = vmatmul.bf16.gmra.mxu1 %v8986_v12 }
  0xb0   : > { %1911 = vmatmul.bf16.gmra.mxu2 %v8988_v13 }
  0xbe   : > { %1738 = vmatmul.bf16.gmra.mxu0 %v9000_v29  ;;  %2005 = vmatmul.bf16.gmra.mxu3 %v9000_v29 }
  0xbf   : > { %1827 = vmatmul.bf16.gmra.mxu1 %v9002_v30 }
  0xc0   : > { %1916 = vmatmul.bf16.gmra.mxu2 %v9004_v31 }
  0xce   : > { %1743 = vmatmul.bf16.gmra.mxu0 %v9016_v44  ;;  %2010 = vmatmul.bf16.gmra.mxu3 %v9016_v44 }
  0xcf   : > { %1832 = vmatmul.bf16.gmra.mxu1 %v9018_v45 }
  0xd0   : > { %1921 = vmatmul.bf16.gmra.mxu2 %v9020_v46 }
  0xde   : > { %1748 = vmatmul.bf16.gmra.mxu0 %v9032_v7  ;;  %2015 = vmatmul.bf16.gmra.mxu3 %v9032_v7 }
  0xdf   : > { %1837 = vmatmul.bf16.gmra.mxu1 %v9034_v8 }
  0xe0   : > { %1926 = vmatmul.bf16.gmra.mxu2 %v9036_v9 }
  0xeb   : > { %v1714_v25 = vpop.f32.mrf.mxu0 }
  0xec   : > { %v1715_v28 = vadd.f32 %v1714_v25, %v9051_v20  ;;  %v1803_v32 = vpop.f32.mrf.mxu1 }
  0xee   : > { %v1804_v33 = vadd.f32 %v1803_v32, %v1715_v28  ;;  %1753 = vmatmul.bf16.gmra.mxu0 %v9056_v24  ;;  %2020 = vmatmul.bf16.gmra.mxu3 %v9056_v24  ;;  %v7444_v28 = vld [vmem:[#allocation6 + $0x344] sm:$0xf] }
  0xef   : > { %1842 = vmatmul.bf16.gmra.mxu1 %v9058_v26  ;;  %v6726_v32 = vld [vmem:[#allocation6 + $0x360] sm:$0xf0] }
  0xf0   : > { %1931 = vmatmul.bf16.gmra.mxu2 %v9060_v27 }
  0xf1   : > { %v9069_v42 = vpop.f32.mrf.mxu3 }
  0xf3   : > { %v1892_v37 = vpop.f32.mrf.mxu2  ;;  %v1716_v43 = vpop.f32.mrf.mxu0 }
  0xf4   : > { %v9067_v38 = vadd.f32 %v1892_v37, %v1804_v33  ;;  %v1717_v47 = vadd.f32 %v1716_v43, %v9051_v20  ;;  %v1805_v51 = vpop.f32.mrf.mxu1  ;;  %v6729_v33 = vor.u32 %v7444_v28, %v6726_v32 }
  0xf6   : > { %12174 = vst [vmem:[#allocation39_spill] sm:$0xff] %v9067_v38  ;;  %v1806_v54 = vadd.f32 %v1805_v51, %v1717_v47  ;;  %2063 = vmatpush.bf16.msrb.mxu0 %v6729_v33  ;;  %v7492_v38 = vld [vmem:[#allocation6 + $0x4c4] sm:$0xf] }
  0xf9   : > { %v9082_v17 = vpop.f32.mrf.mxu3 }
  0xfb   : > { %v1894_v10 = vpop.f32.mrf.mxu2  ;;  %v1719_v18 = vpop.f32.mrf.mxu0 }
  0xfc   : > { %v9080_v15 = vadd.f32 %v1894_v10, %v1806_v54  ;;  %v1720_v22 = vadd.f32 %v1719_v18, %v9051_v20  ;;  %v1808_v23 = vpop.f32.mrf.mxu1  ;;  %v452_v54 = vld [vmem:[%s8904_s3 + $0x1e8] sm:$0xff] }
  0xfd   : > { %v9110_v5 = vpack.c.bf16 %v455_v55, %v452_v54  ;;  %v7500_v55 = vld [vmem:[#allocation6 + $0x504] sm:$0xf] }
  0xfe   : > { %12176 = vst [vmem:[#allocation41_spill] sm:$0xff] %v9080_v15  ;;  %v1809_v25 = vadd.f32 %v1808_v23, %v1720_v22  ;;  %1758 = vmatmul.bf16.gmra.mxu0 %v9078_v14  ;;  %2025 = vmatmul.bf16.gmra.mxu3 %v9078_v14  ;;  %v6444_v23 = vld [vmem:[#allocation6 + $0x108] sm:$0xf] }
  0xff   : > { %1847 = vmatmul.bf16.gmra.mxu1 %v9084_v19  ;;  %12182 = vst [vmem:[#allocation47_spill] sm:$0xff] %v9110_v5 }
 0x100   : > { %1936 = vmatmul.bf16.gmra.mxu2 %v9086_v21 }
 0x101   : > { %v9095_v36 = vpop.f32.mrf.mxu3 }
 0x103   : > { %v1897_v34 = vpop.f32.mrf.mxu2  ;;  %v1721_v37 = vpop.f32.mrf.mxu0 }
 0x104   : > { %v9093_v35 = vadd.f32 %v1897_v34, %v1809_v25  ;;  %v1722_v43 = vadd.f32 %v1721_v37, %v9051_v20  ;;  %v1810_v47 = vpop.f32.mrf.mxu1  ;;  %v7377_v25 = vld [vmem:[#allocation6 + $0x124] sm:$0xf0] }
 0x105   : > { %v6445_v28 = vor.u32 %v7377_v25, %v6444_v23  ;;  %v462_v23 = vld [vmem:[%s8904_s3 + $0x238] sm:$0xff] }
 0x106   : > { %12179 = vst [vmem:[#allocation44_spill] sm:$0xff] %v9093_v35  ;;  %v1811_v51 = vadd.f32 %v1810_v47, %v1722_v43 }
 0x107   : > { %2242 = vmatpush.bf16.msrb.mxu2 %v6445_v28 }
 0x109   : > { %v9108_v0 = vpop.f32.mrf.mxu3 }
 0x10b   : > { %v1899_v61 = vpop.f32.mrf.mxu2  ;;  %v1724_v1 = vpop.f32.mrf.mxu0 }
 0x10c   : > { %v9106_v63 = vadd.f32 %v1899_v61, %v1811_v51  ;;  %v1725_v10 = vadd.f32 %v1724_v1, %v9051_v20  ;;  %v1813_v18 = vpop.f32.mrf.mxu1  ;;  %v6700_v51 = vld [vmem:[#allocation6 + $0x308] sm:$0xf]  ;;  %v458_v1 = vld [vmem:[%s8904_s3 + $0x218] sm:$0xff] }
 0x10d   : > { %v6701_v54 = vor.u32 %v7441_v52, %v6700_v51  ;;  %v460_v61 = vld [vmem:[%s8904_s3 + $0x228] sm:$0xff] }
 0x10e   : > { %12181 = vst [vmem:[#allocation46_spill] sm:$0xff] %v9106_v63  ;;  %v1814_v22 = vadd.f32 %v1813_v18, %v1725_v10  ;;  %1763 = vmatmul.bf16.gmra.mxu0 %v9104_v62  ;;  %2030 = vmatmul.bf16.gmra.mxu3 %v9104_v62  ;;  %v6953_v10 = vor.u32 %v7500_v55, %v6950_v56  ;;  %v461_v18 = vld [vmem:[%s8904_s3 + $0x230] sm:$0xff]  ;;  %v468_v63 = vld [vmem:[%s8904_s3 + $0x268] sm:$0xff] }
 0x10f   : > { %1852 = vmatmul.bf16.gmra.mxu1 %v9110_v5  ;;  %2331 = vmatpush.bf16.msrb.mxu3 %v6701_v54  ;;  %v9130_v28 = vpack.c.bf16 %v460_v61, %v457_v60  ;;  %v6694_v54 = vld [vmem:[#allocation6 + $0x320] sm:$0xf0] }
 0x110   : > { %1941 = vmatmul.bf16.gmra.mxu2 %v9112_v6  ;;  %2153 = vmatpush.bf16.msrb.mxu1 %v6953_v10  ;;  %v7468_v6 = vld [vmem:[#allocation6 + $0x404] sm:$0xf] }
 0x111   : > { %v9121_v34 = vpop.f32.mrf.mxu3  ;;  %12185 = vst [vmem:[#allocation50_spill] sm:$0xff] %v9130_v28 }
 0x113   : > { %v1902_v32 = vpop.f32.mrf.mxu2  ;;  %v1726_v37 = vpop.f32.mrf.mxu0 }
 0x114   : > { %v9119_v33 = vadd.f32 %v1902_v32, %v1814_v22  ;;  %v1727_v43 = vadd.f32 %v1726_v37, %v9051_v20  ;;  %v1815_v47 = vpop.f32.mrf.mxu1  ;;  %v459_v22 = vld [vmem:[%s8904_s3 + $0x220] sm:$0xff] }
 0x115   : > { %v9138_v51 = vpack.c.bf16 %v462_v23, %v459_v22 }
 0x116   : > { %12184 = vst [vmem:[#allocation49_spill] sm:$0xff] %v9119_v33  ;;  %v1816_v53 = vadd.f32 %v1815_v47, %v1727_v43  ;;  %v9136_v47 = vpack.c.bf16 %v461_v18, %v458_v1  ;;  %v465_v33 = vld [vmem:[%s8904_s3 + $0x250] sm:$0xff] }
 0x117   : > { %12189 = vst [vmem:[#allocation54_spill] sm:$0xff] %v9138_v51 }
 0x118   : > { %12188 = vst [vmem:[#allocation53_spill] sm:$0xff] %v9136_v47 }
 0x119   : > { %v9134_v37 = vpop.f32.mrf.mxu3 }
 0x11a   : > { %12187 = vst [vmem:[#allocation52_spill] sm:$0xff] %v9134_v37 }
 0x11b   : > { %v1904_v25 = vpop.f32.mrf.mxu2  ;;  %v1729_v43 = vpop.f32.mrf.mxu0 }
 0x11c   : > { %v9132_v32 = vadd.f32 %v1904_v25, %v1816_v53  ;;  %v1730_v52 = vadd.f32 %v1729_v43, %v9051_v20  ;;  %v1818_v55 = vpop.f32.mrf.mxu1  ;;  %v7436_v53 = vld [vmem:[#allocation6 + $0x304] sm:$0xf] }
 0x11d   : > { %v6697_v60 = vor.u32 %v7436_v53, %v6694_v54  ;;  %v463_v43 = vld [vmem:[%s8904_s3 + $0x240] sm:$0xff] }
 0x11e   : > { %12186 = vst [vmem:[#allocation51_spill] sm:$0xff] %v9132_v32  ;;  %v1819_v56 = vadd.f32 %v1818_v55, %v1730_v52  ;;  %1768 = vmatmul.bf16.gmra.mxu0 %v9130_v28  ;;  %2035 = vmatmul.bf16.gmra.mxu3 %v9130_v28  ;;  %v466_v52 = vld [vmem:[%s8904_s3 + $0x258] sm:$0xff]  ;;  %v464_v55 = vld [vmem:[%s8904_s3 + $0x248] sm:$0xff]  ;;  %v467_v32 = vld [vmem:[%s8904_s3 + $0x260] sm:$0xff] }
 0x11f   : > { %1857 = vmatmul.bf16.gmra.mxu1 %v9136_v47  ;;  %2064 = vmatpush.bf16.msrb.mxu0 %v6697_v60  ;;  %v9156_v15 = vpack.c.bf16 %v466_v52, %v463_v43  ;;  %v9164_v60 = vpack.c.bf16 %v468_v63, %v465_v33  ;;  %v479_v28 = vld [vmem:[%s8904_s3 + $0x2c0] sm:$0xff] }
 0x120   : > { %1946 = vmatmul.bf16.gmra.mxu2 %v9138_v51  ;;  %v477_v51 = vld [vmem:[%s8904_s3 + $0x2b0] sm:$0xff]  ;;  %v7476_v47 = vld [vmem:[#allocation6 + $0x444] sm:$0xf] }
 0x121   : > { %v9147_v10 = vpop.f32.mrf.mxu3  ;;  %12192 = vst [vmem:[#allocation57_spill] sm:$0xff] %v9156_v15 }
 0x122   : > { %12191 = vst [vmem:[#allocation56_spill] sm:$0xff] %v9147_v10 }
 0x123   : > { %v1907_v61 = vpop.f32.mrf.mxu2  ;;  %v1731_v18 = vpop.f32.mrf.mxu0  ;;  %12196 = vst [vmem:[#allocation61_spill] sm:$0xff] %v9164_v60 }
 0x124   : > { %v9145_v1 = vadd.f32 %v1907_v61, %v1819_v56  ;;  %v1732_v22 = vadd.f32 %v1731_v18, %v9051_v20  ;;  %v1820_v23 = vpop.f32.mrf.mxu1  ;;  %v9162_v61 = vpack.c.bf16 %v467_v32, %v464_v55 }
 0x126   : > { %12190 = vst [vmem:[#allocation55_spill] sm:$0xff] %v9145_v1  ;;  %v1821_v25 = vadd.f32 %v1820_v23, %v1732_v22 }
 0x127   : > { %12195 = vst [vmem:[#allocation60_spill] sm:$0xff] %v9162_v61 }
 0x129   : > { %v9160_v56 = vpop.f32.mrf.mxu3 }
 0x12a   : > { %12194 = vst [vmem:[#allocation59_spill] sm:$0xff] %v9160_v56 }
 0x12b   : > { %v1909_v35 = vpop.f32.mrf.mxu2  ;;  %v1734_v54 = vpop.f32.mrf.mxu0 }
 0x12c   : > { %v9158_v53 = vadd.f32 %v1909_v35, %v1821_v25  ;;  %v1735_v18 = vadd.f32 %v1734_v54, %v9051_v20  ;;  %v1823_v22 = vpop.f32.mrf.mxu1  ;;  %v6412_v35 = vld [vmem:[#allocation6 + $0xc8] sm:$0xf] }
 0x12d   : > { %v7369_v25 = vld [vmem:[#allocation6 + $0xe4] sm:$0xf0] }
 0x12e   : > { %12193 = vst [vmem:[#allocation58_spill] sm:$0xff] %v9158_v53  ;;  %v1824_v23 = vadd.f32 %v1823_v22, %v1735_v18  ;;  %1773 = vmatmul.bf16.gmra.mxu0 %v9156_v15  ;;  %2040 = vmatmul.bf16.gmra.mxu3 %v9156_v15  ;;  %v6413_v32 = vor.u32 %v7369_v25, %v6412_v35  ;;  %v6668_v18 = vld [vmem:[#allocation6 + $0x2c8] sm:$0xf]  ;;  %v6918_v35 = vld [vmem:[#allocation6 + $0x4e0] sm:$0xf0]  ;;  %v469_v25 = vld [vmem:[%s8904_s3 + $0x270] sm:$0xff] }
 0x12f   : > { %1862 = vmatmul.bf16.gmra.mxu1 %v9162_v61  ;;  %v7433_v22 = vld [vmem:[#allocation6 + $0x2e4] sm:$0xf0]  ;;  %v474_v61 = vld [vmem:[%s8904_s3 + $0x298] sm:$0xff] }
 0x130   : > { %1951 = vmatmul.bf16.gmra.mxu2 %v9164_v60  ;;  %v6669_v1 = vor.u32 %v7433_v22, %v6668_v18  ;;  %v472_v15 = vld [vmem:[%s8904_s3 + $0x288] sm:$0xff]  ;;  %v471_v60 = vld [vmem:[%s8904_s3 + $0x280] sm:$0xff] }
 0x131   : > { %v9173_v43 = vpop.f32.mrf.mxu3  ;;  %2243 = vmatpush.bf16.msrb.mxu2 %v6413_v32  ;;  %v9182_v32 = vpack.c.bf16 %v472_v15, %v469_v25  ;;  %v9190_v18 = vpack.c.bf16 %v474_v61, %v471_v60  ;;  %v7428_v15 = vld [vmem:[#allocation6 + $0x2c4] sm:$0xf] }
 0x132   : > { %12198 = vst [vmem:[#allocation63_spill] sm:$0xff] %v9173_v43  ;;  %2332 = vmatpush.bf16.msrb.mxu3 %v6669_v1  ;;  %v6662_v1 = vld [vmem:[#allocation6 + $0x2e0] sm:$0xf0] }
 0x133   : > { %v1912_v63 = vpop.f32.mrf.mxu2  ;;  %v1736_v52 = vpop.f32.mrf.mxu0  ;;  %12199 = vst [vmem:[#allocation64_spill] sm:$0xff] %v9182_v32  ;;  %v6630_v61 = vld [vmem:[#allocation6 + $0x2a0] sm:$0xf0] }
 0x134   : > { %v9171_v33 = vadd.f32 %v1912_v63, %v1824_v23  ;;  %v1737_v55 = vadd.f32 %v1736_v52, %v9051_v20  ;;  %v1825_v54 = vpop.f32.mrf.mxu1  ;;  %v470_v23 = vld [vmem:[%s8904_s3 + $0x278] sm:$0xff]  ;;  %v6921_v63 = vor.u32 %v7492_v38, %v6918_v35  ;;  %12203 = vst [vmem:[#allocation68_spill] sm:$0xff] %v9190_v18  ;;  %v7484_v60 = vld [vmem:[#allocation6 + $0x484] sm:$0xf] }
 0x136   : > { %12197 = vst [vmem:[#allocation62_spill] sm:$0xff] %v9171_v33  ;;  %v1826_v53 = vadd.f32 %v1825_v54, %v1737_v55  ;;  %v473_v33 = vld [vmem:[%s8904_s3 + $0x290] sm:$0xff]  ;;  %2154 = vmatpush.bf16.msrb.mxu1 %v6921_v63 }
 0x137   : > { %v9188_v54 = vpack.c.bf16 %v473_v33, %v470_v23  ;;  %v7420_v33 = vld [vmem:[#allocation6 + $0x284] sm:$0xf] }
 0x139   : > { %v9186_v56 = vpop.f32.mrf.mxu3  ;;  %12202 = vst [vmem:[#allocation67_spill] sm:$0xff] %v9188_v54 }
 0x13a   : > { %12201 = vst [vmem:[#allocation66_spill] sm:$0xff] %v9186_v56  ;;  %v475_v56 = vld [vmem:[%s8904_s3 + $0x2a0] sm:$0xff] }
 0x13b   : > { %v1914_v43 = vpop.f32.mrf.mxu2  ;;  %v1739_v55 = vpop.f32.mrf.mxu0 }
 0x13c   : > { %v9184_v52 = vadd.f32 %v1914_v43, %v1826_v53  ;;  %v1740_v22 = vadd.f32 %v1739_v55, %v9051_v20  ;;  %v1828_v38 = vpop.f32.mrf.mxu1  ;;  %v6665_v53 = vor.u32 %v7428_v15, %v6662_v1  ;;  %v6633_v55 = vor.u32 %v7420_v33, %v6630_v61  ;;  %v7412_v33 = vld [vmem:[#allocation6 + $0x244] sm:$0xf] }
 0x13d   : > { %v6598_v61 = vld [vmem:[#allocation6 + $0x260] sm:$0xf0] }
 0x13e   : > { %12200 = vst [vmem:[#allocation65_spill] sm:$0xff] %v9184_v52  ;;  %v1829_v35 = vadd.f32 %v1828_v38, %v1740_v22  ;;  %1778 = vmatmul.bf16.gmra.mxu0 %v9182_v32  ;;  %2045 = vmatmul.bf16.gmra.mxu3 %v9182_v32  ;;  %v6886_v22 = vld [vmem:[#allocation6 + $0x4a0] sm:$0xf0]  ;;  %v6380_v38 = vld [vmem:[#allocation6 + $0x88] sm:$0xf] }
 0x13f   : > { %1867 = vmatmul.bf16.gmra.mxu1 %v9188_v54  ;;  %2065 = vmatpush.bf16.msrb.mxu0 %v6665_v53  ;;  %v7361_v52 = vld [vmem:[#allocation6 + $0xa4] sm:$0xf0]  ;;  %v6889_v53 = vor.u32 %v7484_v60, %v6886_v22  ;;  %v6854_v60 = vld [vmem:[#allocation6 + $0x460] sm:$0xf0] }
 0x140   : > { %1956 = vmatmul.bf16.gmra.mxu2 %v9190_v18  ;;  %v6381_v32 = vor.u32 %v7361_v52, %v6380_v38  ;;  %v6636_v18 = vld [vmem:[#allocation6 + $0x288] sm:$0xf]  ;;  %v6857_v10 = vor.u32 %v7476_v47, %v6854_v60  ;;  %v6822_v60 = vld [vmem:[#allocation6 + $0x420] sm:$0xf0] }
 0x141   : > { %v9199_v23 = vpop.f32.mrf.mxu3  ;;  %v7425_v54 = vld [vmem:[#allocation6 + $0x2a4] sm:$0xf0]  ;;  %2155 = vmatpush.bf16.msrb.mxu1 %v6889_v53  ;;  %v6566_v53 = vld [vmem:[#allocation6 + $0x220] sm:$0xf0] }
 0x142   : > { %12205 = vst [vmem:[#allocation70_spill] sm:$0xff] %v9199_v23  ;;  %v476_v23 = vld [vmem:[%s8904_s3 + $0x2a8] sm:$0xff]  ;;  %2244 = vmatpush.bf16.msrb.mxu2 %v6381_v32 }
 0x143   : > { %v1917_v43 = vpop.f32.mrf.mxu2  ;;  %v1741_v63 = vpop.f32.mrf.mxu0  ;;  %2066 = vmatpush.bf16.msrb.mxu0 %v6633_v55  ;;  %v6348_v52 = vld [vmem:[#allocation6 + $0x48] sm:$0xf]  ;;  %v7404_v55 = vld [vmem:[#allocation6 + $0x204] sm:$0xf] }
 0x144   : > { %v9197_v25 = vadd.f32 %v1917_v43, %v1829_v35  ;;  %v1742_v15 = vadd.f32 %v1741_v63, %v9051_v20  ;;  %v1830_v1 = vpop.f32.mrf.mxu1  ;;  %v478_v35 = vld [vmem:[%s8904_s3 + $0x2b8] sm:$0xff]  ;;  %v6637_v43 = vor.u32 %v7425_v54, %v6636_v18  ;;  %v6601_v63 = vor.u32 %v7412_v33, %v6598_v61  ;;  %v7353_v22 = vld [vmem:[#allocation6 + $0x64] sm:$0xf0] }
 0x145   : > { %v480_v38 = vld [vmem:[%s8904_s3 + $0x2c8] sm:$0xff]  ;;  %v6349_v37 = vor.u32 %v7353_v22, %v6348_v52  ;;  %v9208_v62 = vpack.c.bf16 %v478_v35, %v475_v56  ;;  %2156 = vmatpush.bf16.msrb.mxu1 %v6857_v10  ;;  %v9214_v61 = vpack.c.bf16 %v479_v28, %v476_v23  ;;  %v6825_v22 = vor.u32 %v7468_v6, %v6822_v60  ;;  %v485_v60 = vld [vmem:[%s8904_s3 + $0x2f0] sm:$0xff] }
 0x146   : > { %12204 = vst [vmem:[#allocation69_spill] sm:$0xff] %v9197_v25  ;;  %v1831_v25 = vadd.f32 %v1830_v1, %v1742_v15  ;;  %2333 = vmatpush.bf16.msrb.mxu3 %v6637_v43  ;;  %v6604_v54 = vld [vmem:[#allocation6 + $0x248] sm:$0xf]  ;;  %v9216_v47 = vpack.c.bf16 %v480_v38, %v477_v51 }
 0x147   : > { %v7417_v18 = vld [vmem:[#allocation6 + $0x264] sm:$0xf0]  ;;  %12206 = vst [vmem:[#allocation71_spill] sm:$0xff] %v9208_v62  ;;  %2067 = vmatpush.bf16.msrb.mxu0 %v6601_v63  ;;  %2245 = vmatpush.bf16.msrb.mxu2 %v6349_v37  ;;  %v6569_v63 = vor.u32 %v7404_v55, %v6566_v53  ;;  %v481_v55 = vld [vmem:[%s8904_s3 + $0x2d0] sm:$0xff] }
 0x148   : > { %v6605_v15 = vor.u32 %v7417_v18, %v6604_v54  ;;  %v6316_v52 = vld [vmem:[#allocation6 + $0x8] sm:$0xf] }
 0x149   : > { %v9212_v43 = vpop.f32.mrf.mxu3  ;;  %v7345_v56 = vld [vmem:[#allocation6 + $0x24] sm:$0xf0]  ;;  %2157 = vmatpush.bf16.msrb.mxu1 %v6825_v22 }
 0x14a   : > { %2334 = vmatpush.bf16.msrb.mxu3 %v6605_v15  ;;  %v6572_v54 = vld [vmem:[#allocation6 + $0x208] sm:$0xf]  ;;  %v6317_v18 = vor.u32 %v7345_v56, %v6316_v52  ;;  %v483_v52 = vld [vmem:[%s8904_s3 + $0x2e0] sm:$0xff]  ;;  %v486_v56 = vld [vmem:[%s8904_s3 + $0x2f8] sm:$0xff] }
 0x14b   : > { %v1919_v1 = vpop.f32.mrf.mxu2  ;;  %v1744_v33 = vpop.f32.mrf.mxu0  ;;  %2068 = vmatpush.bf16.msrb.mxu0 %v6569_v63  ;;  %v484_v53 = vld [vmem:[%s8904_s3 + $0x2e8] sm:$0xff] }
 0x14c   : > { %v9210_v32 = vadd.f32 %v1919_v1, %v1831_v25  ;;  %v1745_v35 = vadd.f32 %v1744_v33, %v9051_v20  ;;  %v1833_v10 = vpop.f32.mrf.mxu1  ;;  %v7409_v25 = vld [vmem:[#allocation6 + $0x224] sm:$0xf0]  ;;  %2246 = vmatpush.bf16.msrb.mxu2 %v6317_v18  ;;  %v482_v33 = vld [vmem:[%s8904_s3 + $0x2d8] sm:$0xff] }
 0x14d   : > { %v6573_v1 = vor.u32 %v7409_v25, %v6572_v54  ;;  %v9240_v54 = vpack.c.bf16 %v485_v60, %v482_v33  ;;  %v9242_v25 = vpack.c.bf16 %v486_v56, %v483_v52 }
 0x14e   : > { %12207 = vst [vmem:[#allocation72_spill] sm:$0xff] %v9210_v32  ;;  %v1834_v32 = vadd.f32 %v1833_v10, %v1745_v35  ;;  %1783 = vmatmul.bf16.gmra.mxu0 %v9208_v62  ;;  %2050 = vmatmul.bf16.gmra.mxu3 %v9208_v62  ;;  %v9234_v10 = vpack.c.bf16 %v484_v53, %v481_v55 }
 0x14f   : > { %1872 = vmatmul.bf16.gmra.mxu1 %v9214_v61  ;;  %2335 = vmatpush.bf16.msrb.mxu3 %v6573_v1  ;;  %12211 = vst [vmem:[#allocation76_spill] sm:$0xff] %v9240_v54 }
 0x150   : > { %1961 = vmatmul.bf16.gmra.mxu2 %v9216_v47  ;;  %12209 = vst [vmem:[#allocation74_spill] sm:$0xff] %v9234_v10 }
 0x151   : > { %v9225_v37 = vpop.f32.mrf.mxu3  ;;  %12212 = vst [vmem:[#allocation77_spill] sm:$0xff] %v9242_v25 }
 0x153   : > { %v1922_v6 = vpop.f32.mrf.mxu2  ;;  %v1746_v51 = vpop.f32.mrf.mxu0 }
 0x154   : > { %v9223_v28 = vadd.f32 %v1922_v6, %v1834_v32  ;;  %v1747_v23 = vadd.f32 %v1746_v51, %v9051_v20  ;;  %v1835_v38 = vpop.f32.mrf.mxu1 }
 0x156   : > { %12208 = vst [vmem:[#allocation73_spill] sm:$0xff] %v9223_v28  ;;  %v1836_v15 = vadd.f32 %v1835_v38, %v1747_v23 }
 0x159   : > { %v9238_v32 = vpop.f32.mrf.mxu3 }
 0x15b   : > { %v1924_v35 = vpop.f32.mrf.mxu2  ;;  %v1749_v22 = vpop.f32.mrf.mxu0 }
 0x15c   : > { %v9236_v63 = vadd.f32 %v1924_v35, %v1836_v15  ;;  %v1750_v18 = vadd.f32 %v1749_v22, %v9051_v20  ;;  %v1838_v1 = vpop.f32.mrf.mxu1 }
 0x15e   : > { %12210 = vst [vmem:[#allocation75_spill] sm:$0xff] %v9236_v63  ;;  %v1839_v6 = vadd.f32 %v1838_v1, %v1750_v18  ;;  %1788 = vmatmul.bf16.gmra.mxu0 %v9234_v10  ;;  %2055 = vmatmul.bf16.gmra.mxu3 %v9234_v10 }
 0x15f   : > { %1877 = vmatmul.bf16.gmra.mxu1 %v9240_v54 }
 0x160   : > { %1966 = vmatmul.bf16.gmra.mxu2 %v9242_v25 }
 0x161   : > { %v9251_v38 = vpop.f32.mrf.mxu3 }
 0x163   : > { %v1927_v51 = vpop.f32.mrf.mxu2  ;;  %v1751_v15 = vpop.f32.mrf.mxu0 }
 0x164   : > { %v9249_v23 = vadd.f32 %v1927_v51, %v1839_v6  ;;  %v1752_v55 = vadd.f32 %v1751_v15, %v9051_v20  ;;  %v1840_v53 = vpop.f32.mrf.mxu1 }
 0x166   : > { %12213 = vst [vmem:[#allocation78_spill] sm:$0xff] %v9249_v23  ;;  %v1841_v33 = vadd.f32 %v1840_v53, %v1752_v55 }
 0x169   : > { %v9256_v56 = vpop.f32.mrf.mxu3 }
 0x16b   : > { %v1929_v60 = vpop.f32.mrf.mxu2  ;;  %v1754_v35 = vpop.f32.mrf.mxu0 }
 0x16c   : > { %v9254_v52 = vadd.f32 %v1929_v60, %v1841_v33  ;;  %v1755_v22 = vadd.f32 %v1754_v35, %v9051_v20  ;;  %v1843_v18 = vpop.f32.mrf.mxu1 }
 0x16e   : > { %12214 = vst [vmem:[#allocation79_spill] sm:$0xff] %v9254_v52  ;;  %v1844_v1 = vadd.f32 %v1843_v18, %v1755_v22  ;;  %2069 = vmatmul.bf16.vlgmr.msrb.gmra.mxu0 %v8922_v40  ;;  %2336 = vmatmul.bf16.vlgmr.msrb.gmra.mxu3 %v8922_v40 }
 0x16f   : > { %2158 = vmatmul.bf16.vlgmr.msrb.gmra.mxu1 %v8924_v41 }
 0x170   : > { %2247 = vmatmul.bf16.vlgmr.msrb.gmra.mxu2 %v8920_v39 }
 0x171   : > { %v9265_v15 = vpop.f32.mrf.mxu3 }
 0x173   : > { %v1932_v6 = vpop.f32.mrf.mxu2  ;;  %v1756_v55 = vpop.f32.mrf.mxu0 }
 0x174   : > { %v9263_v51 = vadd.f32 %v1932_v6, %v1844_v1  ;;  %v1757_v53 = vadd.f32 %v1756_v55, %v9051_v20  ;;  %v1845_v33 = vpop.f32.mrf.mxu1 }
 0x176   : > { %12215 = vst [vmem:[#allocation80_spill] sm:$0xff] %v9263_v51  ;;  %v1846_v60 = vadd.f32 %v1845_v33, %v1757_v53 }
 0x179   : > { %v9270_v18 = vpop.f32.mrf.mxu3 }
 0x17b   : > { %v1934_v35 = vpop.f32.mrf.mxu2  ;;  %v1759_v52 = vpop.f32.mrf.mxu0 }
 0x17c   : > { %v9268_v22 = vadd.f32 %v1934_v35, %v1846_v60  ;;  %v1760_v23 = vadd.f32 %v1759_v52, %v9051_v20  ;;  %v1848_v63 = vpop.f32.mrf.mxu1 }
 0x17e   : > { %12216 = vst [vmem:[#allocation81_spill] sm:$0xff] %v9268_v22  ;;  %v1849_v28 = vadd.f32 %v1848_v63, %v1760_v23  ;;  %2074 = vmatmul.bf16.gmra.mxu0 %v8938_v49  ;;  %2341 = vmatmul.bf16.gmra.mxu3 %v8938_v49 }
 0x17f   : > { %2163 = vmatmul.bf16.gmra.mxu1 %v8940_v50 }
 0x180   : > { %2252 = vmatmul.bf16.gmra.mxu2 %v8936_v48 }
 0x181   : > { %v9279_v55 = vpop.f32.mrf.mxu3 }
 0x183   : > { %v1937_v1 = vpop.f32.mrf.mxu2  ;;  %v1761_v53 = vpop.f32.mrf.mxu0 }
 0x184   : > { %v9277_v6 = vadd.f32 %v1937_v1, %v1849_v28  ;;  %v1762_v33 = vadd.f32 %v1761_v53, %v9051_v20  ;;  %v1850_v60 = vpop.f32.mrf.mxu1 }
 0x186   : > { %12217 = vst [vmem:[#allocation82_spill] sm:$0xff] %v9277_v6  ;;  %v1851_v52 = vadd.f32 %v1850_v60, %v1762_v33 }
 0x189   : > { %v9284_v23 = vpop.f32.mrf.mxu3 }
 0x18b   : > { %v1939_v35 = vpop.f32.mrf.mxu2  ;;  %v1764_v22 = vpop.f32.mrf.mxu0 }
 0x18c   : > { %v9282_v63 = vadd.f32 %v1939_v35, %v1851_v52  ;;  %v1765_v51 = vadd.f32 %v1764_v22, %v9051_v20  ;;  %v1853_v48 = vpop.f32.mrf.mxu1 }
 0x18e   : > { %12218 = vst [vmem:[#allocation83_spill] sm:$0xff] %v9282_v63  ;;  %v1854_v49 = vadd.f32 %v1853_v48, %v1765_v51  ;;  %2079 = vmatmul.bf16.gmra.mxu0 %v8954_v58  ;;  %2346 = vmatmul.bf16.gmra.mxu3 %v8954_v58 }
 0x18f   : > { %2168 = vmatmul.bf16.gmra.mxu1 %v8956_v59 }
 0x190   : > { %2257 = vmatmul.bf16.gmra.mxu2 %v8952_v57 }
 0x191   : > { %v9293_v53 = vpop.f32.mrf.mxu3 }
 0x193   : > { %v1942_v28 = vpop.f32.mrf.mxu2  ;;  %v1766_v33 = vpop.f32.mrf.mxu0 }
 0x194   : > { %v9291_v1 = vadd.f32 %v1942_v28, %v1854_v49  ;;  %v1767_v60 = vadd.f32 %v1766_v33, %v9051_v20  ;;  %v1855_v52 = vpop.f32.mrf.mxu1 }
 0x196   : > { %12219 = vst [vmem:[#allocation84_spill] sm:$0xff] %v9291_v1  ;;  %v1856_v22 = vadd.f32 %v1855_v52, %v1767_v60 }
 0x199   : > { %v9298_v51 = vpop.f32.mrf.mxu3 }
 0x19b   : > { %v1944_v35 = vpop.f32.mrf.mxu2  ;;  %v1769_v63 = vpop.f32.mrf.mxu0 }
 0x19c   : > { %v9296_v48 = vadd.f32 %v1944_v35, %v1856_v22  ;;  %v1770_v6 = vadd.f32 %v1769_v63, %v9051_v20  ;;  %v1858_v57 = vpop.f32.mrf.mxu1 }
 0x19e   : > { %12220 = vst [vmem:[#allocation85_spill] sm:$0xff] %v9296_v48  ;;  %v1859_v58 = vadd.f32 %v1858_v57, %v1770_v6  ;;  %2084 = vmatmul.bf16.gmra.mxu0 %v8970_v3  ;;  %2351 = vmatmul.bf16.gmra.mxu3 %v8970_v3 }
 0x19f   : > { %2173 = vmatmul.bf16.gmra.mxu1 %v8972_v4 }
 0x1a0   : > { %2262 = vmatmul.bf16.gmra.mxu2 %v8968_v2 }
 0x1a1   : > { %v9307_v33 = vpop.f32.mrf.mxu3 }
 0x1a3   : > { %v1947_v49 = vpop.f32.mrf.mxu2  ;;  %v1771_v60 = vpop.f32.mrf.mxu0 }
 0x1a4   : > { %v9305_v28 = vadd.f32 %v1947_v49, %v1859_v58  ;;  %v1772_v52 = vadd.f32 %v1771_v60, %v9051_v20  ;;  %v1860_v22 = vpop.f32.mrf.mxu1  ;;  %v7461_v58 = vld [vmem:[#allocation6 + $0x3cc] sm:$0xf] }
 0x1a5   : > { %v6798_v49 = vld [vmem:[#allocation6 + $0x3e8] sm:$0xf0] }
 0x1a6   : > { %12221 = vst [vmem:[#allocation86_spill] sm:$0xff] %v9305_v28  ;;  %v1861_v63 = vadd.f32 %v1860_v22, %v1772_v52  ;;  %v6801_v60 = vor.u32 %v7461_v58, %v6798_v49 }
 0x1a8   : > { %2595 = vmatpush.bf16.msra.mxu2 %v6801_v60 }
 0x1a9   : > { %v9312_v6 = vpop.f32.mrf.mxu3 }
 0x1aa   : > { %12223 = vst [vmem:[#allocation88_spill] sm:$0xff] %v9312_v6  ;;  %v6542_v6 = vld [vmem:[#allocation6 + $0x1e8] sm:$0xf0] }
 0x1ab   : > { %v1949_v35 = vpop.f32.mrf.mxu2  ;;  %v1774_v48 = vpop.f32.mrf.mxu0 }
 0x1ac   : > { %v9310_v57 = vadd.f32 %v1949_v35, %v1861_v63  ;;  %v1775_v1 = vadd.f32 %v1774_v48, %v9051_v20  ;;  %v1863_v2 = vpop.f32.mrf.mxu1  ;;  %v7525_v48 = vld [vmem:[#allocation6 + $0x5cc] sm:$0xf] }
 0x1ae   : > { %12222 = vst [vmem:[#allocation87_spill] sm:$0xff] %v9310_v57  ;;  %v1864_v3 = vadd.f32 %v1863_v2, %v1775_v1  ;;  %2089 = vmatmul.bf16.gmra.mxu0 %v8986_v12  ;;  %2356 = vmatmul.bf16.gmra.mxu3 %v8986_v12  ;;  %v7054_v57 = vld [vmem:[#allocation6 + $0x5e8] sm:$0xf0] }
 0x1af   : > { %2178 = vmatmul.bf16.gmra.mxu1 %v8988_v13  ;;  %v7057_v13 = vor.u32 %v7525_v48, %v7054_v57 }
 0x1b0   : > { %2267 = vmatmul.bf16.gmra.mxu2 %v8984_v11  ;;  %v7397_v11 = vld [vmem:[#allocation6 + $0x1cc] sm:$0xf] }
 0x1b1   : > { %v9321_v63 = vpop.f32.mrf.mxu3  ;;  %v6545_v12 = vor.u32 %v7397_v11, %v6542_v6  ;;  %2684 = vmatpush.bf16.msra.mxu3 %v7057_v13  ;;  %v7052_v11 = vld [vmem:[#allocation6 + $0x5c8] sm:$0xf] }
 0x1b3   : > { %v1952_v52 = vpop.f32.mrf.mxu2  ;;  %v1776_v35 = vpop.f32.mrf.mxu0  ;;  %2506 = vmatpush.bf16.msra.mxu1 %v6545_v12  ;;  %v7529_v12 = vld [vmem:[#allocation6 + $0x5e4] sm:$0xf0] }
 0x1b4   : > { %v9319_v22 = vadd.f32 %v1952_v52, %v1864_v3  ;;  %v1777_v2 = vadd.f32 %v1776_v35, %v9051_v20  ;;  %v1865_v1 = vpop.f32.mrf.mxu1  ;;  %v7053_v13 = vor.u32 %v7529_v12, %v7052_v11 }
 0x1b6   : > { %12224 = vst [vmem:[#allocation89_spill] sm:$0xff] %v9319_v22  ;;  %v1866_v28 = vadd.f32 %v1865_v1, %v1777_v2  ;;  %2417 = vmatpush.bf16.msra.mxu0 %v7053_v13  ;;  %v6766_v13 = vld [vmem:[#allocation6 + $0x3a8] sm:$0xf0] }
 0x1b9   : > { %v9326_v3 = vpop.f32.mrf.mxu3 }
 0x1bb   : > { %v1954_v58 = vpop.f32.mrf.mxu2  ;;  %v1779_v52 = vpop.f32.mrf.mxu0 }
 0x1bc   : > { %v9324_v49 = vadd.f32 %v1954_v58, %v1866_v28  ;;  %v1780_v60 = vadd.f32 %v1779_v52, %v9051_v20  ;;  %v1868_v22 = vpop.f32.mrf.mxu1 }
 0x1be   : > { %12225 = vst [vmem:[#allocation90_spill] sm:$0xff] %v9324_v49  ;;  %v1869_v35 = vadd.f32 %v1868_v22, %v1780_v60  ;;  %2094 = vmatmul.bf16.gmra.mxu0 %v9002_v30  ;;  %2361 = vmatmul.bf16.gmra.mxu3 %v9002_v30 }
 0x1bf   : > { %2183 = vmatmul.bf16.gmra.mxu1 %v9004_v31 }
 0x1c0   : > { %2272 = vmatmul.bf16.gmra.mxu2 %v9000_v29 }
 0x1c1   : > { %v9335_v6 = vpop.f32.mrf.mxu3 }
 0x1c3   : > { %v1957_v28 = vpop.f32.mrf.mxu2  ;;  %v1781_v2 = vpop.f32.mrf.mxu0 }
 0x1c4   : > { %v9333_v57 = vadd.f32 %v1957_v28, %v1869_v35  ;;  %v1782_v22 = vadd.f32 %v1781_v2, %v9051_v20  ;;  %v1870_v1 = vpop.f32.mrf.mxu1  ;;  %v7453_v35 = vld [vmem:[#allocation6 + $0x38c] sm:$0xf] }
 0x1c5   : > { %v6769_v28 = vor.u32 %v7453_v35, %v6766_v13 }
 0x1c6   : > { %12226 = vst [vmem:[#allocation91_spill] sm:$0xff] %v9333_v57  ;;  %v1871_v48 = vadd.f32 %v1870_v1, %v1782_v22 }
 0x1c7   : > { %2596 = vmatpush.bf16.msra.mxu2 %v6769_v28 }
 0x1c9   : > { %v9340_v60 = vpop.f32.mrf.mxu3 }
 0x1ca   : > { %12228 = vst [vmem:[#allocation93_spill] sm:$0xff] %v9340_v60 }
 0x1cb   : > { %v1959_v58 = vpop.f32.mrf.mxu2  ;;  %v1784_v49 = vpop.f32.mrf.mxu0 }
 0x1cc   : > { %v9338_v52 = vadd.f32 %v1959_v58, %v1871_v48  ;;  %v1785_v30 = vadd.f32 %v1784_v49, %v9051_v20  ;;  %v1873_v11 = vpop.f32.mrf.mxu1  ;;  %v7517_v58 = vld [vmem:[#allocation6 + $0x58c] sm:$0xf] }
 0x1ce   : > { %12227 = vst [vmem:[#allocation92_spill] sm:$0xff] %v9338_v52  ;;  %v1874_v12 = vadd.f32 %v1873_v11, %v1785_v30  ;;  %2099 = vmatmul.bf16.gmra.mxu0 %v9018_v45  ;;  %2366 = vmatmul.bf16.gmra.mxu3 %v9018_v45  ;;  %v7022_v11 = vld [vmem:[#allocation6 + $0x5a8] sm:$0xf0] }
 0x1cf   : > { %2188 = vmatmul.bf16.gmra.mxu1 %v9020_v46  ;;  %v7025_v57 = vor.u32 %v7517_v58, %v7022_v11  ;;  %v6510_v45 = vld [vmem:[#allocation6 + $0x1a8] sm:$0xf0]  ;;  %v9367_v11 = vperm.slane %v9045_v16, 1 }
 0x1d0   : > { %2277 = vmatmul.bf16.gmra.mxu2 %v9016_v44  ;;  %v7389_v44 = vld [vmem:[#allocation6 + $0x18c] sm:$0xf] }
 0x1d1   : > { %v9349_v1 = vpop.f32.mrf.mxu3  ;;  %2685 = vmatpush.bf16.msra.mxu3 %v7025_v57  ;;  %v6513_v46 = vor.u32 %v7389_v44, %v6510_v45  ;;  %v7020_v44 = vld [vmem:[#allocation6 + $0x588] sm:$0xf] }
 0x1d2   : > { %v7521_v45 = vld [vmem:[#allocation6 + $0x5a4] sm:$0xf0] }
 0x1d3   : > { %v1962_v2 = vpop.f32.mrf.mxu2  ;;  %v1786_v48 = vpop.f32.mrf.mxu0  ;;  %2507 = vmatpush.bf16.msra.mxu1 %v6513_v46  ;;  %v7021_v57 = vor.u32 %v7521_v45, %v7020_v44 }
 0x1d4   : > { %v9347_v22 = vadd.f32 %v1962_v2, %v1874_v12  ;;  %v1787_v30 = vadd.f32 %v1786_v48, %v9051_v20  ;;  %v1875_v49 = vpop.f32.mrf.mxu1 }
 0x1d5   : > { %2418 = vmatpush.bf16.msra.mxu0 %v7021_v57  ;;  %v6734_v57 = vld [vmem:[#allocation6 + $0x368] sm:$0xf0] }
 0x1d6   : > { %12229 = vst [vmem:[#allocation94_spill] sm:$0xff] %v9347_v22  ;;  %v1876_v52 = vadd.f32 %v1875_v49, %v1787_v30 }
 0x1d9   : > { %v9354_v12 = vpop.f32.mrf.mxu3 }
 0x1db   : > { %v1964_v60 = vpop.f32.mrf.mxu2  ;;  %v1789_v13 = vpop.f32.mrf.mxu0 }
 0x1dc   : > { %v9352_v35 = vadd.f32 %v1964_v60, %v1876_v52  ;;  %v1790_v28 = vadd.f32 %v1789_v13, %v9051_v20  ;;  %v1878_v2 = vpop.f32.mrf.mxu1 }
 0x1de   : > { %12230 = vst [vmem:[#allocation95_spill] sm:$0xff] %v9352_v35  ;;  %v1879_v48 = vadd.f32 %v1878_v2, %v1790_v28  ;;  %2104 = vmatmul.bf16.gmra.mxu0 %v9034_v8  ;;  %2371 = vmatmul.bf16.gmra.mxu3 %v9034_v8  ;;  %v1982_v28 = vadd.f32 %v9069_v42, %v9367_v11  ;;  %v7445_v42 = vld [vmem:[#allocation6 + $0x34c] sm:$0xf] }
 0x1df   : > { %2193 = vmatmul.bf16.gmra.mxu1 %v9036_v9 }
 0x1e0   : > { %2282 = vmatmul.bf16.gmra.mxu2 %v9032_v7 }
 0x1e1   : > { %v9363_v30 = vpop.f32.mrf.mxu3 }
 0x1e3   : > { %v1967_v52 = vpop.f32.mrf.mxu2  ;;  %v1791_v46 = vpop.f32.mrf.mxu0 }
 0x1e4   : > { %v9361_v60 = vadd.f32 %v1967_v52, %v1879_v48  ;;  %v1792_v49 = vadd.f32 %v1791_v46, %v9051_v20  ;;  %v1880_v58 = vpop.f32.mrf.mxu1  ;;  %v9381_v20 = vperm.slane %v9045_v16, 2  ;;  %v6737_v46 = vor.u32 %v7445_v42, %v6734_v57  ;;  %v7509_v16 = vld [vmem:[#allocation6 + $0x54c] sm:$0xf] }
 0x1e5   : > { %v7381_v42 = vld [vmem:[#allocation6 + $0x14c] sm:$0xf] }
 0x1e6   : > { %12231 = vst [vmem:[#allocation96_spill] sm:$0xff] %v9361_v60  ;;  %v1881_v13 = vadd.f32 %v1880_v58, %v1792_v49  ;;  %v1984_v49 = vadd.f32 %v9082_v17, %v9367_v11  ;;  %2597 = vmatpush.bf16.msra.mxu2 %v6737_v46  ;;  %v6478_v57 = vld [vmem:[#allocation6 + $0x168] sm:$0xf0]  ;;  %v1987_v17 = vadd.f32 %v9095_v36, %v9367_v11  ;;  %v6988_v36 = vld [vmem:[#allocation6 + $0x548] sm:$0xf] }
 0x1e9   : > { %v9373_v44 = vpop.f32.mrf.mxu3 }
 0x1eb   : > { %v1969_v2 = vpop.f32.mrf.mxu2  ;;  %v2070_v48 = vpop.f32.mrf.mxu0 }
 0x1ec   : > { %v9371_v35 = vadd.f32 %v1969_v2, %v1881_v13  ;;  %v2071_v45 = vadd.f32 %v2070_v48, %v1982_v28  ;;  %v2159_v52 = vpop.f32.mrf.mxu1 }
 0x1ee   : > { %12232 = vst [vmem:[#allocation97_spill] sm:$0xff] %v9371_v35  ;;  %v9375_v60 = vadd.f32 %v2159_v52, %v2071_v45  ;;  %2109 = vmatmul.bf16.gmra.mxu0 %v9058_v26  ;;  %2376 = vmatmul.bf16.gmra.mxu3 %v9058_v26  ;;  %v6990_v35 = vld [vmem:[#allocation6 + $0x568] sm:$0xf0]  ;;  %v6481_v26 = vor.u32 %v7381_v42, %v6478_v57 }
 0x1ef   : > { %2198 = vmatmul.bf16.gmra.mxu1 %v9060_v27 }
 0x1f0   : > { %12233 = vst [vmem:[#allocation98_spill] sm:$0xff] %v9375_v60  ;;  %2287 = vmatmul.bf16.gmra.mxu2 %v9056_v24  ;;  %v6993_v60 = vor.u32 %v7509_v16, %v6990_v35  ;;  %2508 = vmatpush.bf16.msra.mxu1 %v6481_v26  ;;  %v7513_v35 = vld [vmem:[#allocation6 + $0x564] sm:$0xf0]  ;;  %v1989_v26 = vadd.f32 %v9108_v0, %v9367_v11 }
 0x1f1   : > { %v2337_v28 = vpop.f32.mrf.mxu3 }
 0x1f2   : > { %2686 = vmatpush.bf16.msra.mxu3 %v6993_v60  ;;  %v6989_v60 = vor.u32 %v7513_v35, %v6988_v36 }
 0x1f3   : > { %v2248_v58 = vpop.f32.mrf.mxu2  ;;  %v2072_v2 = vpop.f32.mrf.mxu0 }
 0x1f4   : > { %v2249_v13 = vadd.f32 %v2248_v58, %v9381_v20  ;;  %v2073_v48 = vadd.f32 %v2072_v2, %v1984_v49  ;;  %v2161_v45 = vpop.f32.mrf.mxu1  ;;  %2419 = vmatpush.bf16.msra.mxu0 %v6989_v60  ;;  %v12239_v60 = vld [vmem:[#allocation48_spill] sm:$0xff] }
 0x1f6   : > { %v9387_v52 = vadd.f32 %v2337_v28, %v2249_v13  ;;  %v9389_v22 = vadd.f32 %v2161_v45, %v2073_v48 }
 0x1f8   : > { %12234 = vst [vmem:[#allocation99_spill] sm:$0xff] %v9389_v22  ;;  %v7481_v22 = vld [vmem:[#allocation6 + $0x464] sm:$0xf0] }
 0x1f9   : > { %v2339_v46 = vpop.f32.mrf.mxu3 }
 0x1fb   : > { %v2250_v58 = vpop.f32.mrf.mxu2  ;;  %v2075_v49 = vpop.f32.mrf.mxu0 }
 0x1fc   : > { %v2251_v24 = vadd.f32 %v2250_v58, %v9381_v20  ;;  %v2076_v13 = vadd.f32 %v2075_v49, %v1987_v17  ;;  %v2164_v28 = vpop.f32.mrf.mxu1  ;;  %v1992_v49 = vadd.f32 %v9121_v34, %v9367_v11  ;;  %v7437_v34 = vld [vmem:[#allocation6 + $0x30c] sm:$0xf] }
 0x1fe   : > { %v9394_v2 = vadd.f32 %v2339_v46, %v2251_v24  ;;  %v9396_v48 = vadd.f32 %v2164_v28, %v2076_v13  ;;  %2114 = vmatmul.bf16.gmra.mxu0 %v9084_v19  ;;  %2381 = vmatmul.bf16.gmra.mxu3 %v9084_v19 }
 0x1ff   : > { %2203 = vmatmul.bf16.gmra.mxu1 %v9086_v21  ;;  %v6350_v21 = vld [vmem:[#allocation6 + $0x68] sm:$0xf0] }
 0x200   : > { %12235 = vst [vmem:[#allocation100_spill] sm:$0xff] %v9396_v48  ;;  %2292 = vmatmul.bf16.gmra.mxu2 %v9078_v14 }
 0x201   : > { %v2342_v16 = vpop.f32.mrf.mxu3 }
 0x203   : > { %v2253_v45 = vpop.f32.mrf.mxu2  ;;  %v2077_v42 = vpop.f32.mrf.mxu0 }
 0x204   : > { %v2254_v24 = vadd.f32 %v2253_v45, %v9381_v20  ;;  %v2078_v57 = vadd.f32 %v2077_v42, %v1989_v26  ;;  %v2166_v17 = vpop.f32.mrf.mxu1  ;;  %v12240_v26 = vld [vmem:[#allocation45_spill] sm:$0xff]  ;;  %v12241_v42 = vld [vmem:[#allocation52_spill] sm:$0xff] }
 0x206   : > { %v9405_v58 = vadd.f32 %v2342_v16, %v2254_v24  ;;  %v9407_v46 = vadd.f32 %v2166_v17, %v2078_v57  ;;  %v6702_v24 = vld [vmem:[#allocation6 + $0x328] sm:$0xf0]  ;;  %v1994_v57 = vadd.f32 %v12241_v42, %v9367_v11 }
 0x207   : > { %v6705_v16 = vor.u32 %v7437_v34, %v6702_v24  ;;  %v7373_v34 = vld [vmem:[#allocation6 + $0x10c] sm:$0xf] }
 0x208   : > { %12236 = vst [vmem:[#allocation101_spill] sm:$0xff] %v9407_v46  ;;  %v6446_v24 = vld [vmem:[#allocation6 + $0x128] sm:$0xf0] }
 0x209   : > { %v2344_v36 = vpop.f32.mrf.mxu3  ;;  %2598 = vmatpush.bf16.msra.mxu2 %v6705_v16  ;;  %v6449_v46 = vor.u32 %v7373_v34, %v6446_v24  ;;  %v12244_v42 = vld [vmem:[#allocation56_spill] sm:$0xff]  ;;  %v7505_v34 = vld [vmem:[#allocation6 + $0x524] sm:$0xf0] }
 0x20b   : > { %v2255_v13 = vpop.f32.mrf.mxu2  ;;  %v2080_v0 = vpop.f32.mrf.mxu0  ;;  %2509 = vmatpush.bf16.msra.mxu1 %v6449_v46 }
 0x20c   : > { %v2256_v28 = vadd.f32 %v2255_v13, %v9381_v20  ;;  %v2081_v35 = vadd.f32 %v2080_v0, %v1992_v49  ;;  %v2169_v48 = vpop.f32.mrf.mxu1 }
 0x20e   : > { %v9412_v45 = vadd.f32 %v2344_v36, %v2256_v28  ;;  %v9414_v19 = vadd.f32 %v2169_v48, %v2081_v35  ;;  %2119 = vmatmul.bf16.gmra.mxu0 %v9110_v5  ;;  %2386 = vmatmul.bf16.gmra.mxu3 %v9110_v5  ;;  %v7501_v35 = vld [vmem:[#allocation6 + $0x50c] sm:$0xf] }
 0x20f   : > { %2208 = vmatmul.bf16.gmra.mxu1 %v12239_v60  ;;  %v1997_v60 = vadd.f32 %v12244_v42, %v9367_v11  ;;  %v12250_v42 = vld [vmem:[#allocation59_spill] sm:$0xff] }
 0x210   : > { %12237 = vst [vmem:[#allocation102_spill] sm:$0xff] %v9412_v45  ;;  %2297 = vmatmul.bf16.gmra.mxu2 %v12240_v26  ;;  %v1999_v46 = vadd.f32 %v12250_v42, %v9367_v11 }
 0x211   : > { %12238 = vst [vmem:[#allocation103_spill] sm:$0xff] %v9414_v19  ;;  %v2347_v13 = vpop.f32.mrf.mxu3  ;;  %v6958_v19 = vld [vmem:[#allocation6 + $0x528] sm:$0xf0] }
 0x212   : > { %v6961_v5 = vor.u32 %v7501_v35, %v6958_v19  ;;  %v12247_v19 = vld [vmem:[#allocation53_spill] sm:$0xff]  ;;  %v6956_v35 = vld [vmem:[#allocation6 + $0x508] sm:$0xf] }
 0x213   : > { %v2258_v17 = vpop.f32.mrf.mxu2  ;;  %v2082_v48 = vpop.f32.mrf.mxu0  ;;  %v6957_v24 = vor.u32 %v7505_v34, %v6956_v35 }
 0x214   : > { %v2259_v49 = vadd.f32 %v2258_v17, %v9381_v20  ;;  %v2083_v28 = vadd.f32 %v2082_v48, %v1994_v57  ;;  %v2171_v36 = vpop.f32.mrf.mxu1  ;;  %2687 = vmatpush.bf16.msra.mxu3 %v6961_v5  ;;  %v12248_v5 = vld [vmem:[#allocation54_spill] sm:$0xff] }
 0x215   : > { %2420 = vmatpush.bf16.msra.mxu0 %v6957_v24  ;;  %v12256_v24 = vld [vmem:[#allocation60_spill] sm:$0xff] }
 0x216   : > { %v9423_v0 = vadd.f32 %v2347_v13, %v2259_v49  ;;  %v9425_v26 = vadd.f32 %v2171_v36, %v2083_v28  ;;  %v12249_v36 = vld [vmem:[#allocation50_spill] sm:$0xff] }
 0x218   : > { %12242 = vst [vmem:[#allocation52_spill] sm:$0xff] %v9423_v0 }
 0x219   : > { %12243 = vst [vmem:[#allocation104_spill] sm:$0xff] %v9425_v26  ;;  %v2349_v16 = vpop.f32.mrf.mxu3 }
 0x21b   : > { %v2260_v17 = vpop.f32.mrf.mxu2  ;;  %v2085_v57 = vpop.f32.mrf.mxu0 }
 0x21c   : > { %v2261_v45 = vadd.f32 %v2260_v17, %v9381_v20  ;;  %v2086_v49 = vadd.f32 %v2085_v57, %v1997_v60  ;;  %v2174_v13 = vpop.f32.mrf.mxu1 }
 0x21e   : > { %v9430_v48 = vadd.f32 %v2349_v16, %v2261_v45  ;;  %v9432_v28 = vadd.f32 %v2174_v13, %v2086_v49  ;;  %2124 = vmatmul.bf16.gmra.mxu0 %v12247_v19  ;;  %2391 = vmatmul.bf16.gmra.mxu3 %v12247_v19  ;;  %v12253_v19 = vld [vmem:[#allocation63_spill] sm:$0xff] }
 0x21f   : > { %2213 = vmatmul.bf16.gmra.mxu1 %v12248_v5 }
 0x220   : > { %12245 = vst [vmem:[#allocation56_spill] sm:$0xff] %v9430_v48  ;;  %2302 = vmatmul.bf16.gmra.mxu2 %v12249_v36  ;;  %v2002_v36 = vadd.f32 %v12253_v19, %v9367_v11  ;;  %v7429_v19 = vld [vmem:[#allocation6 + $0x2cc] sm:$0xf] }
 0x221   : > { %12246 = vst [vmem:[#allocation105_spill] sm:$0xff] %v9432_v28  ;;  %v2352_v17 = vpop.f32.mrf.mxu3 }
 0x223   : > { %v2263_v60 = vpop.f32.mrf.mxu2  ;;  %v2087_v16 = vpop.f32.mrf.mxu0 }
 0x224   : > { %v2264_v45 = vadd.f32 %v2263_v60, %v9381_v20  ;;  %v2088_v57 = vadd.f32 %v2087_v16, %v1999_v46  ;;  %v2176_v49 = vpop.f32.mrf.mxu1  ;;  %v12257_v46 = vld [vmem:[#allocation61_spill] sm:$0xff] }
 0x226   : > { %v9441_v13 = vadd.f32 %v2352_v17, %v2264_v45  ;;  %v9443_v28 = vadd.f32 %v2176_v49, %v2088_v57  ;;  %v12258_v45 = vld [vmem:[#allocation57_spill] sm:$0xff]  ;;  %v6670_v17 = vld [vmem:[#allocation6 + $0x2e8] sm:$0xf0] }
 0x227   : > { %v6673_v16 = vor.u32 %v7429_v19, %v6670_v17  ;;  %v7365_v19 = vld [vmem:[#allocation6 + $0xcc] sm:$0xf] }
 0x228   : > { %12251 = vst [vmem:[#allocation59_spill] sm:$0xff] %v9441_v13  ;;  %v6414_v17 = vld [vmem:[#allocation6 + $0xe8] sm:$0xf0] }
 0x229   : > { %12252 = vst [vmem:[#allocation106_spill] sm:$0xff] %v9443_v28  ;;  %v2354_v34 = vpop.f32.mrf.mxu3  ;;  %2599 = vmatpush.bf16.msra.mxu2 %v6673_v16 }
 0x22b   : > { %v2265_v26 = vpop.f32.mrf.mxu2  ;;  %v2090_v42 = vpop.f32.mrf.mxu0 }
 0x22c   : > { %v2266_v35 = vadd.f32 %v2265_v26, %v9381_v20  ;;  %v2091_v5 = vadd.f32 %v2090_v42, %v2002_v36  ;;  %v2179_v48 = vpop.f32.mrf.mxu1  ;;  %v12259_v26 = vld [vmem:[#allocation66_spill] sm:$0xff] }
 0x22d   : > { %v2004_v57 = vadd.f32 %v12259_v26, %v9367_v11  ;;  %v12262_v26 = vld [vmem:[#allocation70_spill] sm:$0xff] }
 0x22e   : > { %v9448_v60 = vadd.f32 %v2354_v34, %v2266_v35  ;;  %v9450_v0 = vadd.f32 %v2179_v48, %v2091_v5  ;;  %2129 = vmatmul.bf16.gmra.mxu0 %v12256_v24  ;;  %2396 = vmatmul.bf16.gmra.mxu3 %v12256_v24 }
 0x22f   : > { %2218 = vmatmul.bf16.gmra.mxu1 %v12257_v46  ;;  %v6417_v46 = vor.u32 %v7365_v19, %v6414_v17  ;;  %v12267_v19 = vld [vmem:[#allocation64_spill] sm:$0xff] }
 0x230   : > { %12254 = vst [vmem:[#allocation63_spill] sm:$0xff] %v9448_v60  ;;  %2307 = vmatmul.bf16.gmra.mxu2 %v12258_v45  ;;  %v6926_v45 = vld [vmem:[#allocation6 + $0x4e8] sm:$0xf0]  ;;  %v2007_v60 = vadd.f32 %v12262_v26, %v9367_v11  ;;  %v7489_v26 = vld [vmem:[#allocation6 + $0x4a4] sm:$0xf0] }
 0x231   : > { %12255 = vst [vmem:[#allocation107_spill] sm:$0xff] %v9450_v0  ;;  %v2357_v35 = vpop.f32.mrf.mxu3  ;;  %v7493_v0 = vld [vmem:[#allocation6 + $0x4cc] sm:$0xf]  ;;  %2510 = vmatpush.bf16.msra.mxu1 %v6417_v46 }
 0x232   : > { %v6929_v24 = vor.u32 %v7493_v0, %v6926_v45  ;;  %v12265_v0 = vld [vmem:[#allocation67_spill] sm:$0xff] }
 0x233   : > { %v2268_v36 = vpop.f32.mrf.mxu2  ;;  %v2092_v48 = vpop.f32.mrf.mxu0  ;;  %v7497_v45 = vld [vmem:[#allocation6 + $0x4e4] sm:$0xf0] }
 0x234   : > { %v2269_v49 = vadd.f32 %v2268_v36, %v9381_v20  ;;  %v2093_v5 = vadd.f32 %v2092_v48, %v2004_v57  ;;  %v2181_v34 = vpop.f32.mrf.mxu1  ;;  %2688 = vmatpush.bf16.msra.mxu3 %v6929_v24  ;;  %v6924_v24 = vld [vmem:[#allocation6 + $0x4c8] sm:$0xf] }
 0x235   : > { %v6925_v17 = vor.u32 %v7497_v45, %v6924_v24 }
 0x236   : > { %v9459_v42 = vadd.f32 %v2357_v35, %v2269_v49  ;;  %v9461_v28 = vadd.f32 %v2181_v34, %v2093_v5  ;;  %v12266_v34 = vld [vmem:[#allocation68_spill] sm:$0xff] }
 0x237   : > { %2421 = vmatpush.bf16.msra.mxu0 %v6925_v17  ;;  %v7485_v17 = vld [vmem:[#allocation6 + $0x48c] sm:$0xf] }
 0x238   : > { %12260 = vst [vmem:[#allocation66_spill] sm:$0xff] %v9459_v42 }
 0x239   : > { %12261 = vst [vmem:[#allocation108_spill] sm:$0xff] %v9461_v28  ;;  %v2359_v16 = vpop.f32.mrf.mxu3  ;;  %v7421_v28 = vld [vmem:[#allocation6 + $0x28c] sm:$0xf] }
 0x23b   : > { %v2270_v36 = vpop.f32.mrf.mxu2  ;;  %v2095_v57 = vpop.f32.mrf.mxu0 }
 0x23c   : > { %v2271_v13 = vadd.f32 %v2270_v36, %v9381_v20  ;;  %v2096_v49 = vadd.f32 %v2095_v57, %v2007_v60  ;;  %v2184_v35 = vpop.f32.mrf.mxu1  ;;  %v2009_v60 = vadd.f32 %v9212_v43, %v9367_v11  ;;  %v7357_v36 = vld [vmem:[#allocation6 + $0x8c] sm:$0xf] }
 0x23e   : > { %v9466_v48 = vadd.f32 %v2359_v16, %v2271_v13  ;;  %v9468_v5 = vadd.f32 %v2184_v35, %v2096_v49  ;;  %2134 = vmatmul.bf16.gmra.mxu0 %v12265_v0  ;;  %2401 = vmatmul.bf16.gmra.mxu3 %v12265_v0  ;;  %v6892_v13 = vld [vmem:[#allocation6 + $0x488] sm:$0xf] }
 0x23f   : > { %2223 = vmatmul.bf16.gmra.mxu1 %v12266_v34  ;;  %v6893_v35 = vor.u32 %v7489_v26, %v6892_v13  ;;  %v6638_v34 = vld [vmem:[#allocation6 + $0x2a8] sm:$0xf0] }
 0x240   : > { %12263 = vst [vmem:[#allocation70_spill] sm:$0xff] %v9466_v48  ;;  %2312 = vmatmul.bf16.gmra.mxu2 %v12267_v19  ;;  %v6641_v0 = vor.u32 %v7421_v28, %v6638_v34  ;;  %v6894_v48 = vld [vmem:[#allocation6 + $0x4a8] sm:$0xf0] }
 0x241   : > { %12264 = vst [vmem:[#allocation109_spill] sm:$0xff] %v9468_v5  ;;  %v2362_v57 = vpop.f32.mrf.mxu3  ;;  %v6382_v5 = vld [vmem:[#allocation6 + $0xa8] sm:$0xf0]  ;;  %2422 = vmatpush.bf16.msra.mxu0 %v6893_v35  ;;  %v6897_v43 = vor.u32 %v7485_v17, %v6894_v48  ;;  %v2012_v48 = vadd.f32 %v9225_v37, %v9367_v11 }
 0x242   : > { %v6385_v45 = vor.u32 %v7357_v36, %v6382_v5  ;;  %2600 = vmatpush.bf16.msra.mxu2 %v6641_v0  ;;  %v7349_v13 = vld [vmem:[#allocation6 + $0x4c] sm:$0xf]  ;;  %v6828_v0 = vld [vmem:[#allocation6 + $0x408] sm:$0xf] }
 0x243   : > { %v2273_v46 = vpop.f32.mrf.mxu2  ;;  %v2097_v49 = vpop.f32.mrf.mxu0  ;;  %2689 = vmatpush.bf16.msra.mxu3 %v6897_v43  ;;  %v6353_v5 = vor.u32 %v7349_v13, %v6350_v21  ;;  %v7477_v34 = vld [vmem:[#allocation6 + $0x44c] sm:$0xf] }
 0x244   : > { %v2274_v16 = vadd.f32 %v2273_v46, %v9381_v20  ;;  %v2098_v19 = vadd.f32 %v2097_v49, %v2009_v60  ;;  %v2186_v24 = vpop.f32.mrf.mxu1  ;;  %2511 = vmatpush.bf16.msra.mxu1 %v6385_v45  ;;  %v6860_v46 = vld [vmem:[#allocation6 + $0x448] sm:$0xf]  ;;  %v7413_v60 = vld [vmem:[#allocation6 + $0x24c] sm:$0xf] }
 0x245   : > { %v6861_v26 = vor.u32 %v7481_v22, %v6860_v46  ;;  %v6606_v49 = vld [vmem:[#allocation6 + $0x268] sm:$0xf0] }
 0x246   : > { %v9477_v42 = vadd.f32 %v2362_v57, %v2274_v16  ;;  %v9479_v14 = vadd.f32 %v2186_v24, %v2098_v19  ;;  %v6609_v28 = vor.u32 %v7413_v60, %v6606_v49  ;;  %v6862_v36 = vld [vmem:[#allocation6 + $0x468] sm:$0xf0]  ;;  %v7473_v57 = vld [vmem:[#allocation6 + $0x424] sm:$0xf0] }
 0x247   : > { %2423 = vmatpush.bf16.msra.mxu0 %v6861_v26  ;;  %v6865_v16 = vor.u32 %v7477_v34, %v6862_v36  ;;  %v7341_v35 = vld [vmem:[#allocation6 + $0xc] sm:$0xf]  ;;  %v6829_v21 = vor.u32 %v7473_v57, %v6828_v0 }
 0x248   : > { %2512 = vmatpush.bf16.msra.mxu1 %v6353_v5  ;;  %2601 = vmatpush.bf16.msra.mxu2 %v6609_v28  ;;  %v6318_v17 = vld [vmem:[#allocation6 + $0x28] sm:$0xf0] }
 0x249   : > { %v2364_v24 = vpop.f32.mrf.mxu3  ;;  %2690 = vmatpush.bf16.msra.mxu3 %v6865_v16  ;;  %v7405_v43 = vld [vmem:[#allocation6 + $0x20c] sm:$0xf]  ;;  %v6321_v60 = vor.u32 %v7341_v35, %v6318_v17  ;;  %v2014_v16 = vadd.f32 %v9238_v32, %v9367_v11 }
 0x24a   : > { %v6574_v46 = vld [vmem:[#allocation6 + $0x228] sm:$0xf0] }
 0x24b   : > { %v2275_v19 = vpop.f32.mrf.mxu2  ;;  %v2100_v45 = vpop.f32.mrf.mxu0  ;;  %v6577_v49 = vor.u32 %v7405_v43, %v6574_v46  ;;  %v7469_v37 = vld [vmem:[#allocation6 + $0x40c] sm:$0xf]  ;;  %2424 = vmatpush.bf16.msra.mxu0 %v6829_v21  ;;  %v2017_v21 = vadd.f32 %v9251_v38, %v9367_v11  ;;  %v2019_v38 = vadd.f32 %v9256_v56, %v9367_v11 }
 0x24c   : > { %v2276_v22 = vadd.f32 %v2275_v19, %v9381_v20  ;;  %v2101_v13 = vadd.f32 %v2100_v45, %v2012_v48  ;;  %v2189_v26 = vpop.f32.mrf.mxu1  ;;  %v6830_v34 = vld [vmem:[#allocation6 + $0x428] sm:$0xf0]  ;;  %2513 = vmatpush.bf16.msra.mxu1 %v6321_v60 }
 0x24d   : > { %v6833_v28 = vor.u32 %v7469_v37, %v6830_v34  ;;  %2602 = vmatpush.bf16.msra.mxu2 %v6577_v49 }
 0x24e   : > { %v9484_v5 = vadd.f32 %v2364_v24, %v2276_v22  ;;  %v9486_v36 = vadd.f32 %v2189_v26, %v2101_v13  ;;  %2139 = vmatmul.bf16.gmra.mxu0 %v9214_v61  ;;  %2406 = vmatmul.bf16.gmra.mxu3 %v9214_v61 }
 0x24f   : > { %2228 = vmatmul.bf16.gmra.mxu1 %v9216_v47  ;;  %2691 = vmatpush.bf16.msra.mxu3 %v6833_v28 }
 0x250   : > { %2317 = vmatmul.bf16.gmra.mxu2 %v9208_v62 }
 0x251   : > { %v2367_v0 = vpop.f32.mrf.mxu3 }
 0x253   : > { %v2278_v48 = vpop.f32.mrf.mxu2  ;;  %v2102_v57 = vpop.f32.mrf.mxu0 }
 0x254   : > { %v2279_v19 = vadd.f32 %v2278_v48, %v9381_v20  ;;  %v2103_v35 = vadd.f32 %v2102_v57, %v2014_v16  ;;  %v2191_v22 = vpop.f32.mrf.mxu1 }
 0x256   : > { %v9495_v24 = vadd.f32 %v2367_v0, %v2279_v19  ;;  %v9497_v45 = vadd.f32 %v2191_v22, %v2103_v35  ;;  %v2022_v35 = vadd.f32 %v9265_v15, %v9367_v11  ;;  %v2024_v15 = vadd.f32 %v9270_v18, %v9367_v11 }
 0x259   : > { %v2369_v46 = vpop.f32.mrf.mxu3 }
 0x25b   : > { %v2280_v17 = vpop.f32.mrf.mxu2  ;;  %v2105_v13 = vpop.f32.mrf.mxu0 }
 0x25c   : > { %v2281_v43 = vadd.f32 %v2280_v17, %v9381_v20  ;;  %v2106_v32 = vadd.f32 %v2105_v13, %v2017_v21  ;;  %v2194_v26 = vpop.f32.mrf.mxu1 }
 0x25e   : > { %v9502_v60 = vadd.f32 %v2369_v46, %v2281_v43  ;;  %v9504_v49 = vadd.f32 %v2194_v26, %v2106_v32  ;;  %2144 = vmatmul.bf16.gmra.mxu0 %v9240_v54  ;;  %2411 = vmatmul.bf16.gmra.mxu3 %v9240_v54 }
 0x25f   : > { %2233 = vmatmul.bf16.gmra.mxu1 %v9242_v25 }
 0x260   : > { %2322 = vmatmul.bf16.gmra.mxu2 %v9234_v10 }
 0x261   : > { %v2372_v28 = vpop.f32.mrf.mxu3 }
 0x263   : > { %v2283_v37 = vpop.f32.mrf.mxu2  ;;  %v2107_v16 = vpop.f32.mrf.mxu0 }
 0x264   : > { %v2284_v34 = vadd.f32 %v2283_v37, %v9381_v20  ;;  %v2108_v48 = vadd.f32 %v2107_v16, %v2019_v38  ;;  %v2196_v19 = vpop.f32.mrf.mxu1 }
 0x266   : > { %v9513_v0 = vadd.f32 %v2372_v28, %v2284_v34  ;;  %v9515_v57 = vadd.f32 %v2196_v19, %v2108_v48 }
 0x269   : > { %v2374_v17 = vpop.f32.mrf.mxu3 }
 0x26b   : > { %v2285_v22 = vpop.f32.mrf.mxu2  ;;  %v2110_v43 = vpop.f32.mrf.mxu0 }
 0x26c   : > { %v2286_v21 = vadd.f32 %v2285_v22, %v9381_v20  ;;  %v2111_v56 = vadd.f32 %v2110_v43, %v2022_v35  ;;  %v2199_v46 = vpop.f32.mrf.mxu1  ;;  %v2027_v35 = vadd.f32 %v9279_v55, %v9367_v11  ;;  %v2029_v55 = vadd.f32 %v9284_v23, %v9367_v11 }
 0x26e   : > { %v9520_v13 = vadd.f32 %v2374_v17, %v2286_v21  ;;  %v9522_v32 = vadd.f32 %v2199_v46, %v2111_v56  ;;  %2425 = vmatmul.bf16.vlgmr.msra.gmra.mxu0 %v8924_v41  ;;  %2692 = vmatmul.bf16.vlgmr.msra.gmra.mxu3 %v8924_v41 }
 0x26f   : > { %2514 = vmatmul.bf16.vlgmr.msra.gmra.mxu1 %v8920_v39 }
 0x270   : > { %2603 = vmatmul.bf16.vlgmr.msra.gmra.mxu2 %v8922_v40 }
 0x271   : > { %v2377_v37 = vpop.f32.mrf.mxu3 }
 0x273   : > { %v2288_v26 = vpop.f32.mrf.mxu2  ;;  %v2112_v34 = vpop.f32.mrf.mxu0 }
 0x274   : > { %v2289_v38 = vadd.f32 %v2288_v26, %v9381_v20  ;;  %v2113_v28 = vadd.f32 %v2112_v34, %v2024_v15  ;;  %v2201_v16 = vpop.f32.mrf.mxu1  ;;  %v12270_v15 = vld [vmem:[#allocation15_spill] sm:$0xff] }
 0x276   : > { %v9531_v48 = vadd.f32 %v2377_v37, %v2289_v38  ;;  %v9533_v19 = vadd.f32 %v2201_v16, %v2113_v28  ;;  %v12271_v38 = vld [vmem:[#allocation16_spill] sm:$0xff] }
 0x278   : > { %12268 = vst [vmem:[#allocation110_spill] sm:$0xff] %v9533_v19 }
 0x279   : > { %v2379_v17 = vpop.f32.mrf.mxu3 }
 0x27b   : > { %v2290_v22 = vpop.f32.mrf.mxu2  ;;  %v2115_v43 = vpop.f32.mrf.mxu0 }
 0x27c   : > { %v2291_v21 = vadd.f32 %v2290_v22, %v9381_v20  ;;  %v2116_v18 = vadd.f32 %v2115_v43, %v2027_v35  ;;  %v2204_v56 = vpop.f32.mrf.mxu1  ;;  %v2032_v43 = vadd.f32 %v9293_v53, %v9367_v11  ;;  %v2034_v53 = vadd.f32 %v9298_v51, %v9367_v11 }
 0x27e   : > { %v9538_v46 = vadd.f32 %v2379_v17, %v2291_v21  ;;  %v9540_v26 = vadd.f32 %v2204_v56, %v2116_v18  ;;  %2430 = vmatmul.bf16.gmra.mxu0 %v8940_v50  ;;  %2697 = vmatmul.bf16.gmra.mxu3 %v8940_v50 }
 0x27f   : > { %2519 = vmatmul.bf16.gmra.mxu1 %v12270_v15 }
 0x280   : > { %12269 = vst [vmem:[#allocation111_spill] sm:$0xff] %v9540_v26  ;;  %2608 = vmatmul.bf16.gmra.mxu2 %v12271_v38 }
 0x281   : > { %v2382_v28 = vpop.f32.mrf.mxu3 }
 0x283   : > { %v2293_v37 = vpop.f32.mrf.mxu2  ;;  %v2117_v16 = vpop.f32.mrf.mxu0 }
 0x284   : > { %v2294_v34 = vadd.f32 %v2293_v37, %v9381_v20  ;;  %v2118_v35 = vadd.f32 %v2117_v16, %v2029_v55  ;;  %v2206_v22 = vpop.f32.mrf.mxu1  ;;  %v12274_v55 = vld [vmem:[#allocation18_spill] sm:$0xff] }
 0x286   : > { %v9549_v21 = vadd.f32 %v2382_v28, %v2294_v34  ;;  %v9551_v17 = vadd.f32 %v2206_v22, %v2118_v35  ;;  %v12275_v34 = vld [vmem:[#allocation19_spill] sm:$0xff] }
 0x288   : > { %12272 = vst [vmem:[#allocation15_spill] sm:$0xff] %v9551_v17 }
 0x289   : > { %v2384_v26 = vpop.f32.mrf.mxu3 }
 0x28b   : > { %v2295_v18 = vpop.f32.mrf.mxu2  ;;  %v2120_v50 = vpop.f32.mrf.mxu0 }
 0x28c   : > { %v2296_v56 = vadd.f32 %v2295_v18, %v9381_v20  ;;  %v2121_v23 = vadd.f32 %v2120_v50, %v2032_v43  ;;  %v2209_v38 = vpop.f32.mrf.mxu1  ;;  %v2037_v18 = vadd.f32 %v9307_v33, %v9367_v11  ;;  %v12280_v33 = vld [vmem:[#allocation88_spill] sm:$0xff] }
 0x28e   : > { %v9556_v19 = vadd.f32 %v2384_v26, %v2296_v56  ;;  %v9558_v37 = vadd.f32 %v2209_v38, %v2121_v23  ;;  %2435 = vmatmul.bf16.gmra.mxu0 %v8956_v59  ;;  %2702 = vmatmul.bf16.gmra.mxu3 %v8956_v59 }
 0x28f   : > { %2524 = vmatmul.bf16.gmra.mxu1 %v12274_v55 }
 0x290   : > { %12273 = vst [vmem:[#allocation112_spill] sm:$0xff] %v9558_v37  ;;  %2613 = vmatmul.bf16.gmra.mxu2 %v12275_v34 }
 0x291   : > { %v2387_v50 = vpop.f32.mrf.mxu3 }
 0x293   : > { %v2298_v28 = vpop.f32.mrf.mxu2  ;;  %v2122_v35 = vpop.f32.mrf.mxu0 }
 0x294   : > { %v2299_v16 = vadd.f32 %v2298_v28, %v9381_v20  ;;  %v2123_v26 = vadd.f32 %v2122_v35, %v2034_v53  ;;  %v2211_v22 = vpop.f32.mrf.mxu1  ;;  %v12278_v53 = vld [vmem:[#allocation21_spill] sm:$0xff] }
 0x296   : > { %v9567_v38 = vadd.f32 %v2387_v50, %v2299_v16  ;;  %v9569_v43 = vadd.f32 %v2211_v22, %v2123_v26  ;;  %v12279_v16 = vld [vmem:[#allocation22_spill] sm:$0xff]  ;;  %v2039_v50 = vadd.f32 %v12280_v33, %v9367_v11 }
 0x298   : > { %12276 = vst [vmem:[#allocation113_spill] sm:$0xff] %v9569_v43 }
 0x299   : > { %v2389_v37 = vpop.f32.mrf.mxu3 }
 0x29b   : > { %v2300_v56 = vpop.f32.mrf.mxu2  ;;  %v2125_v59 = vpop.f32.mrf.mxu0 }
 0x29c   : > { %v2301_v23 = vadd.f32 %v2300_v56, %v9381_v20  ;;  %v2126_v51 = vadd.f32 %v2125_v59, %v2037_v18  ;;  %v2214_v34 = vpop.f32.mrf.mxu1 }
 0x29e   : > { %v9574_v17 = vadd.f32 %v2389_v37, %v2301_v23  ;;  %v9576_v28 = vadd.f32 %v2214_v34, %v2126_v51  ;;  %2440 = vmatmul.bf16.gmra.mxu0 %v8972_v4  ;;  %2707 = vmatmul.bf16.gmra.mxu3 %v8972_v4  ;;  %v2042_v23 = vadd.f32 %v9321_v63, %v9367_v11  ;;  %v7060_v63 = vld [vmem:[#allocation6 + $0x5d0] sm:$0xf] }
 0x29f   : > { %2529 = vmatmul.bf16.gmra.mxu1 %v12278_v53 }
 0x2a0   : > { %12277 = vst [vmem:[#allocation114_spill] sm:$0xff] %v9576_v28  ;;  %2618 = vmatmul.bf16.gmra.mxu2 %v12279_v16 }
 0x2a1   : > { %v2392_v59 = vpop.f32.mrf.mxu3 }
 0x2a3   : > { %v2303_v35 = vpop.f32.mrf.mxu2  ;;  %v2127_v22 = vpop.f32.mrf.mxu0 }
 0x2a4   : > { %v2304_v26 = vadd.f32 %v2303_v35, %v9381_v20  ;;  %v2128_v37 = vadd.f32 %v2127_v22, %v2039_v50  ;;  %v2216_v18 = vpop.f32.mrf.mxu1  ;;  %v12284_v50 = vld [vmem:[#allocation26_spill] sm:$0xff]  ;;  %v7530_v22 = vld [vmem:[#allocation6 + $0x5ec] sm:$0xf0] }
 0x2a6   : > { %v9585_v34 = vadd.f32 %v2392_v59, %v2304_v26  ;;  %v9587_v56 = vadd.f32 %v2216_v18, %v2128_v37  ;;  %v12285_v26 = vld [vmem:[#allocation24_spill] sm:$0xff]  ;;  %v12286_v59 = vld [vmem:[#allocation25_spill] sm:$0xff]  ;;  %v7061_v37 = vor.u32 %v7530_v22, %v7060_v63  ;;  %v2044_v18 = vadd.f32 %v9326_v3, %v9367_v11 }
 0x2a7   : > { %v6804_v63 = vld [vmem:[#allocation6 + $0x3d0] sm:$0xf]  ;;  %v2047_v3 = vadd.f32 %v9335_v6, %v9367_v11 }
 0x2a8   : > { %12281 = vst [vmem:[#allocation88_spill] sm:$0xff] %v9587_v56  ;;  %2951 = vmatpush.bf16.msrb.mxu2 %v7061_v37  ;;  %v7466_v22 = vld [vmem:[#allocation6 + $0x3ec] sm:$0xf0] }
 0x2a9   : > { %v2394_v4 = vpop.f32.mrf.mxu3  ;;  %v6548_v6 = vld [vmem:[#allocation6 + $0x1d0] sm:$0xf] }
 0x2ab   : > { %v2305_v51 = vpop.f32.mrf.mxu2  ;;  %v2130_v16 = vpop.f32.mrf.mxu0 }
 0x2ac   : > { %v2306_v28 = vadd.f32 %v2305_v51, %v9381_v20  ;;  %v2131_v33 = vadd.f32 %v2130_v16, %v2042_v23  ;;  %v2219_v43 = vpop.f32.mrf.mxu1 }
 0x2ae   : > { %v9592_v53 = vadd.f32 %v2394_v4, %v2306_v28  ;;  %v9594_v35 = vadd.f32 %v2219_v43, %v2131_v33  ;;  %2445 = vmatmul.bf16.gmra.mxu0 %v12284_v50  ;;  %2712 = vmatmul.bf16.gmra.mxu3 %v12284_v50 }
 0x2af   : > { %2534 = vmatmul.bf16.gmra.mxu1 %v12285_v26  ;;  %v6805_v26 = vor.u32 %v7466_v22, %v6804_v63 }
 0x2b0   : > { %12282 = vst [vmem:[#allocation115_spill] sm:$0xff] %v9592_v53  ;;  %2623 = vmatmul.bf16.gmra.mxu2 %v12286_v59  ;;  %v6550_v59 = vld [vmem:[#allocation6 + $0x1f0] sm:$0xf0] }
 0x2b1   : > { %12283 = vst [vmem:[#allocation116_spill] sm:$0xff] %v9594_v35  ;;  %v2397_v28 = vpop.f32.mrf.mxu3  ;;  %v7398_v35 = vld [vmem:[#allocation6 + $0x1d4] sm:$0xf]  ;;  %2862 = vmatpush.bf16.msrb.mxu1 %v6805_v26 }
 0x2b2   : > { %v6553_v50 = vor.u32 %v7398_v35, %v6550_v59  ;;  %v12289_v35 = vld [vmem:[#allocation28_spill] sm:$0xff] }
 0x2b3   : > { %v2308_v16 = vpop.f32.mrf.mxu2  ;;  %v2132_v43 = vpop.f32.mrf.mxu0 }
 0x2b4   : > { %v2309_v4 = vadd.f32 %v2308_v16, %v9381_v20  ;;  %v2133_v23 = vadd.f32 %v2132_v43, %v2044_v18  ;;  %v2221_v51 = vpop.f32.mrf.mxu1  ;;  %3040 = vmatpush.bf16.msrb.mxu3 %v6553_v50  ;;  %v7402_v50 = vld [vmem:[#allocation6 + $0x1ec] sm:$0xf0] }
 0x2b5   : > { %v6549_v59 = vor.u32 %v7402_v50, %v6548_v6 }
 0x2b6   : > { %v9603_v33 = vadd.f32 %v2397_v28, %v2309_v4  ;;  %v9605_v56 = vadd.f32 %v2221_v51, %v2133_v23  ;;  %v12290_v51 = vld [vmem:[#allocation93_spill] sm:$0xff] }
 0x2b7   : > { %v2049_v26 = vadd.f32 %v12290_v51, %v9367_v11  ;;  %2773 = vmatpush.bf16.msrb.mxu0 %v6549_v59  ;;  %v12293_v59 = vld [vmem:[#allocation32_spill] sm:$0xff] }
 0x2b8   : > { %12287 = vst [vmem:[#allocation117_spill] sm:$0xff] %v9605_v56 }
 0x2b9   : > { %v2399_v37 = vpop.f32.mrf.mxu3 }
 0x2bb   : > { %v2310_v16 = vpop.f32.mrf.mxu2  ;;  %v2135_v18 = vpop.f32.mrf.mxu0 }
 0x2bc   : > { %v2311_v53 = vadd.f32 %v2310_v16, %v9381_v20  ;;  %v2136_v4 = vadd.f32 %v2135_v18, %v2047_v3  ;;  %v2224_v28 = vpop.f32.mrf.mxu1 }
 0x2be   : > { %v9610_v43 = vadd.f32 %v2399_v37, %v2311_v53  ;;  %v9612_v23 = vadd.f32 %v2224_v28, %v2136_v4  ;;  %2450 = vmatmul.bf16.gmra.mxu0 %v9004_v31  ;;  %2717 = vmatmul.bf16.gmra.mxu3 %v9004_v31  ;;  %v2052_v28 = vadd.f32 %v9349_v1, %v9367_v11  ;;  %v7028_v1 = vld [vmem:[#allocation6 + $0x590] sm:$0xf] }
 0x2bf   : > { %2539 = vmatmul.bf16.gmra.mxu1 %v9000_v29 }
 0x2c0   : > { %12288 = vst [vmem:[#allocation118_spill] sm:$0xff] %v9612_v23  ;;  %2628 = vmatmul.bf16.gmra.mxu2 %v12289_v35 }
 0x2c1   : > { %v2402_v22 = vpop.f32.mrf.mxu3 }
 0x2c3   : > { %v2313_v63 = vpop.f32.mrf.mxu2  ;;  %v2137_v3 = vpop.f32.mrf.mxu0 }
 0x2c4   : > { %v2314_v53 = vadd.f32 %v2313_v63, %v9381_v20  ;;  %v2138_v16 = vadd.f32 %v2137_v3, %v2049_v26  ;;  %v2226_v37 = vpop.f32.mrf.mxu1  ;;  %v12294_v26 = vld [vmem:[#allocation30_spill] sm:$0xff] }
 0x2c6   : > { %v9621_v18 = vadd.f32 %v2402_v22, %v2314_v53  ;;  %v9623_v4 = vadd.f32 %v2226_v37, %v2138_v16  ;;  %v12295_v53 = vld [vmem:[#allocation31_spill] sm:$0xff]  ;;  %v7522_v22 = vld [vmem:[#allocation6 + $0x5ac] sm:$0xf0] }
 0x2c7   : > { %v7029_v3 = vor.u32 %v7522_v22, %v7028_v1  ;;  %v7458_v1 = vld [vmem:[#allocation6 + $0x3ac] sm:$0xf0] }
 0x2c8   : > { %12291 = vst [vmem:[#allocation93_spill] sm:$0xff] %v9623_v4 }
 0x2c9   : > { %v2404_v50 = vpop.f32.mrf.mxu3  ;;  %2952 = vmatpush.bf16.msrb.mxu2 %v7029_v3 }
 0x2cb   : > { %v2315_v23 = vpop.f32.mrf.mxu2  ;;  %v2140_v51 = vpop.f32.mrf.mxu0 }
 0x2cc   : > { %v2316_v6 = vadd.f32 %v2315_v23, %v9381_v20  ;;  %v2141_v31 = vadd.f32 %v2140_v51, %v2052_v28  ;;  %v2229_v35 = vpop.f32.mrf.mxu1  ;;  %v2054_v23 = vadd.f32 %v9354_v12, %v9367_v11  ;;  %v2057_v12 = vadd.f32 %v9363_v30, %v9367_v11  ;;  %v6516_v30 = vld [vmem:[#allocation6 + $0x190] sm:$0xf] }
 0x2ce   : > { %v9628_v63 = vadd.f32 %v2404_v50, %v2316_v6  ;;  %v9630_v56 = vadd.f32 %v2229_v35, %v2141_v31  ;;  %2455 = vmatmul.bf16.gmra.mxu0 %v12293_v59  ;;  %2722 = vmatmul.bf16.gmra.mxu3 %v12293_v59  ;;  %v6518_v59 = vld [vmem:[#allocation6 + $0x1b0] sm:$0xf0] }
 0x2cf   : > { %2544 = vmatmul.bf16.gmra.mxu1 %v12294_v26 }
 0x2d0   : > { %12292 = vst [vmem:[#allocation119_spill] sm:$0xff] %v9630_v56  ;;  %2633 = vmatmul.bf16.gmra.mxu2 %v12295_v53  ;;  %v7390_v56 = vld [vmem:[#allocation6 + $0x194] sm:$0xf]  ;;  %v6772_v53 = vld [vmem:[#allocation6 + $0x390] sm:$0xf] }
 0x2d1   : > { %v2407_v28 = vpop.f32.mrf.mxu3  ;;  %v6521_v4 = vor.u32 %v7390_v56, %v6518_v59  ;;  %v6773_v22 = vor.u32 %v7458_v1, %v6772_v53  ;;  %v7394_v56 = vld [vmem:[#allocation6 + $0x1ac] sm:$0xf0]  ;;  %v2059_v59 = vadd.f32 %v9373_v44, %v9367_v11  ;;  %v8579_v11 = vld [vmem:[%s11930_s2] sm:$0xff] }
 0x2d2   : > { %v9665_v44 = vperm.slane %v8579_v11, 3  ;;  %v7514_v11 = vld [vmem:[#allocation6 + $0x56c] sm:$0xf0] }
 0x2d3   : > { %v2318_v16 = vpop.f32.mrf.mxu2  ;;  %v2142_v31 = vpop.f32.mrf.mxu0  ;;  %3041 = vmatpush.bf16.msrb.mxu3 %v6521_v4  ;;  %2863 = vmatpush.bf16.msrb.mxu1 %v6773_v22  ;;  %v6517_v4 = vor.u32 %v7394_v56, %v6516_v30 }
 0x2d4   : > { %v2319_v37 = vadd.f32 %v2318_v16, %v9381_v20  ;;  %v2143_v35 = vadd.f32 %v2142_v31, %v2054_v23  ;;  %v2231_v6 = vpop.f32.mrf.mxu1 }
 0x2d5   : > { %2774 = vmatpush.bf16.msrb.mxu0 %v6517_v4 }
 0x2d6   : > { %v9639_v50 = vadd.f32 %v2407_v28, %v2319_v37  ;;  %v9641_v51 = vadd.f32 %v2231_v6, %v2143_v35 }
 0x2d8   : > { %12296 = vst [vmem:[#allocation120_spill] sm:$0xff] %v9641_v51 }
 0x2d9   : > { %v2409_v3 = vpop.f32.mrf.mxu3 }
 0x2db   : > { %v2320_v26 = vpop.f32.mrf.mxu2  ;;  %v2145_v23 = vpop.f32.mrf.mxu0 }
 0x2dc   : > { %v2321_v16 = vadd.f32 %v2320_v26, %v9381_v20  ;;  %v2146_v37 = vadd.f32 %v2145_v23, %v2057_v12  ;;  %v2234_v28 = vpop.f32.mrf.mxu1 }
 0x2de   : > { %v9646_v31 = vadd.f32 %v2409_v3, %v2321_v16  ;;  %v9648_v35 = vadd.f32 %v2234_v28, %v2146_v37  ;;  %2460 = vmatmul.bf16.gmra.mxu0 %v9036_v9  ;;  %2727 = vmatmul.bf16.gmra.mxu3 %v9036_v9 }
 0x2df   : > { %2549 = vmatmul.bf16.gmra.mxu1 %v9032_v7 }
 0x2e0   : > { %12297 = vst [vmem:[#allocation121_spill] sm:$0xff] %v9648_v35  ;;  %2638 = vmatmul.bf16.gmra.mxu2 %v9034_v8  ;;  %v12303_v35 = vld [vmem:[#allocation41_spill] sm:$0xff] }
 0x2e1   : > { %v2412_v6 = vpop.f32.mrf.mxu3 }
 0x2e3   : > { %v2323_v26 = vpop.f32.mrf.mxu2  ;;  %v2147_v1 = vpop.f32.mrf.mxu0 }
 0x2e4   : > { %v2324_v53 = vadd.f32 %v2323_v26, %v9381_v20  ;;  %v2148_v22 = vadd.f32 %v2147_v1, %v2059_v59  ;;  %v2236_v12 = vpop.f32.mrf.mxu1  ;;  %v12300_v26 = vld [vmem:[#allocation39_spill] sm:$0xff]  ;;  %v12301_v1 = vld [vmem:[#allocation36_spill] sm:$0xff] }
 0x2e6   : > { %v9657_v16 = vadd.f32 %v2412_v6, %v2324_v53  ;;  %v9659_v3 = vadd.f32 %v2236_v12, %v2148_v22  ;;  %v3841_v53 = vmax.f32 %v12300_v26, 0.0  ;;  %v12302_v22 = vld [vmem:[#allocation37_spill] sm:$0xff] }
 0x2e8   : > { %12298 = vst [vmem:[#allocation122_spill] sm:$0xff] %v9659_v3 }
 0x2e9   : > { %v2414_v28 = vpop.f32.mrf.mxu3 }
 0x2eb   : > { %v2325_v23 = vpop.f32.mrf.mxu2  ;;  %v2426_v30 = vpop.f32.mrf.mxu0 }
 0x2ec   : > { %v2326_v37 = vadd.f32 %v2325_v23, %v9381_v20  ;;  %v2427_v56 = vadd.f32 %v2426_v30, %v9387_v52  ;;  %v2515_v4 = vpop.f32.mrf.mxu1  ;;  %v6996_v23 = vld [vmem:[#allocation6 + $0x550] sm:$0xf] }
 0x2ed   : > { %v2516_v20 = vadd.f32 %v2515_v4, %v9665_v44  ;;  %v6997_v52 = vor.u32 %v7514_v11, %v6996_v23  ;;  %v6740_v11 = vld [vmem:[#allocation6 + $0x350] sm:$0xf] }
 0x2ee   : > { %v9668_v59 = vadd.f32 %v2414_v28, %v2326_v37  ;;  %v3843_v6 = vmax.f32 %v2427_v56, 0.0  ;;  %2465 = vmatmul.bf16.gmra.mxu0 %v9060_v27  ;;  %2732 = vmatmul.bf16.gmra.mxu3 %v9060_v27 }
 0x2ef   : > { %2554 = vmatmul.bf16.gmra.mxu1 %v12301_v1  ;;  %2953 = vmatpush.bf16.msrb.mxu2 %v6997_v52  ;;  %v3849_v1 = vmax.f32 %v12303_v35, 0.0 }
 0x2f0   : > { %12299 = vst [vmem:[#allocation123_spill] sm:$0xff] %v9668_v59  ;;  %2643 = vmatmul.bf16.gmra.mxu2 %v12302_v22  ;;  %v7672_v12 = vpack.i.bf16 %v3841_v53, %v3843_v6  ;;  %v12304_v22 = vld [vmem:[#allocation98_spill] sm:$0xff]  ;;  %v7382_v53 = vld [vmem:[#allocation6 + $0x154] sm:$0xf] }
 0x2f1   : > { %v2693_v28 = vpop.f32.mrf.mxu3  ;;  %v3842_v9 = vmax.f32 %v12304_v22, 0.0  ;;  %v6486_v6 = vld [vmem:[#allocation6 + $0x170] sm:$0xf0] }
 0x2f2   : > { %7673 = vxpose.xlu0.b32.start [1/16] %v7672_v12, 128  ;;  %v6489_v23 = vor.u32 %v7382_v53, %v6486_v6  ;;  %v7450_v12 = vld [vmem:[#allocation6 + $0x36c] sm:$0xf0] }
 0x2f3   : > { %v2604_v30 = vpop.f32.mrf.mxu2  ;;  %v2428_v26 = vpop.f32.mrf.mxu0  ;;  %v6741_v52 = vor.u32 %v7450_v12, %v6740_v11  ;;  %v12308_v53 = vld [vmem:[#allocation40_spill] sm:$0xff] }
 0x2f4   : > { %v2605_v37 = vadd.f32 %v2604_v30, %v2516_v20  ;;  %v2429_v56 = vadd.f32 %v2428_v26, %v9394_v2  ;;  %v2517_v3 = vpop.f32.mrf.mxu1  ;;  %3042 = vmatpush.bf16.msrb.mxu3 %v6489_v23  ;;  %v7386_v23 = vld [vmem:[#allocation6 + $0x16c] sm:$0xf0] }
 0x2f5   : > { %v2518_v20 = vadd.f32 %v2517_v3, %v9665_v44  ;;  %2864 = vmatpush.bf16.msrb.mxu1 %v6741_v52  ;;  %v12307_v3 = vld [vmem:[#allocation99_spill] sm:$0xff] }
 0x2f6   : > { %v2694_v4 = vadd.f32 %v2693_v28, %v2605_v37  ;;  %v3851_v59 = vmax.f32 %v2429_v56, 0.0 }
 0x2f8   : > { %v3844_v27 = vmax.f32 %v2694_v4, 0.0  ;;  %v7674_v8 = vpack.i.bf16 %v3849_v1, %v3851_v59  ;;  %v12305_v59 = vld [vmem:[#allocation44_spill] sm:$0xff]  ;;  %v12306_v4 = vld [vmem:[#allocation43_spill] sm:$0xff] }
 0x2f9   : > { %v2695_v37 = vpop.f32.mrf.mxu3  ;;  %v3857_v1 = vmax.f32 %v12305_v59, 0.0 }
 0x2fa   : > { %v7784_v30 = vpack.i.bf16 %v3842_v9, %v3844_v27  ;;  %7675 = vxpose.xlu0.b32.cont [2/16] %v7674_v8, 128  ;;  %v3850_v9 = vmax.f32 %v12307_v3, 0.0 }
 0x2fb   : > { %v2606_v51 = vpop.f32.mrf.mxu2  ;;  %v2431_v35 = vpop.f32.mrf.mxu0 }
 0x2fc   : > { %v2607_v2 = vadd.f32 %v2606_v51, %v2518_v20  ;;  %7785 = vxpose.xlu1.b32.start [1/16] %v7784_v30, 128  ;;  %v2432_v22 = vadd.f32 %v2431_v35, %v9405_v58  ;;  %v2520_v28 = vpop.f32.mrf.mxu1  ;;  %v12309_v51 = vld [vmem:[#allocation42_spill] sm:$0xff]  ;;  %v6484_v58 = vld [vmem:[#allocation6 + $0x150] sm:$0xf] }
 0x2fd   : > { %v2521_v8 = vadd.f32 %v2520_v28, %v9665_v44  ;;  %v6485_v12 = vor.u32 %v7386_v23, %v6484_v58 }
 0x2fe   : > { %v2696_v26 = vadd.f32 %v2695_v37, %v2607_v2  ;;  %v3859_v56 = vmax.f32 %v2432_v22, 0.0  ;;  %2470 = vmatmul.bf16.gmra.mxu0 %v12306_v4  ;;  %2737 = vmatmul.bf16.gmra.mxu3 %v12306_v4  ;;  %v12310_v37 = vld [vmem:[#allocation102_spill] sm:$0xff]  ;;  %v12312_v4 = vld [vmem:[#allocation100_spill] sm:$0xff] }
 0x2ff   : > { %2559 = vmatmul.bf16.gmra.mxu1 %v12308_v53  ;;  %2775 = vmatpush.bf16.msrb.mxu0 %v6485_v12 }
 0x300   : > { %v3852_v27 = vmax.f32 %v2696_v26, 0.0  ;;  %2648 = vmatmul.bf16.gmra.mxu2 %v12309_v51  ;;  %v7676_v6 = vpack.i.bf16 %v3857_v1, %v3859_v56  ;;  %v12311_v26 = vld [vmem:[#allocation46_spill] sm:$0xff]  ;;  %v3858_v1 = vmax.f32 %v12312_v4, 0.0  ;;  %v12316_v4 = vld [vmem:[#allocation101_spill] sm:$0xff] }
 0x301   : > { %v2698_v52 = vpop.f32.mrf.mxu3  ;;  %v3865_v59 = vmax.f32 %v12311_v26, 0.0 }
 0x302   : > { %v7786_v11 = vpack.i.bf16 %v3850_v9, %v3852_v27  ;;  %7677 = vxpose.xlu0.b32.cont [3/16] %v7676_v6, 128 }
 0x303   : > { %v2609_v20 = vpop.f32.mrf.mxu2  ;;  %v2433_v2 = vpop.f32.mrf.mxu0 }
 0x304   : > { %v2610_v30 = vadd.f32 %v2609_v20, %v2521_v8  ;;  %7787 = vxpose.xlu1.b32.cont [2/16] %v7786_v11, 128  ;;  %v2434_v35 = vadd.f32 %v2433_v2, %v12310_v37  ;;  %v2522_v22 = vpop.f32.mrf.mxu1  ;;  %v12313_v11 = vld [vmem:[#allocation52_spill] sm:$0xff] }
 0x305   : > { %v2523_v9 = vadd.f32 %v2522_v22, %v9665_v44 }
 0x306   : > { %v2699_v28 = vadd.f32 %v2698_v52, %v2610_v30  ;;  %v3867_v3 = vmax.f32 %v2434_v35, 0.0  ;;  %v12314_v52 = vld [vmem:[#allocation49_spill] sm:$0xff]  ;;  %v12315_v35 = vld [vmem:[#allocation48_spill] sm:$0xff] }
 0x307   : > { %v3873_v2 = vmax.f32 %v12314_v52, 0.0  ;;  %v12320_v52 = vld [vmem:[#allocation51_spill] sm:$0xff] }
 0x308   : > { %v3860_v56 = vmax.f32 %v2699_v28, 0.0  ;;  %v7678_v51 = vpack.i.bf16 %v3865_v59, %v3867_v3  ;;  %v3866_v28 = vmax.f32 %v12316_v4, 0.0  ;;  %v12317_v59 = vld [vmem:[#allocation45_spill] sm:$0xff]  ;;  %v3881_v4 = vmax.f32 %v12320_v52, 0.0 }
 0x309   : > { %v2700_v58 = vpop.f32.mrf.mxu3 }
 0x30a   : > { %v7788_v27 = vpack.i.bf16 %v3858_v1, %v3860_v56  ;;  %7679 = vxpose.xlu0.b32.cont [4/16] %v7678_v51, 128  ;;  %v12318_v51 = vld [vmem:[#allocation47_spill] sm:$0xff]  ;;  %v6964_v1 = vld [vmem:[#allocation6 + $0x510] sm:$0xf] }
 0x30b   : > { %v2611_v6 = vpop.f32.mrf.mxu2  ;;  %v2436_v23 = vpop.f32.mrf.mxu0  ;;  %v7506_v56 = vld [vmem:[#allocation6 + $0x52c] sm:$0xf0] }
 0x30c   : > { %v2612_v8 = vadd.f32 %v2611_v6, %v2523_v9  ;;  %7789 = vxpose.xlu1.b32.cont [3/16] %v7788_v27, 128  ;;  %v2437_v12 = vadd.f32 %v2436_v23, %v12313_v11  ;;  %v2525_v20 = vpop.f32.mrf.mxu1  ;;  %v6965_v27 = vor.u32 %v7506_v56, %v6964_v1  ;;  %v12319_v11 = vld [vmem:[#allocation56_spill] sm:$0xff] }
 0x30d   : > { %v2526_v22 = vadd.f32 %v2525_v20, %v9665_v44 }
 0x30e   : > { %v2701_v30 = vadd.f32 %v2700_v58, %v2612_v8  ;;  %v3875_v37 = vmax.f32 %v2437_v12, 0.0  ;;  %2475 = vmatmul.bf16.gmra.mxu0 %v12315_v35  ;;  %2742 = vmatmul.bf16.gmra.mxu3 %v12315_v35  ;;  %v12321_v35 = vld [vmem:[#allocation103_spill] sm:$0xff] }
 0x30f   : > { %2564 = vmatmul.bf16.gmra.mxu1 %v12317_v59  ;;  %2954 = vmatpush.bf16.msrb.mxu2 %v6965_v27  ;;  %v7374_v59 = vld [vmem:[#allocation6 + $0x114] sm:$0xf] }
 0x310   : > { %v3868_v26 = vmax.f32 %v2701_v30, 0.0  ;;  %2653 = vmatmul.bf16.gmra.mxu2 %v12318_v51  ;;  %v7680_v3 = vpack.i.bf16 %v3873_v2, %v3875_v37  ;;  %v3874_v2 = vmax.f32 %v12321_v35, 0.0  ;;  %v12322_v35 = vld [vmem:[#allocation59_spill] sm:$0xff] }
 0x311   : > { %v2703_v58 = vpop.f32.mrf.mxu3 }
 0x312   : > { %v7790_v9 = vpack.i.bf16 %v3866_v28, %v3868_v26  ;;  %7681 = vxpose.xlu0.b32.cont [5/16] %v7680_v3, 128  ;;  %v6454_v28 = vld [vmem:[#allocation6 + $0x130] sm:$0xf0]  ;;  %v6708_v3 = vld [vmem:[#allocation6 + $0x310] sm:$0xf] }
 0x313   : > { %v2614_v6 = vpop.f32.mrf.mxu2  ;;  %v2438_v23 = vpop.f32.mrf.mxu0  ;;  %v6457_v1 = vor.u32 %v7374_v59, %v6454_v28 }
 0x314   : > { %v2615_v8 = vadd.f32 %v2614_v6, %v2526_v22  ;;  %7791 = vxpose.xlu1.b32.cont [4/16] %v7790_v9, 128  ;;  %v2439_v12 = vadd.f32 %v2438_v23, %v12319_v11  ;;  %v2527_v20 = vpop.f32.mrf.mxu1  ;;  %v7442_v22 = vld [vmem:[#allocation6 + $0x32c] sm:$0xf0] }
 0x315   : > { %v2528_v56 = vadd.f32 %v2527_v20, %v9665_v44  ;;  %v6709_v27 = vor.u32 %v7442_v22, %v6708_v3  ;;  %3043 = vmatpush.bf16.msrb.mxu3 %v6457_v1  ;;  %v12325_v20 = vld [vmem:[#allocation104_spill] sm:$0xff]  ;;  %v12327_v1 = vld [vmem:[#allocation53_spill] sm:$0xff] }
 0x316   : > { %v2704_v30 = vadd.f32 %v2703_v58, %v2615_v8  ;;  %v3883_v51 = vmax.f32 %v2439_v12, 0.0  ;;  %v6452_v22 = vld [vmem:[#allocation6 + $0x110] sm:$0xf] }
 0x317   : > { %2865 = vmatpush.bf16.msrb.mxu1 %v6709_v27 }
 0x318   : > { %v3876_v37 = vmax.f32 %v2704_v30, 0.0  ;;  %v7682_v26 = vpack.i.bf16 %v3881_v4, %v3883_v51  ;;  %v12323_v51 = vld [vmem:[#allocation55_spill] sm:$0xff]  ;;  %v12324_v4 = vld [vmem:[#allocation54_spill] sm:$0xff] }
 0x319   : > { %v2705_v58 = vpop.f32.mrf.mxu3  ;;  %v3889_v59 = vmax.f32 %v12323_v51, 0.0  ;;  %v12329_v51 = vld [vmem:[#allocation58_spill] sm:$0xff] }
 0x31a   : > { %v7792_v9 = vpack.i.bf16 %v3874_v2, %v3876_v37  ;;  %7683 = vxpose.xlu0.b32.cont [6/16] %v7682_v26, 128  ;;  %v3882_v2 = vmax.f32 %v12325_v20, 0.0  ;;  %v12326_v26 = vld [vmem:[#allocation50_spill] sm:$0xff]  ;;  %v3897_v20 = vmax.f32 %v12329_v51, 0.0  ;;  %v12335_v51 = vld [vmem:[#allocation57_spill] sm:$0xff] }
 0x31b   : > { %v2616_v6 = vpop.f32.mrf.mxu2  ;;  %v2441_v23 = vpop.f32.mrf.mxu0 }
 0x31c   : > { %v2617_v8 = vadd.f32 %v2616_v6, %v2528_v56  ;;  %7793 = vxpose.xlu1.b32.cont [5/16] %v7792_v9, 128  ;;  %v2442_v11 = vadd.f32 %v2441_v23, %v12322_v35  ;;  %v2530_v12 = vpop.f32.mrf.mxu1  ;;  %v7378_v56 = vld [vmem:[#allocation6 + $0x12c] sm:$0xf0]  ;;  %v12328_v35 = vld [vmem:[#allocation63_spill] sm:$0xff] }
 0x31d   : > { %v2531_v28 = vadd.f32 %v2530_v12, %v9665_v44  ;;  %v6453_v27 = vor.u32 %v7378_v56, %v6452_v22 }
 0x31e   : > { %v2706_v30 = vadd.f32 %v2705_v58, %v2617_v8  ;;  %v3891_v52 = vmax.f32 %v2442_v11, 0.0  ;;  %2480 = vmatmul.bf16.gmra.mxu0 %v12324_v4  ;;  %2747 = vmatmul.bf16.gmra.mxu3 %v12324_v4  ;;  %v12330_v4 = vld [vmem:[#allocation105_spill] sm:$0xff] }
 0x31f   : > { %2569 = vmatmul.bf16.gmra.mxu1 %v12326_v26  ;;  %2776 = vmatpush.bf16.msrb.mxu0 %v6453_v27 }
 0x320   : > { %v3884_v37 = vmax.f32 %v2706_v30, 0.0  ;;  %2658 = vmatmul.bf16.gmra.mxu2 %v12327_v1  ;;  %v7684_v3 = vpack.i.bf16 %v3889_v59, %v3891_v52  ;;  %v3890_v59 = vmax.f32 %v12330_v4, 0.0  ;;  %v12334_v4 = vld [vmem:[#allocation106_spill] sm:$0xff] }
 0x321   : > { %v2708_v58 = vpop.f32.mrf.mxu3 }
 0x322   : > { %v7794_v9 = vpack.i.bf16 %v3882_v2, %v3884_v37  ;;  %7685 = vxpose.xlu0.b32.cont [7/16] %v7684_v3, 128 }
 0x323   : > { %v2619_v6 = vpop.f32.mrf.mxu2  ;;  %v2443_v23 = vpop.f32.mrf.mxu0 }
 0x324   : > { %v2620_v8 = vadd.f32 %v2619_v6, %v2531_v28  ;;  %7795 = vxpose.xlu1.b32.cont [6/16] %v7794_v9, 128  ;;  %v2444_v11 = vadd.f32 %v2443_v23, %v12328_v35  ;;  %v2532_v12 = vpop.f32.mrf.mxu1  ;;  %v12331_v9 = vld [vmem:[#allocation66_spill] sm:$0xff] }
 0x325   : > { %v2533_v2 = vadd.f32 %v2532_v12, %v9665_v44 }
 0x326   : > { %v2709_v30 = vadd.f32 %v2708_v58, %v2620_v8  ;;  %v3899_v1 = vmax.f32 %v2444_v11, 0.0  ;;  %v12332_v58 = vld [vmem:[#allocation62_spill] sm:$0xff]  ;;  %v12333_v11 = vld [vmem:[#allocation61_spill] sm:$0xff] }
 0x327   : > { %v3905_v23 = vmax.f32 %v12332_v58, 0.0  ;;  %v12338_v58 = vld [vmem:[#allocation65_spill] sm:$0xff] }
 0x328   : > { %v3892_v52 = vmax.f32 %v2709_v30, 0.0  ;;  %v7686_v26 = vpack.i.bf16 %v3897_v20, %v3899_v1  ;;  %v3898_v1 = vmax.f32 %v12334_v4, 0.0  ;;  %v3913_v4 = vmax.f32 %v12338_v58, 0.0  ;;  %v12341_v58 = vld [vmem:[#allocation68_spill] sm:$0xff] }
 0x329   : > { %v2710_v22 = vpop.f32.mrf.mxu3 }
 0x32a   : > { %v7796_v37 = vpack.i.bf16 %v3890_v59, %v3892_v52  ;;  %7687 = vxpose.xlu0.b32.cont [8/16] %v7686_v26, 128  ;;  %v12336_v26 = vld [vmem:[#allocation60_spill] sm:$0xff] }
 0x32b   : > { %v2621_v3 = vpop.f32.mrf.mxu2  ;;  %v2446_v56 = vpop.f32.mrf.mxu0  ;;  %v6932_v59 = vld [vmem:[#allocation6 + $0x4d0] sm:$0xf] }
 0x32c   : > { %v2622_v28 = vadd.f32 %v2621_v3, %v2533_v2  ;;  %7797 = vxpose.xlu1.b32.cont [7/16] %v7796_v37, 128  ;;  %v2447_v27 = vadd.f32 %v2446_v56, %v12331_v9  ;;  %v2535_v6 = vpop.f32.mrf.mxu1  ;;  %v7498_v52 = vld [vmem:[#allocation6 + $0x4ec] sm:$0xf0]  ;;  %v12337_v9 = vld [vmem:[#allocation70_spill] sm:$0xff] }
 0x32d   : > { %v2536_v12 = vadd.f32 %v2535_v6, %v9665_v44  ;;  %v6933_v37 = vor.u32 %v7498_v52, %v6932_v59 }
 0x32e   : > { %v2711_v8 = vadd.f32 %v2710_v22, %v2622_v28  ;;  %v3907_v35 = vmax.f32 %v2447_v27, 0.0  ;;  %2485 = vmatmul.bf16.gmra.mxu0 %v12333_v11  ;;  %2752 = vmatmul.bf16.gmra.mxu3 %v12333_v11  ;;  %v12339_v11 = vld [vmem:[#allocation107_spill] sm:$0xff] }
 0x32f   : > { %2574 = vmatmul.bf16.gmra.mxu1 %v12335_v51  ;;  %2955 = vmatpush.bf16.msrb.mxu2 %v6933_v37  ;;  %v7366_v51 = vld [vmem:[#allocation6 + $0xd4] sm:$0xf] }
 0x330   : > { %v3900_v30 = vmax.f32 %v2711_v8, 0.0  ;;  %2663 = vmatmul.bf16.gmra.mxu2 %v12336_v26  ;;  %v7688_v20 = vpack.i.bf16 %v3905_v23, %v3907_v35  ;;  %v3906_v23 = vmax.f32 %v12339_v11, 0.0 }
 0x331   : > { %v2713_v22 = vpop.f32.mrf.mxu3 }
 0x332   : > { %v7798_v2 = vpack.i.bf16 %v3898_v1, %v3900_v30  ;;  %7689 = vxpose.xlu0.b32.cont [9/16] %v7688_v20, 128  ;;  %v6422_v1 = vld [vmem:[#allocation6 + $0xf0] sm:$0xf0]  ;;  %v6676_v20 = vld [vmem:[#allocation6 + $0x2d0] sm:$0xf] }
 0x333   : > { %v2624_v3 = vpop.f32.mrf.mxu2  ;;  %v2448_v56 = vpop.f32.mrf.mxu0  ;;  %v6425_v59 = vor.u32 %v7366_v51, %v6422_v1 }
 0x334   : > { %v2625_v28 = vadd.f32 %v2624_v3, %v2536_v12  ;;  %7799 = vxpose.xlu1.b32.cont [8/16] %v7798_v2, 128  ;;  %v2449_v27 = vadd.f32 %v2448_v56, %v12337_v9  ;;  %v2537_v6 = vpop.f32.mrf.mxu1  ;;  %v7434_v12 = vld [vmem:[#allocation6 + $0x2ec] sm:$0xf0] }
 0x335   : > { %v2538_v52 = vadd.f32 %v2537_v6, %v9665_v44  ;;  %v6677_v37 = vor.u32 %v7434_v12, %v6676_v20  ;;  %3044 = vmatpush.bf16.msrb.mxu3 %v6425_v59  ;;  %v6420_v6 = vld [vmem:[#allocation6 + $0xd0] sm:$0xf]  ;;  %v12344_v20 = vld [vmem:[#allocation67_spill] sm:$0xff] }
 0x336   : > { %v2714_v8 = vadd.f32 %v2713_v22, %v2625_v28  ;;  %v3915_v26 = vmax.f32 %v2449_v27, 0.0  ;;  %v12343_v59 = vld [vmem:[#allocation64_spill] sm:$0xff] }
 0x337   : > { %2866 = vmatpush.bf16.msrb.mxu1 %v6677_v37  ;;  %v6388_v37 = vld [vmem:[#allocation6 + $0x90] sm:$0xf] }
 0x338   : > { %v3908_v35 = vmax.f32 %v2714_v8, 0.0  ;;  %v7690_v30 = vpack.i.bf16 %v3913_v4, %v3915_v26  ;;  %v12340_v26 = vld [vmem:[#allocation69_spill] sm:$0xff]  ;;  %v7370_v4 = vld [vmem:[#allocation6 + $0xec] sm:$0xf0] }
 0x339   : > { %v2715_v22 = vpop.f32.mrf.mxu3  ;;  %v3921_v51 = vmax.f32 %v12340_v26, 0.0  ;;  %v6421_v12 = vor.u32 %v7370_v4, %v6420_v6  ;;  %v6900_v26 = vld [vmem:[#allocation6 + $0x490] sm:$0xf] }
 0x33a   : > { %v7800_v2 = vpack.i.bf16 %v3906_v23, %v3908_v35  ;;  %7691 = vxpose.xlu0.b32.cont [10/16] %v7690_v30, 128  ;;  %v12342_v23 = vld [vmem:[#allocation108_spill] sm:$0xff] }
 0x33b   : > { %v2626_v3 = vpop.f32.mrf.mxu2  ;;  %v2451_v56 = vpop.f32.mrf.mxu0  ;;  %v3914_v35 = vmax.f32 %v12342_v23, 0.0  ;;  %2777 = vmatpush.bf16.msrb.mxu0 %v6421_v12  ;;  %v7490_v23 = vld [vmem:[#allocation6 + $0x4ac] sm:$0xf0] }
 0x33c   : > { %v2627_v28 = vadd.f32 %v2626_v3, %v2538_v52  ;;  %7801 = vxpose.xlu1.b32.cont [9/16] %v7800_v2, 128  ;;  %v2452_v11 = vadd.f32 %v2451_v56, %v9477_v42  ;;  %v2540_v9 = vpop.f32.mrf.mxu1  ;;  %v7362_v3 = vld [vmem:[#allocation6 + $0xac] sm:$0xf0] }
 0x33d   : > { %v2541_v30 = vadd.f32 %v2540_v9, %v9665_v44  ;;  %v6389_v9 = vor.u32 %v7362_v3, %v6388_v37  ;;  %v12346_v37 = vld [vmem:[#allocation109_spill] sm:$0xff] }
 0x33e   : > { %v2716_v27 = vadd.f32 %v2715_v22, %v2627_v28  ;;  %v3923_v8 = vmax.f32 %v2452_v11, 0.0  ;;  %2490 = vmatmul.bf16.gmra.mxu0 %v12341_v58  ;;  %2757 = vmatmul.bf16.gmra.mxu3 %v12341_v58  ;;  %v6644_v28 = vld [vmem:[#allocation6 + $0x290] sm:$0xf]  ;;  %v3922_v3 = vmax.f32 %v12346_v37, 0.0 }
 0x33f   : > { %2579 = vmatmul.bf16.gmra.mxu1 %v12343_v59  ;;  %2778 = vmatpush.bf16.msrb.mxu0 %v6389_v9  ;;  %v7410_v37 = vld [vmem:[#allocation6 + $0x22c] sm:$0xf0] }
 0x340   : > { %v3916_v1 = vmax.f32 %v2716_v27, 0.0  ;;  %2668 = vmatmul.bf16.gmra.mxu2 %v12344_v20  ;;  %v7692_v42 = vpack.i.bf16 %v3921_v51, %v3923_v8  ;;  %v7426_v27 = vld [vmem:[#allocation6 + $0x2ac] sm:$0xf0]  ;;  %v6901_v51 = vor.u32 %v7490_v23, %v6900_v26  ;;  %v7358_v8 = vld [vmem:[#allocation6 + $0x94] sm:$0xf] }
 0x341   : > { %v2718_v56 = vpop.f32.mrf.mxu3  ;;  %v6645_v58 = vor.u32 %v7426_v27, %v6644_v28  ;;  %v7418_v28 = vld [vmem:[#allocation6 + $0x26c] sm:$0xf0] }
 0x342   : > { %v7802_v52 = vpack.i.bf16 %v3914_v35, %v3916_v1  ;;  %7693 = vxpose.xlu0.b32.cont [11/16] %v7692_v42, 128  ;;  %v6390_v35 = vld [vmem:[#allocation6 + $0xb0] sm:$0xf0]  ;;  %v12345_v42 = vld [vmem:[#allocation72_spill] sm:$0xff]  ;;  %2956 = vmatpush.bf16.msrb.mxu2 %v6901_v51 }
 0x343   : > { %v2629_v2 = vpop.f32.mrf.mxu2  ;;  %v2453_v11 = vpop.f32.mrf.mxu0  ;;  %v6393_v12 = vor.u32 %v7358_v8, %v6390_v35  ;;  %v3929_v20 = vmax.f32 %v12345_v42, 0.0  ;;  %2867 = vmatpush.bf16.msrb.mxu1 %v6645_v58  ;;  %v6868_v23 = vld [vmem:[#allocation6 + $0x450] sm:$0xf] }
 0x344   : > { %v2630_v22 = vadd.f32 %v2629_v2, %v2541_v30  ;;  %7803 = vxpose.xlu1.b32.cont [10/16] %v7802_v52, 128  ;;  %v2454_v6 = vadd.f32 %v2453_v11, %v9484_v5  ;;  %v2542_v4 = vpop.f32.mrf.mxu1  ;;  %v6356_v52 = vld [vmem:[#allocation6 + $0x50] sm:$0xf] }
 0x345   : > { %v7354_v2 = vld [vmem:[#allocation6 + $0x6c] sm:$0xf0]  ;;  %3045 = vmatpush.bf16.msrb.mxu3 %v6393_v12  ;;  %v2543_v9 = vadd.f32 %v2542_v4, %v9665_v44 }
 0x346   : > { %v2719_v1 = vadd.f32 %v2718_v56, %v2630_v22  ;;  %v3931_v30 = vmax.f32 %v2454_v6, 0.0  ;;  %v6357_v5 = vor.u32 %v7354_v2, %v6356_v52  ;;  %v6612_v11 = vld [vmem:[#allocation6 + $0x250] sm:$0xf]  ;;  %v7350_v56 = vld [vmem:[#allocation6 + $0x54] sm:$0xf] }
 0x347   : > { %v6613_v26 = vor.u32 %v7418_v28, %v6612_v11  ;;  %v7482_v22 = vld [vmem:[#allocation6 + $0x46c] sm:$0xf0]  ;;  %v6358_v6 = vld [vmem:[#allocation6 + $0x70] sm:$0xf0] }
 0x348   : > { %v3924_v59 = vmax.f32 %v2719_v1, 0.0  ;;  %v7694_v27 = vpack.i.bf16 %v3929_v20, %v3931_v30  ;;  %2779 = vmatpush.bf16.msrb.mxu0 %v6357_v5  ;;  %v6869_v58 = vor.u32 %v7482_v22, %v6868_v23  ;;  %v6361_v35 = vor.u32 %v7350_v56, %v6358_v6  ;;  %v6324_v1 = vld [vmem:[#allocation6 + $0x10] sm:$0xf]  ;;  %v12347_v56 = vld [vmem:[#allocation73_spill] sm:$0xff] }
 0x349   : > { %2868 = vmatpush.bf16.msrb.mxu1 %v6613_v26  ;;  %v7346_v12 = vld [vmem:[#allocation6 + $0x2c] sm:$0xf0]  ;;  %v2720_v2 = vpop.f32.mrf.mxu3  ;;  %v6326_v26 = vld [vmem:[#allocation6 + $0x30] sm:$0xf0] }
 0x34a   : > { %v7804_v8 = vpack.i.bf16 %v3922_v3, %v3924_v59  ;;  %7695 = vxpose.xlu0.b32.cont [12/16] %v7694_v27, 128  ;;  %v6580_v42 = vld [vmem:[#allocation6 + $0x210] sm:$0xf]  ;;  %2957 = vmatpush.bf16.msrb.mxu2 %v6869_v58  ;;  %v6325_v30 = vor.u32 %v7346_v12, %v6324_v1  ;;  %v7342_v27 = vld [vmem:[#allocation6 + $0x14] sm:$0xf]  ;;  %v3930_v58 = vmax.f32 %v9479_v14, 0.0 }
 0x34b   : > { %v2631_v51 = vpop.f32.mrf.mxu2  ;;  %v2456_v20 = vpop.f32.mrf.mxu0  ;;  %v6836_v11 = vld [vmem:[#allocation6 + $0x410] sm:$0xf]  ;;  %3046 = vmatpush.bf16.msrb.mxu3 %v6361_v35  ;;  %v6581_v5 = vor.u32 %v7410_v37, %v6580_v42  ;;  %v6329_v22 = vor.u32 %v7342_v27, %v6326_v26 }
 0x34c   : > { %v2632_v52 = vadd.f32 %v2631_v51, %v2543_v9  ;;  %7805 = vxpose.xlu1.b32.cont [11/16] %v7804_v8, 128  ;;  %v7474_v4 = vld [vmem:[#allocation6 + $0x42c] sm:$0xf0]  ;;  %v2457_v59 = vadd.f32 %v2456_v20, %v9495_v24  ;;  %v2545_v3 = vpop.f32.mrf.mxu1  ;;  %2780 = vmatpush.bf16.msrb.mxu0 %v6325_v30  ;;  %v3937_v9 = vmax.f32 %v12347_v56, 0.0  ;;  %v12348_v30 = vld [vmem:[#allocation75_spill] sm:$0xff] }
 0x34d   : > { %v6837_v28 = vor.u32 %v7474_v4, %v6836_v11  ;;  %2869 = vmatpush.bf16.msrb.mxu1 %v6581_v5  ;;  %v2546_v24 = vadd.f32 %v2545_v3, %v9665_v44  ;;  %v3945_v37 = vmax.f32 %v12348_v30, 0.0  ;;  %v3938_v4 = vmax.f32 %v9486_v36, 0.0 }
 0x34e   : > { %v2721_v23 = vadd.f32 %v2720_v2, %v2632_v52  ;;  %v3939_v8 = vmax.f32 %v2457_v59, 0.0  ;;  %2495 = vmatmul.bf16.gmra.mxu0 %v9216_v47  ;;  %2762 = vmatmul.bf16.gmra.mxu3 %v9216_v47  ;;  %v3946_v36 = vmax.f32 %v9497_v45, 0.0 }
 0x34f   : > { %2584 = vmatmul.bf16.gmra.mxu1 %v9208_v62  ;;  %2958 = vmatpush.bf16.msrb.mxu2 %v6837_v28 }
 0x350   : > { %v3932_v6 = vmax.f32 %v2721_v23, 0.0  ;;  %2673 = vmatmul.bf16.gmra.mxu2 %v9214_v61  ;;  %v7696_v51 = vpack.i.bf16 %v3937_v9, %v3939_v8  ;;  %3047 = vmatpush.bf16.msrb.mxu3 %v6329_v22  ;;  %v12349_v8 = vld [vmem:[#allocation78_spill] sm:$0xff] }
 0x351   : > { %v2723_v42 = vpop.f32.mrf.mxu3 }
 0x352   : > { %v7806_v35 = vpack.i.bf16 %v3930_v58, %v3932_v6  ;;  %7697 = vxpose.xlu0.b32.cont [13/16] %v7696_v51, 128  ;;  %v3953_v58 = vmax.f32 %v12349_v8, 0.0 }
 0x353   : > { %v2634_v1 = vpop.f32.mrf.mxu2  ;;  %v2458_v52 = vpop.f32.mrf.mxu0 }
 0x354   : > { %v2635_v12 = vadd.f32 %v2634_v1, %v2546_v24  ;;  %7807 = vxpose.xlu1.b32.cont [12/16] %v7806_v35, 128  ;;  %v2459_v14 = vadd.f32 %v2458_v52, %v9502_v60  ;;  %v2547_v2 = vpop.f32.mrf.mxu1 }
 0x355   : > { %v2548_v5 = vadd.f32 %v2547_v2, %v9665_v44 }
 0x356   : > { %v2724_v20 = vadd.f32 %v2723_v42, %v2635_v12  ;;  %v3947_v11 = vmax.f32 %v2459_v14, 0.0 }
 0x358   : > { %v3940_v59 = vmax.f32 %v2724_v20, 0.0  ;;  %v7698_v3 = vpack.i.bf16 %v3945_v37, %v3947_v11  ;;  %v12350_v20 = vld [vmem:[#allocation79_spill] sm:$0xff]  ;;  %v3954_v11 = vmax.f32 %v9504_v49, 0.0  ;;  %v3962_v49 = vmax.f32 %v9515_v57, 0.0 }
 0x359   : > { %v2725_v23 = vpop.f32.mrf.mxu3  ;;  %v3961_v30 = vmax.f32 %v12350_v20, 0.0 }
 0x35a   : > { %v7808_v28 = vpack.i.bf16 %v3938_v4, %v3940_v59  ;;  %7699 = vxpose.xlu0.b32.cont [14/16] %v7698_v3, 128 }
 0x35b   : > { %v2636_v27 = vpop.f32.mrf.mxu2  ;;  %v2461_v22 = vpop.f32.mrf.mxu0 }
 0x35c   : > { %v2637_v26 = vadd.f32 %v2636_v27, %v2548_v5  ;;  %7809 = vxpose.xlu1.b32.cont [13/16] %v7808_v28, 128  ;;  %v2462_v60 = vadd.f32 %v2461_v22, %v9513_v0  ;;  %v2550_v56 = vpop.f32.mrf.mxu1 }
 0x35d   : > { %v2551_v51 = vadd.f32 %v2550_v56, %v9665_v44  ;;  %v12351_v56 = vld [vmem:[#allocation80_spill] sm:$0xff] }
 0x35e   : > { %v2726_v9 = vadd.f32 %v2725_v23, %v2637_v26  ;;  %v3955_v6 = vmax.f32 %v2462_v60, 0.0  ;;  %2500 = vmatmul.bf16.gmra.mxu0 %v9242_v25  ;;  %2767 = vmatmul.bf16.gmra.mxu3 %v9242_v25 }
 0x35f   : > { %2589 = vmatmul.bf16.gmra.mxu1 %v9234_v10 }
 0x360   : > { %v3948_v24 = vmax.f32 %v2726_v9, 0.0  ;;  %2678 = vmatmul.bf16.gmra.mxu2 %v9240_v54  ;;  %v7700_v35 = vpack.i.bf16 %v3953_v58, %v3955_v6  ;;  %v3969_v9 = vmax.f32 %v12351_v56, 0.0  ;;  %v12356_v56 = vld [vmem:[#allocation16_spill] sm:$0xff] }
 0x361   : > { %v2728_v42 = vpop.f32.mrf.mxu3 }
 0x362   : > { %v7810_v0 = vpack.i.bf16 %v3946_v36, %v3948_v24  ;;  %7701 = vxpose.xlu0.b32.cont [15/16] %v7700_v35, 128 }
 0x363   : > { %v2639_v1 = vpop.f32.mrf.mxu2  ;;  %v2463_v52 = vpop.f32.mrf.mxu0 }
 0x364   : > { %v2640_v12 = vadd.f32 %v2639_v1, %v2551_v51  ;;  %7811 = vxpose.xlu1.b32.cont [14/16] %v7810_v0, 128  ;;  %v2464_v14 = vadd.f32 %v2463_v52, %v9520_v13  ;;  %v2552_v45 = vpop.f32.mrf.mxu1 }
 0x365   : > { %v2553_v3 = vadd.f32 %v2552_v45, %v9665_v44  ;;  %v3970_v45 = vmax.f32 %v9522_v32, 0.0  ;;  %v12355_v32 = vld [vmem:[#allocation110_spill] sm:$0xff] }
 0x366   : > { %v2729_v2 = vadd.f32 %v2728_v42, %v2640_v12  ;;  %v3963_v37 = vmax.f32 %v2464_v14, 0.0  ;;  %v12352_v42 = vld [vmem:[#allocation81_spill] sm:$0xff] }
 0x367   : > { %v3977_v52 = vmax.f32 %v12352_v42, 0.0 }
 0x368   : > { %v3956_v4 = vmax.f32 %v2729_v2, 0.0  ;;  %v7702_v59 = vpack.i.bf16 %v3961_v30, %v3963_v37 }
 0x369   : > { %v2730_v26 = vpop.f32.mrf.mxu3 }
 0x36a   : > { %v7812_v5 = vpack.i.bf16 %v3954_v11, %v3956_v4  ;;  %7703 = vxpose.xlu0.b32.end [16/16] %v7702_v59, 128 }
 0x36b   : > { %v2641_v28 = vpop.f32.mrf.mxu2  ;;  %v2466_v23 = vpop.f32.mrf.mxu0 }
 0x36c   : > { %v2642_v27 = vadd.f32 %v2641_v28, %v2553_v3  ;;  %7813 = vxpose.xlu1.b32.cont [15/16] %v7812_v5, 128  ;;  %v2467_v13 = vadd.f32 %v2466_v23, %v9531_v48  ;;  %v2555_v22 = vpop.f32.mrf.mxu1 }
 0x36d   : > { %v2556_v6 = vadd.f32 %v2555_v22, %v9665_v44 }
 0x36e   : > { %v2731_v60 = vadd.f32 %v2730_v26, %v2642_v27  ;;  %v3971_v8 = vmax.f32 %v2467_v13, 0.0  ;;  %2781 = vmatmul.bf16.vlgmr.msrb.gmra.mxu0 %v8920_v39  ;;  %3048 = vmatmul.bf16.vlgmr.msrb.gmra.mxu3 %v8920_v39  ;;  %v12354_v27 = vld [vmem:[#allocation82_spill] sm:$0xff]  ;;  %v3978_v13 = vmax.f32 %v12355_v32, 0.0  ;;  %v12364_v32 = vld [vmem:[#allocation19_spill] sm:$0xff] }
 0x36f   : > { %2870 = vmatmul.bf16.vlgmr.msrb.gmra.mxu1 %v8922_v40  ;;  %v3985_v26 = vmax.f32 %v12354_v27, 0.0 }
 0x370   : > { %v3964_v58 = vmax.f32 %v2731_v60, 0.0  ;;  %2959 = vmatmul.bf16.vlgmr.msrb.gmra.mxu2 %v8924_v41  ;;  %v8120_v36 = vpack.i.bf16 %v3969_v9, %v3971_v8  ;;  %v12357_v9 = vld [vmem:[#allocation17_spill] sm:$0xff] }
 0x371   : > { %v2733_v35 = vpop.f32.mrf.mxu3 }
 0x372   : > { %v7814_v48 = vpack.i.bf16 %v3962_v49, %v3964_v58 }
 0x373   : > { %v2644_v24 = vpop.f32.mrf.mxu2  ;;  %v2468_v0 = vpop.f32.mrf.mxu0 }
 0x374   : > { %v2645_v51 = vadd.f32 %v2644_v24, %v2556_v6  ;;  %7815 = vxpose.xlu1.b32.end [16/16] %v7814_v48, 128  ;;  %v2469_v1 = vadd.f32 %v2468_v0, %v9538_v46  ;;  %v2557_v12 = vpop.f32.mrf.mxu1 }
 0x375   : > { %v2558_v30 = vadd.f32 %v2557_v12, %v9665_v44  ;;  %v12360_v12 = vld [vmem:[#allocation111_spill] sm:$0xff] }
 0x376   : > { %v2734_v57 = vadd.f32 %v2733_v35, %v2645_v51  ;;  %v3979_v14 = vmax.f32 %v2469_v1, 0.0  ;;  %v12359_v35 = vld [vmem:[#allocation83_spill] sm:$0xff] }
 0x377   : > { %v3993_v0 = vmax.f32 %v12359_v35, 0.0 }
 0x378   : > { %v3972_v2 = vmax.f32 %v2734_v57, 0.0  ;;  %v8122_v20 = vpack.i.bf16 %v3977_v52, %v3979_v14  ;;  %v3986_v57 = vmax.f32 %v12360_v12, 0.0 }
 0x379   : > { %v2735_v59 = vpop.f32.mrf.mxu3 }
 0x37a   : > { %v9776_v37 = vpack.i.bf16 %v3970_v45, %v3972_v2 }
 0x37b   : > { %v2646_v11 = vpop.f32.mrf.mxu2  ;;  %v2471_v3 = vpop.f32.mrf.mxu0 }
 0x37c   : > { %12353 = vst [vmem:[#allocation39_spill] sm:$0xff] %v9776_v37  ;;  %v2647_v4 = vadd.f32 %v2646_v11, %v2558_v30  ;;  %8121 = vxpose.xlu1.b32.start [1/16] %v8120_v36, 128  ;;  %v2472_v46 = vadd.f32 %v2471_v3, %v9549_v21  ;;  %v2560_v5 = vpop.f32.mrf.mxu1  ;;  %v12362_v3 = vld [vmem:[#allocation84_spill] sm:$0xff]  ;;  %v7502_v37 = vld [vmem:[#allocation6 + $0x514] sm:$0xf] }
 0x37d   : > { %v2561_v60 = vadd.f32 %v2560_v5, %v9665_v44 }
 0x37e   : > { %v2736_v28 = vadd.f32 %v2735_v59, %v2647_v4  ;;  %v3987_v23 = vmax.f32 %v2472_v46, 0.0  ;;  %2786 = vmatmul.bf16.gmra.mxu0 %v12270_v15  ;;  %3053 = vmatmul.bf16.gmra.mxu3 %v12270_v15  ;;  %v4001_v46 = vmax.f32 %v12362_v3, 0.0 }
 0x37f   : > { %2875 = vmatmul.bf16.gmra.mxu1 %v12356_v56 }
 0x380   : > { %v3980_v22 = vmax.f32 %v2736_v28, 0.0  ;;  %2964 = vmatmul.bf16.gmra.mxu2 %v12357_v9  ;;  %v8124_v8 = vpack.i.bf16 %v3985_v26, %v3987_v23  ;;  %v12363_v28 = vld [vmem:[#allocation15_spill] sm:$0xff] }
 0x381   : > { %v2738_v6 = vpop.f32.mrf.mxu3  ;;  %v3994_v27 = vmax.f32 %v12363_v28, 0.0 }
 0x382   : > { %v9786_v21 = vpack.i.bf16 %v3978_v13, %v3980_v22  ;;  %v12365_v13 = vld [vmem:[#allocation20_spill] sm:$0xff] }
 0x383   : > { %v2649_v49 = vpop.f32.mrf.mxu2  ;;  %v2473_v36 = vpop.f32.mrf.mxu0 }
 0x384   : > { %12358 = vst [vmem:[#allocation41_spill] sm:$0xff] %v9786_v21  ;;  %v2650_v58 = vadd.f32 %v2649_v49, %v2561_v60  ;;  %8123 = vxpose.xlu1.b32.cont [2/16] %v8122_v20, 128  ;;  %v2474_v48 = vadd.f32 %v2473_v36, %v9556_v19  ;;  %v2562_v24 = vpop.f32.mrf.mxu1 }
 0x385   : > { %v2563_v45 = vadd.f32 %v2562_v24, %v9665_v44  ;;  %v12367_v24 = vld [vmem:[#allocation85_spill] sm:$0xff] }
 0x386   : > { %v2739_v51 = vadd.f32 %v2738_v6, %v2650_v58  ;;  %v3995_v1 = vmax.f32 %v2474_v48, 0.0 }
 0x388   : > { %v3988_v42 = vmax.f32 %v2739_v51, 0.0  ;;  %v8126_v52 = vpack.i.bf16 %v3993_v0, %v3995_v1  ;;  %v4009_v51 = vmax.f32 %v12367_v24, 0.0  ;;  %v12368_v0 = vld [vmem:[#allocation112_spill] sm:$0xff] }
 0x389   : > { %v2740_v11 = vpop.f32.mrf.mxu3  ;;  %v4002_v1 = vmax.f32 %v12368_v0, 0.0 }
 0x38a   : > { %v9791_v14 = vpack.i.bf16 %v3986_v57, %v3988_v42 }
 0x38b   : > { %v2651_v2 = vpop.f32.mrf.mxu2  ;;  %v2476_v20 = vpop.f32.mrf.mxu0 }
 0x38c   : > { %12361 = vst [vmem:[#allocation98_spill] sm:$0xff] %v9791_v14  ;;  %v2652_v30 = vadd.f32 %v2651_v2, %v2563_v45  ;;  %8125 = vxpose.xlu1.b32.cont [3/16] %v8124_v8, 128  ;;  %v2477_v19 = vadd.f32 %v2476_v20, %v9567_v38  ;;  %v2565_v4 = vpop.f32.mrf.mxu1 }
 0x38d   : > { %v2566_v23 = vadd.f32 %v2565_v4, %v9665_v44  ;;  %v12370_v4 = vld [vmem:[#allocation86_spill] sm:$0xff] }
 0x38e   : > { %v2741_v59 = vadd.f32 %v2740_v11, %v2652_v30  ;;  %v4003_v5 = vmax.f32 %v2477_v19, 0.0  ;;  %2791 = vmatmul.bf16.gmra.mxu0 %v12274_v55  ;;  %3058 = vmatmul.bf16.gmra.mxu3 %v12274_v55 }
 0x38f   : > { %2880 = vmatmul.bf16.gmra.mxu1 %v12364_v32 }
 0x390   : > { %v3996_v26 = vmax.f32 %v2741_v59, 0.0  ;;  %2969 = vmatmul.bf16.gmra.mxu2 %v12365_v13  ;;  %v8128_v22 = vpack.i.bf16 %v4001_v46, %v4003_v5  ;;  %v4017_v59 = vmax.f32 %v12370_v4, 0.0  ;;  %v12371_v46 = vld [vmem:[#allocation21_spill] sm:$0xff] }
 0x391   : > { %v2743_v49 = vpop.f32.mrf.mxu3  ;;  %v12372_v5 = vld [vmem:[#allocation113_spill] sm:$0xff] }
 0x392   : > { %v9802_v38 = vpack.i.bf16 %v3994_v27, %v3996_v26  ;;  %v4010_v28 = vmax.f32 %v12372_v5, 0.0  ;;  %v12380_v5 = vld [vmem:[#allocation89_spill] sm:$0xff] }
 0x393   : > { %v2654_v60 = vpop.f32.mrf.mxu2  ;;  %v2478_v58 = vpop.f32.mrf.mxu0 }
 0x394   : > { %12366 = vst [vmem:[#allocation44_spill] sm:$0xff] %v9802_v38  ;;  %v2655_v8 = vadd.f32 %v2654_v60, %v2566_v23  ;;  %8127 = vxpose.xlu1.b32.cont [4/16] %v8126_v52, 128  ;;  %v2479_v6 = vadd.f32 %v2478_v58, %v9574_v17  ;;  %v2567_v36 = vpop.f32.mrf.mxu1  ;;  %v12373_v23 = vld [vmem:[#allocation22_spill] sm:$0xff]  ;;  %v12374_v60 = vld [vmem:[#allocation23_spill] sm:$0xff]  ;;  %v7443_v38 = vld [vmem:[#allocation6 + $0x334] sm:$0xf0] }
 0x395   : > { %v2568_v45 = vadd.f32 %v2567_v36, %v9665_v44  ;;  %v12376_v36 = vld [vmem:[#allocation115_spill] sm:$0xff] }
 0x396   : > { %v2744_v48 = vadd.f32 %v2743_v49, %v2655_v8  ;;  %v4011_v35 = vmax.f32 %v2479_v6, 0.0 }
 0x398   : > { %v4004_v12 = vmax.f32 %v2744_v48, 0.0  ;;  %v8130_v57 = vpack.i.bf16 %v4009_v51, %v4011_v35  ;;  %v12377_v35 = vld [vmem:[#allocation87_spill] sm:$0xff] }
 0x399   : > { %v2745_v11 = vpop.f32.mrf.mxu3  ;;  %v4025_v0 = vmax.f32 %v12377_v35, 0.0 }
 0x39a   : > { %v9807_v42 = vpack.i.bf16 %v4002_v1, %v4004_v12  ;;  %v12378_v12 = vld [vmem:[#allocation114_spill] sm:$0xff] }
 0x39b   : > { %v2656_v2 = vpop.f32.mrf.mxu2  ;;  %v2481_v52 = vpop.f32.mrf.mxu0 }
 0x39c   : > { %12369 = vst [vmem:[#allocation99_spill] sm:$0xff] %v9807_v42  ;;  %v2657_v30 = vadd.f32 %v2656_v2, %v2568_v45  ;;  %8129 = vxpose.xlu1.b32.cont [5/16] %v8128_v22, 128  ;;  %v2482_v17 = vadd.f32 %v2481_v52, %v9585_v34  ;;  %v2570_v20 = vpop.f32.mrf.mxu1  ;;  %v4018_v45 = vmax.f32 %v12378_v12, 0.0 }
 0x39d   : > { %v2571_v26 = vadd.f32 %v2570_v20, %v9665_v44 }
 0x39e   : > { %v2746_v19 = vadd.f32 %v2745_v11, %v2657_v30  ;;  %v4019_v3 = vmax.f32 %v2482_v17, 0.0  ;;  %2796 = vmatmul.bf16.gmra.mxu0 %v12371_v46  ;;  %3063 = vmatmul.bf16.gmra.mxu3 %v12371_v46 }
 0x39f   : > { %2885 = vmatmul.bf16.gmra.mxu1 %v12373_v23 }
 0x3a0   : > { %v4012_v27 = vmax.f32 %v2746_v19, 0.0  ;;  %2974 = vmatmul.bf16.gmra.mxu2 %v12374_v60  ;;  %v8132_v22 = vpack.i.bf16 %v4017_v59, %v4019_v3 }
 0x3a1   : > { %v2748_v58 = vpop.f32.mrf.mxu3 }
 0x3a2   : > { %v9818_v34 = vpack.i.bf16 %v4010_v28, %v4012_v27  ;;  %v4033_v28 = vmax.f32 %v12380_v5, 0.0 }
 0x3a3   : > { %v2659_v8 = vpop.f32.mrf.mxu2  ;;  %v2483_v6 = vpop.f32.mrf.mxu0 }
 0x3a4   : > { %12375 = vst [vmem:[#allocation102_spill] sm:$0xff] %v9818_v34  ;;  %v2660_v49 = vadd.f32 %v2659_v8, %v2571_v26  ;;  %8131 = vxpose.xlu1.b32.cont [6/16] %v8130_v57, 128  ;;  %v2484_v48 = vadd.f32 %v2483_v6, %v12376_v36  ;;  %v2572_v24 = vpop.f32.mrf.mxu1  ;;  %v12381_v26 = vld [vmem:[#allocation24_spill] sm:$0xff]  ;;  %v12383_v36 = vld [vmem:[#allocation25_spill] sm:$0xff] }
 0x3a5   : > { %v2573_v52 = vadd.f32 %v2572_v24, %v9665_v44  ;;  %v12382_v8 = vld [vmem:[#allocation88_spill] sm:$0xff]  ;;  %v7403_v24 = vld [vmem:[#allocation6 + $0x1f4] sm:$0xf0] }
 0x3a6   : > { %v2749_v51 = vadd.f32 %v2748_v58, %v2660_v49  ;;  %v4027_v1 = vmax.f32 %v2484_v48, 0.0  ;;  %v4026_v49 = vmax.f32 %v12382_v8, 0.0  ;;  %v12384_v48 = vld [vmem:[#allocation26_spill] sm:$0xff]  ;;  %v6812_v8 = vld [vmem:[#allocation6 + $0x3d8] sm:$0xf]  ;;  %v12429_v34 = vld [vmem:[#allocation48_spill] sm:$0xff] }
 0x3a8   : > { %v4020_v2 = vmax.f32 %v2749_v51, 0.0  ;;  %v8134_v30 = vpack.i.bf16 %v4025_v0, %v4027_v1 }
 0x3a9   : > { %v2750_v19 = vpop.f32.mrf.mxu3 }
 0x3aa   : > { %v9823_v11 = vpack.i.bf16 %v4018_v45, %v4020_v2 }
 0x3ab   : > { %v2661_v17 = vpop.f32.mrf.mxu2  ;;  %v2486_v57 = vpop.f32.mrf.mxu0 }
 0x3ac   : > { %12379 = vst [vmem:[#allocation46_spill] sm:$0xff] %v9823_v11  ;;  %v2662_v20 = vadd.f32 %v2661_v17, %v2573_v52  ;;  %8133 = vxpose.xlu1.b32.cont [7/16] %v8132_v22, 128  ;;  %v2487_v4 = vadd.f32 %v2486_v57, %v9603_v33  ;;  %v2575_v59 = vpop.f32.mrf.mxu1  ;;  %v6556_v33 = vld [vmem:[#allocation6 + $0x1d8] sm:$0xf] }
 0x3ad   : > { %v2576_v6 = vadd.f32 %v2575_v59, %v9665_v44  ;;  %v6557_v51 = vor.u32 %v7403_v24, %v6556_v33  ;;  %v7062_v33 = vld [vmem:[#allocation6 + $0x5f0] sm:$0xf0] }
 0x3ae   : > { %v2751_v3 = vadd.f32 %v2750_v19, %v2662_v20  ;;  %v4035_v27 = vmax.f32 %v2487_v4, 0.0  ;;  %2801 = vmatmul.bf16.gmra.mxu0 %v12381_v26  ;;  %3068 = vmatmul.bf16.gmra.mxu3 %v12381_v26  ;;  %v12386_v20 = vld [vmem:[#allocation90_spill] sm:$0xff]  ;;  %v12387_v4 = vld [vmem:[#allocation116_spill] sm:$0xff] }
 0x3af   : > { %2890 = vmatmul.bf16.gmra.mxu1 %v12383_v36  ;;  %3307 = vmatpush.bf16.msra.mxu2 %v6557_v51  ;;  %v4041_v19 = vmax.f32 %v12386_v20, 0.0  ;;  %v4034_v59 = vmax.f32 %v12387_v4, 0.0  ;;  %v12390_v20 = vld [vmem:[#allocation117_spill] sm:$0xff] }
 0x3b0   : > { %v4028_v58 = vmax.f32 %v2751_v3, 0.0  ;;  %2979 = vmatmul.bf16.gmra.mxu2 %v12384_v48  ;;  %v8136_v22 = vpack.i.bf16 %v4033_v28, %v4035_v27 }
 0x3b1   : > { %v2753_v12 = vpop.f32.mrf.mxu3 }
 0x3b2   : > { %v9834_v35 = vpack.i.bf16 %v4026_v49, %v4028_v58  ;;  %v7467_v49 = vld [vmem:[#allocation6 + $0x3f4] sm:$0xf0] }
 0x3b3   : > { %v2664_v0 = vpop.f32.mrf.mxu2  ;;  %v2488_v45 = vpop.f32.mrf.mxu0 }
 0x3b4   : > { %12385 = vst [vmem:[#allocation100_spill] sm:$0xff] %v9834_v35  ;;  %v2665_v1 = vadd.f32 %v2664_v0, %v2576_v6  ;;  %8135 = vxpose.xlu1.b32.cont [8/16] %v8134_v30, 128  ;;  %v2489_v2 = vadd.f32 %v2488_v45, %v9610_v43  ;;  %v2577_v52 = vpop.f32.mrf.mxu1  ;;  %v7526_v30 = vld [vmem:[#allocation6 + $0x5d4] sm:$0xf]  ;;  %v6813_v6 = vor.u32 %v7467_v49, %v6812_v8 }
 0x3b5   : > { %v2578_v27 = vadd.f32 %v2577_v52, %v9665_v44  ;;  %v7065_v0 = vor.u32 %v7526_v30, %v7062_v33 }
 0x3b6   : > { %v2754_v17 = vadd.f32 %v2753_v12, %v2665_v1  ;;  %v4043_v57 = vmax.f32 %v2489_v2, 0.0  ;;  %3396 = vmatpush.bf16.msra.mxu3 %v6813_v6  ;;  %v12389_v2 = vld [vmem:[#allocation91_spill] sm:$0xff] }
 0x3b7   : > { %3218 = vmatpush.bf16.msra.mxu1 %v7065_v0  ;;  %v12394_v0 = vld [vmem:[#allocation92_spill] sm:$0xff] }
 0x3b8   : > { %v4036_v3 = vmax.f32 %v2754_v17, 0.0  ;;  %v8138_v5 = vpack.i.bf16 %v4041_v19, %v4043_v57  ;;  %v4049_v17 = vmax.f32 %v12389_v2, 0.0  ;;  %v4042_v19 = vmax.f32 %v12390_v20, 0.0 }
 0x3b9   : > { %v2755_v24 = vpop.f32.mrf.mxu3 }
 0x3ba   : > { %v9839_v28 = vpack.i.bf16 %v4034_v59, %v4036_v3  ;;  %v12391_v59 = vld [vmem:[#allocation28_spill] sm:$0xff] }
 0x3bb   : > { %v2666_v58 = vpop.f32.mrf.mxu2  ;;  %v2491_v51 = vpop.f32.mrf.mxu0 }
 0x3bc   : > { %12388 = vst [vmem:[#allocation52_spill] sm:$0xff] %v9839_v28  ;;  %v2667_v43 = vadd.f32 %v2666_v58, %v2578_v27  ;;  %8137 = vxpose.xlu1.b32.cont [9/16] %v8136_v22, 128  ;;  %v2492_v1 = vadd.f32 %v2491_v51, %v9621_v18  ;;  %v2580_v12 = vpop.f32.mrf.mxu1  ;;  %v12392_v22 = vld [vmem:[#allocation29_spill] sm:$0xff] }
 0x3bd   : > { %v2581_v4 = vadd.f32 %v2580_v12, %v9665_v44  ;;  %v7462_v18 = vld [vmem:[#allocation6 + $0x3d4] sm:$0xf] }
 0x3be   : > { %v2756_v45 = vadd.f32 %v2755_v24, %v2667_v43  ;;  %v4051_v52 = vmax.f32 %v2492_v1, 0.0  ;;  %2806 = vmatmul.bf16.gmra.mxu0 %v9000_v29  ;;  %3073 = vmatmul.bf16.gmra.mxu3 %v9000_v29  ;;  %v6806_v27 = vld [vmem:[#allocation6 + $0x3f0] sm:$0xf0]  ;;  %v4057_v1 = vmax.f32 %v12394_v0, 0.0 }
 0x3bf   : > { %2895 = vmatmul.bf16.gmra.mxu1 %v12391_v59  ;;  %v6809_v8 = vor.u32 %v7462_v18, %v6806_v27  ;;  %v6998_v28 = vld [vmem:[#allocation6 + $0x570] sm:$0xf0] }
 0x3c0   : > { %v4044_v57 = vmax.f32 %v2756_v45, 0.0  ;;  %2984 = vmatmul.bf16.gmra.mxu2 %v12392_v22  ;;  %v8140_v3 = vpack.i.bf16 %v4049_v17, %v4051_v52  ;;  %v12395_v45 = vld [vmem:[#allocation118_spill] sm:$0xff] }
 0x3c1   : > { %v2758_v6 = vpop.f32.mrf.mxu3  ;;  %3129 = vmatpush.bf16.msra.mxu0 %v6809_v8  ;;  %v4050_v2 = vmax.f32 %v12395_v45, 0.0  ;;  %v7395_v45 = vld [vmem:[#allocation6 + $0x1b4] sm:$0xf0] }
 0x3c2   : > { %v9850_v49 = vpack.i.bf16 %v4042_v19, %v4044_v57 }
 0x3c3   : > { %v2669_v30 = vpop.f32.mrf.mxu2  ;;  %v2493_v33 = vpop.f32.mrf.mxu0 }
 0x3c4   : > { %12393 = vst [vmem:[#allocation49_spill] sm:$0xff] %v9850_v49  ;;  %v2670_v58 = vadd.f32 %v2669_v30, %v2581_v4  ;;  %8139 = vxpose.xlu1.b32.cont [10/16] %v8138_v5, 128  ;;  %v2494_v43 = vadd.f32 %v2493_v33, %v9628_v63  ;;  %v2582_v24 = vpop.f32.mrf.mxu1  ;;  %v12397_v30 = vld [vmem:[#allocation94_spill] sm:$0xff]  ;;  %v7518_v49 = vld [vmem:[#allocation6 + $0x594] sm:$0xf] }
 0x3c5   : > { %v2583_v19 = vadd.f32 %v2582_v24, %v9665_v44  ;;  %v12398_v33 = vld [vmem:[#allocation30_spill] sm:$0xff]  ;;  %v12400_v24 = vld [vmem:[#allocation31_spill] sm:$0xff] }
 0x3c6   : > { %v2759_v51 = vadd.f32 %v2758_v6, %v2670_v58  ;;  %v4059_v12 = vmax.f32 %v2494_v43, 0.0  ;;  %v4065_v58 = vmax.f32 %v12397_v30, 0.0  ;;  %v12399_v43 = vld [vmem:[#allocation93_spill] sm:$0xff] }
 0x3c7   : > { %v7459_v30 = vld [vmem:[#allocation6 + $0x3b4] sm:$0xf0] }
 0x3c8   : > { %v4052_v17 = vmax.f32 %v2759_v51, 0.0  ;;  %v8142_v52 = vpack.i.bf16 %v4057_v1, %v4059_v12  ;;  %v4058_v51 = vmax.f32 %v12399_v43, 0.0  ;;  %v12401_v12 = vld [vmem:[#allocation32_spill] sm:$0xff] }
 0x3c9   : > { %v2760_v5 = vpop.f32.mrf.mxu3 }
 0x3ca   : > { %v9855_v20 = vpack.i.bf16 %v4050_v2, %v4052_v17 }
 0x3cb   : > { %v2671_v57 = vpop.f32.mrf.mxu2  ;;  %v2496_v18 = vpop.f32.mrf.mxu0 }
 0x3cc   : > { %12396 = vst [vmem:[#allocation101_spill] sm:$0xff] %v9855_v20  ;;  %v2672_v4 = vadd.f32 %v2671_v57, %v2583_v19  ;;  %8141 = vxpose.xlu1.b32.cont [11/16] %v8140_v3, 128  ;;  %v2497_v63 = vadd.f32 %v2496_v18, %v9639_v50  ;;  %v2585_v27 = vpop.f32.mrf.mxu1  ;;  %v6524_v50 = vld [vmem:[#allocation6 + $0x198] sm:$0xf] }
 0x3cd   : > { %v2586_v1 = vadd.f32 %v2585_v27, %v9665_v44  ;;  %v6525_v2 = vor.u32 %v7395_v45, %v6524_v50  ;;  %v7030_v50 = vld [vmem:[#allocation6 + $0x5b0] sm:$0xf0] }
 0x3ce   : > { %v2761_v8 = vadd.f32 %v2760_v5, %v2672_v4  ;;  %v4067_v6 = vmax.f32 %v2497_v63, 0.0  ;;  %2811 = vmatmul.bf16.gmra.mxu0 %v12398_v33  ;;  %3078 = vmatmul.bf16.gmra.mxu3 %v12398_v33 }
 0x3cf   : > { %2900 = vmatmul.bf16.gmra.mxu1 %v12400_v24  ;;  %3308 = vmatpush.bf16.msra.mxu2 %v6525_v2 }
 0x3d0   : > { %v4060_v0 = vmax.f32 %v2761_v8, 0.0  ;;  %2989 = vmatmul.bf16.gmra.mxu2 %v12401_v12  ;;  %v8144_v3 = vpack.i.bf16 %v4065_v58, %v4067_v6  ;;  %v6780_v8 = vld [vmem:[#allocation6 + $0x398] sm:$0xf]  ;;  %v12403_v58 = vld [vmem:[#allocation95_spill] sm:$0xff] }
 0x3d1   : > { %v2763_v4 = vpop.f32.mrf.mxu3  ;;  %v4073_v6 = vmax.f32 %v12403_v58, 0.0  ;;  %v6781_v20 = vor.u32 %v7459_v30, %v6780_v8  ;;  %v12406_v58 = vld [vmem:[#allocation96_spill] sm:$0xff] }
 0x3d2   : > { %v9866_v17 = vpack.i.bf16 %v4058_v51, %v4060_v0  ;;  %v12404_v51 = vld [vmem:[#allocation119_spill] sm:$0xff] }
 0x3d3   : > { %v2674_v19 = vpop.f32.mrf.mxu2  ;;  %v2498_v5 = vpop.f32.mrf.mxu0  ;;  %v4066_v0 = vmax.f32 %v12404_v51, 0.0  ;;  %3397 = vmatpush.bf16.msra.mxu3 %v6781_v20  ;;  %v4081_v51 = vmax.f32 %v12406_v58, 0.0  ;;  %v12412_v58 = vld [vmem:[#allocation97_spill] sm:$0xff] }
 0x3d4   : > { %12402 = vst [vmem:[#allocation56_spill] sm:$0xff] %v9866_v17  ;;  %v2675_v57 = vadd.f32 %v2674_v19, %v2586_v1  ;;  %8143 = vxpose.xlu1.b32.cont [12/16] %v8142_v52, 128  ;;  %v2499_v18 = vadd.f32 %v2498_v5, %v9646_v31  ;;  %v2587_v63 = vpop.f32.mrf.mxu1  ;;  %v7033_v1 = vor.u32 %v7518_v49, %v7030_v50  ;;  %v12407_v49 = vld [vmem:[#allocation120_spill] sm:$0xff]  ;;  %v12409_v50 = vld [vmem:[#allocation35_spill] sm:$0xff] }
 0x3d5   : > { %v2588_v31 = vadd.f32 %v2587_v63, %v9665_v44  ;;  %v4074_v20 = vmax.f32 %v12407_v49, 0.0  ;;  %v4089_v49 = vmax.f32 %v12412_v58, 0.0  ;;  %v12416_v58 = vld [vmem:[#allocation122_spill] sm:$0xff] }
 0x3d6   : > { %v2764_v27 = vadd.f32 %v2763_v4, %v2675_v57  ;;  %v4075_v43 = vmax.f32 %v2499_v18, 0.0  ;;  %3219 = vmatpush.bf16.msra.mxu1 %v7033_v1 }
 0x3d8   : > { %v4068_v45 = vmax.f32 %v2764_v27, 0.0  ;;  %v8146_v19 = vpack.i.bf16 %v4073_v6, %v4075_v43  ;;  %v12408_v43 = vld [vmem:[#allocation34_spill] sm:$0xff] }
 0x3d9   : > { %v2765_v4 = vpop.f32.mrf.mxu3 }
 0x3da   : > { %v9871_v52 = vpack.i.bf16 %v4066_v0, %v4068_v45  ;;  %v6774_v0 = vld [vmem:[#allocation6 + $0x3b0] sm:$0xf0] }
 0x3db   : > { %v2676_v2 = vpop.f32.mrf.mxu2  ;;  %v2501_v5 = vpop.f32.mrf.mxu0 }
 0x3dc   : > { %12405 = vst [vmem:[#allocation51_spill] sm:$0xff] %v9871_v52  ;;  %v2677_v57 = vadd.f32 %v2676_v2, %v2588_v31  ;;  %8145 = vxpose.xlu1.b32.cont [13/16] %v8144_v3, 128  ;;  %v2502_v18 = vadd.f32 %v2501_v5, %v9657_v16  ;;  %v2590_v8 = vpop.f32.mrf.mxu1  ;;  %v7454_v16 = vld [vmem:[#allocation6 + $0x394] sm:$0xf]  ;;  %v12411_v5 = vld [vmem:[#allocation123_spill] sm:$0xff] }
 0x3dd   : > { %v2591_v63 = vadd.f32 %v2590_v8, %v9665_v44  ;;  %v6777_v45 = vor.u32 %v7454_v16, %v6774_v0 }
 0x3de   : > { %v2766_v30 = vadd.f32 %v2765_v4, %v2677_v57  ;;  %v4083_v27 = vmax.f32 %v2502_v18, 0.0  ;;  %2816 = vmatmul.bf16.gmra.mxu0 %v9032_v7  ;;  %3083 = vmatmul.bf16.gmra.mxu3 %v9032_v7 }
 0x3df   : > { %2905 = vmatmul.bf16.gmra.mxu1 %v12408_v43  ;;  %3130 = vmatpush.bf16.msra.mxu0 %v6777_v45 }
 0x3e0   : > { %v4076_v6 = vmax.f32 %v2766_v30, 0.0  ;;  %2994 = vmatmul.bf16.gmra.mxu2 %v12409_v50  ;;  %v8148_v3 = vpack.i.bf16 %v4081_v51, %v4083_v27  ;;  %v12413_v27 = vld [vmem:[#allocation121_spill] sm:$0xff] }
 0x3e1   : > { %v2768_v57 = vpop.f32.mrf.mxu3  ;;  %v4082_v52 = vmax.f32 %v12413_v27, 0.0  ;;  %v4090_v27 = vmax.f32 %v12416_v58, 0.0 }
 0x3e2   : > { %v9882_v1 = vpack.i.bf16 %v4074_v20, %v4076_v6  ;;  %v9890_v20 = vld [vmem:[%s11930_s2] sm:$0xff] }
 0x3e3   : > { %v2679_v31 = vpop.f32.mrf.mxu2  ;;  %v2503_v4 = vpop.f32.mrf.mxu0  ;;  %v9893_v6 = vperm.slane %v9890_v20, 4 }
 0x3e4   : > { %12410 = vst [vmem:[#allocation103_spill] sm:$0xff] %v9882_v1  ;;  %v2680_v2 = vadd.f32 %v2679_v31, %v2591_v63  ;;  %8147 = vxpose.xlu1.b32.cont [14/16] %v8146_v19, 128  ;;  %v2504_v18 = vadd.f32 %v2503_v4, %v12411_v5  ;;  %v2592_v8 = vpop.f32.mrf.mxu1 }
 0x3e5   : > { %v2593_v16 = vadd.f32 %v2592_v8, %v9665_v44  ;;  %v6492_v44 = vld [vmem:[#allocation6 + $0x158] sm:$0xf] }
 0x3e6   : > { %v2769_v30 = vadd.f32 %v2768_v57, %v2680_v2  ;;  %v4091_v51 = vmax.f32 %v2504_v18, 0.0 }
 0x3e8   : > { %v4084_v17 = vmax.f32 %v2769_v30, 0.0  ;;  %v8150_v19 = vpack.i.bf16 %v4089_v49, %v4091_v51  ;;  %v12415_v30 = vld [vmem:[#allocation36_spill] sm:$0xff]  ;;  %v12417_v49 = vld [vmem:[#allocation37_spill] sm:$0xff] }
 0x3e9   : > { %v2770_v31 = vpop.f32.mrf.mxu3 }
 0x3ea   : > { %v9895_v63 = vpack.i.bf16 %v4082_v52, %v4084_v17  ;;  %v12418_v17 = vld [vmem:[#allocation38_spill] sm:$0xff]  ;;  %v7387_v52 = vld [vmem:[#allocation6 + $0x174] sm:$0xf0] }
 0x3eb   : > { %v2681_v0 = vpop.f32.mrf.mxu2  ;;  %v2782_v2 = vpop.f32.mrf.mxu0 }
 0x3ec   : > { %12414 = vst [vmem:[#allocation59_spill] sm:$0xff] %v9895_v63  ;;  %v2682_v45 = vadd.f32 %v2681_v0, %v2593_v16  ;;  %8149 = vxpose.xlu1.b32.cont [15/16] %v8148_v3, 128  ;;  %v2783_v57 = vadd.f32 %v2782_v2, %v9893_v6  ;;  %v2871_v4 = vpop.f32.mrf.mxu1  ;;  %v6493_v3 = vor.u32 %v7387_v52, %v6492_v44  ;;  %v7510_v63 = vld [vmem:[#allocation6 + $0x554] sm:$0xf] }
 0x3ed   : > { %v7001_v44 = vor.u32 %v7510_v63, %v6998_v28  ;;  %v7446_v28 = vld [vmem:[#allocation6 + $0x354] sm:$0xf] }
 0x3ee   : > { %v2771_v5 = vadd.f32 %v2770_v31, %v2682_v45  ;;  %v2872_v18 = vadd.f32 %v2871_v4, %v2783_v57  ;;  %2821 = vmatmul.bf16.gmra.mxu0 %v12415_v30  ;;  %3088 = vmatmul.bf16.gmra.mxu3 %v12415_v30  ;;  %v6748_v57 = vld [vmem:[#allocation6 + $0x358] sm:$0xf]  ;;  %v6742_v63 = vld [vmem:[#allocation6 + $0x370] sm:$0xf0] }
 0x3ef   : > { %2910 = vmatmul.bf16.gmra.mxu1 %v12417_v49  ;;  %3309 = vmatpush.bf16.msra.mxu2 %v6493_v3  ;;  %v7451_v4 = vld [vmem:[#allocation6 + $0x374] sm:$0xf0] }
 0x3f0   : > { %v4092_v1 = vmax.f32 %v2771_v5, 0.0  ;;  %2999 = vmatmul.bf16.gmra.mxu2 %v12418_v17  ;;  %v6749_v58 = vor.u32 %v7451_v4, %v6748_v57  ;;  %3220 = vmatpush.bf16.msra.mxu1 %v7001_v44 }
 0x3f1   : > { %v9908_v0 = vpop.f32.mrf.mxu3 }
 0x3f2   : > { %v9904_v8 = vpack.i.bf16 %v4090_v27, %v4092_v1  ;;  %3398 = vmatpush.bf16.msra.mxu3 %v6749_v58 }
 0x3f3   : > { %v2960_v51 = vpop.f32.mrf.mxu2  ;;  %v2784_v45 = vpop.f32.mrf.mxu0 }
 0x3f4   : > { %12419 = vst [vmem:[#allocation55_spill] sm:$0xff] %v9904_v8  ;;  %v9906_v16 = vadd.f32 %v2960_v51, %v2872_v18  ;;  %8151 = vxpose.xlu1.b32.end [16/16] %v8150_v19, 128  ;;  %v2785_v31 = vadd.f32 %v2784_v45, %v9893_v6  ;;  %v2873_v2 = vpop.f32.mrf.mxu1  ;;  %v12422_v45 = vld [vmem:[#allocation42_spill] sm:$0xff] }
 0x3f6   : > { %12420 = vst [vmem:[#allocation104_spill] sm:$0xff] %v9906_v16  ;;  %v2874_v5 = vadd.f32 %v2873_v2, %v2785_v31  ;;  %v12423_v31 = vld [vmem:[#allocation43_spill] sm:$0xff]  ;;  %v6745_v2 = vor.u32 %v7446_v28, %v6742_v63  ;;  %v12435_v16 = vld [vmem:[#allocation53_spill] sm:$0xff] }
 0x3f8   : > { %3131 = vmatpush.bf16.msra.mxu0 %v6745_v2  ;;  %v6460_v2 = vld [vmem:[#allocation6 + $0x118] sm:$0xf] }
 0x3f9   : > { %v9913_v27 = vpop.f32.mrf.mxu3 }
 0x3fb   : > { %v2962_v1 = vpop.f32.mrf.mxu2  ;;  %v2787_v19 = vpop.f32.mrf.mxu0 }
 0x3fc   : > { %v9911_v18 = vadd.f32 %v2962_v1, %v2874_v5  ;;  %v2788_v52 = vadd.f32 %v2787_v19, %v9893_v6  ;;  %v2876_v3 = vpop.f32.mrf.mxu1 }
 0x3fe   : > { %12421 = vst [vmem:[#allocation63_spill] sm:$0xff] %v9911_v18  ;;  %v2877_v51 = vadd.f32 %v2876_v3, %v2788_v52  ;;  %2826 = vmatmul.bf16.gmra.mxu0 %v12308_v53  ;;  %3093 = vmatmul.bf16.gmra.mxu3 %v12308_v53  ;;  %v12434_v18 = vld [vmem:[#allocation50_spill] sm:$0xff] }
 0x3ff   : > { %2915 = vmatmul.bf16.gmra.mxu1 %v12422_v45 }
 0x400   : > { %3004 = vmatmul.bf16.gmra.mxu2 %v12423_v31 }
 0x401   : > { %v9922_v5 = vpop.f32.mrf.mxu3 }
 0x403   : > { %v2965_v57 = vpop.f32.mrf.mxu2  ;;  %v2789_v58 = vpop.f32.mrf.mxu0 }
 0x404   : > { %v9920_v4 = vadd.f32 %v2965_v57, %v2877_v51  ;;  %v2790_v44 = vadd.f32 %v2789_v58, %v9893_v6  ;;  %v2878_v1 = vpop.f32.mrf.mxu1  ;;  %v12427_v51 = vld [vmem:[#allocation45_spill] sm:$0xff]  ;;  %v12428_v57 = vld [vmem:[#allocation47_spill] sm:$0xff] }
 0x405   : > { %v7379_v58 = vld [vmem:[#allocation6 + $0x134] sm:$0xf0] }
 0x406   : > { %12424 = vst [vmem:[#allocation58_spill] sm:$0xff] %v9920_v4  ;;  %v2879_v19 = vadd.f32 %v2878_v1, %v2790_v44  ;;  %v6461_v44 = vor.u32 %v7379_v58, %v6460_v2 }
 0x408   : > { %3310 = vmatpush.bf16.msra.mxu2 %v6461_v44 }
 0x409   : > { %v9927_v8 = vpop.f32.mrf.mxu3 }
 0x40a   : > { %12426 = vst [vmem:[#allocation66_spill] sm:$0xff] %v9927_v8  ;;  %v6620_v8 = vld [vmem:[#allocation6 + $0x258] sm:$0xf] }
 0x40b   : > { %v2967_v52 = vpop.f32.mrf.mxu2  ;;  %v2792_v35 = vpop.f32.mrf.mxu0 }
 0x40c   : > { %v9925_v3 = vadd.f32 %v2967_v52, %v2879_v19  ;;  %v2793_v11 = vadd.f32 %v2792_v35, %v9893_v6  ;;  %v2881_v28 = vpop.f32.mrf.mxu1 }
 0x40e   : > { %12425 = vst [vmem:[#allocation105_spill] sm:$0xff] %v9925_v3  ;;  %v2882_v63 = vadd.f32 %v2881_v28, %v2793_v11  ;;  %2831 = vmatmul.bf16.gmra.mxu0 %v12427_v51  ;;  %3098 = vmatmul.bf16.gmra.mxu3 %v12427_v51  ;;  %v6716_v28 = vld [vmem:[#allocation6 + $0x318] sm:$0xf]  ;;  %v6966_v3 = vld [vmem:[#allocation6 + $0x530] sm:$0xf0] }
 0x40f   : > { %2920 = vmatmul.bf16.gmra.mxu1 %v12428_v57  ;;  %v6717_v21 = vor.u32 %v7443_v38, %v6716_v28  ;;  %v6969_v4 = vor.u32 %v7502_v37, %v6966_v3  ;;  %v12436_v38 = vld [vmem:[#allocation54_spill] sm:$0xff]  ;;  %v7438_v37 = vld [vmem:[#allocation6 + $0x314] sm:$0xf]  ;;  %v7355_v57 = vld [vmem:[#allocation6 + $0x74] sm:$0xf0] }
 0x410   : > { %3009 = vmatmul.bf16.gmra.mxu2 %v12429_v34 }
 0x411   : > { %v9936_v52 = vpop.f32.mrf.mxu3  ;;  %3399 = vmatpush.bf16.msra.mxu3 %v6717_v21  ;;  %3221 = vmatpush.bf16.msra.mxu1 %v6969_v4  ;;  %v6710_v21 = vld [vmem:[#allocation6 + $0x330] sm:$0xf0] }
 0x412   : > { %12431 = vst [vmem:[#allocation106_spill] sm:$0xff] %v9936_v52  ;;  %v6713_v4 = vor.u32 %v7438_v37, %v6710_v21 }
 0x413   : > { %v2970_v1 = vpop.f32.mrf.mxu2  ;;  %v2794_v42 = vpop.f32.mrf.mxu0 }
 0x414   : > { %v9934_v19 = vadd.f32 %v2970_v1, %v2882_v63  ;;  %v2795_v11 = vadd.f32 %v2794_v42, %v9893_v6  ;;  %v2883_v35 = vpop.f32.mrf.mxu1  ;;  %3132 = vmatpush.bf16.msra.mxu0 %v6713_v4  ;;  %v6428_v4 = vld [vmem:[#allocation6 + $0xd8] sm:$0xf] }
 0x416   : > { %12430 = vst [vmem:[#allocation62_spill] sm:$0xff] %v9934_v19  ;;  %v2884_v14 = vadd.f32 %v2883_v35, %v2795_v11 }
 0x419   : > { %v9941_v63 = vpop.f32.mrf.mxu3 }
 0x41a   : > { %12433 = vst [vmem:[#allocation65_spill] sm:$0xff] %v9941_v63  ;;  %v7430_v63 = vld [vmem:[#allocation6 + $0x2d4] sm:$0xf] }
 0x41b   : > { %v2972_v2 = vpop.f32.mrf.mxu2  ;;  %v2797_v1 = vpop.f32.mrf.mxu0 }
 0x41c   : > { %v9939_v58 = vadd.f32 %v2972_v2, %v2884_v14  ;;  %v2798_v44 = vadd.f32 %v2797_v1, %v9893_v6  ;;  %v2886_v19 = vpop.f32.mrf.mxu1 }
 0x41e   : > { %12432 = vst [vmem:[#allocation70_spill] sm:$0xff] %v9939_v58  ;;  %v2887_v42 = vadd.f32 %v2886_v19, %v2798_v44  ;;  %2836 = vmatmul.bf16.gmra.mxu0 %v12434_v18  ;;  %3103 = vmatmul.bf16.gmra.mxu3 %v12434_v18 }
 0x41f   : > { %2925 = vmatmul.bf16.gmra.mxu1 %v12435_v16 }
 0x420   : > { %3014 = vmatmul.bf16.gmra.mxu2 %v12436_v38 }
 0x421   : > { %v9950_v11 = vpop.f32.mrf.mxu3 }
 0x422   : > { %12438 = vst [vmem:[#allocation69_spill] sm:$0xff] %v9950_v11  ;;  %v6934_v11 = vld [vmem:[#allocation6 + $0x4f0] sm:$0xf0] }
 0x423   : > { %v2975_v14 = vpop.f32.mrf.mxu2  ;;  %v2799_v35 = vpop.f32.mrf.mxu0 }
 0x424   : > { %v9948_v3 = vadd.f32 %v2975_v14, %v2887_v42  ;;  %v2800_v19 = vadd.f32 %v2799_v35, %v9893_v6  ;;  %v2888_v28 = vpop.f32.mrf.mxu1  ;;  %v12441_v42 = vld [vmem:[#allocation57_spill] sm:$0xff]  ;;  %v12442_v14 = vld [vmem:[#allocation60_spill] sm:$0xff] }
 0x425   : > { %v7371_v35 = vld [vmem:[#allocation6 + $0xf4] sm:$0xf0] }
 0x426   : > { %12437 = vst [vmem:[#allocation107_spill] sm:$0xff] %v9948_v3  ;;  %v2889_v2 = vadd.f32 %v2888_v28, %v2800_v19  ;;  %v12443_v3 = vld [vmem:[#allocation61_spill] sm:$0xff]  ;;  %v6429_v19 = vor.u32 %v7371_v35, %v6428_v4 }
 0x428   : > { %3311 = vmatpush.bf16.msra.mxu2 %v6429_v19 }
 0x429   : > { %v9955_v58 = vpop.f32.mrf.mxu3 }
 0x42a   : > { %12440 = vst [vmem:[#allocation72_spill] sm:$0xff] %v9955_v58  ;;  %v7435_v58 = vld [vmem:[#allocation6 + $0x2f4] sm:$0xf0] }
 0x42b   : > { %v2977_v1 = vpop.f32.mrf.mxu2  ;;  %v2802_v18 = vpop.f32.mrf.mxu0 }
 0x42c   : > { %v9953_v44 = vadd.f32 %v2977_v1, %v2889_v2  ;;  %v2803_v38 = vadd.f32 %v2802_v18, %v9893_v6  ;;  %v2891_v37 = vpop.f32.mrf.mxu1 }
 0x42e   : > { %12439 = vst [vmem:[#allocation108_spill] sm:$0xff] %v9953_v44  ;;  %v2892_v21 = vadd.f32 %v2891_v37, %v2803_v38  ;;  %2841 = vmatmul.bf16.gmra.mxu0 %v12441_v42  ;;  %3108 = vmatmul.bf16.gmra.mxu3 %v12441_v42  ;;  %v6684_v37 = vld [vmem:[#allocation6 + $0x2d8] sm:$0xf] }
 0x42f   : > { %2930 = vmatmul.bf16.gmra.mxu1 %v12442_v14  ;;  %v6685_v16 = vor.u32 %v7435_v58, %v6684_v37  ;;  %v12449_v58 = vld [vmem:[#allocation67_spill] sm:$0xff] }
 0x430   : > { %3019 = vmatmul.bf16.gmra.mxu2 %v12443_v3  ;;  %v7494_v3 = vld [vmem:[#allocation6 + $0x4d4] sm:$0xf] }
 0x431   : > { %v9964_v1 = vpop.f32.mrf.mxu3  ;;  %v6937_v42 = vor.u32 %v7494_v3, %v6934_v11  ;;  %3400 = vmatpush.bf16.msra.mxu3 %v6685_v16  ;;  %v7422_v11 = vld [vmem:[#allocation6 + $0x294] sm:$0xf] }
 0x432   : > { %12445 = vst [vmem:[#allocation73_spill] sm:$0xff] %v9964_v1  ;;  %v12448_v1 = vld [vmem:[#allocation64_spill] sm:$0xff] }
 0x433   : > { %v2980_v28 = vpop.f32.mrf.mxu2  ;;  %v2804_v44 = vpop.f32.mrf.mxu0  ;;  %3222 = vmatpush.bf16.msra.mxu1 %v6937_v42  ;;  %v6646_v42 = vld [vmem:[#allocation6 + $0x2b0] sm:$0xf0] }
 0x434   : > { %v9962_v2 = vadd.f32 %v2980_v28, %v2892_v21  ;;  %v2805_v18 = vadd.f32 %v2804_v44, %v9893_v6  ;;  %v2893_v38 = vpop.f32.mrf.mxu1 }
 0x436   : > { %12444 = vst [vmem:[#allocation109_spill] sm:$0xff] %v9962_v2  ;;  %v2894_v14 = vadd.f32 %v2893_v38, %v2805_v18  ;;  %v6678_v18 = vld [vmem:[#allocation6 + $0x2f0] sm:$0xf0]  ;;  %v12450_v38 = vld [vmem:[#allocation68_spill] sm:$0xff] }
 0x437   : > { %v6681_v16 = vor.u32 %v7430_v63, %v6678_v18 }
 0x439   : > { %v9969_v21 = vpop.f32.mrf.mxu3  ;;  %3133 = vmatpush.bf16.msra.mxu0 %v6681_v16  ;;  %v7427_v16 = vld [vmem:[#allocation6 + $0x2b4] sm:$0xf0] }
 0x43a   : > { %12447 = vst [vmem:[#allocation78_spill] sm:$0xff] %v9969_v21  ;;  %v7363_v21 = vld [vmem:[#allocation6 + $0xb4] sm:$0xf0] }
 0x43b   : > { %v2982_v4 = vpop.f32.mrf.mxu2  ;;  %v2807_v28 = vpop.f32.mrf.mxu0 }
 0x43c   : > { %v9967_v35 = vadd.f32 %v2982_v4, %v2894_v14  ;;  %v2808_v19 = vadd.f32 %v2807_v28, %v9893_v6  ;;  %v2896_v2 = vpop.f32.mrf.mxu1  ;;  %v7486_v14 = vld [vmem:[#allocation6 + $0x494] sm:$0xf]  ;;  %v6649_v28 = vor.u32 %v7422_v11, %v6646_v42 }
 0x43d   : > { %v6870_v42 = vld [vmem:[#allocation6 + $0x470] sm:$0xf0] }
 0x43e   : > { %12446 = vst [vmem:[#allocation75_spill] sm:$0xff] %v9967_v35  ;;  %v2897_v44 = vadd.f32 %v2896_v2, %v2808_v19  ;;  %2846 = vmatmul.bf16.gmra.mxu0 %v12448_v1  ;;  %3113 = vmatmul.bf16.gmra.mxu3 %v12448_v1  ;;  %v6902_v19 = vld [vmem:[#allocation6 + $0x4b0] sm:$0xf0]  ;;  %v6396_v35 = vld [vmem:[#allocation6 + $0x98] sm:$0xf] }
 0x43f   : > { %2935 = vmatmul.bf16.gmra.mxu1 %v12449_v58  ;;  %v6905_v63 = vor.u32 %v7486_v14, %v6902_v19  ;;  %v6397_v18 = vor.u32 %v7363_v21, %v6396_v35  ;;  %v6652_v1 = vld [vmem:[#allocation6 + $0x298] sm:$0xf]  ;;  %3134 = vmatpush.bf16.msra.mxu0 %v6649_v28 }
 0x440   : > { %3024 = vmatmul.bf16.gmra.mxu2 %v12450_v38  ;;  %v6653_v51 = vor.u32 %v7427_v16, %v6652_v1  ;;  %v7419_v14 = vld [vmem:[#allocation6 + $0x274] sm:$0xf0]  ;;  %v7406_v1 = vld [vmem:[#allocation6 + $0x214] sm:$0xf] }
 0x441   : > { %v9978_v4 = vpop.f32.mrf.mxu3  ;;  %3223 = vmatpush.bf16.msra.mxu1 %v6905_v63  ;;  %3312 = vmatpush.bf16.msra.mxu2 %v6397_v18  ;;  %v6621_v35 = vor.u32 %v7419_v14, %v6620_v8  ;;  %v6838_v18 = vld [vmem:[#allocation6 + $0x430] sm:$0xf0] }
 0x442   : > { %12452 = vst [vmem:[#allocation80_spill] sm:$0xff] %v9978_v4  ;;  %3401 = vmatpush.bf16.msra.mxu3 %v6653_v51  ;;  %v6364_v4 = vld [vmem:[#allocation6 + $0x58] sm:$0xf] }
 0x443   : > { %v2985_v3 = vpop.f32.mrf.mxu2  ;;  %v2809_v2 = vpop.f32.mrf.mxu0 }
 0x444   : > { %v9976_v37 = vadd.f32 %v2985_v3, %v2897_v44  ;;  %v2810_v58 = vadd.f32 %v2809_v2, %v9893_v6  ;;  %v2898_v38 = vpop.f32.mrf.mxu1  ;;  %v7414_v44 = vld [vmem:[#allocation6 + $0x254] sm:$0xf]  ;;  %v6365_v2 = vor.u32 %v7355_v57, %v6364_v4  ;;  %v7347_v57 = vld [vmem:[#allocation6 + $0x34] sm:$0xf0] }
 0x445   : > { %v6614_v3 = vld [vmem:[#allocation6 + $0x270] sm:$0xf0] }
 0x446   : > { %12451 = vst [vmem:[#allocation79_spill] sm:$0xff] %v9976_v37  ;;  %v2899_v34 = vadd.f32 %v2898_v38, %v2810_v58  ;;  %v7478_v37 = vld [vmem:[#allocation6 + $0x454] sm:$0xf]  ;;  %v6617_v11 = vor.u32 %v7414_v44, %v6614_v3  ;;  %3313 = vmatpush.bf16.msra.mxu2 %v6365_v2  ;;  %3402 = vmatpush.bf16.msra.mxu3 %v6621_v35  ;;  %v7411_v3 = vld [vmem:[#allocation6 + $0x234] sm:$0xf0] }
 0x447   : > { %v6873_v52 = vor.u32 %v7478_v37, %v6870_v42  ;;  %v6582_v58 = vld [vmem:[#allocation6 + $0x230] sm:$0xf0]  ;;  %v6332_v37 = vld [vmem:[#allocation6 + $0x18] sm:$0xf] }
 0x448   : > { %3135 = vmatpush.bf16.msra.mxu0 %v6617_v11  ;;  %v7470_v38 = vld [vmem:[#allocation6 + $0x414] sm:$0xf]  ;;  %v6585_v63 = vor.u32 %v7406_v1, %v6582_v58  ;;  %v6333_v44 = vor.u32 %v7347_v57, %v6332_v37 }
 0x449   : > { %3224 = vmatpush.bf16.msra.mxu1 %v6873_v52  ;;  %v9983_v19 = vpop.f32.mrf.mxu3  ;;  %v6841_v8 = vor.u32 %v7470_v38, %v6838_v18  ;;  %v6588_v52 = vld [vmem:[#allocation6 + $0x218] sm:$0xf] }
 0x44a   : > { %v6589_v11 = vor.u32 %v7411_v3, %v6588_v52  ;;  %3314 = vmatpush.bf16.msra.mxu2 %v6333_v44 }
 0x44b   : > { %v2987_v21 = vpop.f32.mrf.mxu2  ;;  %v2812_v51 = vpop.f32.mrf.mxu0 }
 0x44c   : > { %v9981_v28 = vadd.f32 %v2987_v21, %v2899_v34  ;;  %v2813_v4 = vadd.f32 %v2812_v51, %v9893_v6  ;;  %v2901_v16 = vpop.f32.mrf.mxu1  ;;  %3136 = vmatpush.bf16.msra.mxu0 %v6585_v63  ;;  %3403 = vmatpush.bf16.msra.mxu3 %v6589_v11 }
 0x44d   : > { %3225 = vmatpush.bf16.msra.mxu1 %v6841_v8 }
 0x44e   : > { %12453 = vst [vmem:[#allocation81_spill] sm:$0xff] %v9981_v28  ;;  %v2902_v42 = vadd.f32 %v2901_v16, %v2813_v4  ;;  %2851 = vmatmul.bf16.gmra.mxu0 %v9208_v62  ;;  %3118 = vmatmul.bf16.gmra.mxu3 %v9208_v62 }
 0x44f   : > { %2940 = vmatmul.bf16.gmra.mxu1 %v9214_v61 }
 0x450   : > { %3029 = vmatmul.bf16.gmra.mxu2 %v9216_v47 }
 0x451   : > { %v9992_v14 = vpop.f32.mrf.mxu3 }
 0x453   : > { %v2990_v34 = vpop.f32.mrf.mxu2  ;;  %v2814_v35 = vpop.f32.mrf.mxu0 }
 0x454   : > { %v9990_v2 = vadd.f32 %v2990_v34, %v2902_v42  ;;  %v2815_v21 = vadd.f32 %v2814_v35, %v9893_v6  ;;  %v2903_v1 = vpop.f32.mrf.mxu1 }
 0x456   : > { %12454 = vst [vmem:[#allocation82_spill] sm:$0xff] %v9990_v2  ;;  %v2904_v58 = vadd.f32 %v2903_v1, %v2815_v21 }
 0x459   : > { %v9997_v63 = vpop.f32.mrf.mxu3 }
 0x45b   : > { %v2992_v38 = vpop.f32.mrf.mxu2  ;;  %v2817_v18 = vpop.f32.mrf.mxu0 }
 0x45c   : > { %v9995_v51 = vadd.f32 %v2992_v38, %v2904_v58  ;;  %v2818_v37 = vadd.f32 %v2817_v18, %v9893_v6  ;;  %v2906_v57 = vpop.f32.mrf.mxu1 }
 0x45e   : > { %12455 = vst [vmem:[#allocation110_spill] sm:$0xff] %v9995_v51  ;;  %v2907_v4 = vadd.f32 %v2906_v57, %v2818_v37  ;;  %2856 = vmatmul.bf16.gmra.mxu0 %v9234_v10  ;;  %3123 = vmatmul.bf16.gmra.mxu3 %v9234_v10 }
 0x45f   : > { %2945 = vmatmul.bf16.gmra.mxu1 %v9240_v54 }
 0x460   : > { %3034 = vmatmul.bf16.gmra.mxu2 %v9242_v25 }
 0x461   : > { %v10006_v44 = vpop.f32.mrf.mxu3 }
 0x463   : > { %v2995_v16 = vpop.f32.mrf.mxu2  ;;  %v2819_v52 = vpop.f32.mrf.mxu0 }
 0x464   : > { %v10004_v8 = vadd.f32 %v2995_v16, %v2907_v4  ;;  %v2820_v3 = vadd.f32 %v2819_v52, %v9893_v6  ;;  %v2908_v11 = vpop.f32.mrf.mxu1 }
 0x466   : > { %12456 = vst [vmem:[#allocation16_spill] sm:$0xff] %v10004_v8  ;;  %v2909_v42 = vadd.f32 %v2908_v11, %v2820_v3 }
 0x469   : > { %v10011_v21 = vpop.f32.mrf.mxu3 }
 0x46b   : > { %v2997_v34 = vpop.f32.mrf.mxu2  ;;  %v2822_v1 = vpop.f32.mrf.mxu0 }
 0x46c   : > { %v10009_v35 = vadd.f32 %v2997_v34, %v2909_v42  ;;  %v2823_v58 = vadd.f32 %v2822_v1, %v9893_v6  ;;  %v2911_v38 = vpop.f32.mrf.mxu1 }
 0x46e   : > { %12457 = vst [vmem:[#allocation17_spill] sm:$0xff] %v10009_v35  ;;  %v2912_v18 = vadd.f32 %v2911_v38, %v2823_v58  ;;  %3137 = vmatmul.bf16.vlgmr.msra.gmra.mxu0 %v8922_v40  ;;  %3404 = vmatmul.bf16.vlgmr.msra.gmra.mxu3 %v8922_v40 }
 0x46f   : > { %3226 = vmatmul.bf16.vlgmr.msra.gmra.mxu1 %v8924_v41 }
 0x470   : > { %3315 = vmatmul.bf16.vlgmr.msra.gmra.mxu2 %v8920_v39 }
 0x471   : > { %v10020_v4 = vpop.f32.mrf.mxu3 }
 0x473   : > { %v3000_v37 = vpop.f32.mrf.mxu2  ;;  %v2824_v16 = vpop.f32.mrf.mxu0 }
 0x474   : > { %v10018_v57 = vadd.f32 %v3000_v37, %v2912_v18  ;;  %v2825_v52 = vadd.f32 %v2824_v16, %v9893_v6  ;;  %v2913_v3 = vpop.f32.mrf.mxu1 }
 0x476   : > { %12458 = vst [vmem:[#allocation83_spill] sm:$0xff] %v10018_v57  ;;  %v2914_v11 = vadd.f32 %v2913_v3, %v2825_v52 }
 0x479   : > { %v10025_v1 = vpop.f32.mrf.mxu3 }
 0x47b   : > { %v3002_v42 = vpop.f32.mrf.mxu2  ;;  %v2827_v58 = vpop.f32.mrf.mxu0 }
 0x47c   : > { %v10023_v34 = vadd.f32 %v3002_v42, %v2914_v11  ;;  %v2828_v38 = vadd.f32 %v2827_v58, %v9893_v6  ;;  %v2916_v35 = vpop.f32.mrf.mxu1 }
 0x47e   : > { %12459 = vst [vmem:[#allocation111_spill] sm:$0xff] %v10023_v34  ;;  %v2917_v8 = vadd.f32 %v2916_v35, %v2828_v38  ;;  %3142 = vmatmul.bf16.gmra.mxu0 %v12356_v56  ;;  %3409 = vmatmul.bf16.gmra.mxu3 %v12356_v56 }
 0x47f   : > { %3231 = vmatmul.bf16.gmra.mxu1 %v12357_v9 }
 0x480   : > { %3320 = vmatmul.bf16.gmra.mxu2 %v12270_v15 }
 0x481   : > { %v10034_v16 = vpop.f32.mrf.mxu3 }
 0x483   : > { %v3005_v18 = vpop.f32.mrf.mxu2  ;;  %v2829_v52 = vpop.f32.mrf.mxu0 }
 0x484   : > { %v10032_v37 = vadd.f32 %v3005_v18, %v2917_v8  ;;  %v2830_v3 = vadd.f32 %v2829_v52, %v9893_v6  ;;  %v2918_v11 = vpop.f32.mrf.mxu1 }
 0x486   : > { %12460 = vst [vmem:[#allocation84_spill] sm:$0xff] %v10032_v37  ;;  %v2919_v42 = vadd.f32 %v2918_v11, %v2830_v3 }
 0x489   : > { %v10039_v38 = vpop.f32.mrf.mxu3 }
 0x48a   : > { %12462 = vst [vmem:[#allocation85_spill] sm:$0xff] %v10039_v38 }
 0x48b   : > { %v3007_v58 = vpop.f32.mrf.mxu2  ;;  %v2832_v34 = vpop.f32.mrf.mxu0 }
 0x48c   : > { %v10037_v35 = vadd.f32 %v3007_v58, %v2919_v42  ;;  %v2833_v57 = vadd.f32 %v2832_v34, %v9893_v6  ;;  %v2921_v51 = vpop.f32.mrf.mxu1 }
 0x48e   : > { %12461 = vst [vmem:[#allocation15_spill] sm:$0xff] %v10037_v35  ;;  %v2922_v2 = vadd.f32 %v2921_v51, %v2833_v57  ;;  %3147 = vmatmul.bf16.gmra.mxu0 %v12364_v32  ;;  %3414 = vmatmul.bf16.gmra.mxu3 %v12364_v32 }
 0x48f   : > { %3236 = vmatmul.bf16.gmra.mxu1 %v12365_v13 }
 0x490   : > { %3325 = vmatmul.bf16.gmra.mxu2 %v12274_v55 }
 0x491   : > { %v10048_v52 = vpop.f32.mrf.mxu3 }
 0x492   : > { %12464 = vst [vmem:[#allocation86_spill] sm:$0xff] %v10048_v52  ;;  %v6910_v52 = vld [vmem:[#allocation6 + $0x4b8] sm:$0xf0] }
 0x493   : > { %v3010_v8 = vpop.f32.mrf.mxu2  ;;  %v2834_v3 = vpop.f32.mrf.mxu0 }
 0x494   : > { %v10046_v18 = vadd.f32 %v3010_v8, %v2922_v2  ;;  %v2835_v11 = vadd.f32 %v2834_v3, %v9893_v6  ;;  %v2923_v42 = vpop.f32.mrf.mxu1 }
 0x496   : > { %12463 = vst [vmem:[#allocation112_spill] sm:$0xff] %v10046_v18  ;;  %v2924_v34 = vadd.f32 %v2923_v42, %v2835_v11 }
 0x499   : > { %v10053_v57 = vpop.f32.mrf.mxu3 }
 0x49a   : > { %12466 = vst [vmem:[#allocation115_spill] sm:$0xff] %v10053_v57 }
 0x49b   : > { %v3012_v58 = vpop.f32.mrf.mxu2  ;;  %v2837_v35 = vpop.f32.mrf.mxu0 }
 0x49c   : > { %v10051_v51 = vadd.f32 %v3012_v58, %v2924_v34  ;;  %v2838_v37 = vadd.f32 %v2837_v35, %v9893_v6  ;;  %v2926_v28 = vpop.f32.mrf.mxu1 }
 0x49e   : > { %12465 = vst [vmem:[#allocation113_spill] sm:$0xff] %v10051_v51  ;;  %v2927_v32 = vadd.f32 %v2926_v28, %v2838_v37  ;;  %3152 = vmatmul.bf16.gmra.mxu0 %v12373_v23  ;;  %3419 = vmatmul.bf16.gmra.mxu3 %v12373_v23 }
 0x49f   : > { %3241 = vmatmul.bf16.gmra.mxu1 %v12374_v60 }
 0x4a0   : > { %3330 = vmatmul.bf16.gmra.mxu2 %v12371_v46 }
 0x4a1   : > { %v10062_v3 = vpop.f32.mrf.mxu3 }
 0x4a2   : > { %12468 = vst [vmem:[#allocation114_spill] sm:$0xff] %v10062_v3  ;;  %v12525_v3 = vld [vmem:[#allocation80_spill] sm:$0xff] }
 0x4a3   : > { %v3015_v2 = vpop.f32.mrf.mxu2  ;;  %v2839_v11 = vpop.f32.mrf.mxu0 }
 0x4a4   : > { %v10060_v8 = vadd.f32 %v3015_v2, %v2927_v32  ;;  %v2840_v42 = vadd.f32 %v2839_v11, %v9893_v6  ;;  %v2928_v34 = vpop.f32.mrf.mxu1  ;;  %v7463_v32 = vld [vmem:[#allocation6 + $0x3dc] sm:$0xf] }
 0x4a5   : > { %v6814_v2 = vld [vmem:[#allocation6 + $0x3f8] sm:$0xf0] }
 0x4a6   : > { %12467 = vst [vmem:[#allocation87_spill] sm:$0xff] %v10060_v8  ;;  %v2929_v35 = vadd.f32 %v2928_v34, %v2840_v42  ;;  %v6817_v11 = vor.u32 %v7463_v32, %v6814_v2 }
 0x4a8   : > { %3663 = vmatpush.bf16.msrb.mxu2 %v6817_v11 }
 0x4a9   : > { %v10067_v37 = vpop.f32.mrf.mxu3 }
 0x4aa   : > { %12470 = vst [vmem:[#allocation88_spill] sm:$0xff] %v10067_v37  ;;  %v6558_v37 = vld [vmem:[#allocation6 + $0x1f8] sm:$0xf0] }
 0x4ab   : > { %v3017_v58 = vpop.f32.mrf.mxu2  ;;  %v2842_v51 = vpop.f32.mrf.mxu0 }
 0x4ac   : > { %v10065_v28 = vadd.f32 %v3017_v58, %v2929_v35  ;;  %v2843_v18 = vadd.f32 %v2842_v51, %v9893_v6  ;;  %v2931_v46 = vpop.f32.mrf.mxu1  ;;  %v7527_v51 = vld [vmem:[#allocation6 + $0x5dc] sm:$0xf] }
 0x4ae   : > { %12469 = vst [vmem:[#allocation89_spill] sm:$0xff] %v10065_v28  ;;  %v2932_v23 = vadd.f32 %v2931_v46, %v2843_v18  ;;  %3157 = vmatmul.bf16.gmra.mxu0 %v12383_v36  ;;  %3424 = vmatmul.bf16.gmra.mxu3 %v12383_v36  ;;  %v7070_v28 = vld [vmem:[#allocation6 + $0x5f8] sm:$0xf0] }
 0x4af   : > { %3246 = vmatmul.bf16.gmra.mxu1 %v12384_v48  ;;  %v7073_v48 = vor.u32 %v7527_v51, %v7070_v28 }
 0x4b0   : > { %3335 = vmatmul.bf16.gmra.mxu2 %v12381_v26  ;;  %v7399_v26 = vld [vmem:[#allocation6 + $0x1dc] sm:$0xf] }
 0x4b1   : > { %v10076_v35 = vpop.f32.mrf.mxu3  ;;  %v6561_v36 = vor.u32 %v7399_v26, %v6558_v37  ;;  %3752 = vmatpush.bf16.msrb.mxu3 %v7073_v48  ;;  %v7068_v26 = vld [vmem:[#allocation6 + $0x5d8] sm:$0xf] }
 0x4b2   : > { %12472 = vst [vmem:[#allocation116_spill] sm:$0xff] %v10076_v35 }
 0x4b3   : > { %v3020_v42 = vpop.f32.mrf.mxu2  ;;  %v2844_v58 = vpop.f32.mrf.mxu0  ;;  %3574 = vmatpush.bf16.msrb.mxu1 %v6561_v36  ;;  %v7531_v36 = vld [vmem:[#allocation6 + $0x5f4] sm:$0xf0] }
 0x4b4   : > { %v10074_v34 = vadd.f32 %v3020_v42, %v2932_v23  ;;  %v2845_v46 = vadd.f32 %v2844_v58, %v9893_v6  ;;  %v2933_v18 = vpop.f32.mrf.mxu1  ;;  %v7069_v48 = vor.u32 %v7531_v36, %v7068_v26 }
 0x4b6   : > { %12471 = vst [vmem:[#allocation90_spill] sm:$0xff] %v10074_v34  ;;  %v2934_v8 = vadd.f32 %v2933_v18, %v2845_v46  ;;  %3485 = vmatpush.bf16.msrb.mxu0 %v7069_v48  ;;  %v6782_v48 = vld [vmem:[#allocation6 + $0x3b8] sm:$0xf0] }
 0x4b9   : > { %v10081_v23 = vpop.f32.mrf.mxu3 }
 0x4ba   : > { %12474 = vst [vmem:[#allocation117_spill] sm:$0xff] %v10081_v23 }
 0x4bb   : > { %v3022_v32 = vpop.f32.mrf.mxu2  ;;  %v2847_v42 = vpop.f32.mrf.mxu0 }
 0x4bc   : > { %v10079_v2 = vadd.f32 %v3022_v32, %v2934_v8  ;;  %v2848_v11 = vadd.f32 %v2847_v42, %v9893_v6  ;;  %v2936_v34 = vpop.f32.mrf.mxu1 }
 0x4be   : > { %12473 = vst [vmem:[#allocation91_spill] sm:$0xff] %v10079_v2  ;;  %v2937_v58 = vadd.f32 %v2936_v34, %v2848_v11  ;;  %3162 = vmatmul.bf16.gmra.mxu0 %v12391_v59  ;;  %3429 = vmatmul.bf16.gmra.mxu3 %v12391_v59 }
 0x4bf   : > { %3251 = vmatmul.bf16.gmra.mxu1 %v12392_v22 }
 0x4c0   : > { %3340 = vmatmul.bf16.gmra.mxu2 %v9000_v29 }
 0x4c1   : > { %v10090_v37 = vpop.f32.mrf.mxu3 }
 0x4c2   : > { %12476 = vst [vmem:[#allocation118_spill] sm:$0xff] %v10090_v37 }
 0x4c3   : > { %v3025_v8 = vpop.f32.mrf.mxu2  ;;  %v2849_v46 = vpop.f32.mrf.mxu0 }
 0x4c4   : > { %v10088_v28 = vadd.f32 %v3025_v8, %v2937_v58  ;;  %v2850_v34 = vadd.f32 %v2849_v46, %v9893_v6  ;;  %v2938_v18 = vpop.f32.mrf.mxu1  ;;  %v7455_v58 = vld [vmem:[#allocation6 + $0x39c] sm:$0xf] }
 0x4c5   : > { %v6785_v8 = vor.u32 %v7455_v58, %v6782_v48 }
 0x4c6   : > { %12475 = vst [vmem:[#allocation92_spill] sm:$0xff] %v10088_v28  ;;  %v2939_v51 = vadd.f32 %v2938_v18, %v2850_v34 }
 0x4c7   : > { %3664 = vmatpush.bf16.msrb.mxu2 %v6785_v8 }
 0x4c9   : > { %v10095_v11 = vpop.f32.mrf.mxu3 }
 0x4ca   : > { %12478 = vst [vmem:[#allocation93_spill] sm:$0xff] %v10095_v11 }
 0x4cb   : > { %v3027_v32 = vpop.f32.mrf.mxu2  ;;  %v2852_v2 = vpop.f32.mrf.mxu0 }
 0x4cc   : > { %v10093_v42 = vadd.f32 %v3027_v32, %v2939_v51  ;;  %v2853_v59 = vadd.f32 %v2852_v2, %v9893_v6  ;;  %v2941_v26 = vpop.f32.mrf.mxu1  ;;  %v7519_v32 = vld [vmem:[#allocation6 + $0x59c] sm:$0xf] }
 0x4ce   : > { %12477 = vst [vmem:[#allocation94_spill] sm:$0xff] %v10093_v42  ;;  %v2942_v36 = vadd.f32 %v2941_v26, %v2853_v59  ;;  %3167 = vmatmul.bf16.gmra.mxu0 %v12400_v24  ;;  %3434 = vmatmul.bf16.gmra.mxu3 %v12400_v24  ;;  %v7038_v26 = vld [vmem:[#allocation6 + $0x5b8] sm:$0xf0] }
 0x4cf   : > { %3256 = vmatmul.bf16.gmra.mxu1 %v12401_v12  ;;  %v7041_v28 = vor.u32 %v7519_v32, %v7038_v26  ;;  %v6526_v24 = vld [vmem:[#allocation6 + $0x1b8] sm:$0xf0]  ;;  %v10122_v26 = vperm.slane %v9890_v20, 5 }
 0x4d0   : > { %3345 = vmatmul.bf16.gmra.mxu2 %v12398_v33  ;;  %v7391_v33 = vld [vmem:[#allocation6 + $0x19c] sm:$0xf] }
 0x4d1   : > { %v10104_v18 = vpop.f32.mrf.mxu3  ;;  %3753 = vmatpush.bf16.msrb.mxu3 %v7041_v28  ;;  %v6529_v12 = vor.u32 %v7391_v33, %v6526_v24  ;;  %v7036_v33 = vld [vmem:[#allocation6 + $0x598] sm:$0xf] }
 0x4d2   : > { %12480 = vst [vmem:[#allocation119_spill] sm:$0xff] %v10104_v18  ;;  %v7523_v24 = vld [vmem:[#allocation6 + $0x5b4] sm:$0xf0] }
 0x4d3   : > { %v3030_v46 = vpop.f32.mrf.mxu2  ;;  %v2854_v51 = vpop.f32.mrf.mxu0  ;;  %3575 = vmatpush.bf16.msrb.mxu1 %v6529_v12  ;;  %v7037_v28 = vor.u32 %v7523_v24, %v7036_v33 }
 0x4d4   : > { %v10102_v34 = vadd.f32 %v3030_v46, %v2942_v36  ;;  %v2855_v59 = vadd.f32 %v2854_v51, %v9893_v6  ;;  %v2943_v2 = vpop.f32.mrf.mxu1 }
 0x4d5   : > { %3486 = vmatpush.bf16.msrb.mxu0 %v7037_v28 }
 0x4d6   : > { %12479 = vst [vmem:[#allocation95_spill] sm:$0xff] %v10102_v34  ;;  %v2944_v42 = vadd.f32 %v2943_v2, %v2855_v59 }
 0x4d9   : > { %v10109_v36 = vpop.f32.mrf.mxu3 }
 0x4da   : > { %12482 = vst [vmem:[#allocation120_spill] sm:$0xff] %v10109_v36  ;;  %v12507_v36 = vld [vmem:[#allocation69_spill] sm:$0xff] }
 0x4db   : > { %v3032_v11 = vpop.f32.mrf.mxu2  ;;  %v2857_v48 = vpop.f32.mrf.mxu0 }
 0x4dc   : > { %v10107_v58 = vadd.f32 %v3032_v11, %v2944_v42  ;;  %v2858_v8 = vadd.f32 %v2857_v48, %v9893_v6  ;;  %v2946_v46 = vpop.f32.mrf.mxu1 }
 0x4de   : > { %12481 = vst [vmem:[#allocation96_spill] sm:$0xff] %v10107_v58  ;;  %v2947_v51 = vadd.f32 %v2946_v46, %v2858_v8  ;;  %3172 = vmatmul.bf16.gmra.mxu0 %v12408_v43  ;;  %3439 = vmatmul.bf16.gmra.mxu3 %v12408_v43  ;;  %v10124_v8 = vpop.trf.xlu0  ;;  %v3050_v46 = vadd.f32 %v9908_v0, %v10122_v26  ;;  %v10132_v58 = vpop.trf.xlu1  ;;  %v10140_v0 = vperm.slane %v9890_v20, 6 }
 0x4df   : > { %3261 = vmatmul.bf16.gmra.mxu1 %v12409_v50  ;;  %12487 = vst [vmem:[#allocation124_spill] sm:$0xff] %v10132_v58 }
 0x4e0   : > { %3350 = vmatmul.bf16.gmra.mxu2 %v9032_v7 }
 0x4e1   : > { %v10118_v59 = vpop.f32.mrf.mxu3 }
 0x4e2   : > { %12484 = vst [vmem:[#allocation97_spill] sm:$0xff] %v10118_v59 }
 0x4e3   : > { %v3035_v42 = vpop.f32.mrf.mxu2  ;;  %v2859_v12 = vpop.f32.mrf.mxu0 }
 0x4e4   : > { %v10116_v11 = vadd.f32 %v3035_v42, %v2947_v51  ;;  %v2860_v2 = vadd.f32 %v2859_v12, %v9893_v6  ;;  %v2948_v32 = vpop.f32.mrf.mxu1  ;;  %v7447_v12 = vld [vmem:[#allocation6 + $0x35c] sm:$0xf] }
 0x4e6   : > { %12483 = vst [vmem:[#allocation123_spill] sm:$0xff] %v10116_v11  ;;  %v2949_v48 = vadd.f32 %v2948_v32, %v2860_v2  ;;  %v6750_v2 = vld [vmem:[#allocation6 + $0x378] sm:$0xf0]  ;;  %v10143_v32 = vpop.trf.xlu0 }
 0x4e7   : > { %12489 = vst [vmem:[#allocation126_spill] sm:$0xff] %v10143_v32 }
 0x4e9   : > { %v10130_v51 = vpop.f32.mrf.mxu3 }
 0x4ea   : > { %12486 = vst [vmem:[#allocation122_spill] sm:$0xff] %v10130_v51 }
 0x4eb   : > { %v3037_v33 = vpop.f32.mrf.mxu2  ;;  %v3138_v42 = vpop.f32.mrf.mxu0 }
 0x4ec   : > { %v10128_v24 = vadd.f32 %v3037_v33, %v2949_v48  ;;  %v3139_v11 = vadd.f32 %v3138_v42, %v3050_v46  ;;  %v3227_v28 = vpop.f32.mrf.mxu1  ;;  %v6753_v48 = vor.u32 %v7447_v12, %v6750_v2  ;;  %v7383_v2 = vld [vmem:[#allocation6 + $0x15c] sm:$0xf] }
 0x4ee   : > { %12485 = vst [vmem:[#allocation121_spill] sm:$0xff] %v10128_v24  ;;  %v10134_v6 = vadd.f32 %v3227_v28, %v3139_v11  ;;  %3177 = vmatmul.bf16.gmra.mxu0 %v12417_v49  ;;  %3444 = vmatmul.bf16.gmra.mxu3 %v12417_v49  ;;  %v3052_v11 = vadd.f32 %v9913_v27, %v10122_v26  ;;  %v10150_v49 = vpop.trf.xlu1  ;;  %v6494_v27 = vld [vmem:[#allocation6 + $0x178] sm:$0xf0]  ;;  %v10154_v51 = vpop.trf.xlu0 }
 0x4ef   : > { %3266 = vmatmul.bf16.gmra.mxu1 %v12418_v17  ;;  %3665 = vmatpush.bf16.msrb.mxu2 %v6753_v48  ;;  %12491 = vst [vmem:[#allocation128_spill] sm:$0xff] %v10150_v49  ;;  %v3055_v48 = vadd.f32 %v9922_v5, %v10122_v26  ;;  %v7004_v5 = vld [vmem:[#allocation6 + $0x558] sm:$0xf] }
 0x4f0   : > { %12488 = vst [vmem:[#allocation125_spill] sm:$0xff] %v10134_v6  ;;  %3355 = vmatmul.bf16.gmra.mxu2 %v12415_v30  ;;  %v7511_v6 = vld [vmem:[#allocation6 + $0x55c] sm:$0xf] }
 0x4f1   : > { %v3405_v42 = vpop.f32.mrf.mxu3  ;;  %v7006_v30 = vld [vmem:[#allocation6 + $0x578] sm:$0xf0] }
 0x4f2   : > { %v7009_v12 = vor.u32 %v7511_v6, %v7006_v30  ;;  %v7515_v6 = vld [vmem:[#allocation6 + $0x574] sm:$0xf0] }
 0x4f3   : > { %v3316_v46 = vpop.f32.mrf.mxu2  ;;  %v3140_v28 = vpop.f32.mrf.mxu0 }
 0x4f4   : > { %v3317_v33 = vadd.f32 %v3316_v46, %v10140_v0  ;;  %v3141_v24 = vadd.f32 %v3140_v28, %v3052_v11  ;;  %v3229_v34 = vpop.f32.mrf.mxu1  ;;  %3754 = vmatpush.bf16.msrb.mxu3 %v7009_v12  ;;  %v6497_v46 = vor.u32 %v7383_v2, %v6494_v27  ;;  %v7005_v2 = vor.u32 %v7515_v6, %v7004_v5  ;;  %v12495_v27 = vld [vmem:[#allocation66_spill] sm:$0xff] }
 0x4f5   : > { %v12498_v5 = vld [vmem:[#allocation106_spill] sm:$0xff] }
 0x4f6   : > { %v10148_v20 = vadd.f32 %v3405_v42, %v3317_v33  ;;  %v10152_v17 = vadd.f32 %v3229_v34, %v3141_v24  ;;  %3576 = vmatpush.bf16.msrb.mxu1 %v6497_v46  ;;  %v10161_v30 = vpop.trf.xlu1  ;;  %v10169_v12 = vpop.trf.xlu0  ;;  %v3057_v46 = vadd.f32 %v12495_v27, %v10122_v26  ;;  %3487 = vmatpush.bf16.msrb.mxu0 %v7005_v2 }
 0x4f7   : > { %v3060_v6 = vadd.f32 %v12498_v5, %v10122_v26  ;;  %v7439_v5 = vld [vmem:[#allocation6 + $0x31c] sm:$0xf] }
 0x4f8   : > { %12490 = vst [vmem:[#allocation127_spill] sm:$0xff] %v10148_v20 }
 0x4f9   : > { %12492 = vst [vmem:[#allocation129_spill] sm:$0xff] %v10152_v17  ;;  %v3407_v42 = vpop.f32.mrf.mxu3 }
 0x4fb   : > { %v3318_v11 = vpop.f32.mrf.mxu2  ;;  %v3143_v28 = vpop.f32.mrf.mxu0 }
 0x4fc   : > { %v3319_v33 = vadd.f32 %v3318_v11, %v10140_v0  ;;  %v3144_v20 = vadd.f32 %v3143_v28, %v3055_v48  ;;  %v3232_v43 = vpop.f32.mrf.mxu1 }
 0x4fe   : > { %v10159_v34 = vadd.f32 %v3407_v42, %v3319_v33  ;;  %v10163_v24 = vadd.f32 %v3232_v43, %v3144_v20  ;;  %3182 = vmatmul.bf16.gmra.mxu0 %v12422_v45  ;;  %3449 = vmatmul.bf16.gmra.mxu3 %v12422_v45  ;;  %v10180_v45 = vpop.trf.xlu0 }
 0x4ff   : > { %3271 = vmatmul.bf16.gmra.mxu1 %v12423_v31 }
 0x500   : > { %12493 = vst [vmem:[#allocation130_spill] sm:$0xff] %v10159_v34  ;;  %3360 = vmatmul.bf16.gmra.mxu2 %v12308_v53 }
 0x501   : > { %12494 = vst [vmem:[#allocation131_spill] sm:$0xff] %v10163_v24  ;;  %v3410_v20 = vpop.f32.mrf.mxu3  ;;  %v10176_v24 = vpop.trf.xlu1 }
 0x503   : > { %v3321_v48 = vpop.f32.mrf.mxu2  ;;  %v3145_v11 = vpop.f32.mrf.mxu0 }
 0x504   : > { %v3322_v43 = vadd.f32 %v3321_v48, %v10140_v0  ;;  %v3146_v33 = vadd.f32 %v3145_v11, %v3057_v46  ;;  %v3234_v42 = vpop.f32.mrf.mxu1  ;;  %v12501_v11 = vld [vmem:[#allocation47_spill] sm:$0xff] }
 0x506   : > { %v10174_v28 = vadd.f32 %v3410_v20, %v3322_v43  ;;  %v10178_v53 = vadd.f32 %v3234_v42, %v3146_v33  ;;  %v12502_v33 = vld [vmem:[#allocation48_spill] sm:$0xff]  ;;  %v12503_v42 = vld [vmem:[#allocation45_spill] sm:$0xff] }
 0x508   : > { %12496 = vst [vmem:[#allocation66_spill] sm:$0xff] %v10174_v28 }
 0x509   : > { %12497 = vst [vmem:[#allocation132_spill] sm:$0xff] %v10178_v53  ;;  %v3412_v48 = vpop.f32.mrf.mxu3  ;;  %v10187_v43 = vpop.trf.xlu1 }
 0x50a   : > { %v10195_v53 = vpop.trf.xlu0 }
 0x50b   : > { %v3323_v27 = vpop.f32.mrf.mxu2  ;;  %v3148_v31 = vpop.f32.mrf.mxu0 }
 0x50c   : > { %v3324_v17 = vadd.f32 %v3323_v27, %v10140_v0  ;;  %v3149_v34 = vadd.f32 %v3148_v31, %v3060_v6  ;;  %v3237_v2 = vpop.f32.mrf.mxu1  ;;  %v6718_v27 = vld [vmem:[#allocation6 + $0x338] sm:$0xf0] }
 0x50d   : > { %v6721_v31 = vor.u32 %v7439_v5, %v6718_v27  ;;  %v7375_v27 = vld [vmem:[#allocation6 + $0x11c] sm:$0xf] }
 0x50e   : > { %v10185_v46 = vadd.f32 %v3412_v48, %v3324_v17  ;;  %v10189_v20 = vadd.f32 %v3237_v2, %v3149_v34  ;;  %3187 = vmatmul.bf16.gmra.mxu0 %v12501_v11  ;;  %3454 = vmatmul.bf16.gmra.mxu3 %v12501_v11  ;;  %v12504_v17 = vld [vmem:[#allocation65_spill] sm:$0xff]  ;;  %v6974_v11 = vld [vmem:[#allocation6 + $0x538] sm:$0xf0] }
 0x50f   : > { %3276 = vmatmul.bf16.gmra.mxu1 %v12502_v33  ;;  %v3062_v6 = vadd.f32 %v12504_v17, %v10122_v26  ;;  %3666 = vmatpush.bf16.msrb.mxu2 %v6721_v31  ;;  %v6462_v17 = vld [vmem:[#allocation6 + $0x138] sm:$0xf0]  ;;  %v3065_v31 = vadd.f32 %v12507_v36, %v10122_v26  ;;  %v6972_v36 = vld [vmem:[#allocation6 + $0x518] sm:$0xf] }
 0x510   : > { %12499 = vst [vmem:[#allocation106_spill] sm:$0xff] %v10185_v46  ;;  %3365 = vmatmul.bf16.gmra.mxu2 %v12503_v42  ;;  %v7503_v42 = vld [vmem:[#allocation6 + $0x51c] sm:$0xf] }
 0x511   : > { %12500 = vst [vmem:[#allocation133_spill] sm:$0xff] %v10189_v20  ;;  %v3415_v2 = vpop.f32.mrf.mxu3  ;;  %v10202_v7 = vpop.trf.xlu1  ;;  %v6977_v5 = vor.u32 %v7503_v42, %v6974_v11  ;;  %v12510_v42 = vld [vmem:[#allocation53_spill] sm:$0xff] }
 0x512   : > { %v10206_v59 = vpop.trf.xlu0 }
 0x513   : > { %v3326_v48 = vpop.f32.mrf.mxu2  ;;  %v3150_v20 = vpop.f32.mrf.mxu0  ;;  %3755 = vmatpush.bf16.msrb.mxu3 %v6977_v5  ;;  %v12511_v5 = vld [vmem:[#allocation54_spill] sm:$0xff] }
 0x514   : > { %v3327_v34 = vadd.f32 %v3326_v48, %v10140_v0  ;;  %v3151_v46 = vadd.f32 %v3150_v20, %v3062_v6  ;;  %v3239_v33 = vpop.f32.mrf.mxu1  ;;  %v6465_v48 = vor.u32 %v7375_v27, %v6462_v17  ;;  %v12512_v27 = vld [vmem:[#allocation50_spill] sm:$0xff]  ;;  %v7507_v17 = vld [vmem:[#allocation6 + $0x534] sm:$0xf0] }
 0x516   : > { %v10200_v28 = vadd.f32 %v3415_v2, %v3327_v34  ;;  %v10204_v50 = vadd.f32 %v3239_v33, %v3151_v46  ;;  %3577 = vmatpush.bf16.msrb.mxu1 %v6465_v48  ;;  %v6973_v48 = vor.u32 %v7507_v17, %v6972_v36  ;;  %v12516_v36 = vld [vmem:[#allocation73_spill] sm:$0xff] }
 0x517   : > { %v3070_v17 = vadd.f32 %v12516_v36, %v10122_v26  ;;  %v7431_v36 = vld [vmem:[#allocation6 + $0x2dc] sm:$0xf] }
 0x518   : > { %12505 = vst [vmem:[#allocation65_spill] sm:$0xff] %v10200_v28  ;;  %3488 = vmatpush.bf16.msrb.mxu0 %v6973_v48 }
 0x519   : > { %12506 = vst [vmem:[#allocation134_spill] sm:$0xff] %v10204_v50  ;;  %v3417_v34 = vpop.f32.mrf.mxu3  ;;  %v10213_v11 = vpop.trf.xlu1 }
 0x51b   : > { %v3328_v20 = vpop.f32.mrf.mxu2  ;;  %v3153_v2 = vpop.f32.mrf.mxu0 }
 0x51c   : > { %v3329_v6 = vadd.f32 %v3328_v20, %v10140_v0  ;;  %v3154_v28 = vadd.f32 %v3153_v2, %v3065_v31  ;;  %v3242_v18 = vpop.f32.mrf.mxu1  ;;  %v10221_v20 = vpop.trf.xlu0  ;;  %v12513_v31 = vld [vmem:[#allocation72_spill] sm:$0xff] }
 0x51e   : > { %v10211_v46 = vadd.f32 %v3417_v34, %v3329_v6  ;;  %v10215_v33 = vadd.f32 %v3242_v18, %v3154_v28  ;;  %3192 = vmatmul.bf16.gmra.mxu0 %v12510_v42  ;;  %3459 = vmatmul.bf16.gmra.mxu3 %v12510_v42  ;;  %v3067_v6 = vadd.f32 %v12513_v31, %v10122_v26 }
 0x51f   : > { %3281 = vmatmul.bf16.gmra.mxu1 %v12511_v5 }
 0x520   : > { %12508 = vst [vmem:[#allocation69_spill] sm:$0xff] %v10211_v46  ;;  %3370 = vmatmul.bf16.gmra.mxu2 %v12512_v27 }
 0x521   : > { %12509 = vst [vmem:[#allocation135_spill] sm:$0xff] %v10215_v33  ;;  %v3420_v28 = vpop.f32.mrf.mxu3  ;;  %v10228_v27 = vpop.trf.xlu1 }
 0x523   : > { %v3331_v34 = vpop.f32.mrf.mxu2  ;;  %v3155_v2 = vpop.f32.mrf.mxu0 }
 0x524   : > { %v3332_v18 = vadd.f32 %v3331_v34, %v10140_v0  ;;  %v3156_v33 = vadd.f32 %v3155_v2, %v3067_v6  ;;  %v3244_v50 = vpop.f32.mrf.mxu1  ;;  %v10232_v46 = vpop.trf.xlu0  ;;  %v12521_v2 = vld [vmem:[#allocation57_spill] sm:$0xff] }
 0x526   : > { %v10226_v5 = vadd.f32 %v3420_v28, %v3332_v18  ;;  %v10230_v42 = vadd.f32 %v3244_v50, %v3156_v33  ;;  %v12519_v50 = vld [vmem:[#allocation60_spill] sm:$0xff]  ;;  %v12520_v33 = vld [vmem:[#allocation61_spill] sm:$0xff] }
 0x528   : > { %12514 = vst [vmem:[#allocation72_spill] sm:$0xff] %v10226_v5 }
 0x529   : > { %12515 = vst [vmem:[#allocation136_spill] sm:$0xff] %v10230_v42  ;;  %v3422_v34 = vpop.f32.mrf.mxu3  ;;  %v10239_v18 = vpop.trf.xlu1 }
 0x52b   : > { %v3333_v31 = vpop.f32.mrf.mxu2  ;;  %v3158_v22 = vpop.f32.mrf.mxu0 }
 0x52c   : > { %v3334_v29 = vadd.f32 %v3333_v31, %v10140_v0  ;;  %v3159_v37 = vadd.f32 %v3158_v22, %v3070_v17  ;;  %v3247_v48 = vpop.f32.mrf.mxu1  ;;  %v6686_v31 = vld [vmem:[#allocation6 + $0x2f8] sm:$0xf0]  ;;  %v10247_v42 = vpop.trf.xlu0 }
 0x52d   : > { %v6689_v22 = vor.u32 %v7431_v36, %v6686_v31  ;;  %v7367_v31 = vld [vmem:[#allocation6 + $0xdc] sm:$0xf] }
 0x52e   : > { %v10237_v6 = vadd.f32 %v3422_v34, %v3334_v29  ;;  %v10241_v28 = vadd.f32 %v3247_v48, %v3159_v37  ;;  %3197 = vmatmul.bf16.gmra.mxu0 %v12519_v50  ;;  %3464 = vmatmul.bf16.gmra.mxu3 %v12519_v50  ;;  %v12522_v29 = vld [vmem:[#allocation78_spill] sm:$0xff] }
 0x52f   : > { %3286 = vmatmul.bf16.gmra.mxu1 %v12520_v33  ;;  %v3072_v17 = vadd.f32 %v12522_v29, %v10122_v26  ;;  %3667 = vmatpush.bf16.msrb.mxu2 %v6689_v22  ;;  %v6942_v50 = vld [vmem:[#allocation6 + $0x4f8] sm:$0xf0]  ;;  %v3075_v22 = vadd.f32 %v12525_v3, %v10122_v26  ;;  %v12530_v3 = vld [vmem:[#allocation64_spill] sm:$0xff] }
 0x530   : > { %12517 = vst [vmem:[#allocation73_spill] sm:$0xff] %v10237_v6  ;;  %3375 = vmatmul.bf16.gmra.mxu2 %v12521_v2  ;;  %v7495_v2 = vld [vmem:[#allocation6 + $0x4dc] sm:$0xf] }
 0x531   : > { %12518 = vst [vmem:[#allocation137_spill] sm:$0xff] %v10241_v28  ;;  %v3425_v48 = vpop.f32.mrf.mxu3  ;;  %v10254_v23 = vpop.trf.xlu1  ;;  %v6945_v36 = vor.u32 %v7495_v2, %v6942_v50  ;;  %v6430_v29 = vld [vmem:[#allocation6 + $0xf8] sm:$0xf0]  ;;  %v12528_v2 = vld [vmem:[#allocation67_spill] sm:$0xff] }
 0x533   : > { %v3336_v34 = vpop.f32.mrf.mxu2  ;;  %v3160_v28 = vpop.f32.mrf.mxu0  ;;  %3756 = vmatpush.bf16.msrb.mxu3 %v6945_v36  ;;  %v6940_v36 = vld [vmem:[#allocation6 + $0x4d8] sm:$0xf] }
 0x534   : > { %v3337_v37 = vadd.f32 %v3336_v34, %v10140_v0  ;;  %v3161_v6 = vadd.f32 %v3160_v28, %v3072_v17  ;;  %v3249_v33 = vpop.f32.mrf.mxu1  ;;  %v10258_v60 = vpop.trf.xlu0  ;;  %v6433_v34 = vor.u32 %v7367_v31, %v6430_v29  ;;  %v7499_v31 = vld [vmem:[#allocation6 + $0x4f4] sm:$0xf0]  ;;  %v12529_v29 = vld [vmem:[#allocation68_spill] sm:$0xff] }
 0x536   : > { %v10252_v5 = vadd.f32 %v3425_v48, %v3337_v37  ;;  %v10256_v35 = vadd.f32 %v3249_v33, %v3161_v6  ;;  %3578 = vmatpush.bf16.msrb.mxu1 %v6433_v34 }
 0x538   : > { %12523 = vst [vmem:[#allocation78_spill] sm:$0xff] %v10252_v5 }
 0x539   : > { %12524 = vst [vmem:[#allocation138_spill] sm:$0xff] %v10256_v35  ;;  %v3427_v37 = vpop.f32.mrf.mxu3  ;;  %v10265_v50 = vpop.trf.xlu1 }
 0x53b   : > { %v3338_v28 = vpop.f32.mrf.mxu2  ;;  %v3163_v48 = vpop.f32.mrf.mxu0 }
 0x53c   : > { %v3339_v17 = vadd.f32 %v3338_v28, %v10140_v0  ;;  %v3164_v5 = vadd.f32 %v3163_v48, %v3075_v22  ;;  %v3252_v57 = vpop.f32.mrf.mxu1  ;;  %v6941_v28 = vor.u32 %v7499_v31, %v6940_v36  ;;  %v10273_v34 = vpop.trf.xlu0  ;;  %v3077_v22 = vadd.f32 %v9983_v19, %v10122_v26  ;;  %v6654_v36 = vld [vmem:[#allocation6 + $0x2b8] sm:$0xf0] }
 0x53e   : > { %v10263_v6 = vadd.f32 %v3427_v37, %v3339_v17  ;;  %v10267_v33 = vadd.f32 %v3252_v57, %v3164_v5  ;;  %3202 = vmatmul.bf16.gmra.mxu0 %v12528_v2  ;;  %3469 = vmatmul.bf16.gmra.mxu3 %v12528_v2  ;;  %v6908_v57 = vld [vmem:[#allocation6 + $0x498] sm:$0xf]  ;;  %v7359_v37 = vld [vmem:[#allocation6 + $0x9c] sm:$0xf] }
 0x53f   : > { %3291 = vmatmul.bf16.gmra.mxu1 %v12529_v29  ;;  %3489 = vmatpush.bf16.msrb.mxu0 %v6941_v28  ;;  %v7491_v5 = vld [vmem:[#allocation6 + $0x4b4] sm:$0xf0]  ;;  %v7487_v28 = vld [vmem:[#allocation6 + $0x49c] sm:$0xf] }
 0x540   : > { %12526 = vst [vmem:[#allocation80_spill] sm:$0xff] %v10263_v6  ;;  %3380 = vmatmul.bf16.gmra.mxu2 %v12530_v3  ;;  %v6909_v29 = vor.u32 %v7491_v5, %v6908_v57  ;;  %v6398_v6 = vld [vmem:[#allocation6 + $0xb8] sm:$0xf0]  ;;  %v6913_v49 = vor.u32 %v7487_v28, %v6910_v52  ;;  %v7483_v57 = vld [vmem:[#allocation6 + $0x474] sm:$0xf0] }
 0x541   : > { %12527 = vst [vmem:[#allocation139_spill] sm:$0xff] %v10267_v33  ;;  %v3430_v33 = vpop.f32.mrf.mxu3  ;;  %v7423_v3 = vld [vmem:[#allocation6 + $0x29c] sm:$0xf]  ;;  %v6401_v55 = vor.u32 %v7359_v37, %v6398_v6  ;;  %v10280_v19 = vpop.trf.xlu1 }
 0x542   : > { %v6657_v13 = vor.u32 %v7423_v3, %v6654_v36  ;;  %v7351_v5 = vld [vmem:[#allocation6 + $0x5c] sm:$0xf]  ;;  %3757 = vmatpush.bf16.msrb.mxu3 %v6913_v49  ;;  %v7475_v49 = vld [vmem:[#allocation6 + $0x434] sm:$0xf0] }
 0x543   : > { %v3341_v17 = vpop.f32.mrf.mxu2  ;;  %v3165_v35 = vpop.f32.mrf.mxu0  ;;  %3490 = vmatpush.bf16.msrb.mxu0 %v6909_v29  ;;  %3579 = vmatpush.bf16.msrb.mxu1 %v6401_v55  ;;  %v7415_v6 = vld [vmem:[#allocation6 + $0x25c] sm:$0xf]  ;;  %v3080_v55 = vadd.f32 %v9992_v14, %v10122_v26 }
 0x544   : > { %v3342_v48 = vadd.f32 %v3341_v17, %v10140_v0  ;;  %v3166_v31 = vadd.f32 %v3165_v35, %v3077_v22  ;;  %v3254_v2 = vpop.f32.mrf.mxu1  ;;  %3668 = vmatpush.bf16.msrb.mxu2 %v6657_v13  ;;  %v6876_v17 = vld [vmem:[#allocation6 + $0x458] sm:$0xf]  ;;  %v6366_v22 = vld [vmem:[#allocation6 + $0x78] sm:$0xf0] }
 0x545   : > { %v6877_v35 = vor.u32 %v7483_v57, %v6876_v17  ;;  %v6622_v3 = vld [vmem:[#allocation6 + $0x278] sm:$0xf0]  ;;  %v6369_v37 = vor.u32 %v7351_v5, %v6366_v22 }
 0x546   : > { %v10278_v58 = vadd.f32 %v3430_v33, %v3342_v48  ;;  %v10282_v38 = vadd.f32 %v3254_v2, %v3166_v31  ;;  %v6625_v36 = vor.u32 %v7415_v6, %v6622_v3  ;;  %v7479_v33 = vld [vmem:[#allocation6 + $0x45c] sm:$0xf]  ;;  %v6844_v2 = vld [vmem:[#allocation6 + $0x418] sm:$0xf] }
 0x547   : > { %v6878_v48 = vld [vmem:[#allocation6 + $0x478] sm:$0xf0]  ;;  %3491 = vmatpush.bf16.msrb.mxu0 %v6877_v35  ;;  %3580 = vmatpush.bf16.msrb.mxu1 %v6369_v37  ;;  %v6845_v57 = vor.u32 %v7475_v49, %v6844_v2 }
 0x548   : > { %12531 = vst [vmem:[#allocation140_spill] sm:$0xff] %v10278_v58  ;;  %v10284_v58 = vpop.trf.xlu0  ;;  %v6881_v52 = vor.u32 %v7479_v33, %v6878_v48  ;;  %3669 = vmatpush.bf16.msrb.mxu2 %v6625_v36  ;;  %v7343_v29 = vld [vmem:[#allocation6 + $0x1c] sm:$0xf] }
 0x549   : > { %12532 = vst [vmem:[#allocation141_spill] sm:$0xff] %v10282_v38  ;;  %v3432_v28 = vpop.f32.mrf.mxu3  ;;  %v6334_v5 = vld [vmem:[#allocation6 + $0x38] sm:$0xf0]  ;;  %v10291_v36 = vpop.trf.xlu1 }
 0x54a   : > { %3758 = vmatpush.bf16.msrb.mxu3 %v6881_v52  ;;  %v7407_v22 = vld [vmem:[#allocation6 + $0x21c] sm:$0xf]  ;;  %v6337_v33 = vor.u32 %v7343_v29, %v6334_v5 }
 0x54b   : > { %v3343_v13 = vpop.f32.mrf.mxu2  ;;  %v3168_v17 = vpop.f32.mrf.mxu0  ;;  %v6590_v6 = vld [vmem:[#allocation6 + $0x238] sm:$0xf0]  ;;  %3492 = vmatpush.bf16.msrb.mxu0 %v6845_v57 }
 0x54c   : > { %v3344_v31 = vadd.f32 %v3343_v13, %v10140_v0  ;;  %v3169_v35 = vadd.f32 %v3168_v17, %v3080_v55  ;;  %v3257_v3 = vpop.f32.mrf.mxu1  ;;  %v6593_v48 = vor.u32 %v7407_v22, %v6590_v6  ;;  %v7471_v14 = vld [vmem:[#allocation6 + $0x41c] sm:$0xf]  ;;  %3581 = vmatpush.bf16.msrb.mxu1 %v6337_v33  ;;  %v3082_v55 = vadd.f32 %v9997_v63, %v10122_v26 }
 0x54d   : > { %v6846_v38 = vld [vmem:[#allocation6 + $0x438] sm:$0xf0] }
 0x54e   : > { %v10289_v37 = vadd.f32 %v3432_v28, %v3344_v31  ;;  %v6849_v32 = vor.u32 %v7471_v14, %v6846_v38  ;;  %v10293_v13 = vadd.f32 %v3257_v3, %v3169_v35  ;;  %3207 = vmatmul.bf16.gmra.mxu0 %v9214_v61  ;;  %3474 = vmatmul.bf16.gmra.mxu3 %v9214_v61 }
 0x54f   : > { %3296 = vmatmul.bf16.gmra.mxu1 %v9216_v47  ;;  %3670 = vmatpush.bf16.msrb.mxu2 %v6593_v48 }
 0x550   : > { %12533 = vst [vmem:[#allocation142_spill] sm:$0xff] %v10293_v13  ;;  %3385 = vmatmul.bf16.gmra.mxu2 %v9208_v62  ;;  %v10299_v52 = vpop.trf.xlu0  ;;  %3759 = vmatpush.bf16.msrb.mxu3 %v6849_v32  ;;  %v3085_v32 = vadd.f32 %v10006_v44, %v10122_v26  ;;  %v7768_v13 = vunpack.i.h.bf16 %v10284_v58 }
 0x551   : > { %v3435_v49 = vpop.f32.mrf.mxu3  ;;  %v10306_v57 = vpop.trf.xlu1 }
 0x553   : > { %v3346_v2 = vpop.f32.mrf.mxu2  ;;  %v3170_v29 = vpop.f32.mrf.mxu0 }
 0x554   : > { %v3347_v38 = vadd.f32 %v3346_v2, %v10140_v0  ;;  %v3171_v31 = vadd.f32 %v3170_v29, %v3082_v55  ;;  %v3259_v28 = vpop.f32.mrf.mxu1 }
 0x556   : > { %v10304_v17 = vadd.f32 %v3435_v49, %v3347_v38  ;;  %v10308_v5 = vadd.f32 %v3259_v28, %v3171_v31  ;;  %v3087_v38 = vadd.f32 %v10011_v21, %v10122_v26 }
 0x558   : > { %12534 = vst [vmem:[#allocation143_spill] sm:$0xff] %v10308_v5  ;;  %v7774_v22 = vpop.trf.xlu0 }
 0x559   : > { %v3437_v35 = vpop.f32.mrf.mxu3  ;;  %v7886_v55 = vpop.trf.xlu1 }
 0x55b   : > { %v3348_v6 = vpop.f32.mrf.mxu2  ;;  %v3173_v3 = vpop.f32.mrf.mxu0 }
 0x55c   : > { %v3349_v63 = vadd.f32 %v3348_v6, %v10140_v0  ;;  %v3174_v33 = vadd.f32 %v3173_v3, %v3085_v32  ;;  %v3262_v48 = vpop.f32.mrf.mxu1  ;;  %v7778_v32 = vunpack.i.h.bf16 %v7774_v22  ;;  %v7775_v6 = vunpack.i.l.bf16 %v7774_v22 }
 0x55d   : > { %v7890_v3 = vunpack.i.h.bf16 %v7886_v55  ;;  %v7765_v22 = vunpack.i.l.bf16 %v10284_v58 }
 0x55e   : > { %v10313_v14 = vadd.f32 %v3437_v35, %v3349_v63  ;;  %v10315_v2 = vadd.f32 %v3262_v48, %v3174_v33  ;;  %3212 = vmatmul.bf16.gmra.mxu0 %v9240_v54  ;;  %3479 = vmatmul.bf16.gmra.mxu3 %v9240_v54 }
 0x55f   : > { %3301 = vmatmul.bf16.gmra.mxu1 %v9242_v25 }
 0x560   : > { %12535 = vst [vmem:[#allocation144_spill] sm:$0xff] %v10313_v14  ;;  %3390 = vmatmul.bf16.gmra.mxu2 %v9234_v10  ;;  %v7779_v44 = vpop.trf.xlu0  ;;  %v7887_v10 = vunpack.i.l.bf16 %v7886_v55  ;;  %v3090_v55 = vadd.f32 %v10020_v4, %v10122_v26  ;;  %v7877_v4 = vunpack.i.l.bf16 %v10291_v36 }
 0x561   : > { %12536 = vst [vmem:[#allocation145_spill] sm:$0xff] %v10315_v2  ;;  %v3440_v31 = vpop.f32.mrf.mxu3  ;;  %v7783_v33 = vunpack.i.h.bf16 %v7779_v44  ;;  %v7780_v48 = vunpack.i.l.bf16 %v7779_v44  ;;  %v7891_v54 = vpop.trf.xlu1 }
 0x562   : > { %v7895_v25 = vunpack.i.h.bf16 %v7891_v54  ;;  %v7892_v21 = vunpack.i.l.bf16 %v7891_v54 }
 0x563   : > { %v3351_v49 = vpop.f32.mrf.mxu2  ;;  %v3175_v28 = vpop.f32.mrf.mxu0  ;;  %v4655_v14 = vpack.c.bf16 %v7780_v48, %v7775_v6 }
 0x564   : > { %v3352_v29 = vadd.f32 %v3351_v49, %v10140_v0  ;;  %v3176_v63 = vadd.f32 %v3175_v28, %v3087_v38  ;;  %v3264_v35 = vpop.f32.mrf.mxu1  ;;  %v4623_v49 = vpack.c.bf16 %v7783_v33, %v7778_v32  ;;  %v4639_v62 = vpack.c.bf16 %v7895_v25, %v7890_v3 }
 0x565   : > { %v7773_v38 = vunpack.i.h.bf16 %v10299_v52  ;;  %v7770_v28 = vunpack.i.l.bf16 %v10299_v52  ;;  %v4671_v44 = vpack.c.bf16 %v7892_v21, %v7887_v10  ;;  %5315 = vmatpush.bf16.msra.mxu2 %v4655_v14  ;;  %v7870_v32 = vunpack.i.h.bf16 %v10265_v50 }
 0x566   : > { %v10324_v2 = vadd.f32 %v3440_v31, %v3352_v29  ;;  %v10326_v5 = vadd.f32 %v3264_v35, %v3176_v63  ;;  %v7758_v29 = vunpack.i.h.bf16 %v10258_v60  ;;  %v7755_v31 = vunpack.i.l.bf16 %v10258_v60  ;;  %5217 = vmatpush.bf16.msra.mxu0 %v4623_v49  ;;  %5266 = vmatpush.bf16.msra.mxu1 %v4639_v62 }
 0x567   : > { %v7763_v25 = vunpack.i.h.bf16 %v10273_v34  ;;  %v7880_v52 = vunpack.i.h.bf16 %v10291_v36  ;;  %5364 = vmatpush.bf16.msra.mxu3 %v4671_v44  ;;  %v7885_v60 = vunpack.i.h.bf16 %v10306_v57  ;;  %v7882_v14 = vunpack.i.l.bf16 %v10306_v57 }
 0x568   : > { %v7760_v3 = vunpack.i.l.bf16 %v10273_v34  ;;  %v4621_v48 = vpack.c.bf16 %v7773_v38, %v7768_v13  ;;  %v4653_v21 = vpack.c.bf16 %v7770_v28, %v7765_v22  ;;  %v7867_v49 = vunpack.i.l.bf16 %v10265_v50 }
 0x569   : > { %v3442_v6 = vpop.f32.mrf.mxu3  ;;  %v7872_v62 = vunpack.i.l.bf16 %v10280_v19  ;;  %v3092_v36 = vadd.f32 %v10025_v1, %v10122_v26  ;;  %v7738_v57 = vunpack.i.h.bf16 %v10206_v59  ;;  %v7735_v34 = vunpack.i.l.bf16 %v10206_v59 }
 0x56a   : > { %v7850_v13 = vunpack.i.h.bf16 %v10213_v11  ;;  %v7748_v50 = vunpack.i.h.bf16 %v10232_v46  ;;  %5218 = vmatpush.bf16.msra.mxu0 %v4621_v48  ;;  %v4669_v22 = vpack.c.bf16 %v7882_v14, %v7877_v4  ;;  %v4619_v38 = vpack.c.bf16 %v7763_v25, %v7758_v29  ;;  %5316 = vmatpush.bf16.msra.mxu2 %v4653_v21 }
 0x56b   : > { %v3353_v54 = vpop.f32.mrf.mxu2  ;;  %v3178_v10 = vpop.f32.mrf.mxu0  ;;  %v7745_v1 = vunpack.i.l.bf16 %v10232_v46  ;;  %v7753_v28 = vunpack.i.h.bf16 %v10247_v42  ;;  %v7750_v59 = vunpack.i.l.bf16 %v10247_v42  ;;  %v7855_v29 = vunpack.i.h.bf16 %v10228_v27 }
 0x56c   : > { %v3354_v58 = vadd.f32 %v3353_v54, %v10140_v0  ;;  %v3179_v63 = vadd.f32 %v3178_v10, %v3090_v55  ;;  %v3267_v35 = vpop.f32.mrf.mxu1  ;;  %v7875_v54 = vunpack.i.h.bf16 %v10280_v19  ;;  %v4637_v19 = vpack.c.bf16 %v7885_v60, %v7880_v52  ;;  %5365 = vmatpush.bf16.msra.mxu3 %v4669_v22 }
 0x56d   : > { %v4651_v55 = vpack.c.bf16 %v7760_v3, %v7755_v31  ;;  %v7740_v52 = vunpack.i.l.bf16 %v10221_v20  ;;  %v7860_v46 = vunpack.i.h.bf16 %v10239_v18  ;;  %v7857_v31 = vunpack.i.l.bf16 %v10239_v18 }
 0x56e   : > { %v10344_v33 = vadd.f32 %v3442_v6, %v3354_v58  ;;  %v10349_v44 = vadd.f32 %v3267_v35, %v3179_v63  ;;  %3493 = vmatmul.bf16.vlgmr.msrb.gmra.mxu0 %v8924_v41  ;;  %3760 = vmatmul.bf16.vlgmr.msrb.gmra.mxu3 %v8924_v41  ;;  %v4635_v41 = vpack.c.bf16 %v7875_v54, %v7870_v32  ;;  %v7862_v4 = vunpack.i.l.bf16 %v10254_v23 }
 0x56f   : > { %3582 = vmatmul.bf16.vlgmr.msrb.gmra.mxu1 %v8920_v39  ;;  %v7847_v39 = vunpack.i.l.bf16 %v10213_v11  ;;  %v4667_v6 = vpack.c.bf16 %v7872_v62, %v7867_v49  ;;  %v7865_v11 = vunpack.i.h.bf16 %v10254_v23  ;;  %5219 = vmatpush.bf16.msra.mxu0 %v4619_v38  ;;  %v7852_v32 = vunpack.i.l.bf16 %v10228_v27 }
 0x570   : > { %3671 = vmatmul.bf16.vlgmr.msrb.gmra.mxu2 %v8922_v40  ;;  %v7743_v40 = vunpack.i.h.bf16 %v10221_v20  ;;  %5267 = vmatpush.bf16.msra.mxu1 %v4637_v19  ;;  %v4617_v60 = vpack.c.bf16 %v7753_v28, %v7748_v50  ;;  %v4649_v14 = vpack.c.bf16 %v7750_v59, %v7745_v1  ;;  %v3095_v18 = vadd.f32 %v10034_v16, %v10122_v26 }
 0x571   : > { %v3445_v42 = vpop.f32.mrf.mxu3  ;;  %5317 = vmatpush.bf16.msra.mxu2 %v4651_v55  ;;  %5366 = vmatpush.bf16.msra.mxu3 %v4667_v6  ;;  %v7718_v48 = vunpack.i.h.bf16 %v10154_v51  ;;  %v7728_v23 = vunpack.i.h.bf16 %v10180_v45  ;;  %v7725_v21 = vunpack.i.l.bf16 %v10180_v45  ;;  %v7733_v27 = vunpack.i.h.bf16 %v10195_v53 }
 0x572   : > { %v4633_v49 = vpack.c.bf16 %v7865_v11, %v7860_v46  ;;  %v4665_v54 = vpack.c.bf16 %v7862_v4, %v7857_v31  ;;  %v4615_v62 = vpack.c.bf16 %v7743_v40, %v7738_v57  ;;  %v4647_v50 = vpack.c.bf16 %v7740_v52, %v7735_v34 }
 0x573   : > { %v3356_v58 = vpop.f32.mrf.mxu2  ;;  %v3180_v10 = vpop.f32.mrf.mxu0  ;;  %5220 = vmatpush.bf16.msra.mxu0 %v4617_v60  ;;  %v4631_v19 = vpack.c.bf16 %v7855_v29, %v7850_v13  ;;  %v4663_v22 = vpack.c.bf16 %v7852_v32, %v7847_v39  ;;  %v7715_v16 = vunpack.i.l.bf16 %v10154_v51  ;;  %v7830_v38 = vunpack.i.h.bf16 %v10161_v30 }
 0x574   : > { %v3357_v25 = vadd.f32 %v3356_v58, %v10140_v0  ;;  %v3181_v63 = vadd.f32 %v3180_v10, %v3092_v36  ;;  %v3269_v35 = vpop.f32.mrf.mxu1  ;;  %5268 = vmatpush.bf16.msra.mxu1 %v4635_v41  ;;  %v7730_v36 = vunpack.i.l.bf16 %v10195_v53  ;;  %v7827_v1 = vunpack.i.l.bf16 %v10161_v30 }
 0x575   : > { %5318 = vmatpush.bf16.msra.mxu2 %v4649_v14  ;;  %v7723_v45 = vunpack.i.h.bf16 %v10169_v12  ;;  %5367 = vmatpush.bf16.msra.mxu3 %v4665_v54  ;;  %v7720_v59 = vunpack.i.l.bf16 %v10169_v12  ;;  %v7835_v57 = vunpack.i.h.bf16 %v10176_v24  ;;  %v7840_v53 = vunpack.i.h.bf16 %v10187_v43  ;;  %v12540_v54 = vld [vmem:[#allocation124_spill] sm:$0xff] }
 0x576   : > { %v10374_v20 = vadd.f32 %v3445_v42, %v3357_v25  ;;  %v10376_v3 = vadd.f32 %v3269_v35, %v3181_v63  ;;  %v7837_v51 = vunpack.i.l.bf16 %v10187_v43  ;;  %v7845_v39 = vunpack.i.h.bf16 %v10202_v7 }
 0x577   : > { %v7842_v30 = vunpack.i.l.bf16 %v10202_v7  ;;  %5221 = vmatpush.bf16.msra.mxu0 %v4615_v62  ;;  %v7832_v41 = vunpack.i.l.bf16 %v10176_v24  ;;  %v4613_v6 = vpack.c.bf16 %v7733_v27, %v7728_v23  ;;  %v4645_v52 = vpack.c.bf16 %v7730_v36, %v7725_v21  ;;  %v12537_v7 = vld [vmem:[#allocation126_spill] sm:$0xff]  ;;  %v12539_v27 = vld [vmem:[#allocation128_spill] sm:$0xff] }
 0x578   : > { %5269 = vmatpush.bf16.msra.mxu1 %v4633_v49  ;;  %v7708_v43 = vunpack.i.h.bf16 %v10124_v8  ;;  %v7705_v46 = vunpack.i.l.bf16 %v10124_v8  ;;  %v7713_v24 = vunpack.i.h.bf16 %v12537_v7  ;;  %v4629_v25 = vpack.c.bf16 %v7845_v39, %v7840_v53  ;;  %v12538_v8 = vld [vmem:[#allocation85_spill] sm:$0xff]  ;;  %v12544_v39 = vld [vmem:[#allocation19_spill] sm:$0xff] }
 0x579   : > { %v3447_v13 = vpop.f32.mrf.mxu3  ;;  %5319 = vmatpush.bf16.msra.mxu2 %v4647_v50  ;;  %v4661_v42 = vpack.c.bf16 %v7842_v30, %v7837_v51  ;;  %v4611_v10 = vpack.c.bf16 %v7723_v45, %v7718_v48  ;;  %v7710_v31 = vunpack.i.l.bf16 %v12537_v7  ;;  %5368 = vmatpush.bf16.msra.mxu3 %v4663_v22  ;;  %v4643_v11 = vpack.c.bf16 %v7720_v59, %v7715_v16  ;;  %v12543_v51 = vld [vmem:[#allocation18_spill] sm:$0xff]  ;;  %v12545_v30 = vld [vmem:[#allocation115_spill] sm:$0xff] }
 0x57a   : > { %v4627_v4 = vpack.c.bf16 %v7835_v57, %v7830_v38  ;;  %v4659_v63 = vpack.c.bf16 %v7832_v41, %v7827_v1  ;;  %v4609_v48 = vpack.c.bf16 %v7713_v24, %v7708_v43  ;;  %v7825_v49 = vunpack.i.h.bf16 %v12539_v27 }
 0x57b   : > { %v3358_v28 = vpop.f32.mrf.mxu2  ;;  %v3183_v55 = vpop.f32.mrf.mxu0  ;;  %5222 = vmatpush.bf16.msra.mxu0 %v4613_v6  ;;  %v4641_v23 = vpack.c.bf16 %v7710_v31, %v7705_v46  ;;  %v7820_v62 = vunpack.i.h.bf16 %v12540_v54  ;;  %v7822_v36 = vunpack.i.l.bf16 %v12539_v27  ;;  %v7817_v50 = vunpack.i.l.bf16 %v12540_v54 }
 0x57c   : > { %v3359_v34 = vadd.f32 %v3358_v28, %v10140_v0  ;;  %v3184_v40 = vadd.f32 %v3183_v55, %v3095_v18  ;;  %v3272_v58 = vpop.f32.mrf.mxu1  ;;  %5270 = vmatpush.bf16.msra.mxu1 %v4631_v19  ;;  %v12541_v19 = vld [vmem:[#allocation86_spill] sm:$0xff]  ;;  %v12542_v55 = vld [vmem:[#allocation20_spill] sm:$0xff] }
 0x57d   : > { %5320 = vmatpush.bf16.msra.mxu2 %v4645_v52  ;;  %5369 = vmatpush.bf16.msra.mxu3 %v4661_v42  ;;  %v3100_v22 = vadd.f32 %v12541_v19, %v10122_v26  ;;  %v4625_v38 = vpack.c.bf16 %v7825_v49, %v7820_v62  ;;  %v4657_v59 = vpack.c.bf16 %v7822_v36, %v7817_v50  ;;  %v12551_v19 = vld [vmem:[#allocation116_spill] sm:$0xff] }
 0x57e   : > { %v10397_v12 = vadd.f32 %v3447_v13, %v3359_v34  ;;  %v10399_v29 = vadd.f32 %v3272_v58, %v3184_v40  ;;  %3498 = vmatmul.bf16.gmra.mxu0 %v12357_v9  ;;  %3765 = vmatmul.bf16.gmra.mxu3 %v12357_v9  ;;  %v3102_v40 = vadd.f32 %v12545_v30, %v10122_v26  ;;  %v12555_v30 = vld [vmem:[#allocation117_spill] sm:$0xff] }
 0x57f   : > { %3587 = vmatmul.bf16.gmra.mxu1 %v12270_v15  ;;  %v3097_v15 = vadd.f32 %v12538_v8, %v10122_v26  ;;  %5223 = vmatpush.bf16.msra.mxu0 %v4611_v10 }
 0x580   : > { %3676 = vmatmul.bf16.gmra.mxu2 %v12356_v56  ;;  %5271 = vmatpush.bf16.msra.mxu1 %v4629_v25  ;;  %v12546_v25 = vld [vmem:[#allocation114_spill] sm:$0xff] }
 0x581   : > { %v3450_v32 = vpop.f32.mrf.mxu3  ;;  %5321 = vmatpush.bf16.msra.mxu2 %v4643_v11  ;;  %5370 = vmatpush.bf16.msra.mxu3 %v4659_v63  ;;  %v3105_v42 = vadd.f32 %v12546_v25, %v10122_v26 }
 0x583   : > { %v3361_v35 = vpop.f32.mrf.mxu2  ;;  %v3185_v9 = vpop.f32.mrf.mxu0  ;;  %5224 = vmatpush.bf16.msra.mxu0 %v4609_v48 }
 0x584   : > { %v3362_v56 = vadd.f32 %v3361_v35, %v10140_v0  ;;  %v3186_v60 = vadd.f32 %v3185_v9, %v3097_v15  ;;  %v3274_v14 = vpop.f32.mrf.mxu1  ;;  %5272 = vmatpush.bf16.msra.mxu1 %v4627_v4  ;;  %v12549_v9 = vld [vmem:[#allocation22_spill] sm:$0xff] }
 0x585   : > { %5322 = vmatpush.bf16.msra.mxu2 %v4641_v23  ;;  %5371 = vmatpush.bf16.msra.mxu3 %v4657_v59 }
 0x586   : > { %v10412_v18 = vadd.f32 %v3450_v32, %v3362_v56  ;;  %v10414_v21 = vadd.f32 %v3274_v14, %v3186_v60  ;;  %v12547_v56 = vld [vmem:[#allocation23_spill] sm:$0xff]  ;;  %v12548_v32 = vld [vmem:[#allocation21_spill] sm:$0xff]  ;;  %v12550_v60 = vld [vmem:[#allocation88_spill] sm:$0xff] }
 0x587   : > { %v3107_v14 = vadd.f32 %v12550_v60, %v10122_v26 }
 0x588   : > { %5273 = vmatpush.bf16.msra.mxu1 %v4625_v38 }
 0x589   : > { %v3452_v45 = vpop.f32.mrf.mxu3 }
 0x58b   : > { %v3363_v16 = vpop.f32.mrf.mxu2  ;;  %v3188_v28 = vpop.f32.mrf.mxu0 }
 0x58c   : > { %v3364_v1 = vadd.f32 %v3363_v16, %v10140_v0  ;;  %v3189_v57 = vadd.f32 %v3188_v28, %v3100_v22  ;;  %v3277_v53 = vpop.f32.mrf.mxu1  ;;  %v3110_v22 = vadd.f32 %v12551_v19, %v10122_v26 }
 0x58e   : > { %v10423_v34 = vadd.f32 %v3452_v45, %v3364_v1  ;;  %v10425_v13 = vadd.f32 %v3277_v53, %v3189_v57  ;;  %3503 = vmatmul.bf16.gmra.mxu0 %v12542_v55  ;;  %3770 = vmatmul.bf16.gmra.mxu3 %v12542_v55  ;;  %v12552_v55 = vld [vmem:[#allocation26_spill] sm:$0xff] }
 0x58f   : > { %3592 = vmatmul.bf16.gmra.mxu1 %v12543_v51  ;;  %v12553_v51 = vld [vmem:[#allocation24_spill] sm:$0xff] }
 0x590   : > { %3681 = vmatmul.bf16.gmra.mxu2 %v12544_v39  ;;  %v12554_v39 = vld [vmem:[#allocation25_spill] sm:$0xff] }
 0x591   : > { %v3455_v6 = vpop.f32.mrf.mxu3 }
 0x593   : > { %v3366_v58 = vpop.f32.mrf.mxu2  ;;  %v3190_v52 = vpop.f32.mrf.mxu0 }
 0x594   : > { %v3367_v41 = vadd.f32 %v3366_v58, %v10140_v0  ;;  %v3191_v43 = vadd.f32 %v3190_v52, %v3102_v40  ;;  %v3279_v46 = vpop.f32.mrf.mxu1  ;;  %v3112_v40 = vadd.f32 %v12555_v30, %v10122_v26 }
 0x596   : > { %v10434_v7 = vadd.f32 %v3455_v6, %v3367_v41  ;;  %v10436_v24 = vadd.f32 %v3279_v46, %v3191_v43 }
 0x599   : > { %v3457_v11 = vpop.f32.mrf.mxu3 }
 0x59b   : > { %v3368_v10 = vpop.f32.mrf.mxu2  ;;  %v3193_v4 = vpop.f32.mrf.mxu0 }
 0x59c   : > { %v3369_v31 = vadd.f32 %v3368_v10, %v10140_v0  ;;  %v3194_v63 = vadd.f32 %v3193_v4, %v3105_v42  ;;  %v3282_v8 = vpop.f32.mrf.mxu1  ;;  %v12556_v10 = vld [vmem:[#allocation118_spill] sm:$0xff] }
 0x59e   : > { %v10441_v15 = vadd.f32 %v3457_v11, %v3369_v31  ;;  %v10443_v35 = vadd.f32 %v3282_v8, %v3194_v63  ;;  %3508 = vmatmul.bf16.gmra.mxu0 %v12547_v56  ;;  %3775 = vmatmul.bf16.gmra.mxu3 %v12547_v56  ;;  %v3115_v31 = vadd.f32 %v12556_v10, %v10122_v26  ;;  %v12565_v10 = vld [vmem:[#allocation120_spill] sm:$0xff] }
 0x59f   : > { %3597 = vmatmul.bf16.gmra.mxu1 %v12548_v32 }
 0x5a0   : > { %3686 = vmatmul.bf16.gmra.mxu2 %v12549_v9 }
 0x5a1   : > { %v3460_v27 = vpop.f32.mrf.mxu3 }
 0x5a3   : > { %v3371_v48 = vpop.f32.mrf.mxu2  ;;  %v3195_v49 = vpop.f32.mrf.mxu0 }
 0x5a4   : > { %v3372_v23 = vadd.f32 %v3371_v48, %v10140_v0  ;;  %v3196_v54 = vadd.f32 %v3195_v49, %v3107_v14  ;;  %v3284_v62 = vpop.f32.mrf.mxu1  ;;  %v12557_v14 = vld [vmem:[#allocation29_spill] sm:$0xff]  ;;  %v12558_v48 = vld [vmem:[#allocation27_spill] sm:$0xff] }
 0x5a6   : > { %v10452_v36 = vadd.f32 %v3460_v27, %v3372_v23  ;;  %v10454_v50 = vadd.f32 %v3284_v62, %v3196_v54  ;;  %v12559_v23 = vld [vmem:[#allocation28_spill] sm:$0xff]  ;;  %v12560_v27 = vld [vmem:[#allocation93_spill] sm:$0xff] }
 0x5a7   : > { %v3117_v49 = vadd.f32 %v12560_v27, %v10122_v26 }
 0x5a9   : > { %v3462_v1 = vpop.f32.mrf.mxu3 }
 0x5ab   : > { %v3373_v16 = vpop.f32.mrf.mxu2  ;;  %v3198_v45 = vpop.f32.mrf.mxu0 }
 0x5ac   : > { %v3374_v38 = vadd.f32 %v3373_v16, %v10140_v0  ;;  %v3199_v28 = vadd.f32 %v3198_v45, %v3110_v22  ;;  %v3287_v59 = vpop.f32.mrf.mxu1 }
 0x5ae   : > { %v10459_v57 = vadd.f32 %v3462_v1, %v3374_v38  ;;  %v10461_v53 = vadd.f32 %v3287_v59, %v3199_v28  ;;  %3513 = vmatmul.bf16.gmra.mxu0 %v12552_v55  ;;  %3780 = vmatmul.bf16.gmra.mxu3 %v12552_v55  ;;  %v12561_v28 = vld [vmem:[#allocation119_spill] sm:$0xff] }
 0x5af   : > { %3602 = vmatmul.bf16.gmra.mxu1 %v12553_v51  ;;  %v3120_v59 = vadd.f32 %v12561_v28, %v10122_v26 }
 0x5b0   : > { %3691 = vmatmul.bf16.gmra.mxu2 %v12554_v39 }
 0x5b1   : > { %v3465_v6 = vpop.f32.mrf.mxu3 }
 0x5b3   : > { %v3376_v58 = vpop.f32.mrf.mxu2  ;;  %v3200_v52 = vpop.f32.mrf.mxu0 }
 0x5b4   : > { %v3377_v41 = vadd.f32 %v3376_v58, %v10140_v0  ;;  %v3201_v43 = vadd.f32 %v3200_v52, %v3112_v40  ;;  %v3289_v46 = vpop.f32.mrf.mxu1  ;;  %v12562_v52 = vld [vmem:[#allocation32_spill] sm:$0xff] }
 0x5b6   : > { %v10470_v25 = vadd.f32 %v3465_v6, %v3377_v41  ;;  %v10472_v42 = vadd.f32 %v3289_v46, %v3201_v43  ;;  %v12563_v43 = vld [vmem:[#allocation30_spill] sm:$0xff]  ;;  %v12564_v46 = vld [vmem:[#allocation31_spill] sm:$0xff] }
 0x5b9   : > { %v3467_v63 = vpop.f32.mrf.mxu3 }
 0x5bb   : > { %v3378_v11 = vpop.f32.mrf.mxu2  ;;  %v3203_v8 = vpop.f32.mrf.mxu0 }
 0x5bc   : > { %v3379_v4 = vadd.f32 %v3378_v11, %v10140_v0  ;;  %v3204_v56 = vadd.f32 %v3203_v8, %v3115_v31  ;;  %v3292_v32 = vpop.f32.mrf.mxu1  ;;  %v3122_v31 = vadd.f32 %v12565_v10, %v10122_v26 }
 0x5be   : > { %v10477_v9 = vadd.f32 %v3467_v63, %v3379_v4  ;;  %v10479_v60 = vadd.f32 %v3292_v32, %v3204_v56  ;;  %3518 = vmatmul.bf16.gmra.mxu0 %v12557_v14  ;;  %3785 = vmatmul.bf16.gmra.mxu3 %v12557_v14 }
 0x5bf   : > { %3607 = vmatmul.bf16.gmra.mxu1 %v12558_v48 }
 0x5c0   : > { %3696 = vmatmul.bf16.gmra.mxu2 %v12559_v23  ;;  %v12566_v23 = vld [vmem:[#allocation97_spill] sm:$0xff] }
 0x5c1   : > { %v3470_v19 = vpop.f32.mrf.mxu3  ;;  %v3125_v27 = vadd.f32 %v12566_v23, %v10122_v26  ;;  %v12571_v23 = vld [vmem:[#allocation127_spill] sm:$0xff] }
 0x5c3   : > { %v3381_v54 = vpop.f32.mrf.mxu2  ;;  %v3205_v22 = vpop.f32.mrf.mxu0 }
 0x5c4   : > { %v3382_v62 = vadd.f32 %v3381_v54, %v10140_v0  ;;  %v3206_v16 = vadd.f32 %v3205_v22, %v3117_v49  ;;  %v3294_v38 = vpop.f32.mrf.mxu1 }
 0x5c6   : > { %v10488_v1 = vadd.f32 %v3470_v19, %v3382_v62  ;;  %v10490_v45 = vadd.f32 %v3294_v38, %v3206_v16 }
 0x5c9   : > { %v3472_v39 = vpop.f32.mrf.mxu3 }
 0x5cb   : > { %v3383_v55 = vpop.f32.mrf.mxu2  ;;  %v3208_v30 = vpop.f32.mrf.mxu0 }
 0x5cc   : > { %v3384_v51 = vadd.f32 %v3383_v55, %v10140_v0  ;;  %v3209_v40 = vadd.f32 %v3208_v30, %v3120_v59  ;;  %v3297_v58 = vpop.f32.mrf.mxu1  ;;  %v12567_v59 = vld [vmem:[#allocation35_spill] sm:$0xff]  ;;  %v12568_v55 = vld [vmem:[#allocation33_spill] sm:$0xff] }
 0x5ce   : > { %v10495_v41 = vadd.f32 %v3472_v39, %v3384_v51  ;;  %v10497_v6 = vadd.f32 %v3297_v58, %v3209_v40  ;;  %3523 = vmatmul.bf16.gmra.mxu0 %v12562_v52  ;;  %3790 = vmatmul.bf16.gmra.mxu3 %v12562_v52  ;;  %v12569_v51 = vld [vmem:[#allocation34_spill] sm:$0xff] }
 0x5cf   : > { %3612 = vmatmul.bf16.gmra.mxu1 %v12563_v43  ;;  %v12570_v39 = vld [vmem:[#allocation122_spill] sm:$0xff] }
 0x5d0   : > { %3701 = vmatmul.bf16.gmra.mxu2 %v12564_v46  ;;  %v3127_v30 = vadd.f32 %v12570_v39, %v10122_v26  ;;  %v8581_v26 = vld [vmem:[%s11930_s2] sm:$0xff] }
 0x5d1   : > { %v3475_v63 = vpop.f32.mrf.mxu3 }
 0x5d3   : > { %v3386_v11 = vpop.f32.mrf.mxu2  ;;  %v3210_v8 = vpop.f32.mrf.mxu0 }
 0x5d4   : > { %v3387_v4 = vadd.f32 %v3386_v11, %v10140_v0  ;;  %v3211_v56 = vadd.f32 %v3210_v8, %v3122_v31  ;;  %v3299_v32 = vpop.f32.mrf.mxu1 }
 0x5d6   : > { %v10506_v14 = vadd.f32 %v3475_v63, %v3387_v4  ;;  %v10508_v48 = vadd.f32 %v3299_v32, %v3211_v56  ;;  %v10532_v32 = vperm.slane %v8581_v26, 7 }
 0x5d9   : > { %v3477_v62 = vpop.f32.mrf.mxu3 }
 0x5db   : > { %v3388_v49 = vpop.f32.mrf.mxu2  ;;  %v3213_v19 = vpop.f32.mrf.mxu0 }
 0x5dc   : > { %v3389_v54 = vadd.f32 %v3388_v49, %v10140_v0  ;;  %v3214_v22 = vadd.f32 %v3213_v19, %v3125_v27  ;;  %v3302_v16 = vpop.f32.mrf.mxu1 }
 0x5de   : > { %v10513_v38 = vadd.f32 %v3477_v62, %v3389_v54  ;;  %v10515_v28 = vadd.f32 %v3302_v16, %v3214_v22  ;;  %3528 = vmatmul.bf16.gmra.mxu0 %v12567_v59  ;;  %3795 = vmatmul.bf16.gmra.mxu3 %v12567_v59  ;;  %v12572_v62 = vld [vmem:[#allocation104_spill] sm:$0xff]  ;;  %v12573_v16 = vld [vmem:[#allocation38_spill] sm:$0xff]  ;;  %v12574_v59 = vld [vmem:[#allocation37_spill] sm:$0xff] }
 0x5df   : > { %3617 = vmatmul.bf16.gmra.mxu1 %v12568_v55  ;;  %v3845_v19 = vmax.f32 %v12572_v62, 0.0  ;;  %v12575_v55 = vld [vmem:[#allocation36_spill] sm:$0xff] }
 0x5e0   : > { %3706 = vmatmul.bf16.gmra.mxu2 %v12569_v51 }
 0x5e1   : > { %v3480_v52 = vpop.f32.mrf.mxu3 }
 0x5e3   : > { %v3391_v40 = vpop.f32.mrf.mxu2  ;;  %v3215_v43 = vpop.f32.mrf.mxu0 }
 0x5e4   : > { %v3392_v58 = vadd.f32 %v3391_v40, %v10140_v0  ;;  %v3216_v46 = vadd.f32 %v3215_v43, %v3127_v30  ;;  %v3304_v10 = vpop.f32.mrf.mxu1 }
 0x5e6   : > { %v10524_v31 = vadd.f32 %v3480_v52, %v3392_v58  ;;  %v10526_v11 = vadd.f32 %v3304_v10, %v3216_v46  ;;  %v12576_v52 = vld [vmem:[#allocation130_spill] sm:$0xff] }
 0x5e9   : > { %v3482_v8 = vpop.f32.mrf.mxu3 }
 0x5eb   : > { %v3393_v4 = vpop.f32.mrf.mxu2  ;;  %v3494_v56 = vpop.f32.mrf.mxu0 }
 0x5ec   : > { %v3394_v63 = vadd.f32 %v3393_v4, %v10140_v0  ;;  %v3495_v27 = vadd.f32 %v3494_v56, %v12571_v23  ;;  %v3583_v49 = vpop.f32.mrf.mxu1  ;;  %v12577_v4 = vld [vmem:[#allocation63_spill] sm:$0xff]  ;;  %v12578_v56 = vld [vmem:[#allocation125_spill] sm:$0xff] }
 0x5ed   : > { %v3584_v0 = vadd.f32 %v3583_v49, %v10532_v32  ;;  %v3846_v26 = vmax.f32 %v12578_v56, 0.0 }
 0x5ee   : > { %v10535_v54 = vadd.f32 %v3482_v8, %v3394_v63  ;;  %v3847_v22 = vmax.f32 %v3495_v27, 0.0  ;;  %3533 = vmatmul.bf16.gmra.mxu0 %v12573_v16  ;;  %3800 = vmatmul.bf16.gmra.mxu3 %v12573_v16  ;;  %v3853_v63 = vmax.f32 %v12577_v4, 0.0 }
 0x5ef   : > { %3622 = vmatmul.bf16.gmra.mxu1 %v12575_v55 }
 0x5f0   : > { %3711 = vmatmul.bf16.gmra.mxu2 %v12574_v59  ;;  %v7896_v51 = vpack.i.bf16 %v3845_v19, %v3847_v22  ;;  %v12579_v59 = vld [vmem:[#allocation66_spill] sm:$0xff] }
 0x5f1   : > { %v3761_v40 = vpop.f32.mrf.mxu3 }
 0x5f2   : > { %7897 = vxpose.xlu2.b32.start [1/16] %v7896_v51, 128 }
 0x5f3   : > { %v3672_v39 = vpop.f32.mrf.mxu2  ;;  %v3496_v58 = vpop.f32.mrf.mxu0 }
 0x5f4   : > { %v3673_v30 = vadd.f32 %v3672_v39, %v3584_v0  ;;  %v3497_v43 = vadd.f32 %v3496_v58, %v12576_v52  ;;  %v3585_v46 = vpop.f32.mrf.mxu1  ;;  %v12581_v52 = vld [vmem:[#allocation43_spill] sm:$0xff] }
 0x5f5   : > { %v3586_v49 = vadd.f32 %v3585_v46, %v10532_v32 }
 0x5f6   : > { %v3762_v10 = vadd.f32 %v3761_v40, %v3673_v30  ;;  %v3855_v8 = vmax.f32 %v3497_v43, 0.0  ;;  %v12580_v30 = vld [vmem:[#allocation58_spill] sm:$0xff]  ;;  %v12582_v43 = vld [vmem:[#allocation129_spill] sm:$0xff] }
 0x5f7   : > { %v3861_v40 = vmax.f32 %v12580_v30, 0.0 }
 0x5f8   : > { %v3848_v23 = vmax.f32 %v3762_v10, 0.0  ;;  %v7898_v27 = vpack.i.bf16 %v3853_v63, %v3855_v8  ;;  %v3854_v10 = vmax.f32 %v12582_v43, 0.0  ;;  %v12583_v63 = vld [vmem:[#allocation42_spill] sm:$0xff]  ;;  %v12584_v8 = vld [vmem:[#allocation40_spill] sm:$0xff] }
 0x5f9   : > { %v3763_v16 = vpop.f32.mrf.mxu3 }
 0x5fa   : > { %v8008_v62 = vpack.i.bf16 %v3846_v26, %v3848_v23  ;;  %7899 = vxpose.xlu2.b32.cont [2/16] %v7898_v27, 128 }
 0x5fb   : > { %v3674_v19 = vpop.f32.mrf.mxu2  ;;  %v3499_v0 = vpop.f32.mrf.mxu0 }
 0x5fc   : > { %v3675_v22 = vadd.f32 %v3674_v19, %v3586_v49  ;;  %8009 = vxpose.xlu0.b32.start [1/16] %v8008_v62, 128  ;;  %v3500_v55 = vadd.f32 %v3499_v0, %v12579_v59  ;;  %v3588_v51 = vpop.f32.mrf.mxu1  ;;  %v12585_v19 = vld [vmem:[#allocation106_spill] sm:$0xff]  ;;  %v12586_v59 = vld [vmem:[#allocation105_spill] sm:$0xff] }
 0x5fd   : > { %v3589_v46 = vadd.f32 %v3588_v51, %v10532_v32 }
 0x5fe   : > { %v3764_v39 = vadd.f32 %v3763_v16, %v3675_v22  ;;  %v3863_v58 = vmax.f32 %v3500_v55, 0.0  ;;  %3538 = vmatmul.bf16.gmra.mxu0 %v12581_v52  ;;  %3805 = vmatmul.bf16.gmra.mxu3 %v12581_v52  ;;  %v3869_v55 = vmax.f32 %v12586_v59, 0.0 }
 0x5ff   : > { %3627 = vmatmul.bf16.gmra.mxu1 %v12584_v8  ;;  %v12588_v8 = vld [vmem:[#allocation65_spill] sm:$0xff] }
 0x600   : > { %v3856_v4 = vmax.f32 %v3764_v39, 0.0  ;;  %3716 = vmatmul.bf16.gmra.mxu2 %v12583_v63  ;;  %v7900_v56 = vpack.i.bf16 %v3861_v40, %v3863_v58  ;;  %v12587_v39 = vld [vmem:[#allocation131_spill] sm:$0xff] }
 0x601   : > { %v3766_v49 = vpop.f32.mrf.mxu3  ;;  %v3862_v30 = vmax.f32 %v12587_v39, 0.0 }
 0x602   : > { %v8010_v26 = vpack.i.bf16 %v3854_v10, %v3856_v4  ;;  %7901 = vxpose.xlu2.b32.cont [3/16] %v7900_v56, 128 }
 0x603   : > { %v3677_v23 = vpop.f32.mrf.mxu2  ;;  %v3501_v62 = vpop.f32.mrf.mxu0 }
 0x604   : > { %v3678_v27 = vadd.f32 %v3677_v23, %v3589_v46  ;;  %8011 = vxpose.xlu0.b32.cont [2/16] %v8010_v26, 128  ;;  %v3502_v22 = vadd.f32 %v3501_v62, %v12585_v19  ;;  %v3590_v16 = vpop.f32.mrf.mxu1  ;;  %v12590_v19 = vld [vmem:[#allocation48_spill] sm:$0xff] }
 0x605   : > { %v3591_v40 = vadd.f32 %v3590_v16, %v10532_v32 }
 0x606   : > { %v3767_v0 = vadd.f32 %v3766_v49, %v3678_v27  ;;  %v3871_v51 = vmax.f32 %v3502_v22, 0.0  ;;  %v12589_v27 = vld [vmem:[#allocation62_spill] sm:$0xff]  ;;  %v12591_v22 = vld [vmem:[#allocation132_spill] sm:$0xff] }
 0x607   : > { %v3877_v49 = vmax.f32 %v12589_v27, 0.0 }
 0x608   : > { %v3864_v43 = vmax.f32 %v3767_v0, 0.0  ;;  %v7902_v63 = vpack.i.bf16 %v3869_v55, %v3871_v51  ;;  %v3870_v0 = vmax.f32 %v12591_v22, 0.0  ;;  %v12592_v55 = vld [vmem:[#allocation47_spill] sm:$0xff]  ;;  %v12593_v51 = vld [vmem:[#allocation45_spill] sm:$0xff] }
 0x609   : > { %v3768_v4 = vpop.f32.mrf.mxu3 }
 0x60a   : > { %v8012_v52 = vpack.i.bf16 %v3862_v30, %v3864_v43  ;;  %7903 = vxpose.xlu2.b32.cont [4/16] %v7902_v63, 128 }
 0x60b   : > { %v3679_v58 = vpop.f32.mrf.mxu2  ;;  %v3504_v46 = vpop.f32.mrf.mxu0 }
 0x60c   : > { %v3680_v10 = vadd.f32 %v3679_v58, %v3591_v40  ;;  %8013 = vxpose.xlu0.b32.cont [3/16] %v8012_v52, 128  ;;  %v3505_v56 = vadd.f32 %v3504_v46, %v12588_v8  ;;  %v3593_v26 = vpop.f32.mrf.mxu1  ;;  %v12594_v58 = vld [vmem:[#allocation69_spill] sm:$0xff]  ;;  %v12595_v8 = vld [vmem:[#allocation70_spill] sm:$0xff] }
 0x60d   : > { %v3594_v16 = vadd.f32 %v3593_v26, %v10532_v32 }
 0x60e   : > { %v3769_v23 = vadd.f32 %v3768_v4, %v3680_v10  ;;  %v3879_v62 = vmax.f32 %v3505_v56, 0.0  ;;  %3543 = vmatmul.bf16.gmra.mxu0 %v12590_v19  ;;  %3810 = vmatmul.bf16.gmra.mxu3 %v12590_v19  ;;  %v3885_v56 = vmax.f32 %v12595_v8, 0.0 }
 0x60f   : > { %3632 = vmatmul.bf16.gmra.mxu1 %v12593_v51  ;;  %v12597_v51 = vld [vmem:[#allocation72_spill] sm:$0xff] }
 0x610   : > { %v3872_v59 = vmax.f32 %v3769_v23, 0.0  ;;  %3721 = vmatmul.bf16.gmra.mxu2 %v12592_v55  ;;  %v7904_v39 = vpack.i.bf16 %v3877_v49, %v3879_v62  ;;  %v12596_v23 = vld [vmem:[#allocation133_spill] sm:$0xff] }
 0x611   : > { %v3771_v52 = vpop.f32.mrf.mxu3  ;;  %v3878_v27 = vmax.f32 %v12596_v23, 0.0 }
 0x612   : > { %v8014_v30 = vpack.i.bf16 %v3870_v0, %v3872_v59  ;;  %7905 = vxpose.xlu2.b32.cont [5/16] %v7904_v39, 128 }
 0x613   : > { %v3682_v43 = vpop.f32.mrf.mxu2  ;;  %v3506_v40 = vpop.f32.mrf.mxu0 }
 0x614   : > { %v3683_v63 = vadd.f32 %v3682_v43, %v3594_v16  ;;  %8015 = vxpose.xlu0.b32.cont [4/16] %v8014_v30, 128  ;;  %v3507_v10 = vadd.f32 %v3506_v40, %v12594_v58  ;;  %v3595_v4 = vpop.f32.mrf.mxu1  ;;  %v12599_v58 = vld [vmem:[#allocation54_spill] sm:$0xff] }
 0x615   : > { %v3596_v49 = vadd.f32 %v3595_v4, %v10532_v32 }
 0x616   : > { %v3772_v46 = vadd.f32 %v3771_v52, %v3683_v63  ;;  %v3887_v26 = vmax.f32 %v3507_v10, 0.0  ;;  %v12598_v63 = vld [vmem:[#allocation107_spill] sm:$0xff]  ;;  %v12600_v10 = vld [vmem:[#allocation134_spill] sm:$0xff] }
 0x617   : > { %v3893_v52 = vmax.f32 %v12598_v63, 0.0 }
 0x618   : > { %v3880_v22 = vmax.f32 %v3772_v46, 0.0  ;;  %v7906_v55 = vpack.i.bf16 %v3885_v56, %v3887_v26  ;;  %v3886_v46 = vmax.f32 %v12600_v10, 0.0  ;;  %v12601_v56 = vld [vmem:[#allocation53_spill] sm:$0xff]  ;;  %v12602_v26 = vld [vmem:[#allocation50_spill] sm:$0xff] }
 0x619   : > { %v3773_v59 = vpop.f32.mrf.mxu3 }
 0x61a   : > { %v8016_v19 = vpack.i.bf16 %v3878_v27, %v3880_v22  ;;  %7907 = vxpose.xlu2.b32.cont [6/16] %v7906_v55, 128 }
 0x61b   : > { %v3684_v62 = vpop.f32.mrf.mxu2  ;;  %v3509_v16 = vpop.f32.mrf.mxu0 }
 0x61c   : > { %v3685_v0 = vadd.f32 %v3684_v62, %v3596_v49  ;;  %8017 = vxpose.xlu0.b32.cont [5/16] %v8016_v19, 128  ;;  %v3510_v39 = vadd.f32 %v3509_v16, %v12597_v51  ;;  %v3598_v30 = vpop.f32.mrf.mxu1  ;;  %v12603_v62 = vld [vmem:[#allocation73_spill] sm:$0xff]  ;;  %v12604_v51 = vld [vmem:[#allocation108_spill] sm:$0xff] }
 0x61d   : > { %v3599_v4 = vadd.f32 %v3598_v30, %v10532_v32 }
 0x61e   : > { %v3774_v43 = vadd.f32 %v3773_v59, %v3685_v0  ;;  %v3895_v40 = vmax.f32 %v3510_v39, 0.0  ;;  %3548 = vmatmul.bf16.gmra.mxu0 %v12599_v58  ;;  %3815 = vmatmul.bf16.gmra.mxu3 %v12599_v58  ;;  %v3901_v39 = vmax.f32 %v12604_v51, 0.0 }
 0x61f   : > { %3637 = vmatmul.bf16.gmra.mxu1 %v12602_v26  ;;  %v12606_v26 = vld [vmem:[#allocation78_spill] sm:$0xff] }
 0x620   : > { %v3888_v8 = vmax.f32 %v3774_v43, 0.0  ;;  %3726 = vmatmul.bf16.gmra.mxu2 %v12601_v56  ;;  %v7908_v23 = vpack.i.bf16 %v3893_v52, %v3895_v40  ;;  %v12605_v43 = vld [vmem:[#allocation135_spill] sm:$0xff] }
 0x621   : > { %v3776_v19 = vpop.f32.mrf.mxu3  ;;  %v3894_v63 = vmax.f32 %v12605_v43, 0.0 }
 0x622   : > { %v8018_v27 = vpack.i.bf16 %v3886_v46, %v3888_v8  ;;  %7909 = vxpose.xlu2.b32.cont [7/16] %v7908_v23, 128 }
 0x623   : > { %v3687_v22 = vpop.f32.mrf.mxu2  ;;  %v3511_v49 = vpop.f32.mrf.mxu0 }
 0x624   : > { %v3688_v55 = vadd.f32 %v3687_v22, %v3599_v4  ;;  %8019 = vxpose.xlu0.b32.cont [6/16] %v8018_v27, 128  ;;  %v3512_v0 = vadd.f32 %v3511_v49, %v12603_v62  ;;  %v3600_v59 = vpop.f32.mrf.mxu1  ;;  %v12608_v62 = vld [vmem:[#allocation61_spill] sm:$0xff] }
 0x625   : > { %v3601_v52 = vadd.f32 %v3600_v59, %v10532_v32 }
 0x626   : > { %v3777_v16 = vadd.f32 %v3776_v19, %v3688_v55  ;;  %v3903_v30 = vmax.f32 %v3512_v0, 0.0  ;;  %v12607_v55 = vld [vmem:[#allocation109_spill] sm:$0xff]  ;;  %v12609_v0 = vld [vmem:[#allocation136_spill] sm:$0xff] }
 0x627   : > { %v3909_v19 = vmax.f32 %v12607_v55, 0.0 }
 0x628   : > { %v3896_v10 = vmax.f32 %v3777_v16, 0.0  ;;  %v7910_v56 = vpack.i.bf16 %v3901_v39, %v3903_v30  ;;  %v3902_v16 = vmax.f32 %v12609_v0, 0.0  ;;  %v12610_v39 = vld [vmem:[#allocation60_spill] sm:$0xff]  ;;  %v12611_v30 = vld [vmem:[#allocation57_spill] sm:$0xff] }
 0x629   : > { %v3778_v8 = vpop.f32.mrf.mxu3 }
 0x62a   : > { %v8020_v58 = vpack.i.bf16 %v3894_v63, %v3896_v10  ;;  %7911 = vxpose.xlu2.b32.cont [8/16] %v7910_v56, 128 }
 0x62b   : > { %v3689_v40 = vpop.f32.mrf.mxu2  ;;  %v3514_v4 = vpop.f32.mrf.mxu0 }
 0x62c   : > { %v3690_v46 = vadd.f32 %v3689_v40, %v3601_v52  ;;  %8021 = vxpose.xlu0.b32.cont [7/16] %v8020_v58, 128  ;;  %v3515_v23 = vadd.f32 %v3514_v4, %v12606_v26  ;;  %v3603_v27 = vpop.f32.mrf.mxu1  ;;  %v12612_v40 = vld [vmem:[#allocation80_spill] sm:$0xff]  ;;  %v12613_v26 = vld [vmem:[#allocation75_spill] sm:$0xff] }
 0x62d   : > { %v3604_v59 = vadd.f32 %v3603_v27, %v10532_v32 }
 0x62e   : > { %v3779_v22 = vadd.f32 %v3778_v8, %v3690_v46  ;;  %v3911_v49 = vmax.f32 %v3515_v23, 0.0  ;;  %3553 = vmatmul.bf16.gmra.mxu0 %v12608_v62  ;;  %3820 = vmatmul.bf16.gmra.mxu3 %v12608_v62  ;;  %v3917_v23 = vmax.f32 %v12613_v26, 0.0 }
 0x62f   : > { %3642 = vmatmul.bf16.gmra.mxu1 %v12611_v30  ;;  %v12615_v30 = vld [vmem:[#allocation140_spill] sm:$0xff] }
 0x630   : > { %v3904_v51 = vmax.f32 %v3779_v22, 0.0  ;;  %3731 = vmatmul.bf16.gmra.mxu2 %v12610_v39  ;;  %v7912_v43 = vpack.i.bf16 %v3909_v19, %v3911_v49  ;;  %v12614_v22 = vld [vmem:[#allocation137_spill] sm:$0xff] }
 0x631   : > { %v3781_v58 = vpop.f32.mrf.mxu3  ;;  %v3910_v55 = vmax.f32 %v12614_v22, 0.0 }
 0x632   : > { %v8022_v63 = vpack.i.bf16 %v3902_v16, %v3904_v51  ;;  %7913 = vxpose.xlu2.b32.cont [9/16] %v7912_v43, 128 }
 0x633   : > { %v3692_v10 = vpop.f32.mrf.mxu2  ;;  %v3516_v52 = vpop.f32.mrf.mxu0 }
 0x634   : > { %v3693_v56 = vadd.f32 %v3692_v10, %v3604_v59  ;;  %8023 = vxpose.xlu0.b32.cont [8/16] %v8022_v63, 128  ;;  %v3517_v46 = vadd.f32 %v3516_v52, %v12612_v40  ;;  %v3605_v8 = vpop.f32.mrf.mxu1  ;;  %v12617_v40 = vld [vmem:[#allocation68_spill] sm:$0xff] }
 0x635   : > { %v3606_v19 = vadd.f32 %v3605_v8, %v10532_v32 }
 0x636   : > { %v3782_v4 = vadd.f32 %v3781_v58, %v3693_v56  ;;  %v3919_v27 = vmax.f32 %v3517_v46, 0.0  ;;  %v12616_v56 = vld [vmem:[#allocation79_spill] sm:$0xff]  ;;  %v12618_v46 = vld [vmem:[#allocation138_spill] sm:$0xff] }
 0x637   : > { %v3925_v58 = vmax.f32 %v12616_v56, 0.0 }
 0x638   : > { %v3912_v0 = vmax.f32 %v3782_v4, 0.0  ;;  %v7914_v39 = vpack.i.bf16 %v3917_v23, %v3919_v27  ;;  %v3918_v4 = vmax.f32 %v12618_v46, 0.0  ;;  %v12619_v23 = vld [vmem:[#allocation67_spill] sm:$0xff]  ;;  %v12620_v27 = vld [vmem:[#allocation64_spill] sm:$0xff] }
 0x639   : > { %v3783_v51 = vpop.f32.mrf.mxu3 }
 0x63a   : > { %v8024_v62 = vpack.i.bf16 %v3910_v55, %v3912_v0  ;;  %7915 = vxpose.xlu2.b32.cont [10/16] %v7914_v39, 128 }
 0x63b   : > { %v3694_v49 = vpop.f32.mrf.mxu2  ;;  %v3519_v59 = vpop.f32.mrf.mxu0 }
 0x63c   : > { %v3695_v16 = vadd.f32 %v3694_v49, %v3606_v19  ;;  %8025 = vxpose.xlu0.b32.cont [9/16] %v8024_v62, 128  ;;  %v3520_v43 = vadd.f32 %v3519_v59, %v12615_v30  ;;  %v3608_v63 = vpop.f32.mrf.mxu1  ;;  %v12621_v59 = vld [vmem:[#allocation81_spill] sm:$0xff] }
 0x63d   : > { %v3609_v8 = vadd.f32 %v3608_v63, %v10532_v32  ;;  %v3933_v30 = vmax.f32 %v12621_v59, 0.0  ;;  %v12622_v63 = vld [vmem:[#allocation139_spill] sm:$0xff] }
 0x63e   : > { %v3784_v10 = vadd.f32 %v3783_v51, %v3695_v16  ;;  %v3927_v52 = vmax.f32 %v3520_v43, 0.0  ;;  %3558 = vmatmul.bf16.gmra.mxu0 %v12617_v40  ;;  %3825 = vmatmul.bf16.gmra.mxu3 %v12617_v40 }
 0x63f   : > { %3647 = vmatmul.bf16.gmra.mxu1 %v12620_v27 }
 0x640   : > { %v3920_v26 = vmax.f32 %v3784_v10, 0.0  ;;  %3736 = vmatmul.bf16.gmra.mxu2 %v12619_v23  ;;  %v7916_v22 = vpack.i.bf16 %v3925_v58, %v3927_v52  ;;  %v3926_v10 = vmax.f32 %v12622_v63, 0.0 }
 0x641   : > { %v3786_v62 = vpop.f32.mrf.mxu3 }
 0x642   : > { %v8026_v55 = vpack.i.bf16 %v3918_v4, %v3920_v26  ;;  %7917 = vxpose.xlu2.b32.cont [11/16] %v7916_v22, 128  ;;  %v12623_v22 = vld [vmem:[#allocation82_spill] sm:$0xff] }
 0x643   : > { %v3697_v0 = vpop.f32.mrf.mxu2  ;;  %v3521_v19 = vpop.f32.mrf.mxu0 }
 0x644   : > { %v3698_v39 = vadd.f32 %v3697_v0, %v3609_v8  ;;  %8027 = vxpose.xlu0.b32.cont [10/16] %v8026_v55, 128  ;;  %v3522_v49 = vadd.f32 %v3521_v19, %v10289_v37  ;;  %v3610_v16 = vpop.f32.mrf.mxu1  ;;  %v3941_v55 = vmax.f32 %v12623_v22, 0.0 }
 0x645   : > { %v3611_v58 = vadd.f32 %v3610_v16, %v10532_v32  ;;  %v12625_v16 = vld [vmem:[#allocation71_spill] sm:$0xff] }
 0x646   : > { %v3787_v51 = vadd.f32 %v3786_v62, %v3698_v39  ;;  %v3935_v43 = vmax.f32 %v3522_v49, 0.0  ;;  %v12624_v39 = vld [vmem:[#allocation141_spill] sm:$0xff] }
 0x647   : > { %v3934_v62 = vmax.f32 %v12624_v39, 0.0 }
 0x648   : > { %v3928_v56 = vmax.f32 %v3787_v51, 0.0  ;;  %v7918_v46 = vpack.i.bf16 %v3933_v30, %v3935_v43 }
 0x649   : > { %v3788_v26 = vpop.f32.mrf.mxu3 }
 0x64a   : > { %v8028_v40 = vpack.i.bf16 %v3926_v10, %v3928_v56  ;;  %7919 = vxpose.xlu2.b32.cont [12/16] %v7918_v46, 128  ;;  %v12626_v10 = vld [vmem:[#allocation144_spill] sm:$0xff] }
 0x64b   : > { %v3699_v52 = vpop.f32.mrf.mxu2  ;;  %v3524_v8 = vpop.f32.mrf.mxu0 }
 0x64c   : > { %v3700_v4 = vadd.f32 %v3699_v52, %v3611_v58  ;;  %8029 = vxpose.xlu0.b32.cont [11/16] %v8028_v40, 128  ;;  %v3525_v37 = vadd.f32 %v3524_v8, %v10304_v17  ;;  %v3613_v23 = vpop.f32.mrf.mxu1  ;;  %v12627_v58 = vld [vmem:[#allocation110_spill] sm:$0xff] }
 0x64d   : > { %v3614_v49 = vadd.f32 %v3613_v23, %v10532_v32  ;;  %v3949_v52 = vmax.f32 %v12627_v58, 0.0 }
 0x64e   : > { %v3789_v27 = vadd.f32 %v3788_v26, %v3700_v4  ;;  %v3943_v0 = vmax.f32 %v3525_v37, 0.0  ;;  %3563 = vmatmul.bf16.gmra.mxu0 %v9216_v47  ;;  %3830 = vmatmul.bf16.gmra.mxu3 %v9216_v47 }
 0x64f   : > { %3652 = vmatmul.bf16.gmra.mxu1 %v12625_v16 }
 0x650   : > { %v3936_v19 = vmax.f32 %v3789_v27, 0.0  ;;  %3741 = vmatmul.bf16.gmra.mxu2 %v9214_v61  ;;  %v7920_v51 = vpack.i.bf16 %v3941_v55, %v3943_v0  ;;  %v12628_v61 = vld [vmem:[#allocation142_spill] sm:$0xff] }
 0x651   : > { %v3791_v43 = vpop.f32.mrf.mxu3  ;;  %v3942_v26 = vmax.f32 %v12628_v61, 0.0 }
 0x652   : > { %v8030_v17 = vpack.i.bf16 %v3934_v62, %v3936_v19  ;;  %7921 = vxpose.xlu2.b32.cont [13/16] %v7920_v51, 128 }
 0x653   : > { %v3702_v59 = vpop.f32.mrf.mxu2  ;;  %v3526_v63 = vpop.f32.mrf.mxu0 }
 0x654   : > { %v3703_v30 = vadd.f32 %v3702_v59, %v3614_v49  ;;  %8031 = vxpose.xlu0.b32.cont [12/16] %v8030_v17, 128  ;;  %v3527_v56 = vadd.f32 %v3526_v63, %v12626_v10  ;;  %v3615_v46 = vpop.f32.mrf.mxu1  ;;  %v12629_v49 = vld [vmem:[#allocation16_spill] sm:$0xff]  ;;  %v12630_v17 = vld [vmem:[#allocation77_spill] sm:$0xff]  ;;  %v12631_v59 = vld [vmem:[#allocation143_spill] sm:$0xff] }
 0x655   : > { %v3616_v23 = vadd.f32 %v3615_v46, %v10532_v32  ;;  %v3957_v16 = vmax.f32 %v12629_v49, 0.0  ;;  %v12632_v10 = vld [vmem:[#allocation76_spill] sm:$0xff] }
 0x656   : > { %v3792_v40 = vadd.f32 %v3791_v43, %v3703_v30  ;;  %v3951_v4 = vmax.f32 %v3527_v56, 0.0  ;;  %v3950_v30 = vmax.f32 %v12631_v59, 0.0  ;;  %v12633_v56 = vld [vmem:[#allocation74_spill] sm:$0xff] }
 0x658   : > { %v3944_v8 = vmax.f32 %v3792_v40, 0.0  ;;  %v7922_v37 = vpack.i.bf16 %v3949_v52, %v3951_v4 }
 0x659   : > { %v3793_v55 = vpop.f32.mrf.mxu3 }
 0x65a   : > { %v8032_v47 = vpack.i.bf16 %v3942_v26, %v3944_v8  ;;  %7923 = vxpose.xlu2.b32.cont [14/16] %v7922_v37, 128  ;;  %v12634_v37 = vld [vmem:[#allocation17_spill] sm:$0xff] }
 0x65b   : > { %v3704_v27 = vpop.f32.mrf.mxu2  ;;  %v3529_v0 = vpop.f32.mrf.mxu0 }
 0x65c   : > { %v3705_v22 = vadd.f32 %v3704_v27, %v3616_v23  ;;  %8033 = vxpose.xlu0.b32.cont [13/16] %v8032_v47, 128  ;;  %v3530_v39 = vadd.f32 %v3529_v0, %v10324_v2  ;;  %v3618_v62 = vpop.f32.mrf.mxu1  ;;  %v3965_v47 = vmax.f32 %v12634_v37, 0.0  ;;  %v12635_v27 = vld [vmem:[#allocation145_spill] sm:$0xff] }
 0x65d   : > { %v3619_v63 = vadd.f32 %v3618_v62, %v10532_v32 }
 0x65e   : > { %v3794_v19 = vadd.f32 %v3793_v55, %v3705_v22  ;;  %v3959_v51 = vmax.f32 %v3530_v39, 0.0  ;;  %3568 = vmatmul.bf16.gmra.mxu0 %v12630_v17  ;;  %3835 = vmatmul.bf16.gmra.mxu3 %v12630_v17  ;;  %v3958_v22 = vmax.f32 %v12635_v27, 0.0 }
 0x65f   : > { %3657 = vmatmul.bf16.gmra.mxu1 %v12633_v56 }
 0x660   : > { %v3952_v43 = vmax.f32 %v3794_v19, 0.0  ;;  %3746 = vmatmul.bf16.gmra.mxu2 %v12632_v10  ;;  %v7924_v46 = vpack.i.bf16 %v3957_v16, %v3959_v51  ;;  %v3966_v10 = vmax.f32 %v10326_v5, 0.0  ;;  %v3974_v5 = vmax.f32 %v10349_v44, 0.0 }
 0x661   : > { %v3796_v52 = vpop.f32.mrf.mxu3 }
 0x662   : > { %v8034_v2 = vpack.i.bf16 %v3950_v30, %v3952_v43  ;;  %7925 = vxpose.xlu2.b32.cont [15/16] %v7924_v46, 128  ;;  %v12636_v30 = vld [vmem:[#allocation83_spill] sm:$0xff] }
 0x663   : > { %v3707_v40 = vpop.f32.mrf.mxu2  ;;  %v3531_v4 = vpop.f32.mrf.mxu0  ;;  %v3973_v43 = vmax.f32 %v12636_v30, 0.0 }
 0x664   : > { %v3708_v58 = vadd.f32 %v3707_v40, %v3619_v63  ;;  %8035 = vxpose.xlu0.b32.cont [14/16] %v8034_v2, 128  ;;  %v3532_v61 = vadd.f32 %v3531_v4, %v10344_v33  ;;  %v3620_v26 = vpop.f32.mrf.mxu1 }
 0x665   : > { %v3621_v62 = vadd.f32 %v3620_v26, %v10532_v32 }
 0x666   : > { %v3797_v8 = vadd.f32 %v3796_v52, %v3708_v58  ;;  %v3967_v23 = vmax.f32 %v3532_v61, 0.0  ;;  %v12637_v52 = vld [vmem:[#allocation39_spill] sm:$0xff] }
 0x668   : > { %v3960_v55 = vmax.f32 %v3797_v8, 0.0  ;;  %v7926_v0 = vpack.i.bf16 %v3965_v47, %v3967_v23  ;;  %v12638_v47 = vld [vmem:[#allocation111_spill] sm:$0xff] }
 0x669   : > { %v3798_v16 = vpop.f32.mrf.mxu3  ;;  %v3981_v23 = vmax.f32 %v12638_v47, 0.0  ;;  %v7536_v47 = vld [vmem:[#allocation8 + $0x1c] sm:$0xf0] }
 0x66a   : > { %v8036_v39 = vpack.i.bf16 %v3958_v22, %v3960_v55  ;;  %7927 = vxpose.xlu2.b32.end [16/16] %v7926_v0, 128 }
 0x66b   : > { %v3709_v19 = vpop.f32.mrf.mxu2  ;;  %v3534_v51 = vpop.f32.mrf.mxu0 }
 0x66c   : > { %v3710_v49 = vadd.f32 %v3709_v19, %v3621_v62  ;;  %8037 = vxpose.xlu0.b32.cont [15/16] %v8036_v39, 128  ;;  %v3535_v33 = vadd.f32 %v3534_v51, %v10374_v20  ;;  %v3623_v17 = vpop.f32.mrf.mxu1  ;;  %v12639_v19 = vld [vmem:[#allocation41_spill] sm:$0xff] }
 0x66d   : > { %v3624_v46 = vadd.f32 %v3623_v17, %v10532_v32 }
 0x66e   : > { %v3799_v59 = vadd.f32 %v3798_v16, %v3710_v49  ;;  %v3975_v63 = vmax.f32 %v3535_v33, 0.0 }
 0x670   : > { %v3968_v56 = vmax.f32 %v3799_v59, 0.0  ;;  %v8344_v2 = vpack.i.bf16 %v3973_v43, %v3975_v63  ;;  %v12640_v59 = vld [vmem:[#allocation84_spill] sm:$0xff]  ;;  %v3982_v43 = vmax.f32 %v10376_v3, 0.0 }
 0x671   : > { %v3801_v26 = vpop.f32.mrf.mxu3  ;;  %v3989_v30 = vmax.f32 %v12640_v59, 0.0 }
 0x672   : > { %v8038_v40 = vpack.i.bf16 %v3966_v10, %v3968_v56  ;;  %8233 = vxpose.xlu2.b32.start [1/16] %v12637_v52, 128 }
 0x673   : > { %v3712_v58 = vpop.f32.mrf.mxu2  ;;  %v3536_v61 = vpop.f32.mrf.mxu0 }
 0x674   : > { %v3713_v4 = vadd.f32 %v3712_v58, %v3624_v46  ;;  %8039 = vxpose.xlu0.b32.end [16/16] %v8038_v40, 128  ;;  %v3537_v20 = vadd.f32 %v3536_v61, %v10397_v12  ;;  %v3625_v8 = vpop.f32.mrf.mxu1  ;;  %v12641_v58 = vld [vmem:[#allocation98_spill] sm:$0xff] }
 0x675   : > { %v3626_v55 = vadd.f32 %v3625_v8, %v10532_v32 }
 0x676   : > { %v3802_v37 = vadd.f32 %v3801_v26, %v3713_v4  ;;  %v3983_v27 = vmax.f32 %v3537_v20, 0.0  ;;  %v12642_v20 = vld [vmem:[#allocation15_spill] sm:$0xff] }
 0x677   : > { %v3997_v8 = vmax.f32 %v12642_v20, 0.0 }
 0x678   : > { %v3976_v22 = vmax.f32 %v3802_v37, 0.0  ;;  %v8346_v0 = vpack.i.bf16 %v3981_v23, %v3983_v27  ;;  %v7076_v37 = vld [vmem:[#allocation8] sm:$0xf]  ;;  %v3990_v23 = vmax.f32 %v10399_v29, 0.0 }
 0x679   : > { %v3803_v12 = vpop.f32.mrf.mxu3 }
 0x67a   : > { %v8456_v39 = vpack.i.bf16 %v3974_v5, %v3976_v22  ;;  %8235 = vxpose.xlu2.b32.cont [2/16] %v12639_v19, 128  ;;  %v10650_v22 = vor.u32 %v7536_v47, %v7076_v37  ;;  %v7078_v37 = vld [vmem:[#allocation8 + $0x20] sm:$0xf0]  ;;  %v12649_v47 = vld [vmem:[#allocation113_spill] sm:$0xff] }
 0x67b   : > { %v3714_v62 = vpop.f32.mrf.mxu2  ;;  %v3539_v16 = vpop.f32.mrf.mxu0 }
 0x67c   : > { %v3715_v49 = vadd.f32 %v3714_v62, %v3626_v55  ;;  %8457 = vxpose.xlu1.b32.start [1/16] %v8456_v39, 128  ;;  %8345 = vxpose.xlu0.b32.start [1/16] %v8344_v2, 128  ;;  %v3540_v51 = vadd.f32 %v3539_v16, %v10412_v18  ;;  %v3628_v33 = vpop.f32.mrf.mxu1  ;;  %12643 = vst [vmem:[#allocation126_spill] sm:$0xff] %v10650_v22  ;;  %v10653_v39 = vpop.trf.xlu1  ;;  %v12644_v62 = vld [vmem:[#allocation44_spill] sm:$0xff] }
 0x67d   : > { %v3629_v10 = vadd.f32 %v3628_v33, %v10532_v32  ;;  %5225 = vmatmul.bf16.vlgmr.msra.gmra.mxu0 %v10650_v22 }
 0x67e   : > { %v3804_v17 = vadd.f32 %v3803_v12, %v3715_v49  ;;  %v3991_v44 = vmax.f32 %v3540_v51, 0.0 }
 0x680   : > { %v3984_v63 = vmax.f32 %v3804_v17, 0.0  ;;  %v8348_v56 = vpack.i.bf16 %v3989_v30, %v3991_v44  ;;  %v12645_v17 = vld [vmem:[#allocation112_spill] sm:$0xff]  ;;  %v3998_v44 = vmax.f32 %v10414_v21, 0.0 }
 0x681   : > { %v3806_v18 = vpop.f32.mrf.mxu3  ;;  %v4005_v59 = vmax.f32 %v12645_v17, 0.0 }
 0x682   : > { %v8458_v46 = vpack.i.bf16 %v3982_v43, %v3984_v63  ;;  %8237 = vxpose.xlu2.b32.cont [3/16] %v12641_v58, 128 }
 0x683   : > { %v3717_v40 = vpop.f32.mrf.mxu2  ;;  %v3541_v52 = vpop.f32.mrf.mxu0 }
 0x684   : > { %v3718_v2 = vadd.f32 %v3717_v40, %v3629_v10  ;;  %8459 = vxpose.xlu1.b32.cont [2/16] %v8458_v46, 128  ;;  %8347 = vxpose.xlu0.b32.cont [2/16] %v8346_v0, 128  ;;  %v3542_v4 = vadd.f32 %v3541_v52, %v10423_v34  ;;  %v3630_v61 = vpop.f32.mrf.mxu1  ;;  %v7084_v10 = vld [vmem:[#allocation8 + $0x8] sm:$0xf]  ;;  %v7086_v52 = vld [vmem:[#allocation8 + $0x28] sm:$0xf0] }
 0x685   : > { %v3631_v5 = vadd.f32 %v3630_v61, %v10532_v32  ;;  %v7537_v46 = vld [vmem:[#allocation8 + $0x24] sm:$0xf0] }
 0x686   : > { %v3807_v26 = vadd.f32 %v3806_v18, %v3718_v2  ;;  %v3999_v3 = vmax.f32 %v3542_v4, 0.0  ;;  %v10660_v58 = vor.u32 %v7537_v46, %v7084_v10  ;;  %v10662_v2 = vpop.trf.xlu1  ;;  %v12647_v4 = vld [vmem:[#allocation99_spill] sm:$0xff]  ;;  %v12652_v10 = vld [vmem:[#allocation102_spill] sm:$0xff] }
 0x688   : > { %v3992_v27 = vmax.f32 %v3807_v26, 0.0  ;;  %v8350_v55 = vpack.i.bf16 %v3997_v8, %v3999_v3  ;;  %12646 = vst [vmem:[#allocation85_spill] sm:$0xff] %v10660_v58  ;;  %5323 = vmatmul.bf16.vlgmr.msra.gmra.mxu2 %v10660_v58  ;;  %v7532_v3 = vld [vmem:[#allocation8 + $0x4] sm:$0xf] }
 0x689   : > { %v3808_v16 = vpop.f32.mrf.mxu3 }
 0x68a   : > { %v8460_v0 = vpack.i.bf16 %v3990_v23, %v3992_v27  ;;  %8239 = vxpose.xlu2.b32.cont [4/16] %v12644_v62, 128  ;;  %v4013_v23 = vmax.f32 %v12649_v47, 0.0  ;;  %v10670_v62 = vor.u32 %v7532_v3, %v7078_v37  ;;  %v4014_v3 = vmax.f32 %v10436_v24, 0.0 }
 0x68b   : > { %v3719_v34 = vpop.f32.mrf.mxu2  ;;  %v3544_v49 = vpop.f32.mrf.mxu0 }
 0x68c   : > { %v3720_v19 = vadd.f32 %v3719_v34, %v3631_v5  ;;  %8461 = vxpose.xlu1.b32.cont [3/16] %v8460_v0, 128  ;;  %8349 = vxpose.xlu0.b32.cont [3/16] %v8348_v56, 128  ;;  %v3545_v29 = vadd.f32 %v3544_v49, %v10434_v7  ;;  %v7928_v12 = vpop.trf.xlu2  ;;  %v3633_v51 = vpop.f32.mrf.mxu1  ;;  %v7533_v7 = vld [vmem:[#allocation8 + $0xc] sm:$0xf]  ;;  %12650 = vst [vmem:[#allocation124_spill] sm:$0xff] %v10670_v62 }
 0x68d   : > { %v3634_v63 = vadd.f32 %v3633_v51, %v10532_v32  ;;  %v7932_v61 = vunpack.i.h.bf16 %v7928_v12  ;;  %v10666_v8 = vor.u32 %v7533_v7, %v7086_v52  ;;  %v7929_v27 = vunpack.i.l.bf16 %v7928_v12  ;;  %5274 = vmatmul.bf16.vlgmr.msra.gmra.mxu1 %v10670_v62  ;;  %v7108_v51 = vld [vmem:[#allocation8 + $0x40] sm:$0xf] }
 0x68e   : > { %v3809_v33 = vadd.f32 %v3808_v16, %v3720_v19  ;;  %v4007_v30 = vmax.f32 %v3545_v29, 0.0 }
 0x68f   : > { %12648 = vst [vmem:[#allocation128_spill] sm:$0xff] %v10666_v8  ;;  %5372 = vmatmul.bf16.vlgmr.msra.gmra.mxu3 %v10666_v8 }
 0x690   : > { %v4000_v43 = vmax.f32 %v3809_v33, 0.0  ;;  %v8352_v40 = vpack.i.bf16 %v4005_v59, %v4007_v30  ;;  %v7544_v33 = vld [vmem:[#allocation8 + $0x5c] sm:$0xf0] }
 0x691   : > { %v3811_v20 = vpop.f32.mrf.mxu3 }
 0x692   : > { %v8462_v56 = vpack.i.bf16 %v3998_v44, %v4000_v43  ;;  %8241 = vxpose.xlu2.b32.cont [5/16] %v12647_v4, 128 }
 0x693   : > { %v3722_v18 = vpop.f32.mrf.mxu2  ;;  %v3546_v26 = vpop.f32.mrf.mxu0 }
 0x694   : > { %v3723_v21 = vadd.f32 %v3722_v18, %v3634_v63  ;;  %8463 = vxpose.xlu1.b32.cont [4/16] %v8462_v56, 128  ;;  %8351 = vxpose.xlu0.b32.cont [4/16] %v8350_v55, 128  ;;  %v3547_v5 = vadd.f32 %v3546_v26, %v10441_v15  ;;  %v7933_v0 = vpop.trf.xlu2  ;;  %v3635_v34 = vpop.f32.mrf.mxu1  ;;  %v4006_v55 = vmax.f32 %v10425_v13, 0.0  ;;  %v10676_v15 = vor.u32 %v7544_v33, %v7108_v51 }
 0x695   : > { %v7937_v49 = vunpack.i.h.bf16 %v7933_v0  ;;  %v7934_v29 = vunpack.i.l.bf16 %v7933_v0  ;;  %v3636_v12 = vadd.f32 %v3635_v34, %v10532_v32  ;;  %v10683_v13 = vpop.trf.xlu1 }
 0x696   : > { %v3812_v19 = vadd.f32 %v3811_v20, %v3723_v21  ;;  %v4015_v16 = vmax.f32 %v3547_v5, 0.0  ;;  %12651 = vst [vmem:[#allocation86_spill] sm:$0xff] %v10676_v15  ;;  %5230 = vmatmul.bf16.gmra.mxu0 %v10676_v15  ;;  %v12653_v21 = vld [vmem:[#allocation87_spill] sm:$0xff] }
 0x697   : > { %v10678_v59 = vpack.c.bf16 %v7937_v49, %v7932_v61  ;;  %v10680_v44 = vpack.c.bf16 %v7934_v29, %v7929_v27  ;;  %v4021_v26 = vmax.f32 %v12653_v21, 0.0  ;;  %v7116_v27 = vld [vmem:[#allocation8 + $0x48] sm:$0xf]  ;;  %v7118_v49 = vld [vmem:[#allocation8 + $0x68] sm:$0xf0] }
 0x698   : > { %v4008_v17 = vmax.f32 %v3812_v19, 0.0  ;;  %v8354_v30 = vpack.i.bf16 %v4013_v23, %v4015_v16  ;;  %v7545_v5 = vld [vmem:[#allocation8 + $0x64] sm:$0xf0]  ;;  %v12655_v16 = vld [vmem:[#allocation46_spill] sm:$0xff] }
 0x699   : > { %v3813_v7 = vpop.f32.mrf.mxu3  ;;  %v10692_v19 = vor.u32 %v7545_v5, %v7116_v27 }
 0x69a   : > { %v8464_v43 = vpack.i.bf16 %v4006_v55, %v4008_v17  ;;  %8243 = vxpose.xlu2.b32.cont [6/16] %v12652_v10, 128 }
 0x69b   : > { %v3724_v63 = vpop.f32.mrf.mxu2  ;;  %v3549_v56 = vpop.f32.mrf.mxu0  ;;  %12654 = vst [vmem:[#allocation20_spill] sm:$0xff] %v10692_v19  ;;  %5328 = vmatmul.bf16.gmra.mxu2 %v10692_v19 }
 0x69c   : > { %v3725_v46 = vadd.f32 %v3724_v63, %v3636_v12  ;;  %8465 = vxpose.xlu1.b32.cont [5/16] %v8464_v43, 128  ;;  %8353 = vxpose.xlu0.b32.cont [5/16] %v8352_v40, 128  ;;  %v3550_v52 = vadd.f32 %v3549_v56, %v10452_v36  ;;  %v7938_v18 = vpop.trf.xlu2  ;;  %v3638_v4 = vpop.f32.mrf.mxu1  ;;  %v7541_v36 = vld [vmem:[#allocation8 + $0x4c] sm:$0xf]  ;;  %v7540_v12 = vld [vmem:[#allocation8 + $0x44] sm:$0xf]  ;;  %v12657_v63 = vld [vmem:[#allocation89_spill] sm:$0xff] }
 0x69d   : > { %v3639_v23 = vadd.f32 %v3638_v4, %v10532_v32  ;;  %v10690_v34 = vpop.trf.xlu1  ;;  %v7942_v29 = vunpack.i.h.bf16 %v7938_v18  ;;  %v10695_v17 = vor.u32 %v7541_v36, %v7118_v49  ;;  %v7110_v43 = vld [vmem:[#allocation8 + $0x60] sm:$0xf0]  ;;  %v4029_v10 = vmax.f32 %v12657_v63, 0.0 }
 0x69e   : > { %v3814_v61 = vadd.f32 %v3813_v7, %v3725_v46  ;;  %v4023_v20 = vmax.f32 %v3550_v52, 0.0  ;;  %v7939_v46 = vunpack.i.l.bf16 %v7938_v18  ;;  %v10700_v4 = vor.u32 %v7540_v12, %v7110_v43  ;;  %v7140_v18 = vld [vmem:[#allocation8 + $0x80] sm:$0xf]  ;;  %v12660_v12 = vld [vmem:[#allocation100_spill] sm:$0xff] }
 0x69f   : > { %12656 = vst [vmem:[#allocation18_spill] sm:$0xff] %v10695_v17  ;;  %5377 = vmatmul.bf16.gmra.mxu3 %v10695_v17 }
 0x6a0   : > { %v4016_v37 = vmax.f32 %v3814_v61, 0.0  ;;  %v8040_v47 = vpop.trf.xlu0  ;;  %v8356_v0 = vpack.i.bf16 %v4021_v26, %v4023_v20  ;;  %12658 = vst [vmem:[#allocation19_spill] sm:$0xff] %v10700_v4  ;;  %5279 = vmatmul.bf16.gmra.mxu1 %v10700_v4 }
 0x6a1   : > { %v3816_v33 = vpop.f32.mrf.mxu3  ;;  %v8044_v26 = vunpack.i.h.bf16 %v8040_v47 }
 0x6a2   : > { %v8466_v40 = vpack.i.bf16 %v4014_v3, %v4016_v37  ;;  %8245 = vxpose.xlu2.b32.cont [7/16] %v12655_v16, 128  ;;  %v7552_v37 = vld [vmem:[#allocation8 + $0x9c] sm:$0xf0] }
 0x6a3   : > { %v3727_v55 = vpop.f32.mrf.mxu2  ;;  %v3551_v24 = vpop.f32.mrf.mxu0  ;;  %v10706_v5 = vor.u32 %v7552_v37, %v7140_v18  ;;  %v7148_v37 = vld [vmem:[#allocation8 + $0x88] sm:$0xf] }
 0x6a4   : > { %v3728_v51 = vadd.f32 %v3727_v55, %v3639_v23  ;;  %8467 = vxpose.xlu1.b32.cont [6/16] %v8466_v40, 128  ;;  %8355 = vxpose.xlu0.b32.cont [6/16] %v8354_v30, 128  ;;  %v3552_v56 = vadd.f32 %v3551_v24, %v10459_v57  ;;  %v7943_v7 = vpop.trf.xlu2  ;;  %v3640_v52 = vpop.f32.mrf.mxu1  ;;  %v4022_v30 = vmax.f32 %v10443_v35, 0.0  ;;  %v8041_v55 = vunpack.i.l.bf16 %v8040_v47 }
 0x6a5   : > { %v7947_v21 = vunpack.i.h.bf16 %v7943_v7  ;;  %v7944_v3 = vunpack.i.l.bf16 %v7943_v7  ;;  %v3641_v27 = vadd.f32 %v3640_v52, %v10532_v32  ;;  %12659 = vst [vmem:[#allocation115_spill] sm:$0xff] %v10706_v5 }
 0x6a6   : > { %v3817_v61 = vadd.f32 %v3816_v33, %v3728_v51  ;;  %v4031_v20 = vmax.f32 %v3552_v56, 0.0  ;;  %5235 = vmatmul.bf16.gmra.mxu0 %v10706_v5  ;;  %v10711_v51 = vpop.trf.xlu1  ;;  %v7588_v5 = vld [vmem:[#allocation8 + $0x1c4] sm:$0xf] }
 0x6a7   : > { %v10708_v40 = vpack.c.bf16 %v7947_v21, %v7942_v29  ;;  %v10713_v24 = vpack.c.bf16 %v7944_v3, %v7939_v46  ;;  %v12661_v21 = vld [vmem:[#allocation90_spill] sm:$0xff] }
 0x6a8   : > { %v4024_v57 = vmax.f32 %v3817_v61, 0.0  ;;  %v8045_v23 = vpop.trf.xlu0  ;;  %v8358_v35 = vpack.i.bf16 %v4029_v10, %v4031_v20  ;;  %v4037_v46 = vmax.f32 %v12661_v21, 0.0  ;;  %v4030_v20 = vmax.f32 %v10454_v50, 0.0 }
 0x6a9   : > { %v8049_v36 = vunpack.i.h.bf16 %v8045_v23  ;;  %v8046_v49 = vunpack.i.l.bf16 %v8045_v23  ;;  %v3818_v29 = vpop.f32.mrf.mxu3 }
 0x6aa   : > { %v8468_v16 = vpack.i.bf16 %v4022_v30, %v4024_v57  ;;  %8247 = vxpose.xlu2.b32.cont [8/16] %v12660_v12, 128  ;;  %v7553_v57 = vld [vmem:[#allocation8 + $0xa4] sm:$0xf0] }
 0x6ab   : > { %v3729_v33 = vpop.f32.mrf.mxu2  ;;  %v3554_v63 = vpop.f32.mrf.mxu0  ;;  %v10716_v56 = vpack.c.bf16 %v8049_v36, %v8044_v26  ;;  %v10718_v7 = vpack.c.bf16 %v8046_v49, %v8041_v55  ;;  %v10726_v36 = vor.u32 %v7553_v57, %v7148_v37  ;;  %v7150_v49 = vld [vmem:[#allocation8 + $0xa8] sm:$0xf0] }
 0x6ac   : > { %v3730_v43 = vadd.f32 %v3729_v33, %v3641_v27  ;;  %8469 = vxpose.xlu1.b32.cont [7/16] %v8468_v16, 128  ;;  %8357 = vxpose.xlu0.b32.cont [7/16] %v8356_v0, 128  ;;  %v3555_v47 = vadd.f32 %v3554_v63, %v10470_v25  ;;  %v7948_v10 = vpop.trf.xlu2  ;;  %v3643_v52 = vpop.f32.mrf.mxu1  ;;  %v7549_v25 = vld [vmem:[#allocation8 + $0x8c] sm:$0xf] }
 0x6ad   : > { %v3644_v0 = vadd.f32 %v3643_v52, %v10532_v32  ;;  %12662 = vst [vmem:[#allocation114_spill] sm:$0xff] %v10726_v36  ;;  %v12663_v16 = vld [vmem:[#allocation52_spill] sm:$0xff]  ;;  %v7952_v33 = vunpack.i.h.bf16 %v7948_v10  ;;  %v10729_v63 = vor.u32 %v7549_v25, %v7150_v49  ;;  %v12665_v52 = vld [vmem:[#allocation91_spill] sm:$0xff]  ;;  %v7949_v21 = vunpack.i.l.bf16 %v7948_v10  ;;  %5333 = vmatmul.bf16.gmra.mxu2 %v10726_v36  ;;  %v7172_v10 = vld [vmem:[#allocation8 + $0xc0] sm:$0xf] }
 0x6ae   : > { %v3819_v61 = vadd.f32 %v3818_v29, %v3730_v43  ;;  %v4039_v30 = vmax.f32 %v3555_v47, 0.0  ;;  %v10724_v27 = vpop.trf.xlu1  ;;  %v7548_v29 = vld [vmem:[#allocation8 + $0x84] sm:$0xf]  ;;  %v7560_v49 = vld [vmem:[#allocation8 + $0xdc] sm:$0xf0] }
 0x6af   : > { %12664 = vst [vmem:[#allocation23_spill] sm:$0xff] %v10729_v63  ;;  %v7142_v47 = vld [vmem:[#allocation8 + $0xa0] sm:$0xf0]  ;;  %5382 = vmatmul.bf16.gmra.mxu3 %v10729_v63 }
 0x6b0   : > { %v4032_v3 = vmax.f32 %v3819_v61, 0.0  ;;  %v8050_v18 = vpop.trf.xlu0  ;;  %v8360_v26 = vpack.i.bf16 %v4037_v46, %v4039_v30  ;;  %v4045_v61 = vmax.f32 %v12665_v52, 0.0  ;;  %v7238_v36 = vld [vmem:[#allocation8 + $0x160] sm:$0xf0] }
 0x6b1   : > { %v3821_v43 = vpop.f32.mrf.mxu3  ;;  %v8054_v57 = vunpack.i.h.bf16 %v8050_v18 }
 0x6b2   : > { %v8470_v23 = vpack.i.bf16 %v4030_v20, %v4032_v3  ;;  %8249 = vxpose.xlu2.b32.cont [9/16] %v12663_v16, 128  ;;  %v10734_v3 = vor.u32 %v7548_v29, %v7142_v47  ;;  %v8051_v47 = vunpack.i.l.bf16 %v8050_v18 }
 0x6b3   : > { %v3732_v55 = vpop.f32.mrf.mxu2  ;;  %v3556_v50 = vpop.f32.mrf.mxu0 }
 0x6b4   : > { %v3733_v12 = vadd.f32 %v3732_v55, %v3644_v0  ;;  %8471 = vxpose.xlu1.b32.cont [8/16] %v8470_v23, 128  ;;  %8359 = vxpose.xlu0.b32.cont [8/16] %v8358_v35, 128  ;;  %v3557_v46 = vadd.f32 %v3556_v50, %v10477_v9  ;;  %v7953_v30 = vpop.trf.xlu2  ;;  %v3645_v20 = vpop.f32.mrf.mxu1  ;;  %12666 = vst [vmem:[#allocation21_spill] sm:$0xff] %v10734_v3  ;;  %v4038_v35 = vmax.f32 %v10461_v53, 0.0 }
 0x6b5   : > { %v7957_v37 = vunpack.i.h.bf16 %v7953_v30  ;;  %v7954_v25 = vunpack.i.l.bf16 %v7953_v30  ;;  %5284 = vmatmul.bf16.gmra.mxu1 %v10734_v3  ;;  %v3646_v16 = vadd.f32 %v3645_v20, %v10532_v32  ;;  %v10740_v50 = vor.u32 %v7560_v49, %v7172_v10  ;;  %v12669_v49 = vld [vmem:[#allocation92_spill] sm:$0xff] }
 0x6b6   : > { %v3822_v0 = vadd.f32 %v3821_v43, %v3733_v12  ;;  %v4047_v23 = vmax.f32 %v3557_v46, 0.0  ;;  %v10745_v46 = vpop.trf.xlu1 }
 0x6b7   : > { %12667 = vst [vmem:[#allocation22_spill] sm:$0xff] %v10740_v50  ;;  %v10742_v29 = vpack.c.bf16 %v7957_v37, %v7952_v33  ;;  %5240 = vmatmul.bf16.gmra.mxu0 %v10740_v50  ;;  %v10747_v30 = vpack.c.bf16 %v7954_v25, %v7949_v21  ;;  %v4053_v21 = vmax.f32 %v12669_v49, 0.0  ;;  %v7556_v49 = vld [vmem:[#allocation8 + $0xc4] sm:$0xf] }
 0x6b8   : > { %v4040_v9 = vmax.f32 %v3822_v0, 0.0  ;;  %v8055_v55 = vpop.trf.xlu0  ;;  %v8362_v53 = vpack.i.bf16 %v4045_v61, %v4047_v23  ;;  %v12668_v0 = vld [vmem:[#allocation49_spill] sm:$0xff] }
 0x6b9   : > { %v8059_v12 = vunpack.i.h.bf16 %v8055_v55  ;;  %v8056_v43 = vunpack.i.l.bf16 %v8055_v55  ;;  %v3823_v33 = vpop.f32.mrf.mxu3 }
 0x6ba   : > { %v8472_v52 = vpack.i.bf16 %v4038_v35, %v4040_v9  ;;  %8251 = vxpose.xlu2.b32.cont [10/16] %v12668_v0, 128  ;;  %v4046_v9 = vmax.f32 %v10472_v42, 0.0  ;;  %v7182_v0 = vld [vmem:[#allocation8 + $0xe8] sm:$0xf0] }
 0x6bb   : > { %v3734_v63 = vpop.f32.mrf.mxu2  ;;  %v3559_v20 = vpop.f32.mrf.mxu0  ;;  %v10750_v37 = vpack.c.bf16 %v8059_v12, %v8054_v57  ;;  %v10752_v10 = vpack.c.bf16 %v8056_v43, %v8051_v47 }
 0x6bc   : > { %v3735_v3 = vadd.f32 %v3734_v63, %v3646_v16  ;;  %8473 = vxpose.xlu1.b32.cont [9/16] %v8472_v52, 128  ;;  %8361 = vxpose.xlu0.b32.cont [9/16] %v8360_v26, 128  ;;  %v3560_v18 = vadd.f32 %v3559_v20, %v10488_v1  ;;  %v7958_v61 = vpop.trf.xlu2  ;;  %v3648_v35 = vpop.f32.mrf.mxu1  ;;  %v7180_v16 = vld [vmem:[#allocation8 + $0xc8] sm:$0xf]  ;;  %v7557_v1 = vld [vmem:[#allocation8 + $0xcc] sm:$0xf]  ;;  %v12671_v20 = vld [vmem:[#allocation101_spill] sm:$0xff] }
 0x6bd   : > { %v3649_v26 = vadd.f32 %v3648_v35, %v10532_v32  ;;  %v7561_v52 = vld [vmem:[#allocation8 + $0xe4] sm:$0xf0]  ;;  %v10763_v35 = vor.u32 %v7557_v1, %v7182_v0 }
 0x6be   : > { %v3824_v23 = vadd.f32 %v3823_v33, %v3735_v3  ;;  %v4055_v25 = vmax.f32 %v3560_v18, 0.0  ;;  %v10758_v43 = vpop.trf.xlu1  ;;  %v10760_v47 = vor.u32 %v7561_v52, %v7180_v16  ;;  %v7962_v33 = vunpack.i.h.bf16 %v7958_v61 }
 0x6bf   : > { %12672 = vst [vmem:[#allocation116_spill] sm:$0xff] %v10763_v35  ;;  %5387 = vmatmul.bf16.gmra.mxu3 %v10763_v35 }
 0x6c0   : > { %v4048_v55 = vmax.f32 %v3824_v23, 0.0  ;;  %v8060_v63 = vpop.trf.xlu0  ;;  %v8364_v57 = vpack.i.bf16 %v4053_v21, %v4055_v25  ;;  %12670 = vst [vmem:[#allocation88_spill] sm:$0xff] %v10760_v47  ;;  %v7174_v21 = vld [vmem:[#allocation8 + $0xe0] sm:$0xf0]  ;;  %v12673_v25 = vld [vmem:[#allocation94_spill] sm:$0xff]  ;;  %5338 = vmatmul.bf16.gmra.mxu2 %v10760_v47 }
 0x6c1   : > { %v3826_v23 = vpop.f32.mrf.mxu3  ;;  %v8064_v1 = vunpack.i.h.bf16 %v8060_v63 }
 0x6c2   : > { %v8474_v12 = vpack.i.bf16 %v4046_v9, %v4048_v55  ;;  %8253 = vxpose.xlu2.b32.cont [11/16] %v12671_v20, 128  ;;  %v4061_v9 = vmax.f32 %v12673_v25, 0.0  ;;  %v7959_v55 = vunpack.i.l.bf16 %v7958_v61  ;;  %v10768_v20 = vor.u32 %v7556_v49, %v7174_v21  ;;  %v7204_v61 = vld [vmem:[#allocation8 + $0x100] sm:$0xf] }
 0x6c3   : > { %v3737_v3 = vpop.f32.mrf.mxu2  ;;  %v3561_v42 = vpop.f32.mrf.mxu0  ;;  %v7568_v25 = vld [vmem:[#allocation8 + $0x11c] sm:$0xf0]  ;;  %v8061_v21 = vunpack.i.l.bf16 %v8060_v63 }
 0x6c4   : > { %v3738_v18 = vadd.f32 %v3737_v3, %v3649_v26  ;;  %8475 = vxpose.xlu1.b32.cont [10/16] %v8474_v12, 128  ;;  %8363 = vxpose.xlu0.b32.cont [10/16] %v8362_v53, 128  ;;  %v3562_v16 = vadd.f32 %v3561_v42, %v10495_v41  ;;  %v7963_v52 = vpop.trf.xlu2  ;;  %v3650_v50 = vpop.f32.mrf.mxu1  ;;  %12674 = vst [vmem:[#allocation26_spill] sm:$0xff] %v10768_v20  ;;  %v4054_v53 = vmax.f32 %v10479_v60, 0.0 }
 0x6c5   : > { %v7967_v12 = vunpack.i.h.bf16 %v7963_v52  ;;  %v7964_v3 = vunpack.i.l.bf16 %v7963_v52  ;;  %5289 = vmatmul.bf16.gmra.mxu1 %v10768_v20  ;;  %v3651_v17 = vadd.f32 %v3650_v50, %v10532_v32  ;;  %v10774_v47 = vor.u32 %v7568_v25, %v7204_v61 }
 0x6c6   : > { %v3827_v26 = vadd.f32 %v3826_v23, %v3738_v18  ;;  %v4063_v0 = vmax.f32 %v3562_v16, 0.0  ;;  %v10779_v16 = vpop.trf.xlu1 }
 0x6c7   : > { %12675 = vst [vmem:[#allocation24_spill] sm:$0xff] %v10774_v47  ;;  %v10776_v49 = vpack.c.bf16 %v7967_v12, %v7962_v33  ;;  %5245 = vmatmul.bf16.gmra.mxu0 %v10774_v47  ;;  %v10781_v52 = vpack.c.bf16 %v7964_v3, %v7959_v55  ;;  %v12677_v55 = vld [vmem:[#allocation95_spill] sm:$0xff] }
 0x6c8   : > { %v4056_v41 = vmax.f32 %v3827_v26, 0.0  ;;  %v8065_v42 = vpop.trf.xlu0  ;;  %v8366_v60 = vpack.i.bf16 %v4061_v9, %v4063_v0  ;;  %v12676_v26 = vld [vmem:[#allocation56_spill] sm:$0xff]  ;;  %v4069_v3 = vmax.f32 %v12677_v55, 0.0  ;;  %v7206_v55 = vld [vmem:[#allocation8 + $0x120] sm:$0xf0] }
 0x6c9   : > { %v8069_v18 = vunpack.i.h.bf16 %v8065_v42  ;;  %v8066_v23 = vunpack.i.l.bf16 %v8065_v42  ;;  %v3828_v33 = vpop.f32.mrf.mxu3 }
 0x6ca   : > { %v8476_v35 = vpack.i.bf16 %v4054_v53, %v4056_v41  ;;  %8255 = vxpose.xlu2.b32.cont [12/16] %v12676_v26, 128  ;;  %v4062_v41 = vmax.f32 %v10490_v45, 0.0 }
 0x6cb   : > { %v3739_v20 = vpop.f32.mrf.mxu2  ;;  %v3564_v50 = vpop.f32.mrf.mxu0  ;;  %v10784_v12 = vpack.c.bf16 %v8069_v18, %v8064_v1  ;;  %v10786_v61 = vpack.c.bf16 %v8066_v23, %v8061_v21  ;;  %v7569_v1 = vld [vmem:[#allocation8 + $0x124] sm:$0xf0]  ;;  %v7565_v18 = vld [vmem:[#allocation8 + $0x10c] sm:$0xf] }
 0x6cc   : > { %v3740_v4 = vadd.f32 %v3739_v20, %v3651_v17  ;;  %8477 = vxpose.xlu1.b32.cont [11/16] %v8476_v35, 128  ;;  %8365 = vxpose.xlu0.b32.cont [11/16] %v8364_v57, 128  ;;  %v3565_v63 = vadd.f32 %v3564_v50, %v10506_v14  ;;  %v10789_v9 = vpop.trf.xlu2  ;;  %v3653_v53 = vpop.f32.mrf.mxu1  ;;  %v7212_v20 = vld [vmem:[#allocation8 + $0x108] sm:$0xf]  ;;  %v7214_v23 = vld [vmem:[#allocation8 + $0x128] sm:$0xf0] }
 0x6cd   : > { %v3654_v57 = vadd.f32 %v3653_v53, %v10532_v32  ;;  %v10796_v26 = vor.u32 %v7569_v1, %v7212_v20  ;;  %v12682_v1 = vld [vmem:[#allocation96_spill] sm:$0xff] }
 0x6ce   : > { %v3829_v0 = vadd.f32 %v3828_v33, %v3740_v4  ;;  %v4071_v25 = vmax.f32 %v3565_v63, 0.0  ;;  %v10794_v14 = vpop.trf.xlu1  ;;  %v10798_v4 = vor.u32 %v7565_v18, %v7214_v23  ;;  %v12680_v33 = vld [vmem:[#allocation51_spill] sm:$0xff]  ;;  %v7576_v23 = vld [vmem:[#allocation8 + $0x15c] sm:$0xf0] }
 0x6cf   : > { %12678 = vst [vmem:[#allocation25_spill] sm:$0xff] %v10796_v26  ;;  %v8198_v15 = vunpack.i.l.bf16 %v10794_v14 }
 0x6d0   : > { %v4064_v17 = vmax.f32 %v3829_v0, 0.0  ;;  %v8070_v35 = vpop.trf.xlu0  ;;  %v8368_v42 = vpack.i.bf16 %v4069_v3, %v4071_v25  ;;  %12679 = vst [vmem:[#allocation117_spill] sm:$0xff] %v10798_v4  ;;  %v7564_v0 = vld [vmem:[#allocation8 + $0x104] sm:$0xf]  ;;  %5343 = vmatmul.bf16.gmra.mxu2 %v10796_v26  ;;  %5392 = vmatmul.bf16.gmra.mxu3 %v10798_v4 }
 0x6d1   : > { %v3831_v53 = vpop.f32.mrf.mxu3 }
 0x6d2   : > { %v8478_v21 = vpack.i.bf16 %v4062_v41, %v4064_v17  ;;  %8257 = vxpose.xlu2.b32.cont [13/16] %v12680_v33, 128  ;;  %v10805_v17 = vor.u32 %v7564_v0, %v7206_v55 }
 0x6d3   : > { %v3742_v50 = vpop.f32.mrf.mxu2  ;;  %v3566_v63 = vpop.f32.mrf.mxu0 }
 0x6d4   : > { %v3743_v45 = vadd.f32 %v3742_v50, %v3654_v57  ;;  %8479 = vxpose.xlu1.b32.cont [12/16] %v8478_v21, 128  ;;  %8367 = vxpose.xlu0.b32.cont [12/16] %v8366_v60, 128  ;;  %v3567_v3 = vadd.f32 %v3566_v63, %v10513_v38  ;;  %v10802_v25 = vpop.trf.xlu2  ;;  %v3655_v41 = vpop.f32.mrf.mxu1  ;;  %12681 = vst [vmem:[#allocation118_spill] sm:$0xff] %v10805_v17  ;;  %v4077_v57 = vmax.f32 %v12682_v1, 0.0  ;;  %v7236_v60 = vld [vmem:[#allocation8 + $0x140] sm:$0xf]  ;;  %v4070_v21 = vmax.f32 %v10497_v6, 0.0 }
 0x6d5   : > { %5294 = vmatmul.bf16.gmra.mxu1 %v10805_v17  ;;  %v3656_v33 = vadd.f32 %v3655_v41, %v10532_v32  ;;  %v10812_v63 = vor.u32 %v7576_v23, %v7236_v60  ;;  %v12684_v17 = vld [vmem:[#allocation103_spill] sm:$0xff] }
 0x6d6   : > { %v3832_v20 = vadd.f32 %v3831_v53, %v3743_v45  ;;  %v4079_v18 = vmax.f32 %v3567_v3, 0.0  ;;  %v8074_v45 = vunpack.i.h.bf16 %v8070_v35  ;;  %v8071_v53 = vunpack.i.l.bf16 %v8070_v35  ;;  %v10815_v3 = vpop.trf.xlu1 }
 0x6d7   : > { %12683 = vst [vmem:[#allocation29_spill] sm:$0xff] %v10812_v63  ;;  %5250 = vmatmul.bf16.gmra.mxu0 %v10812_v63 }
 0x6d8   : > { %v4072_v38 = vmax.f32 %v3832_v20, 0.0  ;;  %v8075_v50 = vpop.trf.xlu0  ;;  %v8370_v26 = vpack.i.bf16 %v4077_v57, %v4079_v18 }
 0x6d9   : > { %v8079_v0 = vunpack.i.h.bf16 %v8075_v50  ;;  %v8076_v55 = vunpack.i.l.bf16 %v8075_v50  ;;  %v3833_v41 = vpop.f32.mrf.mxu3 }
 0x6da   : > { %v8480_v4 = vpack.i.bf16 %v4070_v21, %v4072_v38  ;;  %8259 = vxpose.xlu2.b32.cont [14/16] %v12684_v17, 128  ;;  %v12685_v38 = vld [vmem:[#allocation123_spill] sm:$0xff]  ;;  %v4078_v17 = vmax.f32 %v10508_v48, 0.0 }
 0x6db   : > { %v3744_v1 = vpop.f32.mrf.mxu2  ;;  %v3569_v20 = vpop.f32.mrf.mxu0  ;;  %v10818_v60 = vpack.c.bf16 %v8079_v0, %v8074_v45  ;;  %v10820_v23 = vpack.c.bf16 %v8076_v55, %v8071_v53  ;;  %v4085_v50 = vmax.f32 %v12685_v38, 0.0  ;;  %v7244_v0 = vld [vmem:[#allocation8 + $0x148] sm:$0xf]  ;;  %v7573_v53 = vld [vmem:[#allocation8 + $0x14c] sm:$0xf] }
 0x6dc   : > { %v3745_v6 = vadd.f32 %v3744_v1, %v3656_v33  ;;  %8481 = vxpose.xlu1.b32.cont [13/16] %v8480_v4, 128  ;;  %8369 = vxpose.xlu0.b32.cont [13/16] %v8368_v42, 128  ;;  %v3570_v35 = vadd.f32 %v3569_v20, %v10524_v31  ;;  %v10823_v21 = vpop.trf.xlu2  ;;  %v3658_v57 = vpop.f32.mrf.mxu1  ;;  %v7577_v45 = vld [vmem:[#allocation8 + $0x164] sm:$0xf0]  ;;  %v7246_v1 = vld [vmem:[#allocation8 + $0x168] sm:$0xf0]  ;;  %v7572_v38 = vld [vmem:[#allocation8 + $0x144] sm:$0xf] }
 0x6dd   : > { %v3659_v42 = vadd.f32 %v3658_v57, %v10532_v32  ;;  %v10832_v47 = vor.u32 %v7577_v45, %v7244_v0  ;;  %v12690_v45 = vld [vmem:[#allocation121_spill] sm:$0xff] }
 0x6de   : > { %v3834_v18 = vadd.f32 %v3833_v41, %v3745_v6  ;;  %v4087_v63 = vmax.f32 %v3570_v35, 0.0  ;;  %v10830_v20 = vpop.trf.xlu1  ;;  %v10834_v6 = vor.u32 %v7573_v53, %v7246_v1  ;;  %v12688_v35 = vld [vmem:[#allocation59_spill] sm:$0xff]  ;;  %v7584_v1 = vld [vmem:[#allocation8 + $0x19c] sm:$0xf0] }
 0x6df   : > { %12686 = vst [vmem:[#allocation27_spill] sm:$0xff] %v10832_v47 }
 0x6e0   : > { %v4080_v33 = vmax.f32 %v3834_v18, 0.0  ;;  %v10827_v4 = vpop.trf.xlu0  ;;  %v8372_v55 = vpack.i.bf16 %v4085_v50, %v4087_v63  ;;  %12687 = vst [vmem:[#allocation28_spill] sm:$0xff] %v10834_v6  ;;  %5348 = vmatmul.bf16.gmra.mxu2 %v10832_v47  ;;  %5397 = vmatmul.bf16.gmra.mxu3 %v10834_v6 }
 0x6e1   : > { %v3836_v57 = vpop.f32.mrf.mxu3 }
 0x6e2   : > { %v8482_v31 = vpack.i.bf16 %v4078_v17, %v4080_v33  ;;  %8261 = vxpose.xlu2.b32.cont [15/16] %v12688_v35, 128  ;;  %v10841_v33 = vor.u32 %v7572_v38, %v7238_v36 }
 0x6e3   : > { %v3747_v41 = vpop.f32.mrf.mxu2  ;;  %v3571_v18 = vpop.f32.mrf.mxu0 }
 0x6e4   : > { %v3748_v48 = vadd.f32 %v3747_v41, %v3659_v42  ;;  %8483 = vxpose.xlu1.b32.cont [14/16] %v8482_v31, 128  ;;  %8371 = vxpose.xlu0.b32.cont [14/16] %v8370_v26, 128  ;;  %v3572_v63 = vadd.f32 %v3571_v18, %v10535_v54  ;;  %v10838_v50 = vpop.trf.xlu2  ;;  %v3660_v17 = vpop.f32.mrf.mxu1  ;;  %12689 = vst [vmem:[#allocation93_spill] sm:$0xff] %v10841_v33  ;;  %v4093_v42 = vmax.f32 %v12690_v45, 0.0  ;;  %v7268_v26 = vld [vmem:[#allocation8 + $0x180] sm:$0xf]  ;;  %v4086_v31 = vmax.f32 %v10515_v28, 0.0 }
 0x6e5   : > { %5299 = vmatmul.bf16.gmra.mxu1 %v10841_v33  ;;  %v3661_v35 = vadd.f32 %v3660_v17, %v10532_v32  ;;  %v10850_v18 = vor.u32 %v7584_v1, %v7268_v26  ;;  %v4094_v32 = vmax.f32 %v10526_v11, 0.0 }
 0x6e6   : > { %v3837_v0 = vadd.f32 %v3836_v57, %v3748_v48  ;;  %v4095_v53 = vmax.f32 %v3572_v63, 0.0  ;;  %v10853_v57 = vpop.trf.xlu1  ;;  %v12692_v63 = vld [vmem:[#allocation55_spill] sm:$0xff] }
 0x6e7   : > { %12691 = vst [vmem:[#allocation119_spill] sm:$0xff] %v10850_v18  ;;  %5255 = vmatmul.bf16.gmra.mxu0 %v10850_v18 }
 0x6e8   : > { %v4088_v54 = vmax.f32 %v3837_v0, 0.0  ;;  %v10847_v41 = vpop.trf.xlu0  ;;  %v8374_v48 = vpack.i.bf16 %v4093_v42, %v4095_v53  ;;  %v7276_v42 = vld [vmem:[#allocation8 + $0x188] sm:$0xf] }
 0x6e9   : > { %v3838_v28 = vpop.f32.mrf.mxu3  ;;  %v7585_v53 = vld [vmem:[#allocation8 + $0x1a4] sm:$0xf0] }
 0x6ea   : > { %v8484_v36 = vpack.i.bf16 %v4086_v31, %v4088_v54  ;;  %8263 = vxpose.xlu2.b32.end [16/16] %v12692_v63, 128  ;;  %v10863_v54 = vor.u32 %v7585_v53, %v7276_v42  ;;  %v7581_v63 = vld [vmem:[#allocation8 + $0x18c] sm:$0xf]  ;;  %v8156_v42 = vunpack.i.h.bf16 %v10653_v39  ;;  %v8153_v53 = vunpack.i.l.bf16 %v10653_v39 }
 0x6eb   : > { %v3749_v38 = vpop.f32.mrf.mxu2 }
 0x6ec   : > { %v3750_v45 = vadd.f32 %v3749_v38, %v3661_v35  ;;  %8485 = vxpose.xlu1.b32.cont [15/16] %v8484_v36, 128  ;;  %8373 = vxpose.xlu0.b32.cont [15/16] %v8372_v55, 128  ;;  %v10856_v0 = vpop.trf.xlu2  ;;  %12693 = vst [vmem:[#allocation32_spill] sm:$0xff] %v10863_v54  ;;  %v7278_v35 = vld [vmem:[#allocation8 + $0x1a8] sm:$0xf0]  ;;  %v7580_v36 = vld [vmem:[#allocation8 + $0x184] sm:$0xf] }
 0x6ed   : > { %v10865_v55 = vor.u32 %v7581_v63, %v7278_v35  ;;  %v7270_v38 = vld [vmem:[#allocation8 + $0x1a0] sm:$0xf0]  ;;  %v8161_v63 = vunpack.i.h.bf16 %v10662_v2  ;;  %v8158_v35 = vunpack.i.l.bf16 %v10662_v2 }
 0x6ee   : > { %v3839_v6 = vadd.f32 %v3838_v28, %v3750_v45  ;;  %v10861_v31 = vpop.trf.xlu1  ;;  %v10868_v11 = vor.u32 %v7580_v36, %v7270_v38  ;;  %v7592_v28 = vld [vmem:[#allocation8 + $0x1dc] sm:$0xf0]  ;;  %v7308_v38 = vld [vmem:[#allocation8 + $0x1c8] sm:$0xf]  ;;  %v7302_v2 = vld [vmem:[#allocation8 + $0x1e0] sm:$0xf0] }
 0x6ef   : > { %12694 = vst [vmem:[#allocation30_spill] sm:$0xff] %v10865_v55  ;;  %v10889_v33 = vpack.c.bf16 %v8161_v63, %v8156_v42  ;;  %v10896_v62 = vor.u32 %v7588_v5, %v7302_v2  ;;  %v7992_v42 = vunpack.i.h.bf16 %v10856_v0  ;;  %v8166_v5 = vunpack.i.h.bf16 %v10683_v13 }
 0x6f0   : > { %v4096_v17 = vmax.f32 %v3839_v6, 0.0  ;;  %v10859_v26 = vpop.trf.xlu0  ;;  %5353 = vmatmul.bf16.gmra.mxu2 %v10863_v54  ;;  %12695 = vst [vmem:[#allocation31_spill] sm:$0xff] %v10868_v11  ;;  %5402 = vmatmul.bf16.gmra.mxu3 %v10865_v55  ;;  %v7300_v6 = vld [vmem:[#allocation8 + $0x1c0] sm:$0xf]  ;;  %v7593_v55 = vld [vmem:[#allocation8 + $0x1e4] sm:$0xf0]  ;;  %v10891_v54 = vpack.c.bf16 %v8158_v35, %v8153_v53  ;;  %v7989_v53 = vunpack.i.l.bf16 %v10856_v0  ;;  %v8206_v2 = vunpack.i.h.bf16 %v10815_v3 }
 0x6f1   : > { %12699 = vst [vmem:[#allocation33_spill] sm:$0xff] %v10896_v62  ;;  %v7982_v0 = vunpack.i.h.bf16 %v10823_v21 }
 0x6f2   : > { %v8486_v1 = vpack.i.bf16 %v4094_v32, %v4096_v17  ;;  %v10874_v17 = vor.u32 %v7592_v28, %v7300_v6  ;;  %v10887_v6 = vor.u32 %v7593_v55, %v7308_v38  ;;  %v7589_v28 = vld [vmem:[#allocation8 + $0x1cc] sm:$0xf] }
 0x6f4   : > { %8487 = vxpose.xlu1.b32.end [16/16] %v8486_v1, 128  ;;  %8375 = vxpose.xlu0.b32.end [16/16] %v8374_v48, 128  ;;  %v7993_v45 = vpop.trf.xlu2  ;;  %12696 = vst [vmem:[#allocation120_spill] sm:$0xff] %v10874_v17 }
 0x6f5   : > { %5304 = vmatmul.bf16.gmra.mxu1 %v10868_v11  ;;  %12697 = vst [vmem:[#allocation97_spill] sm:$0xff] %v10887_v6 }
 0x6f6   : > { %v10877_v48 = vpop.trf.xlu1 }
 0x6f7   : > { %5260 = vmatmul.bf16.gmra.mxu0 %v10874_v17  ;;  %v7310_v17 = vld [vmem:[#allocation8 + $0x1e8] sm:$0xf0] }
 0x6f8   : > { %v10872_v32 = vpop.trf.xlu0  ;;  %v10893_v47 = vor.u32 %v7589_v28, %v7310_v17  ;;  %v7997_v17 = vunpack.i.h.bf16 %v7993_v45 }
 0x6fa   : > { %12698 = vst [vmem:[#allocation35_spill] sm:$0xff] %v10893_v47  ;;  %v10901_v63 = vpop.f32.mrf.mxu0 }
 0x6fb   : > { %12700 = vst [vmem:[#allocation34_spill] sm:$0xff] %v10901_v63  ;;  %v7979_v63 = vunpack.i.l.bf16 %v10823_v21  ;;  %v8201_v21 = vunpack.i.h.bf16 %v10794_v14  ;;  %v8186_v14 = vunpack.i.h.bf16 %v10745_v46 }
 0x6fc   : > { %v7998_v1 = vpop.trf.xlu2 }
 0x6fd   : > { %v8002_v39 = vunpack.i.h.bf16 %v7998_v1  ;;  %v7999_v18 = vunpack.i.l.bf16 %v7998_v1  ;;  %v7994_v1 = vunpack.i.l.bf16 %v7993_v45  ;;  %v8211_v45 = vunpack.i.h.bf16 %v10830_v20 }
 0x6fe   : > { %v10885_v11 = vpop.trf.xlu1 }
 0x700   : > { %v10883_v36 = vpop.trf.xlu0  ;;  %5358 = vmatmul.bf16.gmra.mxu2 %v10887_v6  ;;  %5407 = vmatmul.bf16.gmra.mxu3 %v10893_v47  ;;  %v8203_v47 = vunpack.i.l.bf16 %v10815_v3  ;;  %v8168_v3 = vunpack.i.l.bf16 %v10690_v34 }
 0x704   : > { %v8003_v8 = vpop.trf.xlu2 }
 0x705   : > { %v8007_v19 = vunpack.i.h.bf16 %v8003_v8  ;;  %v8004_v55 = vunpack.i.l.bf16 %v8003_v8  ;;  %5309 = vmatmul.bf16.gmra.mxu1 %v10896_v62  ;;  %v8163_v8 = vunpack.i.l.bf16 %v10683_v13  ;;  %v8208_v62 = vunpack.i.l.bf16 %v10830_v20 }
 0x706   : > { %v4717_v13 = vpack.c.bf16 %v7994_v1, %v7989_v53  ;;  %v7972_v20 = vunpack.i.h.bf16 %v10789_v9  ;;  %v10926_v53 = vpack.c.bf16 %v8211_v45, %v8206_v2 }
 0x707   : > { %v4687_v38 = vpack.c.bf16 %v8007_v19, %v8002_v39  ;;  %v4719_v28 = vpack.c.bf16 %v8004_v55, %v7999_v18  ;;  %v7987_v19 = vunpack.i.h.bf16 %v10838_v50  ;;  %v7984_v18 = vunpack.i.l.bf16 %v10838_v50 }
 0x708   : > { %v10904_v35 = vpop.trf.xlu0  ;;  %v4685_v39 = vpack.c.bf16 %v7997_v17, %v7992_v42  ;;  %v8171_v55 = vunpack.i.h.bf16 %v10690_v34  ;;  %v7969_v50 = vunpack.i.l.bf16 %v10789_v9  ;;  %v10924_v42 = vpop.f32.mrf.mxu0  ;;  %v10928_v34 = vpack.c.bf16 %v8208_v62, %v8203_v47 }
 0x709   : > { %5413 = vmatpush.bf16.msrb.mxu0 %v4687_v38  ;;  %5511 = vmatpush.bf16.msrb.mxu2 %v4719_v28  ;;  %v8196_v38 = vunpack.i.h.bf16 %v10779_v16  ;;  %v8193_v28 = vunpack.i.l.bf16 %v10779_v16  ;;  %12701 = vst [vmem:[#allocation122_spill] sm:$0xff] %v10924_v42  ;;  %v7977_v17 = vunpack.i.h.bf16 %v10802_v25  ;;  %v7974_v16 = vunpack.i.l.bf16 %v10802_v25 }
 0x70a   : > { %v4683_v58 = vpack.c.bf16 %v7987_v19, %v7982_v0  ;;  %v4715_v22 = vpack.c.bf16 %v7984_v18, %v7979_v63  ;;  %v8191_v62 = vunpack.i.h.bf16 %v10758_v43  ;;  %v8188_v47 = vunpack.i.l.bf16 %v10758_v43 }
 0x70b   : > { %v10934_v9 = vpack.c.bf16 %v8201_v21, %v8196_v38  ;;  %v10940_v2 = vpack.c.bf16 %v8171_v55, %v8166_v5  ;;  %v10942_v25 = vpack.c.bf16 %v8168_v3, %v8163_v8  ;;  %v4681_v45 = vpack.c.bf16 %v7977_v17, %v7972_v20  ;;  %v10948_v43 = vpop.f32.mrf.mxu2 }
 0x70c   : > { %v8264_v6 = vpop.trf.xlu2  ;;  %v4713_v19 = vpack.c.bf16 %v7974_v16, %v7969_v50  ;;  %12702 = vst [vmem:[#allocation127_spill] sm:$0xff] %v10948_v43  ;;  %v10950_v5 = vpack.c.bf16 %v8191_v62, %v8186_v14  ;;  %v8109_v14 = vunpack.i.h.bf16 %v10904_v35 }
 0x70d   : > { %5414 = vmatpush.bf16.msrb.mxu0 %v4685_v39  ;;  %5512 = vmatpush.bf16.msrb.mxu2 %v4717_v13  ;;  %v8183_v39 = vunpack.i.l.bf16 %v10745_v46  ;;  %v10936_v13 = vpack.c.bf16 %v8198_v15, %v8193_v28  ;;  %v8268_v0 = vunpack.i.h.bf16 %v8264_v6  ;;  %v8265_v63 = vunpack.i.l.bf16 %v8264_v6 }
 0x70e   : > { %v8176_v46 = vunpack.i.h.bf16 %v10711_v51  ;;  %v8178_v15 = vunpack.i.l.bf16 %v10724_v27 }
 0x70f   : > { %v10952_v6 = vpack.c.bf16 %v8188_v47, %v8183_v39  ;;  %v10968_v47 = vpop.f32.mrf.mxu1 }
 0x710   : > { %v8110_v1 = vpop.trf.xlu0  ;;  %12704 = vst [vmem:[#allocation38_spill] sm:$0xff] %v10968_v47 }
 0x711   : > { %5415 = vmatpush.bf16.msrb.mxu0 %v4683_v58  ;;  %5513 = vmatpush.bf16.msrb.mxu2 %v4715_v22  ;;  %v8173_v22 = vunpack.i.l.bf16 %v10711_v51  ;;  %v8181_v58 = vunpack.i.h.bf16 %v10724_v27  ;;  %v8114_v8 = vunpack.i.h.bf16 %v8110_v1  ;;  %v8111_v55 = vunpack.i.l.bf16 %v8110_v1 }
 0x712   : > { %v8106_v1 = vunpack.i.l.bf16 %v10904_v35 }
 0x713   : > { %v10958_v50 = vpop.f32.mrf.mxu0  ;;  %v10962_v17 = vpack.c.bf16 %v8181_v58, %v8176_v46  ;;  %v10964_v16 = vpack.c.bf16 %v8178_v15, %v8173_v22  ;;  %v8223_v46 = vunpack.i.l.bf16 %v10877_v48  ;;  %v8231_v58 = vunpack.i.h.bf16 %v10885_v11  ;;  %v10980_v15 = vpop.f32.mrf.mxu3 }
 0x714   : > { %v8269_v18 = vpop.trf.xlu2  ;;  %12703 = vst [vmem:[#allocation104_spill] sm:$0xff] %v10958_v50 }
 0x715   : > { %v8273_v38 = vunpack.i.h.bf16 %v8269_v18  ;;  %v8270_v28 = vunpack.i.l.bf16 %v8269_v18  ;;  %5416 = vmatpush.bf16.msrb.mxu0 %v4681_v45  ;;  %5514 = vmatpush.bf16.msrb.mxu2 %v4713_v19  ;;  %v8226_v19 = vunpack.i.h.bf16 %v10877_v48  ;;  %12705 = vst [vmem:[#allocation37_spill] sm:$0xff] %v10980_v15  ;;  %v8089_v18 = vunpack.i.h.bf16 %v10847_v41 }
 0x716   : > { %v8213_v48 = vunpack.i.l.bf16 %v10853_v57 }
 0x717   : > { %v10954_v21 = vpack.c.bf16 %v8273_v38, %v8268_v0  ;;  %v10956_v51 = vpack.c.bf16 %v8270_v28, %v8265_v63  ;;  %v8099_v0 = vunpack.i.h.bf16 %v10872_v32  ;;  %v8096_v63 = vunpack.i.l.bf16 %v10872_v32 }
 0x718   : > { %v8115_v3 = vpop.trf.xlu0  ;;  %v8228_v32 = vunpack.i.l.bf16 %v10885_v11  ;;  %v8216_v38 = vunpack.i.h.bf16 %v10853_v57  ;;  %v7092_v11 = vld [vmem:[#allocation8 + $0x10] sm:$0xf] }
 0x719   : > { %v8119_v20 = vunpack.i.h.bf16 %v8115_v3  ;;  %v8116_v27 = vunpack.i.l.bf16 %v8115_v3  ;;  %5417 = vmatpush.bf16.msrb.mxu0 %v10776_v49  ;;  %5515 = vmatpush.bf16.msrb.mxu2 %v10781_v52  ;;  %v8104_v49 = vunpack.i.h.bf16 %v10883_v36  ;;  %v8101_v52 = vunpack.i.l.bf16 %v10883_v36  ;;  %v10982_v36 = vpop.f32.mrf.mxu2  ;;  %v7538_v57 = vld [vmem:[#allocation8 + $0x2c] sm:$0xf0] }
 0x71a   : > { %12706 = vst [vmem:[#allocation36_spill] sm:$0xff] %v10982_v36  ;;  %v8218_v3 = vunpack.i.l.bf16 %v10861_v31  ;;  %v7166_v36 = vld [vmem:[#allocation8 + $0xb8] sm:$0xf0] }
 0x71b   : > { %v4703_v39 = vpack.c.bf16 %v8119_v20, %v8114_v8  ;;  %v4735_v62 = vpack.c.bf16 %v8116_v27, %v8111_v55  ;;  %v4701_v35 = vpack.c.bf16 %v8109_v14, %v8104_v49  ;;  %v4733_v22 = vpack.c.bf16 %v8106_v1, %v8101_v52  ;;  %v7100_v20 = vld [vmem:[#allocation8 + $0x18] sm:$0xf]  ;;  %v10997_v49 = vpop.f32.mrf.mxu0 }
 0x71c   : > { %v8274_v45 = vpop.trf.xlu2  ;;  %v8091_v8 = vunpack.i.l.bf16 %v10859_v26  ;;  %v8221_v55 = vunpack.i.h.bf16 %v10861_v31  ;;  %v7539_v27 = vld [vmem:[#allocation8 + $0x34] sm:$0xf0]  ;;  %12707 = vst [vmem:[#allocation130_spill] sm:$0xff] %v10997_v49  ;;  %v8081_v31 = vunpack.i.l.bf16 %v10827_v4 }
 0x71d   : > { %5462 = vmatpush.bf16.msrb.mxu1 %v4703_v39  ;;  %5560 = vmatpush.bf16.msrb.mxu3 %v4735_v62  ;;  %v4624_v39 = vpack.c.bf16 %v8231_v58, %v8226_v19  ;;  %v4656_v62 = vpack.c.bf16 %v8228_v32, %v8223_v46  ;;  %v8278_v52 = vunpack.i.h.bf16 %v8274_v45  ;;  %v11004_v15 = vor.u32 %v7539_v27, %v7100_v20  ;;  %v7132_v20 = vld [vmem:[#allocation8 + $0x58] sm:$0xf] }
 0x71e   : > { %5418 = vmatpush.bf16.msrb.mxu0 %v10742_v29  ;;  %5516 = vmatpush.bf16.msrb.mxu2 %v10747_v30  ;;  %v8094_v30 = vunpack.i.h.bf16 %v10859_v26  ;;  %v4731_v1 = vpack.c.bf16 %v8096_v63, %v8091_v8  ;;  %v8086_v26 = vunpack.i.l.bf16 %v10847_v41 }
 0x71f   : > { %12709 = vst [vmem:[#allocation125_spill] sm:$0xff] %v11004_v15 }
 0x720   : > { %v10987_v28 = vpop.trf.xlu0  ;;  %v10989_v29 = vpop.trf.xlu1  ;;  %v4699_v14 = vpack.c.bf16 %v8099_v0, %v8094_v30  ;;  %v4729_v58 = vpack.c.bf16 %v8086_v26, %v8081_v31 }
 0x721   : > { %5463 = vmatpush.bf16.msrb.mxu1 %v4701_v35  ;;  %5561 = vmatpush.bf16.msrb.mxu3 %v4733_v22  ;;  %v8275_v35 = vunpack.i.l.bf16 %v8274_v45  ;;  %v8084_v22 = vunpack.i.h.bf16 %v10827_v4  ;;  %v11006_v0 = vpop.f32.mrf.mxu1  ;;  %v4622_v45 = vpack.c.bf16 %v8221_v55, %v8216_v38  ;;  %v4654_v4 = vpack.c.bf16 %v8218_v3, %v8213_v48  ;;  %v7124_v3 = vld [vmem:[#allocation8 + $0x50] sm:$0xf] }
 0x722   : > { %5419 = vmatpush.bf16.msrb.mxu0 %v10708_v40  ;;  %5517 = vmatpush.bf16.msrb.mxu2 %v10713_v24  ;;  %v11002_v24 = vor.u32 %v7538_v57, %v7092_v11  ;;  %12710 = vst [vmem:[#allocation66_spill] sm:$0xff] %v11006_v0 }
 0x723   : > { %v4697_v41 = vpack.c.bf16 %v8089_v18, %v8084_v22  ;;  %v11025_v38 = vpop.f32.mrf.mxu0 }
 0x724   : > { %v8279_v40 = vpop.trf.xlu2  ;;  %12708 = vst [vmem:[#allocation63_spill] sm:$0xff] %v11002_v24 }
 0x725   : > { %5464 = vmatpush.bf16.msrb.mxu1 %v4699_v14  ;;  %5562 = vmatpush.bf16.msrb.mxu3 %v4731_v1  ;;  %v8283_v63 = vunpack.i.h.bf16 %v8279_v40  ;;  %v8280_v19 = vunpack.i.l.bf16 %v8279_v40  ;;  %12713 = vst [vmem:[#allocation129_spill] sm:$0xff] %v11025_v38  ;;  %v7534_v1 = vld [vmem:[#allocation8 + $0x14] sm:$0xf] }
 0x726   : > { %5420 = vmatpush.bf16.msrb.mxu0 %v10678_v59  ;;  %5518 = vmatpush.bf16.msrb.mxu2 %v10680_v44  ;;  %v11019_v59 = vpop.f32.mrf.mxu3  ;;  %v11021_v44 = vpop.f32.mrf.mxu2 }
 0x727   : > { %v11014_v30 = vpack.c.bf16 %v8283_v63, %v8278_v52  ;;  %v11016_v8 = vpack.c.bf16 %v8280_v19, %v8275_v35  ;;  %12711 = vst [vmem:[#allocation58_spill] sm:$0xff] %v11019_v59  ;;  %v7102_v52 = vld [vmem:[#allocation8 + $0x38] sm:$0xf0]  ;;  %v7158_v59 = vld [vmem:[#allocation8 + $0xb0] sm:$0xf0] }
 0x728   : > { %v11010_v46 = vpop.trf.xlu0  ;;  %v11012_v32 = vpop.trf.xlu1  ;;  %12712 = vst [vmem:[#allocation43_spill] sm:$0xff] %v11021_v44 }
 0x729   : > { %5421 = vmatmul.bf16.vlgmr.msrb.gmra.mxu0 %v11002_v24  ;;  %5465 = vmatpush.bf16.msrb.mxu1 %v4697_v41  ;;  %v11030_v48 = vpop.f32.mrf.mxu1  ;;  %v7156_v41 = vld [vmem:[#allocation8 + $0x90] sm:$0xf]  ;;  %v7190_v24 = vld [vmem:[#allocation8 + $0xf0] sm:$0xf0] }
 0x72a   : > { %5609 = vmatpush.bf16.msra.mxu0 %v4624_v39  ;;  %5707 = vmatpush.bf16.msra.mxu2 %v4656_v62  ;;  %12714 = vst [vmem:[#allocation42_spill] sm:$0xff] %v11030_v48  ;;  %v7094_v39 = vld [vmem:[#allocation8 + $0x30] sm:$0xf0] }
 0x72b   : > { %5563 = vmatpush.bf16.msrb.mxu3 %v4729_v58  ;;  %5519 = vmatmul.bf16.vlgmr.msrb.gmra.mxu2 %v11004_v15  ;;  %v7555_v58 = vld [vmem:[#allocation8 + $0xb4] sm:$0xf0] }
 0x72c   : > { %v8284_v18 = vpop.trf.xlu2 }
 0x72d   : > { %5466 = vmatpush.bf16.msrb.mxu1 %v10818_v60  ;;  %v7546_v60 = vld [vmem:[#allocation8 + $0x6c] sm:$0xf0]  ;;  %v8285_v27 = vunpack.i.l.bf16 %v8284_v18 }
 0x72e   : > { %5610 = vmatpush.bf16.msra.mxu0 %v4622_v45  ;;  %5708 = vmatpush.bf16.msra.mxu2 %v4654_v4  ;;  %v11037_v57 = vpop.f32.mrf.mxu2  ;;  %v7164_v4 = vld [vmem:[#allocation8 + $0x98] sm:$0xf] }
 0x72f   : > { %5564 = vmatpush.bf16.msrb.mxu3 %v10820_v23  ;;  %12715 = vst [vmem:[#allocation40_spill] sm:$0xff] %v11037_v57  ;;  %v7547_v23 = vld [vmem:[#allocation8 + $0x74] sm:$0xf0]  ;;  %v7559_v57 = vld [vmem:[#allocation8 + $0xdc] sm:$0xf] }
 0x730   : > { %v11032_v11 = vpop.trf.xlu0  ;;  %v11034_v55 = vpop.trf.xlu1  ;;  %v11047_v62 = vor.u32 %v7547_v23, %v7132_v20  ;;  %v7542_v20 = vld [vmem:[#allocation8 + $0x54] sm:$0xf] }
 0x731   : > { %5467 = vmatpush.bf16.msrb.mxu1 %v10784_v12  ;;  %v11045_v12 = vor.u32 %v7546_v60, %v7124_v3  ;;  %v7126_v23 = vld [vmem:[#allocation8 + $0x70] sm:$0xf0] }
 0x732   : > { %5611 = vmatpush.bf16.msra.mxu0 %v10926_v53  ;;  %5709 = vmatpush.bf16.msra.mxu2 %v10928_v34  ;;  %v11042_v53 = vpop.f32.mrf.mxu3  ;;  %v8288_v34 = vunpack.i.h.bf16 %v8284_v18  ;;  %12718 = vst [vmem:[#allocation131_spill] sm:$0xff] %v11047_v62 }
 0x733   : > { %5565 = vmatpush.bf16.msrb.mxu3 %v10786_v61  ;;  %12716 = vst [vmem:[#allocation106_spill] sm:$0xff] %v11042_v53 }
 0x734   : > { %v8289_v14 = vpop.trf.xlu2  ;;  %12717 = vst [vmem:[#allocation105_spill] sm:$0xff] %v11045_v12 }
 0x735   : > { %5468 = vmatpush.bf16.msrb.mxu1 %v10750_v37  ;;  %v8293_v61 = vunpack.i.h.bf16 %v8289_v14  ;;  %v8290_v26 = vunpack.i.l.bf16 %v8289_v14  ;;  %v11056_v37 = vor.u32 %v7534_v1, %v7094_v39  ;;  %v7543_v1 = vld [vmem:[#allocation8 + $0x5c] sm:$0xf] }
 0x736   : > { %5612 = vmatpush.bf16.msra.mxu0 %v10934_v9  ;;  %5710 = vmatpush.bf16.msra.mxu2 %v10936_v13  ;;  %v7535_v9 = vld [vmem:[#allocation8 + $0x1c] sm:$0xf]  ;;  %v11052_v13 = vpop.f32.mrf.mxu0 }
 0x737   : > { %5566 = vmatpush.bf16.msrb.mxu3 %v10752_v10  ;;  %12719 = vst [vmem:[#allocation65_spill] sm:$0xff] %v11052_v13  ;;  %v11060_v31 = vpack.c.bf16 %v8293_v61, %v8288_v34  ;;  %v11062_v40 = vpack.c.bf16 %v8290_v26, %v8285_v27  ;;  %v11066_v10 = vor.u32 %v7535_v9, %v7102_v52  ;;  %v7134_v39 = vld [vmem:[#allocation8 + $0x78] sm:$0xf0]  ;;  %v8750_v61 = vmov 0  }
 0x738   : > { %v11054_v35 = vpop.trf.xlu0  ;;  %12720 = vst [vmem:[#allocation62_spill] sm:$0xff] %v11056_v37  ;;  %v11058_v22 = vpop.trf.xlu1  ;;  %v11096_v34 = vor.u32 %v7555_v58, %v7164_v4  ;;  %v11102_v26 = vor.u32 %v7542_v20, %v7126_v23  ;;  %v4812_v4 = vld [vmem:[%s11932_s4 + $0x58] sm:$0xff]  ;;  %v4815_v23 = vld [vmem:[%s11932_s4 + $0x70] sm:$0xff] }
 0x739   : > { %5426 = vmatmul.bf16.gmra.mxu0 %v11045_v12  ;;  %5469 = vmatpush.bf16.msrb.mxu1 %v10716_v56  ;;  %12721 = vst [vmem:[#allocation48_spill] sm:$0xff] %v11066_v10  ;;  %v7567_v13 = vld [vmem:[#allocation8 + $0x11c] sm:$0xf] }
 0x73a   : > { %5613 = vmatpush.bf16.msra.mxu0 %v10950_v5  ;;  %5711 = vmatpush.bf16.msra.mxu2 %v10952_v6  ;;  %v11068_v5 = vpop.f32.mrf.mxu1  ;;  %v11070_v6 = vpop.f32.mrf.mxu2  ;;  %12729 = vst [vmem:[#allocation107_spill] sm:$0xff] %v11096_v34 }
 0x73b   : > { %12722 = vst [vmem:[#allocation132_spill] sm:$0xff] %v11068_v5  ;;  %5567 = vmatpush.bf16.msrb.mxu3 %v10718_v7  ;;  %5524 = vmatmul.bf16.gmra.mxu2 %v11047_v62  ;;  %v11078_v56 = vpop.f32.mrf.mxu3  ;;  %v7198_v5 = vld [vmem:[#allocation8 + $0xf8] sm:$0xf0] }
 0x73c   : > { %12723 = vst [vmem:[#allocation47_spill] sm:$0xff] %v11070_v6  ;;  %5470 = vmatmul.bf16.vlgmr.msrb.gmra.mxu1 %v11056_v37  ;;  %v8294_v63 = vpop.trf.xlu2 }
 0x73d   : > { %12724 = vst [vmem:[#allocation45_spill] sm:$0xff] %v11078_v56 }
 0x73e   : > { %5614 = vmatpush.bf16.msra.mxu0 %v10962_v17  ;;  %5712 = vmatpush.bf16.msra.mxu2 %v10964_v16  ;;  %v11086_v45 = vpop.f32.mrf.mxu0  ;;  %v7554_v16 = vld [vmem:[#allocation8 + $0xac] sm:$0xf0]  ;;  %12731 = vst [vmem:[#allocation134_spill] sm:$0xff] %v11102_v26 }
 0x73f   : > { %5568 = vmatmul.bf16.vlgmr.msrb.gmra.mxu3 %v11066_v10  ;;  %12725 = vst [vmem:[#allocation69_spill] sm:$0xff] %v11086_v45  ;;  %v11094_v60 = vor.u32 %v7554_v16, %v7156_v41  ;;  %v11111_v41 = vor.u32 %v7543_v1, %v7134_v39  ;;  %v7562_v1 = vld [vmem:[#allocation8 + $0xec] sm:$0xf0]  ;;  %v7196_v39 = vld [vmem:[#allocation8 + $0xd8] sm:$0xf] }
 0x740   : > { %v11082_v19 = vpop.trf.xlu0  ;;  %v11084_v7 = vpop.trf.xlu1  ;;  %v7551_v10 = vld [vmem:[#allocation8 + $0x9c] sm:$0xf] }
 0x741   : > { %12728 = vst [vmem:[#allocation72_spill] sm:$0xff] %v11094_v60 }
 0x742   : > { %5615 = vmatpush.bf16.msra.mxu0 %v10940_v2  ;;  %5713 = vmatpush.bf16.msra.mxu2 %v10942_v25  ;;  %v11088_v17 = vpop.f32.mrf.mxu2  ;;  %v11092_v18 = vpop.f32.mrf.mxu1  ;;  %v8298_v2 = vunpack.i.h.bf16 %v8294_v63  ;;  %v8295_v25 = vunpack.i.l.bf16 %v8294_v63  ;;  %12732 = vst [vmem:[#allocation53_spill] sm:$0xff] %v11111_v41 }
 0x743   : > { %12726 = vst [vmem:[#allocation70_spill] sm:$0xff] %v11088_v17  ;;  %v7566_v17 = vld [vmem:[#allocation8 + $0x114] sm:$0xf] }
 0x744   : > { %12727 = vst [vmem:[#allocation133_spill] sm:$0xff] %v11092_v18  ;;  %v8299_v3 = vpop.trf.xlu2  ;;  %v7586_v18 = vld [vmem:[#allocation8 + $0x1ac] sm:$0xf0] }
 0x745   : > { %v8303_v27 = vunpack.i.h.bf16 %v8299_v3  ;;  %v8300_v14 = vunpack.i.l.bf16 %v8299_v3 }
 0x746   : > { %5616 = vmatpush.bf16.msra.mxu0 %v10889_v33  ;;  %5714 = vmatpush.bf16.msra.mxu2 %v10891_v54  ;;  %v11098_v33 = vpop.f32.mrf.mxu3  ;;  %v11119_v58 = vpop.f32.mrf.mxu0 }
 0x747   : > { %8570 = vset.pattern.permute.xlu1 %v8750_v61  ;;  %12730 = vst [vmem:[#allocation54_spill] sm:$0xff] %v11098_v33  ;;  %v11106_v52 = vpack.c.bf16 %v8303_v27, %v8298_v2  ;;  %v11108_v63 = vpack.c.bf16 %v8300_v14, %v8295_v25  ;;  %v7188_v14 = vld [vmem:[#allocation8 + $0xd0] sm:$0xf] }
 0x748   : > { %v11100_v54 = vpop.trf.xlu0  ;;  %v11104_v9 = vpop.trf.xlu1  ;;  %12734 = vst [vmem:[#allocation73_spill] sm:$0xff] %v11119_v58  ;;  %v7587_v58 = vld [vmem:[#allocation8 + $0x1b4] sm:$0xf0] }
 0x749   : > { %5431 = vmatmul.bf16.gmra.mxu0 %v11094_v60  ;;  %v7550_v60 = vld [vmem:[#allocation8 + $0x94] sm:$0xf] }
 0x74a   : > { %v11113_v16 = vpop.f32.mrf.mxu2  ;;  %v11125_v25 = vpop.f32.mrf.mxu1  ;;  %v11150_v12 = vor.u32 %v7550_v60, %v7158_v59 }
 0x74b   : > { %12733 = vst [vmem:[#allocation50_spill] sm:$0xff] %v11113_v16  ;;  %5529 = vmatmul.bf16.gmra.mxu2 %v11096_v34  ;;  %v7262_v16 = vld [vmem:[#allocation8 + $0x178] sm:$0xf0] }
 0x74c   : > { %5475 = vmatmul.bf16.gmra.mxu1 %v11102_v26  ;;  %v11123_v2 = vpop.trf.xlu2  ;;  %8568 = vset.pattern.permute.xlu2 %v8750_v61  ;;  %12735 = vst [vmem:[#allocation108_spill] sm:$0xff] %v11125_v25  ;;  %v7222_v25 = vld [vmem:[#allocation8 + $0x130] sm:$0xf0] }
 0x74d   : > { %12742 = vst [vmem:[#allocation57_spill] sm:$0xff] %v11150_v12  ;;  %v11237_v6 = vor.u32 %v7566_v17, %v7222_v25 }
 0x74e   : > { %4874 = vperm.xlu1 %8570, %v4812_v4   ;;  %v11134_v27 = vpop.f32.mrf.mxu3  ;;  %v11140_v4 = vor.u32 %v7562_v1, %v7188_v14  ;;  %v11142_v43 = vpop.f32.mrf.mxu0  ;;  %v4816_v14 = vld [vmem:[%s11932_s4 + $0x78] sm:$0xff] }
 0x74f   : > { %5573 = vmatmul.bf16.gmra.mxu3 %v11111_v41  ;;  %12736 = vst [vmem:[#allocation135_spill] sm:$0xff] %v11134_v27  ;;  %v7563_v41 = vld [vmem:[#allocation8 + $0xf4] sm:$0xf0] }
 0x750   : > { %v11127_v3 = vpop.trf.xlu0  ;;  %v11129_v20 = vpop.trf.xlu1  ;;  %12738 = vst [vmem:[#allocation109_spill] sm:$0xff] %v11140_v4  ;;  %v11144_v37 = vor.u32 %v7563_v41, %v7196_v39  ;;  %v4813_v39 = vld [vmem:[%s11932_s4 + $0x60] sm:$0xff] }
 0x751   : > { %12739 = vst [vmem:[#allocation61_spill] sm:$0xff] %v11142_v43  ;;  %v8407_v38 = vunpack.i.l.bf16 %v11127_v3 }
 0x752   : > { %v11136_v26 = vpop.f32.mrf.mxu2  ;;  %12740 = vst [vmem:[#allocation136_spill] sm:$0xff] %v11144_v37  ;;  %v11146_v62 = vpop.f32.mrf.mxu1 }
 0x753   : > { %12737 = vst [vmem:[#allocation78_spill] sm:$0xff] %v11136_v26  ;;  %4889 = vperm.xlu2 %8568, %v4815_v23   ;;  %v11155_v23 = vor.u32 %v7551_v10, %v7166_v36  ;;  %v4811_v36 = vld [vmem:[%s11932_s4 + $0x50] sm:$0xff] }
 0x754   : > { %v11138_v34 = vpop.trf.xlu2  ;;  %12741 = vst [vmem:[#allocation60_spill] sm:$0xff] %v11146_v62 }
 0x755   : > { %12743 = vst [vmem:[#allocation80_spill] sm:$0xff] %v11155_v23 }
 0x756   : > { %v11161_v41 = vpop.f32.mrf.mxu3  ;;  %v11172_v10 = vpop.f32.mrf.mxu0  ;;  %12762 = vst [vmem:[#allocation143_spill] sm:$0xff] %v11237_v6 }
 0x757   : > { %12744 = vst [vmem:[#allocation75_spill] sm:$0xff] %v11161_v41 }
 0x758   : > { %v11148_v47 = vpop.trf.xlu0  ;;  %v11152_v0 = vpop.trf.xlu1  ;;  %12746 = vst [vmem:[#allocation140_spill] sm:$0xff] %v11172_v10  ;;  %v7558_v10 = vld [vmem:[#allocation8 + $0xd4] sm:$0xf] }
 0x759   : > { %5436 = vmatmul.bf16.gmra.mxu0 %v11140_v4  ;;  %v7571_v4 = vld [vmem:[#allocation8 + $0x134] sm:$0xf0]  ;;  %v11195_v44 = vor.u32 %v7558_v10, %v7190_v24  ;;  %v4809_v10 = vld [vmem:[%s11932_s4 + $0x40] sm:$0xff] }
 0x75a   : > { %v11167_v60 = vpop.f32.mrf.mxu2 }
 0x75b   : > { %5534 = vmatmul.bf16.gmra.mxu2 %v11144_v37  ;;  %8569 = vset.pattern.permute.xlu0 %v8750_v61  ;;  %12745 = vst [vmem:[#allocation137_spill] sm:$0xff] %v11167_v60  ;;  %v7228_v37 = vld [vmem:[#allocation8 + $0x118] sm:$0xf]  ;;  %v7284_v60 = vld [vmem:[#allocation8 + $0x190] sm:$0xf] }
 0x75c   : > { %5480 = vmatmul.bf16.gmra.mxu1 %v11150_v12  ;;  %4894 = vperm.xlu2 %8568, %v4816_v14   ;;  %v11165_v59 = vpop.trf.xlu2  ;;  %v11181_v14 = vpop.f32.mrf.mxu1  ;;  %v7570_v12 = vld [vmem:[#allocation8 + $0x12c] sm:$0xf0]  ;;  %v11189_v49 = vor.u32 %v7571_v4, %v7228_v37  ;;  %12752 = vst [vmem:[#allocation81_spill] sm:$0xff] %v11195_v44 }
 0x75d   : > { %12747 = vst [vmem:[#allocation79_spill] sm:$0xff] %v11181_v14  ;;  %v7254_v14 = vld [vmem:[#allocation8 + $0x170] sm:$0xf0] }
 0x75e   : > { %v11187_v56 = vpop.f32.mrf.mxu3  ;;  %12750 = vst [vmem:[#allocation67_spill] sm:$0xff] %v11189_v49 }
 0x75f   : > { %5578 = vmatmul.bf16.gmra.mxu3 %v11155_v23  ;;  %v7220_v23 = vld [vmem:[#allocation8 + $0x110] sm:$0xf]  ;;  %12749 = vst [vmem:[#allocation138_spill] sm:$0xff] %v11187_v56 }
 0x760   : > { %v11174_v1 = vpop.trf.xlu0  ;;  %v11176_v61 = vpop.trf.xlu1  ;;  %v11185_v15 = vor.u32 %v7570_v12, %v7220_v23  ;;  %v11200_v12 = vor.u32 %v7559_v57, %v7198_v5  ;;  %v4814_v23 = vld [vmem:[%s11932_s4 + $0x68] sm:$0xff] }
 0x762   : > { %4869 = vperm.xlu0 %8569, %v4811_v36   ;;  %12748 = vst [vmem:[#allocation68_spill] sm:$0xff] %v11185_v15  ;;  %v11191_v53 = vpop.f32.mrf.mxu2 }
 0x763   : > { %12751 = vst [vmem:[#allocation64_spill] sm:$0xff] %v11191_v53  ;;  %v7578_v53 = vld [vmem:[#allocation8 + $0x16c] sm:$0xf0] }
 0x764   : > { %4879 = vperm.xlu2 %8568, %v4813_v39   ;;  %v11183_v42 = vpop.trf.xlu2  ;;  %12753 = vst [vmem:[#allocation139_spill] sm:$0xff] %v11200_v12  ;;  %v11205_v39 = vpop.f32.mrf.mxu0 }
 0x765   : > { %12754 = vst [vmem:[#allocation82_spill] sm:$0xff] %v11205_v39  ;;  %v11208_v37 = vpop.f32.mrf.mxu1 }
 0x766   : > { %12755 = vst [vmem:[#allocation141_spill] sm:$0xff] %v11208_v37  ;;  %v11214_v4 = vpop.f32.mrf.mxu3  ;;  %v7574_v37 = vld [vmem:[#allocation8 + $0x154] sm:$0xf] }
 0x767   : > { %12756 = vst [vmem:[#allocation71_spill] sm:$0xff] %v11214_v4  ;;  %v7230_v4 = vld [vmem:[#allocation8 + $0x138] sm:$0xf0] }
 0x768   : > { %v11193_v36 = vpop.trf.xlu0  ;;  %v11197_v48 = vpop.trf.xlu1 }
 0x769   : > { %5441 = vmatmul.bf16.gmra.mxu0 %v11185_v15  ;;  %v7252_v15 = vld [vmem:[#allocation8 + $0x150] sm:$0xf] }
 0x76a   : > { %v11229_v50 = vor.u32 %v7578_v53, %v7252_v15  ;;  %v4810_v15 = vld [vmem:[%s11932_s4 + $0x48] sm:$0xff] }
 0x76b   : > { %5539 = vmatmul.bf16.gmra.mxu2 %v11189_v49  ;;  %v11223_v49 = vpop.f32.mrf.mxu2 }
 0x76c   : > { %5485 = vmatmul.bf16.gmra.mxu1 %v11195_v44  ;;  %4884 = vperm.xlu2 %8568, %v4814_v23   ;;  %v11212_v24 = vpop.trf.xlu2  ;;  %12757 = vst [vmem:[#allocation144_spill] sm:$0xff] %v11223_v49  ;;  %v11225_v44 = vpop.f32.mrf.mxu0  ;;  %v7260_v23 = vld [vmem:[#allocation8 + $0x158] sm:$0xf] }
 0x76d   : > { %12758 = vst [vmem:[#allocation110_spill] sm:$0xff] %v11225_v44  ;;  %v11231_v27 = vpop.f32.mrf.mxu1 }
 0x76e   : > { %12759 = vst [vmem:[#allocation142_spill] sm:$0xff] %v11229_v50  ;;  %v11247_v53 = vpop.f32.mrf.mxu3 }
 0x76f   : > { %5583 = vmatmul.bf16.gmra.mxu3 %v11200_v12  ;;  %v7579_v12 = vld [vmem:[#allocation8 + $0x174] sm:$0xf0]  ;;  %12760 = vst [vmem:[#allocation16_spill] sm:$0xff] %v11231_v27 }
 0x770   : > { %v11216_v57 = vpop.trf.xlu0  ;;  %v11218_v5 = vpop.trf.xlu1  ;;  %v11233_v33 = vor.u32 %v7579_v12, %v7260_v23  ;;  %12764 = vst [vmem:[#allocation74_spill] sm:$0xff] %v11247_v53  ;;  %v8385_v23 = vunpack.i.h.bf16 %v11010_v46 }
 0x772   : > { %12761 = vst [vmem:[#allocation77_spill] sm:$0xff] %v11233_v33 }
 0x773   : > { %v11250_v12 = vpop.f32.mrf.mxu2 }
 0x774   : > { %4859 = vperm.xlu2 %8568, %v4809_v10   ;;  %v11227_v39 = vpop.trf.xlu2  ;;  %v11242_v10 = vor.u32 %v7567_v13, %v7230_v4  ;;  %12765 = vst [vmem:[#allocation17_spill] sm:$0xff] %v11250_v12  ;;  %v11254_v25 = vpop.f32.mrf.mxu0  ;;  %v8380_v13 = vunpack.i.h.bf16 %v10987_v28  ;;  %v8377_v4 = vunpack.i.l.bf16 %v10987_v28 }
 0x775   : > { %12766 = vst [vmem:[#allocation145_spill] sm:$0xff] %v11254_v25  ;;  %v11260_v53 = vpop.f32.mrf.mxu1  ;;  %v8333_v62 = vunpack.i.h.bf16 %v11227_v39 }
 0x776   : > { %12763 = vst [vmem:[#allocation76_spill] sm:$0xff] %v11242_v10  ;;  %v11279_v56 = vpack.c.bf16 %v8385_v23, %v8380_v13  ;;  %v11283_v43 = vpop.f32.mrf.mxu3  ;;  %v8415_v13 = vunpack.i.h.bf16 %v11148_v47 }
 0x777   : > { %12767 = vst [vmem:[#allocation83_spill] sm:$0xff] %v11260_v53  ;;  %v7292_v53 = vld [vmem:[#allocation8 + $0x198] sm:$0xf] }
 0x778   : > { %v11235_v49 = vpop.trf.xlu0  ;;  %v11239_v44 = vpop.trf.xlu1  ;;  %12768 = vst [vmem:[#allocation39_spill] sm:$0xff] %v11283_v43  ;;  %v7575_v43 = vld [vmem:[#allocation8 + $0x15c] sm:$0xf] }
 0x779   : > { %5446 = vmatmul.bf16.gmra.mxu0 %v11229_v50  ;;  %v8382_v50 = vunpack.i.l.bf16 %v11010_v46  ;;  %v4807_v46 = vld [vmem:[%s11932_s4 + $0x30] sm:$0xff] }
 0x77b   : > { %5544 = vmatmul.bf16.gmra.mxu2 %v11233_v33  ;;  %v8492_v33 = vunpack.i.h.bf16 %v10989_v29  ;;  %v11281_v28 = vpack.c.bf16 %v8382_v50, %v8377_v4  ;;  %v11292_v4 = vor.u32 %v7586_v18, %v7284_v60  ;;  %v8330_v18 = vunpack.i.l.bf16 %v11227_v39 }
 0x77c   : > { %5490 = vmatmul.bf16.gmra.mxu1 %v11237_v6  ;;  %4864 = vperm.xlu2 %8568, %v4810_v15   ;;  %v8334_v17 = vpop.trf.xlu2  ;;  %v8489_v6 = vunpack.i.l.bf16 %v10989_v29  ;;  %v8497_v15 = vunpack.i.h.bf16 %v11012_v32  ;;  %v8400_v39 = vunpack.i.h.bf16 %v11082_v19 }
 0x77d   : > { %v8338_v25 = vunpack.i.h.bf16 %v8334_v17  ;;  %v8335_v26 = vunpack.i.l.bf16 %v8334_v17  ;;  %12770 = vst [vmem:[#allocation41_spill] sm:$0xff] %v11292_v4  ;;  %v11294_v17 = vpop.f32.mrf.mxu2 }
 0x77e   : > { %v11285_v29 = vpack.c.bf16 %v8497_v15, %v8492_v33  ;;  %12771 = vst [vmem:[#allocation84_spill] sm:$0xff] %v11294_v17  ;;  %v8328_v33 = vunpack.i.h.bf16 %v11212_v24  ;;  %v11300_v15 = vpop.f32.mrf.mxu0 }
 0x77f   : > { %5588 = vmatmul.bf16.gmra.mxu3 %v11242_v10  ;;  %v8494_v10 = vunpack.i.l.bf16 %v11012_v32  ;;  %v8410_v32 = vunpack.i.h.bf16 %v11127_v3  ;;  %v11302_v3 = vor.u32 %v7587_v58, %v7292_v53  ;;  %v4808_v58 = vld [vmem:[%s11932_s4 + $0x38] sm:$0xff]  ;;  %v8318_v53 = vunpack.i.h.bf16 %v11165_v59 }
 0x780   : > { %v11266_v12 = vpop.trf.xlu0  ;;  %v11268_v27 = vpop.trf.xlu1 }
 0x781   : > { %v11287_v41 = vpack.c.bf16 %v8494_v10, %v8489_v6  ;;  %v8325_v6 = vunpack.i.l.bf16 %v11212_v24  ;;  %v11298_v10 = vor.u32 %v7574_v37, %v7254_v14  ;;  %12773 = vst [vmem:[#allocation15_spill] sm:$0xff] %v11302_v3  ;;  %v11312_v14 = vpop.f32.mrf.mxu1  ;;  %v11314_v37 = vor.u32 %v7575_v43, %v7262_v16 }
 0x782   : > { %12774 = vst [vmem:[#allocation44_spill] sm:$0xff] %v11312_v14  ;;  %v8397_v24 = vunpack.i.l.bf16 %v11082_v19  ;;  %v8323_v43 = vunpack.i.h.bf16 %v11183_v42  ;;  %v8320_v16 = vunpack.i.l.bf16 %v11183_v42  ;;  %v4638_v19 = vpack.c.bf16 %v8333_v62, %v8328_v33  ;;  %v11340_v62 = vpop.f32.mrf.mxu3 }
 0x783   : > { %12769 = vst [vmem:[#allocation111_spill] sm:$0xff] %v11287_v41  ;;  %v8412_v41 = vunpack.i.l.bf16 %v11148_v47  ;;  %v8402_v47 = vunpack.i.l.bf16 %v11100_v54  ;;  %v8313_v42 = vunpack.i.h.bf16 %v11138_v34  ;;  %v8529_v33 = vunpack.i.l.bf16 %v11176_v61 }
 0x784   : > { %4849 = vperm.xlu2 %8568, %v4807_v46   ;;  %v8339_v50 = vpop.trf.xlu2  ;;  %12772 = vst [vmem:[#allocation98_spill] sm:$0xff] %v11298_v10  ;;  %v12783_v14 = vunpack.i.l.bf16 %v11034_v55 }
 0x785   : > { %v8343_v23 = vunpack.i.h.bf16 %v8339_v50  ;;  %v8340_v46 = vunpack.i.l.bf16 %v8339_v50  ;;  %12775 = vst [vmem:[#allocation112_spill] sm:$0xff] %v11314_v37 }
 0x786   : > { %12776 = vst [vmem:[#allocation99_spill] sm:$0xff] %v11340_v62 }
 0x787   : > { %v4640_v17 = vpack.c.bf16 %v8343_v23, %v8338_v25  ;;  %v4672_v50 = vpack.c.bf16 %v8340_v46, %v8335_v26  ;;  %v8405_v26 = vunpack.i.h.bf16 %v11100_v54  ;;  %v8315_v25 = vunpack.i.l.bf16 %v11165_v59 }
 0x788   : > { %v11306_v60 = vpop.trf.xlu0  ;;  %v11308_v45 = vpop.trf.xlu1  ;;  %v8507_v23 = vunpack.i.h.bf16 %v11058_v22  ;;  %v8504_v46 = vunpack.i.l.bf16 %v11058_v22  ;;  %v11332_v54 = vpack.c.bf16 %v8415_v13, %v8410_v32  ;;  %v11334_v59 = vpack.c.bf16 %v8412_v41, %v8407_v38 }
 0x789   : > { %5451 = vmatmul.bf16.gmra.mxu0 %v11292_v4  ;;  %5658 = vmatpush.bf16.msra.mxu1 %v4640_v17  ;;  %v4670_v17 = vpack.c.bf16 %v8330_v18, %v8325_v6  ;;  %v8532_v22 = vunpack.i.h.bf16 %v11176_v61  ;;  %v8537_v32 = vunpack.i.h.bf16 %v11197_v48  ;;  %v8534_v38 = vunpack.i.l.bf16 %v11197_v48  ;;  %v11346_v41 = vpop.f32.mrf.mxu2  ;;  %v4805_v61 = vld [vmem:[%s11932_s4 + $0x20] sm:$0xff] }
 0x78a   : > { %5756 = vmatpush.bf16.msra.mxu3 %v4672_v50  ;;  %v8308_v50 = vunpack.i.h.bf16 %v11123_v2  ;;  %12777 = vst [vmem:[#allocation113_spill] sm:$0xff] %v11346_v41  ;;  %v4668_v6 = vpack.c.bf16 %v8320_v16, %v8315_v25  ;;  %v8527_v48 = vunpack.i.h.bf16 %v11152_v0  ;;  %v7582_v41 = vld [vmem:[#allocation8 + $0x194] sm:$0xf] }
 0x78b   : > { %5549 = vmatmul.bf16.gmra.mxu2 %v11302_v3  ;;  %v8305_v3 = vunpack.i.l.bf16 %v11123_v2  ;;  %v4636_v2 = vpack.c.bf16 %v8323_v43, %v8318_v53  ;;  %v11361_v53 = vpop.f32.mrf.mxu0  ;;  %v11367_v25 = vpack.c.bf16 %v8534_v38, %v8529_v33  ;;  %v12779_v43 = vunpack.i.h.bf16 %v11054_v35 }
 0x78c   : > { %5495 = vmatmul.bf16.gmra.mxu1 %v11298_v10  ;;  %4854 = vperm.xlu2 %8568, %v4808_v58   ;;  %v8310_v58 = vunpack.i.l.bf16 %v11138_v34  ;;  %v11350_v34 = vpack.c.bf16 %v8405_v26, %v8400_v39  ;;  %v8524_v10 = vunpack.i.l.bf16 %v11152_v0  ;;  %v7316_v39 = vld [vmem:[#allocation8 + $0x1d0] sm:$0xf]  ;;  %v12780_v0 = vunpack.i.l.bf16 %v11032_v11 }
 0x78d   : > { %5659 = vmatpush.bf16.msra.mxu1 %v4638_v19  ;;  %v11352_v19 = vpack.c.bf16 %v8402_v47, %v8397_v24  ;;  %v7594_v26 = vld [vmem:[#allocation8 + $0x1ec] sm:$0xf0]  ;;  %v11363_v24 = vpop.f32.mrf.mxu1  ;;  %v11365_v47 = vpack.c.bf16 %v8537_v32, %v8532_v22  ;;  %v4634_v4 = vpack.c.bf16 %v8313_v42, %v8308_v50  ;;  %v7324_v22 = vld [vmem:[#allocation8 + $0x1d8] sm:$0xf]  ;;  %v12782_v33 = vunpack.i.h.bf16 %v11034_v55 }
 0x78e   : > { %5757 = vmatpush.bf16.msra.mxu3 %v4670_v17  ;;  %v8522_v17 = vunpack.i.h.bf16 %v11129_v20  ;;  %v4666_v62 = vpack.c.bf16 %v8310_v58, %v8305_v3  ;;  %v7595_v32 = vld [vmem:[#allocation8 + $0x1f4] sm:$0xf0]  ;;  %v8509_v3 = vunpack.i.l.bf16 %v11084_v7  ;;  %v8517_v50 = vunpack.i.h.bf16 %v11104_v9 }
 0x78f   : > { %5593 = vmatmul.bf16.gmra.mxu3 %v11314_v37  ;;  %v8519_v37 = vunpack.i.l.bf16 %v11129_v20  ;;  %v12778_v20 = vunpack.i.h.bf16 %v11032_v11  ;;  %v11383_v38 = vpack.c.bf16 %v8507_v23, %v12782_v33  ;;  %v8512_v11 = vunpack.i.h.bf16 %v11084_v7 }
 0x790   : > { %v8446_v13 = vpop.trf.xlu0  ;;  %v11348_v18 = vpop.trf.xlu1  ;;  %v11394_v42 = vpack.c.bf16 %v8527_v48, %v8522_v17  ;;  %v8514_v55 = vunpack.i.l.bf16 %v11104_v9  ;;  %v11399_v58 = vor.u32 %v7595_v32, %v7324_v22  ;;  %v4806_v9 = vld [vmem:[%s11932_s4 + $0x28] sm:$0xff]  ;;  %v8437_v17 = vunpack.i.l.bf16 %v11266_v12 }
 0x791   : > { %5660 = vmatpush.bf16.msra.mxu1 %v4636_v2  ;;  %v11373_v16 = vpack.c.bf16 %v12779_v43, %v12778_v20  ;;  %v12781_v2 = vunpack.i.l.bf16 %v11054_v35  ;;  %v11387_v20 = vpack.c.bf16 %v8504_v46, %v12783_v14  ;;  %v11390_v43 = vor.u32 %v7594_v26, %v7316_v39  ;;  %v7286_v35 = vld [vmem:[#allocation8 + $0x1b0] sm:$0xf0] }
 0x792   : > { %5758 = vmatpush.bf16.msra.mxu3 %v4668_v6  ;;  %v11396_v23 = vpack.c.bf16 %v8524_v10, %v8519_v37  ;;  %v8450_v14 = vunpack.i.h.bf16 %v8446_v13  ;;  %v8447_v46 = vunpack.i.l.bf16 %v8446_v13  ;;  %12785 = vst [vmem:[#allocation87_spill] sm:$0xff] %v11399_v58  ;;  %v8440_v39 = vunpack.i.h.bf16 %v11266_v12  ;;  %v11413_v13 = vpop.f32.mrf.mxu2 }
 0x793   : > { %v11379_v6 = vpack.c.bf16 %v12781_v2, %v12780_v0  ;;  %12784 = vst [vmem:[#allocation102_spill] sm:$0xff] %v11390_v43  ;;  %v7583_v0 = vld [vmem:[#allocation8 + $0x19c] sm:$0xf]  ;;  %v8445_v26 = vunpack.i.h.bf16 %v11306_v60  ;;  %v11403_v2 = vpop.f32.mrf.mxu3  ;;  %v11405_v33 = vor.u32 %v7582_v41, %v7286_v35  ;;  %v8442_v48 = vunpack.i.l.bf16 %v11306_v60 }
 0x794   : > { %4839 = vperm.xlu2 %8568, %v4805_v61   ;;  %v7294_v61 = vld [vmem:[#allocation8 + $0x1b8] sm:$0xf0]  ;;  %v11420_v32 = vpack.c.bf16 %v8517_v50, %v8512_v11  ;;  %v11422_v35 = vpack.c.bf16 %v8514_v55, %v8509_v3  ;;  %v8430_v12 = vunpack.i.h.bf16 %v11216_v57  ;;  %v8435_v60 = vunpack.i.h.bf16 %v11235_v49 }
 0x795   : > { %5661 = vmatpush.bf16.msra.mxu1 %v4634_v4  ;;  %12786 = vst [vmem:[#allocation46_spill] sm:$0xff] %v11405_v33  ;;  %v11407_v4 = vor.u32 %v7583_v0, %v7294_v61  ;;  %v11425_v0 = vpop.f32.mrf.mxu0  ;;  %v8427_v11 = vunpack.i.l.bf16 %v11216_v57  ;;  %v8432_v61 = vunpack.i.l.bf16 %v11235_v49  ;;  %v4718_v3 = vpack.c.bf16 %v8442_v48, %v8437_v17  ;;  %v4803_v57 = vld [vmem:[%s11932_s4 + $0x10] sm:$0xff] }
 0x796   : > { %5759 = vmatpush.bf16.msra.mxu3 %v4666_v62  ;;  %v8562_v50 = vunpack.i.h.bf16 %v11348_v18  ;;  %v4684_v49 = vpack.c.bf16 %v8435_v60, %v8430_v12  ;;  %v8554_v17 = vunpack.i.l.bf16 %v11308_v45  ;;  %v7318_v48 = vld [vmem:[#allocation8 + $0x1f0] sm:$0xf0]  ;;  %v7326_v60 = vld [vmem:[#allocation8 + $0x1f8] sm:$0xf0] }
 0x797   : > { %12787 = vst [vmem:[#allocation89_spill] sm:$0xff] %v11407_v4 }
 0x798   : > { %v8451_v7 = vpop.trf.xlu0  ;;  %v8563_v37 = vpop.trf.xlu1 }
 0x799   : > { %v8455_v62 = vunpack.i.h.bf16 %v8451_v7  ;;  %v8452_v10 = vunpack.i.l.bf16 %v8451_v7  ;;  %5456 = vmatmul.bf16.gmra.mxu0 %v11390_v43  ;;  %5662 = vmatpush.bf16.msra.mxu1 %v11106_v52  ;;  %v11429_v52 = vpop.f32.mrf.mxu1  ;;  %v8567_v55 = vunpack.i.h.bf16 %v8563_v37  ;;  %v8420_v7 = vunpack.i.h.bf16 %v11174_v1  ;;  %v12835_v43 = vld [vmem:[#allocation71_spill] sm:$0xff] }
 0x79a   : > { %5760 = vmatpush.bf16.msra.mxu3 %v11108_v63  ;;  %v4686_v63 = vpack.c.bf16 %v8445_v26, %v8440_v39  ;;  %v8417_v39 = vunpack.i.l.bf16 %v11174_v1  ;;  %v8422_v26 = vunpack.i.l.bf16 %v11193_v36  ;;  %v8549_v1 = vunpack.i.l.bf16 %v11268_v27 }
 0x79b   : > { %v4688_v41 = vpack.c.bf16 %v8455_v62, %v8450_v14  ;;  %v4720_v22 = vpack.c.bf16 %v8452_v10, %v8447_v46  ;;  %5554 = vmatmul.bf16.gmra.mxu2 %v11399_v58  ;;  %v8559_v14 = vunpack.i.l.bf16 %v11348_v18  ;;  %v8564_v46 = vunpack.i.l.bf16 %v8563_v37  ;;  %v11448_v10 = vpop.f32.mrf.mxu3  ;;  %v11451_v37 = vpop.f32.mrf.mxu2 }
 0x79c   : > { %5500 = vmatmul.bf16.gmra.mxu1 %v11405_v33  ;;  %4844 = vperm.xlu2 %8568, %v4806_v9   ;;  %v8552_v18 = vunpack.i.h.bf16 %v11268_v27  ;;  %v8557_v62 = vunpack.i.h.bf16 %v11308_v45  ;;  %v4704_v9 = vpack.c.bf16 %v8567_v55, %v8562_v50  ;;  %v4714_v12 = vpack.c.bf16 %v8422_v26, %v8417_v39  ;;  %v12789_v55 = vld [vmem:[#allocation126_spill] sm:$0xff] }
 0x79d   : > { %5805 = vmatpush.bf16.msrb.mxu0 %v4688_v41  ;;  %5903 = vmatpush.bf16.msrb.mxu2 %v4720_v22  ;;  %v8547_v27 = vunpack.i.h.bf16 %v11239_v44  ;;  %v4734_v50 = vpack.c.bf16 %v8554_v17, %v8549_v1 }
 0x79e   : > { %5663 = vmatpush.bf16.msra.mxu1 %v11060_v31  ;;  %5761 = vmatpush.bf16.msra.mxu3 %v11062_v40  ;;  %v8425_v31 = vunpack.i.h.bf16 %v11193_v36  ;;  %v4716_v40 = vpack.c.bf16 %v8432_v61, %v8427_v11  ;;  %v4736_v36 = vpack.c.bf16 %v8564_v46, %v8559_v14  ;;  %v4702_v45 = vpack.c.bf16 %v8557_v62, %v8552_v18 }
 0x79f   : > { %5598 = vmatmul.bf16.gmra.mxu3 %v11407_v4  ;;  %v8539_v61 = vunpack.i.l.bf16 %v11218_v5 }
 0x7a0   : > { %v4682_v22 = vpack.c.bf16 %v8425_v31, %v8420_v7  ;;  %v12791_v7 = vld [vmem:[#allocation85_spill] sm:$0xff] }
 0x7a1   : > { %5806 = vmatpush.bf16.msrb.mxu0 %v4686_v63  ;;  %5904 = vmatpush.bf16.msrb.mxu2 %v4718_v3  ;;  %v8542_v63 = vunpack.i.h.bf16 %v11218_v5  ;;  %v5310_v11 = vpop.f32.mrf.mxu1  ;;  %v8544_v3 = vunpack.i.l.bf16 %v11239_v44 }
 0x7a2   : > { %5664 = vmatpush.bf16.msra.mxu1 %v11014_v30  ;;  %5762 = vmatpush.bf16.msra.mxu3 %v11016_v8  ;;  %v7590_v30 = vld [vmem:[#allocation8 + $0x1d4] sm:$0xf]  ;;  %v7591_v8 = vld [vmem:[#allocation8 + $0x1dc] sm:$0xf] }
 0x7a3   : > { %v11466_v14 = vor.u32 %v7591_v8, %v7326_v60  ;;  %v4700_v46 = vpack.c.bf16 %v8547_v27, %v8542_v63  ;;  %v4732_v44 = vpack.c.bf16 %v8544_v3, %v8539_v61  ;;  %v5408_v5 = vpop.f32.mrf.mxu3  ;;  %v12804_v8 = vld [vmem:[#allocation114_spill] sm:$0xff] }
 0x7a4   : > { %4829 = vperm.xlu2 %8568, %v4803_v57   ;;  %v12806_v60 = vld [vmem:[#allocation18_spill] sm:$0xff] }
 0x7a5   : > { %5807 = vmatpush.bf16.msrb.mxu0 %v4684_v49  ;;  %5905 = vmatpush.bf16.msrb.mxu2 %v4716_v40  ;;  %12790 = vst [vmem:[#allocation90_spill] sm:$0xff] %v11466_v14 }
 0x7a6   : > { %v11455_v41 = vpop.f32.mrf.mxu0  ;;  %5665 = vmatpush.bf16.msra.mxu1 %v10954_v21  ;;  %5763 = vmatpush.bf16.msra.mxu3 %v10956_v51  ;;  %v11463_v21 = vor.u32 %v7590_v30, %v7318_v48  ;;  %v4804_v51 = vld [vmem:[%s11932_s4 + $0x18] sm:$0xff] }
 0x7a8   : > { %12788 = vst [vmem:[#allocation100_spill] sm:$0xff] %v11463_v21 }
 0x7a9   : > { %5617 = vmatmul.bf16.vlgmr.msra.gmra.mxu0 %v12789_v55  ;;  %5906 = vmatpush.bf16.msrb.mxu2 %v4714_v12  ;;  %v5312_v26 = vpop.f32.mrf.mxu1 }
 0x7aa   : > { %5854 = vmatpush.bf16.msrb.mxu1 %v4704_v9  ;;  %5952 = vmatpush.bf16.msrb.mxu3 %v4736_v36  ;;  %v12794_v9 = vld [vmem:[#allocation86_spill] sm:$0xff] }
 0x7ab   : > { %5808 = vmatpush.bf16.msrb.mxu0 %v4682_v22  ;;  %5715 = vmatmul.bf16.vlgmr.msra.gmra.mxu2 %v12791_v7  ;;  %v12810_v7 = vld [vmem:[#allocation88_spill] sm:$0xff] }
 0x7ac   : > { %5505 = vmatmul.bf16.gmra.mxu1 %v11463_v21  ;;  %4834 = vperm.xlu2 %8568, %v4804_v51  }
 0x7ad   : > { %5907 = vmatpush.bf16.msrb.mxu2 %v11334_v59  ;;  %v11480_v39 = vpop.permute.xlu2 %4889 }
 0x7ae   : > { %5855 = vmatpush.bf16.msrb.mxu1 %v4702_v45  ;;  %5953 = vmatpush.bf16.msrb.mxu3 %v4734_v50  ;;  %v11474_v57 = vpop.f32.mrf.mxu2  ;;  %v11478_v49 = vpop.f32.mrf.mxu0  ;;  %12792 = vst [vmem:[#allocation52_spill] sm:$0xff] %v11480_v39  ;;  %v5262_v31 = vadd.f32 %v11361_v53, %v11480_v39 }
 0x7af   : > { %5603 = vmatmul.bf16.gmra.mxu3 %v11466_v14  ;;  %5809 = vmatpush.bf16.msrb.mxu0 %v11332_v54  ;;  %v4801_v54 = vld [vmem:[%s11932_s4] sm:$0xff] }
 0x7b0   : > { %v5311_v40 = vadd.f32 %v5310_v11, %v5262_v31 }
 0x7b1   : > { %5908 = vmatpush.bf16.msrb.mxu2 %v11352_v19 }
 0x7b2   : > { %5856 = vmatpush.bf16.msrb.mxu1 %v4700_v46  ;;  %5954 = vmatpush.bf16.msrb.mxu3 %v4732_v44  ;;  %v5360_v59 = vadd.f32 %v11413_v13, %v5311_v40  ;;  %v5410_v13 = vpop.f32.mrf.mxu3  ;;  %v12809_v46 = vld [vmem:[#allocation22_spill] sm:$0xff]  ;;  %v12811_v44 = vld [vmem:[#allocation21_spill] sm:$0xff] }
 0x7b3   : > { %5810 = vmatpush.bf16.msrb.mxu0 %v11350_v34 }
 0x7b4   : > { %4819 = vperm.xlu2 %8568, %v4801_v54   ;;  %v11494_v18 = vadd.f32 %v5408_v5, %v5360_v59  ;;  %v12812_v5 = vld [vmem:[#allocation23_spill] sm:$0xff]  ;;  %v12814_v54 = vld [vmem:[#allocation69_spill] sm:$0xff] }
 0x7b5   : > { %5909 = vmatpush.bf16.msrb.mxu2 %v11379_v6  ;;  %v12795_v6 = vld [vmem:[#allocation20_spill] sm:$0xff] }
 0x7b6   : > { %5857 = vmatpush.bf16.msrb.mxu1 %v11365_v47  ;;  %5955 = vmatpush.bf16.msrb.mxu3 %v11367_v25  ;;  %v11492_v53 = vpop.f32.mrf.mxu2  ;;  %v11498_v34 = vpop.f32.mrf.mxu0 }
 0x7b7   : > { %5811 = vmatpush.bf16.msrb.mxu0 %v11373_v16  ;;  %v11500_v19 = vpop.permute.xlu2 %4894  ;;  %v4802_v16 = vld [vmem:[%s11932_s4 + $0x8] sm:$0xff] }
 0x7b8   : > { %12793 = vst [vmem:[#allocation91_spill] sm:$0xff] %v11500_v19  ;;  %v5264_v47 = vadd.f32 %v11425_v0, %v11500_v19  ;;  %v12797_v0 = vld [vmem:[#allocation128_spill] sm:$0xff]  ;;  %v12825_v19 = vld [vmem:[#allocation26_spill] sm:$0xff] }
 0x7b9   : > { %v11506_v62 = vpop.f32.mrf.mxu1  ;;  %5622 = vmatmul.bf16.gmra.mxu0 %v12794_v9  ;;  %5910 = vmatpush.bf16.msrb.mxu2 %v11281_v28 }
 0x7ba   : > { %5858 = vmatpush.bf16.msrb.mxu1 %v11394_v42  ;;  %5956 = vmatpush.bf16.msrb.mxu3 %v11396_v23  ;;  %v5313_v25 = vadd.f32 %v5312_v26, %v5264_v47  ;;  %v12796_v23 = vld [vmem:[#allocation124_spill] sm:$0xff] }
 0x7bb   : > { %5812 = vmatpush.bf16.msrb.mxu0 %v11279_v56  ;;  %5720 = vmatmul.bf16.gmra.mxu2 %v12795_v6 }
 0x7bc   : > { %v5362_v42 = vadd.f32 %v11451_v37, %v5313_v25  ;;  %5666 = vmatmul.bf16.vlgmr.msra.gmra.mxu1 %v12796_v23  ;;  %4824 = vperm.xlu2 %8568, %v4802_v16   ;;  %v12800_v37 = vld [vmem:[#allocation111_spill] sm:$0xff]  ;;  %v12816_v16 = vld [vmem:[#allocation50_spill] sm:$0xff] }
 0x7be   : > { %5859 = vmatpush.bf16.msrb.mxu1 %v11420_v32  ;;  %5957 = vmatpush.bf16.msrb.mxu3 %v11422_v35  ;;  %v11520_v56 = vpop.f32.mrf.mxu2  ;;  %v11522_v28 = vadd.f32 %v5410_v13, %v5362_v42  ;;  %v11524_v1 = vpop.f32.mrf.mxu0  ;;  %v12815_v13 = vld [vmem:[#allocation60_spill] sm:$0xff]  ;;  %v12817_v42 = vld [vmem:[#allocation75_spill] sm:$0xff] }
 0x7bf   : > { %5764 = vmatmul.bf16.vlgmr.msra.gmra.mxu3 %v12797_v0  ;;  %v11526_v17 = vpop.permute.xlu2 %4879 }
 0x7c0   : > { %12798 = vst [vmem:[#allocation49_spill] sm:$0xff] %v11526_v17 }
 0x7c1   : > { %v11532_v35 = vpop.f32.mrf.mxu1 }
 0x7c2   : > { %5860 = vmatpush.bf16.msrb.mxu1 %v11383_v38  ;;  %v11529_v32 = vpop.f32.mrf.mxu3  ;;  %5958 = vmatpush.bf16.msrb.mxu3 %v11387_v20  ;;  %v12803_v38 = vld [vmem:[#allocation115_spill] sm:$0xff] }
 0x7c3   : > { %12799 = vst [vmem:[#allocation92_spill] sm:$0xff] %v11529_v32  ;;  %v12805_v20 = vld [vmem:[#allocation19_spill] sm:$0xff] }
 0x7c4   : > { %v12876_v32 = vld [vmem:[#allocation35_spill] sm:$0xff] }
 0x7c6   : > { %5861 = vmatpush.bf16.msrb.mxu1 %v11285_v29  ;;  %5959 = vmatpush.bf16.msrb.mxu3 %v12800_v37  ;;  %v11536_v36 = vpop.f32.mrf.mxu2  ;;  %v11538_v30 = vpop.f32.mrf.mxu0 }
 0x7c7   : > { %v11540_v48 = vpop.permute.xlu2 %4884 }
 0x7c8   : > { %12801 = vst [vmem:[#allocation101_spill] sm:$0xff] %v11540_v48 }
 0x7c9   : > { %v11544_v12 = vpop.f32.mrf.mxu1  ;;  %5627 = vmatmul.bf16.gmra.mxu0 %v12803_v38 }
 0x7ca   : > { %v11542_v22 = vpop.f32.mrf.mxu3 }
 0x7cb   : > { %12802 = vst [vmem:[#allocation94_spill] sm:$0xff] %v11542_v22  ;;  %5725 = vmatmul.bf16.gmra.mxu2 %v12804_v8  ;;  %v12819_v8 = vld [vmem:[#allocation73_spill] sm:$0xff] }
 0x7cc   : > { %5671 = vmatmul.bf16.gmra.mxu1 %v12805_v20 }
 0x7ce   : > { %v11550_v29 = vpop.f32.mrf.mxu2  ;;  %v11552_v63 = vpop.f32.mrf.mxu0 }
 0x7cf   : > { %5769 = vmatmul.bf16.gmra.mxu3 %v12806_v60  ;;  %v11554_v27 = vpop.permute.xlu2 %4859 }
 0x7d0   : > { %12807 = vst [vmem:[#allocation56_spill] sm:$0xff] %v11554_v27 }
 0x7d1   : > { %v11558_v45 = vpop.f32.mrf.mxu1 }
 0x7d2   : > { %v11556_v11 = vpop.f32.mrf.mxu3 }
 0x7d6   : > { %v11560_v61 = vpop.f32.mrf.mxu2  ;;  %v5437_v3 = vpop.f32.mrf.mxu0 }
 0x7d7   : > { %v11562_v50 = vpop.permute.xlu2 %4864 }
 0x7d8   : > { %12808 = vst [vmem:[#allocation95_spill] sm:$0xff] %v11562_v50 }
 0x7d9   : > { %v5481_v51 = vpop.f32.mrf.mxu1  ;;  %5632 = vmatmul.bf16.gmra.mxu0 %v12809_v46 }
 0x7da   : > { %v11564_v55 = vpop.f32.mrf.mxu3 }
 0x7db   : > { %5730 = vmatmul.bf16.gmra.mxu2 %v12810_v7  ;;  %v12820_v7 = vld [vmem:[#allocation79_spill] sm:$0xff] }
 0x7dc   : > { %5676 = vmatmul.bf16.gmra.mxu1 %v12811_v44 }
 0x7de   : > { %v5535_v31 = vpop.f32.mrf.mxu2  ;;  %v5439_v26 = vpop.f32.mrf.mxu0 }
 0x7df   : > { %5774 = vmatmul.bf16.gmra.mxu3 %v12812_v5  ;;  %v11570_v40 = vpop.permute.xlu2 %4849 }
 0x7e0   : > { %12813 = vst [vmem:[#allocation51_spill] sm:$0xff] %v11570_v40  ;;  %v5242_v59 = vadd.f32 %v12814_v54, %v11570_v40  ;;  %v12821_v54 = vld [vmem:[#allocation24_spill] sm:$0xff]  ;;  %v12868_v40 = vld [vmem:[#allocation63_spill] sm:$0xff] }
 0x7e1   : > { %v11575_v9 = vpop.f32.mrf.mxu1 }
 0x7e2   : > { %v5579_v47 = vpop.f32.mrf.mxu3  ;;  %v5291_v25 = vadd.f32 %v12815_v13, %v5242_v59  ;;  %v12822_v59 = vld [vmem:[#allocation61_spill] sm:$0xff] }
 0x7e3   : > { %v5247_v13 = vadd.f32 %v12822_v59, %v11554_v27 }
 0x7e4   : > { %v5340_v6 = vadd.f32 %v12816_v16, %v5291_v25  ;;  %v12823_v16 = vld [vmem:[#allocation78_spill] sm:$0xff] }
 0x7e6   : > { %v5389_v23 = vadd.f32 %v12817_v42, %v5340_v6  ;;  %v5537_v0 = vpop.f32.mrf.mxu2  ;;  %v5442_v37 = vpop.f32.mrf.mxu0  ;;  %v12824_v42 = vld [vmem:[#allocation25_spill] sm:$0xff] }
 0x7e7   : > { %v11579_v38 = vpop.permute.xlu2 %4854 }
 0x7e8   : > { %12818 = vst [vmem:[#allocation96_spill] sm:$0xff] %v11579_v38  ;;  %v5244_v20 = vadd.f32 %v12819_v8, %v11579_v38  ;;  %v5438_v60 = vadd.f32 %v5437_v3, %v5389_v23  ;;  %v12826_v8 = vld [vmem:[#allocation116_spill] sm:$0xff]  ;;  %v12827_v3 = vld [vmem:[#allocation138_spill] sm:$0xff] }
 0x7e9   : > { %v5486_v5 = vpop.f32.mrf.mxu1  ;;  %5637 = vmatmul.bf16.gmra.mxu0 %v12821_v54 }
 0x7ea   : > { %v11583_v46 = vpop.f32.mrf.mxu3  ;;  %v5293_v44 = vadd.f32 %v12820_v7, %v5244_v20  ;;  %v5487_v25 = vadd.f32 %v5486_v5, %v5438_v60  ;;  %v12828_v20 = vld [vmem:[#allocation141_spill] sm:$0xff] }
 0x7eb   : > { %5735 = vmatmul.bf16.gmra.mxu2 %v12824_v42  ;;  %v5296_v7 = vadd.f32 %v12828_v20, %v5247_v13  ;;  %v12830_v60 = vld [vmem:[#allocation129_spill] sm:$0xff]  ;;  %v12834_v13 = vld [vmem:[#allocation54_spill] sm:$0xff] }
 0x7ec   : > { %v5342_v6 = vadd.f32 %v12823_v16, %v5293_v44  ;;  %5681 = vmatmul.bf16.gmra.mxu1 %v12825_v19  ;;  %v5536_v14 = vadd.f32 %v5535_v31, %v5487_v25  ;;  %v12831_v16 = vld [vmem:[#allocation133_spill] sm:$0xff] }
 0x7ed   : > { %v12832_v25 = vld [vmem:[#allocation137_spill] sm:$0xff] }
 0x7ee   : > { %v5391_v23 = vadd.f32 %v12827_v3, %v5342_v6  ;;  %v5540_v21 = vpop.f32.mrf.mxu2  ;;  %v11595_v39 = vpop.f32.mrf.mxu0  ;;  %v12833_v6 = vld [vmem:[#allocation47_spill] sm:$0xff] }
 0x7ef   : > { %5779 = vmatmul.bf16.gmra.mxu3 %v12826_v8  ;;  %v11597_v54 = vpop.permute.xlu2 %4839  ;;  %v5345_v8 = vadd.f32 %v12832_v25, %v5296_v7  ;;  %v12840_v25 = vld [vmem:[#allocation70_spill] sm:$0xff] }
 0x7f0   : > { %12829 = vst [vmem:[#allocation103_spill] sm:$0xff] %v11597_v54  ;;  %v5237_v5 = vadd.f32 %v12830_v60, %v11597_v54  ;;  %v5440_v44 = vadd.f32 %v5439_v26, %v5391_v23  ;;  %v12872_v54 = vld [vmem:[#allocation125_spill] sm:$0xff] }
 0x7f1   : > { %v5488_v31 = vpop.f32.mrf.mxu1  ;;  %v5394_v27 = vadd.f32 %v12835_v43, %v5345_v8 }
 0x7f2   : > { %v5584_v59 = vpop.f32.mrf.mxu3  ;;  %v5286_v42 = vadd.f32 %v12831_v16, %v5237_v5  ;;  %v5489_v4 = vadd.f32 %v5488_v31, %v5440_v44  ;;  %v12838_v44 = vld [vmem:[#allocation108_spill] sm:$0xff]  ;;  %v12839_v16 = vld [vmem:[#allocation29_spill] sm:$0xff] }
 0x7f3   : > { %v5585_v19 = vadd.f32 %v5584_v59, %v5536_v14  ;;  %v12837_v14 = vld [vmem:[#allocation65_spill] sm:$0xff]  ;;  %v5443_v7 = vadd.f32 %v5442_v37, %v5394_v27  ;;  %v12843_v37 = vld [vmem:[#allocation135_spill] sm:$0xff] }
 0x7f4   : > { %v5335_v3 = vadd.f32 %v12833_v6, %v5286_v42  ;;  %v5538_v33 = vadd.f32 %v5537_v0, %v5489_v4 }
 0x7f5   : > { %v6013_v43 = vmax.f32 %v5585_v19, 0.0 }
 0x7f6   : > { %v5384_v20 = vadd.f32 %v12834_v13, %v5335_v3  ;;  %v11605_v58 = vpop.f32.mrf.mxu2  ;;  %v11608_v38 = vpop.f32.mrf.mxu0  ;;  %v12841_v3 = vld [vmem:[#allocation27_spill] sm:$0xff]  ;;  %v12842_v13 = vld [vmem:[#allocation118_spill] sm:$0xff] }
 0x7f7   : > { %v11610_v26 = vpop.permute.xlu2 %4844 }
 0x7f8   : > { %12836 = vst [vmem:[#allocation123_spill] sm:$0xff] %v11610_v26  ;;  %v5433_v23 = vadd.f32 %v11538_v30, %v5384_v20  ;;  %v5239_v60 = vadd.f32 %v12837_v14, %v11610_v26  ;;  %v12844_v14 = vld [vmem:[#allocation117_spill] sm:$0xff]  ;;  %v12870_v26 = vld [vmem:[#allocation140_spill] sm:$0xff] }
 0x7f9   : > { %v5491_v0 = vpop.f32.mrf.mxu1  ;;  %5642 = vmatmul.bf16.gmra.mxu0 %v12839_v16 }
 0x7fa   : > { %v5586_v5 = vpop.f32.mrf.mxu3  ;;  %v5288_v59 = vadd.f32 %v12838_v44, %v5239_v60  ;;  %v5482_v42 = vadd.f32 %v5481_v51, %v5433_v23  ;;  %v5492_v31 = vadd.f32 %v5491_v0, %v5443_v7 }
 0x7fb   : > { %v5587_v4 = vadd.f32 %v5586_v5, %v5538_v33  ;;  %5740 = vmatmul.bf16.gmra.mxu2 %v12841_v3 }
 0x7fc   : > { %v5337_v8 = vadd.f32 %v12840_v25, %v5288_v59  ;;  %v5531_v30 = vadd.f32 %v11550_v29, %v5482_v42  ;;  %5686 = vmatmul.bf16.gmra.mxu1 %v12842_v13  ;;  %v5541_v27 = vadd.f32 %v5540_v21, %v5492_v31  ;;  %v12845_v29 = vld [vmem:[#allocation104_spill] sm:$0xff]  ;;  %v12846_v21 = vld [vmem:[#allocation42_spill] sm:$0xff]  ;;  %v12847_v42 = vld [vmem:[#allocation43_spill] sm:$0xff] }
 0x7fd   : > { %v6015_v6 = vmax.f32 %v5587_v4, 0.0 }
 0x7fe   : > { %v5386_v20 = vadd.f32 %v12843_v37, %v5337_v8  ;;  %v11623_v33 = vpop.f32.mrf.mxu2  ;;  %v5580_v51 = vadd.f32 %v5579_v47, %v5531_v30  ;;  %v11627_v19 = vpop.f32.mrf.mxu0 }
 0x7ff   : > { %5784 = vmatmul.bf16.gmra.mxu3 %v12844_v14  ;;  %v11625_v60 = vpack.c.bf16 %v6015_v6, %v6013_v43  ;;  %v11629_v23 = vpop.permute.xlu2 %4829  ;;  %v12848_v43 = vld [vmem:[#allocation106_spill] sm:$0xff]  ;;  %v12850_v14 = vld [vmem:[#allocation119_spill] sm:$0xff] }
 0x800   : > { %v5435_v7 = vadd.f32 %v11552_v63, %v5386_v20  ;;  %v5232_v5 = vadd.f32 %v12845_v29, %v11629_v23  ;;  %v6009_v13 = vmax.f32 %v5580_v51, 0.0  ;;  %v12852_v29 = vld [vmem:[#allocation132_spill] sm:$0xff] }
 0x801   : > { %v11637_v0 = vpop.f32.mrf.mxu1 }
 0x802   : > { %v5589_v44 = vpop.f32.mrf.mxu3  ;;  %v5281_v59 = vadd.f32 %v12846_v21, %v5232_v5  ;;  %v5484_v16 = vadd.f32 %v11575_v9, %v5435_v7  ;;  %v12849_v9 = vld [vmem:[#allocation130_spill] sm:$0xff] }
 0x803   : > { %v11635_v4 = vadd.f32 %v5589_v44, %v5541_v27  ;;  %v12854_v44 = vld [vmem:[#allocation40_spill] sm:$0xff] }
 0x804   : > { %v5330_v47 = vadd.f32 %v12847_v42, %v5281_v59  ;;  %v5533_v31 = vadd.f32 %v11560_v61, %v5484_v16  ;;  %v12855_v59 = vld [vmem:[#allocation93_spill] sm:$0xff]  ;;  %v12856_v16 = vld [vmem:[#allocation28_spill] sm:$0xff] }
 0x806   : > { %v5379_v25 = vadd.f32 %v12848_v43, %v5330_v47  ;;  %v11643_v8 = vpop.f32.mrf.mxu2  ;;  %v5582_v63 = vadd.f32 %v11583_v46, %v5533_v31  ;;  %v11646_v6 = vpop.f32.mrf.mxu0  ;;  %v12857_v47 = vld [vmem:[#allocation45_spill] sm:$0xff] }
 0x807   : > { %v11649_v30 = vpop.permute.xlu2 %4834 }
 0x808   : > { %v5428_v3 = vadd.f32 %v11498_v34, %v5379_v25  ;;  %v6011_v27 = vmax.f32 %v5582_v63, 0.0  ;;  %v5234_v37 = vadd.f32 %v12849_v9, %v11649_v30  ;;  %v12853_v34 = vld [vmem:[#allocation32_spill] sm:$0xff] }
 0x809   : > { %v11655_v61 = vpop.f32.mrf.mxu1  ;;  %5647 = vmatmul.bf16.gmra.mxu0 %v12850_v14 }
 0x80a   : > { %v11653_v20 = vpop.f32.mrf.mxu3  ;;  %v11658_v7 = vpack.c.bf16 %v6011_v27, %v6009_v13  ;;  %v5477_v46 = vadd.f32 %v11544_v12, %v5428_v3  ;;  %v5283_v5 = vadd.f32 %v12852_v29, %v5234_v37 }
 0x80b   : > { %5745 = vmatmul.bf16.gmra.mxu2 %v12853_v34  ;;  %v12860_v34 = vld [vmem:[#allocation97_spill] sm:$0xff] }
 0x80c   : > { %12851 = vst [vmem:[#allocation59_spill] sm:$0xff] %v11658_v7  ;;  %v5526_v51 = vadd.f32 %v11520_v56, %v5477_v46  ;;  %v5332_v21 = vadd.f32 %v12854_v44, %v5283_v5  ;;  %5691 = vmatmul.bf16.gmra.mxu1 %v12855_v59  ;;  %v12858_v5 = vld [vmem:[#allocation120_spill] sm:$0xff]  ;;  %v11691_v59 = vpop.permute.xlu1 %4874 }
 0x80d   : > { %12863 = vst [vmem:[#allocation55_spill] sm:$0xff] %v11691_v59 }
 0x80e   : > { %v5575_v42 = vadd.f32 %v11556_v11, %v5526_v51  ;;  %v5381_v31 = vadd.f32 %v12857_v47, %v5332_v21  ;;  %v5454_v43 = vpop.f32.mrf.mxu0  ;;  %v11669_v25 = vpop.f32.mrf.mxu2  ;;  %v12861_v51 = vld [vmem:[#allocation31_spill] sm:$0xff] }
 0x80f   : > { %5789 = vmatmul.bf16.gmra.mxu3 %v12856_v16  ;;  %v5259_v16 = vadd.f32 %v11300_v15, %v11540_v48 }
 0x810   : > { %v5430_v12 = vadd.f32 %v11524_v1, %v5381_v31  ;;  %v6005_v14 = vmax.f32 %v5575_v42, 0.0  ;;  %v12864_v42 = vld [vmem:[#allocation145_spill] sm:$0xff]  ;;  %v11697_v31 = vpop.permute.xlu0 %4869 }
 0x811   : > { %v11674_v3 = vpop.f32.mrf.mxu1  ;;  %v5257_v47 = vadd.f32 %v12864_v42, %v11526_v17  ;;  %12865 = vst [vmem:[#allocation126_spill] sm:$0xff] %v11697_v31  ;;  %v12869_v42 = vld [vmem:[#allocation44_spill] sm:$0xff] }
 0x812   : > { %v11672_v63 = vpop.f32.mrf.mxu3  ;;  %v5479_v56 = vadd.f32 %v11558_v45, %v5430_v12  ;;  %v12862_v45 = vld [vmem:[#allocation30_spill] sm:$0xff]  ;;  %v4820_v12 = vpop.permute.xlu2 %4819 }
 0x813   : > { %v5306_v15 = vadd.f32 %v11363_v24, %v5257_v47  ;;  %v12877_v24 = vld [vmem:[#allocation16_spill] sm:$0xff] }
 0x814   : > { %v5528_v13 = vadd.f32 %v11536_v36, %v5479_v56  ;;  %v12866_v56 = vld [vmem:[#allocation110_spill] sm:$0xff] }
 0x816   : > { %v5457_v27 = vpop.f32.mrf.mxu0  ;;  %v11678_v9 = vpop.f32.mrf.mxu2  ;;  %v5577_v11 = vadd.f32 %v11564_v55, %v5528_v13  ;;  %v5254_v13 = vadd.f32 %v12866_v56, %v11691_v59  ;;  %v12871_v56 = vld [vmem:[#allocation113_spill] sm:$0xff] }
 0x818   : > { %v6007_v46 = vmax.f32 %v5577_v11, 0.0  ;;  %v5303_v17 = vadd.f32 %v12869_v42, %v5254_v13 }
 0x819   : > { %v5501_v29 = vpop.f32.mrf.mxu1  ;;  %5652 = vmatmul.bf16.gmra.mxu0 %v12858_v5 }
 0x81a   : > { %v11681_v37 = vpop.f32.mrf.mxu3  ;;  %v11684_v1 = vpack.c.bf16 %v6007_v46, %v6005_v14  ;;  %v5308_v46 = vadd.f32 %v11429_v52, %v5259_v16  ;;  %v12873_v52 = vld [vmem:[#allocation83_spill] sm:$0xff] }
 0x81b   : > { %5750 = vmatmul.bf16.gmra.mxu2 %v12860_v34  ;;  %v12867_v34 = vld [vmem:[#allocation82_spill] sm:$0xff] }
 0x81c   : > { %12859 = vst [vmem:[#allocation121_spill] sm:$0xff] %v11684_v1  ;;  %5696 = vmatmul.bf16.gmra.mxu1 %v12861_v51  ;;  %v5252_v51 = vadd.f32 %v12867_v34, %v11697_v31  ;;  %v5249_v1 = vadd.f32 %v12870_v26, %v11562_v50  ;;  %v5357_v59 = vadd.f32 %v12871_v56, %v5308_v46  ;;  %v12875_v34 = vld [vmem:[#allocation84_spill] sm:$0xff]  ;;  %v4825_v50 = vpop.permute.xlu2 %4824 }
 0x81d   : > { %v5355_v31 = vadd.f32 %v12875_v34, %v5306_v15  ;;  %v5458_v46 = vadd.f32 %v5457_v27, %v11494_v18  ;;  %v12882_v18 = vld [vmem:[#allocation39_spill] sm:$0xff] }
 0x81e   : > { %v5459_v36 = vpop.f32.mrf.mxu0  ;;  %v5555_v44 = vpop.f32.mrf.mxu2  ;;  %v5301_v16 = vadd.f32 %v12873_v52, %v5252_v51  ;;  %v5298_v47 = vadd.f32 %v12877_v24, %v5249_v1  ;;  %v5406_v26 = vadd.f32 %v11448_v10, %v5357_v59  ;;  %v12880_v1 = vld [vmem:[#allocation64_spill] sm:$0xff] }
 0x81f   : > { %5794 = vmatmul.bf16.gmra.mxu3 %v12862_v45  ;;  %v5404_v52 = vadd.f32 %v11403_v2, %v5355_v31  ;;  %v5460_v15 = vadd.f32 %v5459_v36, %v11522_v28  ;;  %v12884_v28 = vld [vmem:[#allocation74_spill] sm:$0xff] }
 0x820   : > { %v5347_v24 = vadd.f32 %v12880_v1, %v5298_v47  ;;  %v12885_v47 = vld [vmem:[#allocation34_spill] sm:$0xff] }
 0x821   : > { %v5503_v55 = vpop.f32.mrf.mxu1  ;;  %v5453_v22 = vadd.f32 %v11646_v6, %v5404_v52 }
 0x822   : > { %v11689_v21 = vpop.f32.mrf.mxu3 }
 0x826   : > { %v5618_v11 = vpop.f32.mrf.mxu0  ;;  %v5557_v14 = vpop.f32.mrf.mxu2 }
 0x827   : > { %v5619_v5 = vadd.f32 %v5618_v11, %v4820_v12  ;;  %v12874_v11 = vld [vmem:[#allocation33_spill] sm:$0xff] }
 0x829   : > { %v5506_v48 = vpop.f32.mrf.mxu1  ;;  %5813 = vmatmul.bf16.vlgmr.msrb.gmra.mxu0 %v12868_v40  ;;  %v12878_v40 = vld [vmem:[#allocation17_spill] sm:$0xff] }
 0x82a   : > { %v5601_v45 = vpop.f32.mrf.mxu3  ;;  %v5352_v7 = vadd.f32 %v12878_v40, %v5303_v17  ;;  %v12881_v17 = vld [vmem:[#allocation99_spill] sm:$0xff] }
 0x82b   : > { %5911 = vmatmul.bf16.vlgmr.msrb.gmra.mxu2 %v12872_v54  ;;  %v12879_v54 = vld [vmem:[#allocation144_spill] sm:$0xff] }
 0x82c   : > { %5701 = vmatmul.bf16.gmra.mxu1 %v12874_v11  ;;  %v5350_v56 = vadd.f32 %v12879_v54, %v5301_v16  ;;  %v5455_v11 = vadd.f32 %v5454_v43, %v5406_v26  ;;  %v5401_v40 = vadd.f32 %v12881_v17, %v5352_v7  ;;  %v12883_v54 = vld [vmem:[#allocation122_spill] sm:$0xff]  ;;  %v5502_v43 = vadd.f32 %v5501_v29, %v5453_v22  ;;  %v12889_v17 = vld [vmem:[#allocation131_spill] sm:$0xff] }
 0x82d   : > { %v5229_v2 = vadd.f32 %v12883_v54, %v4825_v50  ;;  %v5227_v26 = vadd.f32 %v12885_v47, %v4820_v12  ;;  %v12893_v54 = vld [vmem:[#allocation127_spill] sm:$0xff] }
 0x82e   : > { %v11717_v13 = vpop.f32.mrf.mxu0  ;;  %v5716_v42 = vpop.f32.mrf.mxu2  ;;  %v5504_v10 = vadd.f32 %v5503_v55, %v5455_v11  ;;  %v5399_v27 = vadd.f32 %v12882_v18, %v5350_v56  ;;  %v5450_v16 = vadd.f32 %v11627_v19, %v5401_v40 }
 0x82f   : > { %5799 = vmatmul.bf16.gmra.mxu3 %v12876_v32  ;;  %v5507_v32 = vadd.f32 %v5506_v48, %v5458_v46  ;;  %v5396_v48 = vadd.f32 %v12884_v28, %v5347_v24 }
 0x830   : > { %v5448_v36 = vadd.f32 %v11608_v38, %v5399_v27  ;;  %v5499_v7 = vadd.f32 %v11674_v3, %v5450_v16  ;;  %v5553_v55 = vadd.f32 %v11678_v9, %v5504_v10  ;;  %v5551_v38 = vadd.f32 %v11669_v25, %v5502_v43  ;;  %v12891_v10 = vld [vmem:[#allocation36_spill] sm:$0xff] }
 0x831   : > { %v5508_v34 = vpop.f32.mrf.mxu1  ;;  %v5556_v31 = vadd.f32 %v5555_v44, %v5507_v32  ;;  %v5445_v11 = vadd.f32 %v11595_v39, %v5396_v48  ;;  %v12886_v44 = vld [vmem:[#allocation66_spill] sm:$0xff] }
 0x832   : > { %v5604_v51 = vpop.f32.mrf.mxu3  ;;  %v5509_v59 = vadd.f32 %v5508_v34, %v5460_v15  ;;  %v5497_v22 = vadd.f32 %v11655_v61, %v5448_v36  ;;  %v5278_v15 = vadd.f32 %v12886_v44, %v5229_v2  ;;  %v5602_v12 = vadd.f32 %v5601_v45, %v5553_v55  ;;  %v12887_v34 = vld [vmem:[#allocation105_spill] sm:$0xff]  ;;  %v12890_v45 = vld [vmem:[#allocation62_spill] sm:$0xff] }
 0x833   : > { %v5605_v52 = vadd.f32 %v5604_v51, %v5556_v31  ;;  %v5494_v9 = vadd.f32 %v11637_v0, %v5445_v11  ;;  %v12888_v51 = vld [vmem:[#allocation38_spill] sm:$0xff]  ;;  %v5600_v39 = vadd.f32 %v11689_v21, %v5551_v38  ;;  %v12895_v55 = vld [vmem:[#allocation37_spill] sm:$0xff] }
 0x834   : > { %v5558_v19 = vadd.f32 %v5557_v14, %v5509_v59  ;;  %v5276_v1 = vadd.f32 %v12888_v51, %v5227_v26  ;;  %v5548_v14 = vadd.f32 %v11643_v8, %v5499_v7  ;;  %v5546_v25 = vadd.f32 %v11623_v33, %v5497_v22  ;;  %v12894_v48 = vld [vmem:[#allocation58_spill] sm:$0xff] }
 0x835   : > { %v6029_v61 = vmax.f32 %v5605_v52, 0.0  ;;  %v5327_v59 = vadd.f32 %v12891_v10, %v5278_v15  ;;  %v6027_v18 = vmax.f32 %v5602_v12, 0.0  ;;  %v5543_v8 = vadd.f32 %v11605_v58, %v5494_v9  ;;  %v12896_v12 = vld [vmem:[#allocation72_spill] sm:$0xff]  ;;  %v12898_v9 = vld [vmem:[#allocation134_spill] sm:$0xff]  ;;  %v12903_v10 = vld [vmem:[#allocation103_spill] sm:$0xff] }
 0x836   : > { %v5623_v46 = vpop.f32.mrf.mxu0  ;;  %v5718_v6 = vpop.f32.mrf.mxu2  ;;  %v5597_v0 = vadd.f32 %v11681_v37, %v5548_v14  ;;  %v5325_v2 = vadd.f32 %v12893_v54, %v5276_v1  ;;  %v5595_v43 = vadd.f32 %v11672_v63, %v5546_v25  ;;  %v6025_v33 = vmax.f32 %v5600_v39, 0.0  ;;  %v12902_v25 = vld [vmem:[#allocation92_spill] sm:$0xff] }
 0x837   : > { %v5624_v56 = vadd.f32 %v5623_v46, %v11629_v23  ;;  %v5621_v37 = vadd.f32 %v11717_v13, %v4825_v50  ;;  %v5376_v36 = vadd.f32 %v12894_v48, %v5327_v59  ;;  %v6017_v13 = vmax.f32 %v11635_v4, 0.0 }
 0x838   : > { %v6023_v47 = vmax.f32 %v5597_v0, 0.0  ;;  %v6045_v7 = vpack.c.bf16 %v6027_v18, %v6025_v33  ;;  %v5374_v52 = vadd.f32 %v12895_v55, %v5325_v2  ;;  %v6021_v63 = vmax.f32 %v5595_v43, 0.0  ;;  %v12904_v18 = vld [vmem:[#allocation121_spill] sm:$0xff]  ;;  %v12906_v43 = vld [vmem:[#allocation136_spill] sm:$0xff] }
 0x839   : > { %v5667_v3 = vpop.f32.mrf.mxu1  ;;  %5818 = vmatmul.bf16.gmra.mxu0 %v12887_v34  ;;  %v5425_v11 = vadd.f32 %v11478_v49, %v5376_v36  ;;  %v12897_v49 = vld [vmem:[#allocation107_spill] sm:$0xff] }
 0x83a   : > { %v5606_v29 = vpop.f32.mrf.mxu3  ;;  %v5668_v23 = vadd.f32 %v5667_v3, %v5619_v5  ;;  %v12892_v5 = vld [vmem:[#allocation48_spill] sm:$0xff]  ;;  %v12909_v36 = vld [vmem:[#allocation123_spill] sm:$0xff] }
 0x83b   : > { %v5607_v32 = vadd.f32 %v5606_v29, %v5558_v19  ;;  %5916 = vmatmul.bf16.gmra.mxu2 %v12889_v17  ;;  %v5423_v29 = vadd.f32 %v11455_v41, %v5374_v52  ;;  %v12899_v41 = vld [vmem:[#allocation53_spill] sm:$0xff]  ;;  %v12901_v17 = vld [vmem:[#allocation59_spill] sm:$0xff] }
 0x83c   : > { %5862 = vmatmul.bf16.vlgmr.msrb.gmra.mxu1 %v12890_v45  ;;  %v5717_v40 = vadd.f32 %v5716_v42, %v5668_v23  ;;  %v5592_v42 = vadd.f32 %v11653_v20, %v5543_v8  ;;  %v6043_v20 = vpack.c.bf16 %v6023_v47, %v6021_v63  ;;  %v6052_v33 = vld [vmem:[%s11934_s6 + $0x8] sm:$0xff] }
 0x83d   : > { %v6031_v24 = vmax.f32 %v5607_v32, 0.0  ;;  %v5472_v34 = vadd.f32 %v11506_v62, %v5423_v29  ;;  %v6102_v52 = vld [vmem:[%s11935_s7 + $0x8] sm:$0xff] }
 0x83e   : > { %v5625_v21 = vpop.f32.mrf.mxu0  ;;  %v5721_v16 = vpop.f32.mrf.mxu2  ;;  %v12911_v29 = vld [vmem:[#allocation68_spill] sm:$0xff] }
 0x83f   : > { %v6047_v27 = vpack.c.bf16 %v6031_v24, %v6029_v61  ;;  %5960 = vmatmul.bf16.vlgmr.msrb.gmra.mxu3 %v12892_v5  ;;  %v5626_v31 = vadd.f32 %v5625_v21, %v11649_v30  ;;  %v6019_v30 = vmax.f32 %v5592_v42, 0.0  ;;  %v5521_v14 = vadd.f32 %v11474_v57, %v5472_v34  ;;  %v12900_v61 = vld [vmem:[#allocation94_spill] sm:$0xff]  ;;  %v12915_v34 = vld [vmem:[#allocation96_spill] sm:$0xff] }
 0x841   : > { %6069 = vmatpush.bf16.msra.mxu0 %v6047_v27  ;;  %v5669_v58 = vpop.f32.mrf.mxu1  ;;  %v6041_v32 = vpack.c.bf16 %v6019_v30, %v6017_v13  ;;  %v5570_v45 = vadd.f32 %v12902_v25, %v5521_v14  ;;  %v12916_v14 = vld [vmem:[#allocation56_spill] sm:$0xff]  ;;  %v12917_v25 = vld [vmem:[#allocation142_spill] sm:$0xff] }
 0x842   : > { %v5765_v28 = vpop.f32.mrf.mxu3  ;;  %v5670_v46 = vadd.f32 %v5669_v58, %v5621_v37  ;;  %v12908_v37 = vld [vmem:[#allocation80_spill] sm:$0xff] }
 0x843   : > { %v11758_v26 = vadd.f32 %v5765_v28, %v5717_v40  ;;  %v6001_v27 = vmax.f32 %v5570_v45, 0.0 }
 0x844   : > { %v5719_v19 = vadd.f32 %v5718_v6, %v5670_v46  ;;  %v5474_v6 = vadd.f32 %v11532_v35, %v5425_v11 }
 0x845   : > { %6070 = vmatpush.bf16.msra.mxu0 %v6045_v7 }
 0x846   : > { %v5628_v22 = vpop.f32.mrf.mxu0  ;;  %v5723_v50 = vpop.f32.mrf.mxu2  ;;  %v5523_v51 = vadd.f32 %v11492_v53, %v5474_v6  ;;  %v6051_v53 = vld [vmem:[%s11934_s6] sm:$0xff] }
 0x847   : > { %6055 = vperm.xlu2 %8568, %v6051_v53   ;;  %v5629_v57 = vadd.f32 %v5628_v22, %v12903_v10  ;;  %v12914_v6 = vld [vmem:[#allocation139_spill] sm:$0xff]  ;;  %v12918_v53 = vld [vmem:[#allocation77_spill] sm:$0xff]  ;;  %v12920_v10 = vld [vmem:[#allocation76_spill] sm:$0xff] }
 0x848   : > { %v5572_v24 = vadd.f32 %v12900_v61, %v5523_v51 }
 0x849   : > { %6071 = vmatpush.bf16.msra.mxu0 %v6043_v20  ;;  %v5672_v38 = vpop.f32.mrf.mxu1 }
 0x84a   : > { %v5767_v44 = vpop.f32.mrf.mxu3  ;;  %5823 = vmatmul.bf16.gmra.mxu0 %v12896_v12  ;;  %v5673_v3 = vadd.f32 %v5672_v38, %v5624_v56  ;;  %v12912_v38 = vld [vmem:[#allocation67_spill] sm:$0xff]  ;;  %v12913_v12 = vld [vmem:[#allocation81_spill] sm:$0xff] }
 0x84b   : > { %v11764_v15 = vadd.f32 %v5767_v44, %v5719_v19  ;;  %5921 = vmatmul.bf16.gmra.mxu2 %v12897_v49  ;;  %v12910_v19 = vld [vmem:[#allocation51_spill] sm:$0xff] }
 0x84c   : > { %5867 = vmatmul.bf16.gmra.mxu1 %v12898_v9  ;;  %v5722_v4 = vadd.f32 %v5721_v16, %v5673_v3  ;;  %v12905_v16 = vld [vmem:[#allocation109_spill] sm:$0xff] }
 0x84d   : > { %6072 = vmatpush.bf16.msra.mxu0 %v6041_v32 }
 0x84e   : > { %v5630_v1 = vpop.f32.mrf.mxu0  ;;  %v5726_v23 = vpop.f32.mrf.mxu2 }
 0x84f   : > { %5965 = vmatmul.bf16.gmra.mxu3 %v12899_v41  ;;  %6060 = vperm.xlu2 %8568, %v6052_v33   ;;  %v5631_v47 = vadd.f32 %v5630_v1, %v12909_v36 }
 0x851   : > { %6073 = vmatpush.bf16.msra.mxu0 %v11625_v60  ;;  %v5674_v39 = vpop.f32.mrf.mxu1  ;;  %v6003_v60 = vmax.f32 %v5572_v24, 0.0 }
 0x852   : > { %v5770_v35 = vpop.f32.mrf.mxu3  ;;  %v5675_v62 = vadd.f32 %v5674_v39, %v5626_v31  ;;  %v12907_v31 = vld [vmem:[#allocation57_spill] sm:$0xff] }
 0x853   : > { %v11775_v56 = vadd.f32 %v5770_v35, %v5722_v4  ;;  %v6033_v54 = vpack.c.bf16 %v6003_v60, %v6001_v27 }
 0x854   : > { %v5724_v40 = vadd.f32 %v5723_v50, %v5675_v62 }
 0x855   : > { %6074 = vmatpush.bf16.msra.mxu0 %v12901_v17 }
 0x856   : > { %v5633_v59 = vpop.f32.mrf.mxu0  ;;  %v5728_v0 = vpop.f32.mrf.mxu2 }
 0x857   : > { %6110 = vperm.xlu2 %8568, %v6102_v52   ;;  %v5634_v30 = vadd.f32 %v5633_v59, %v12910_v19  ;;  %v12927_v19 = vld [vmem:[#allocation55_spill] sm:$0xff] }
 0x859   : > { %6075 = vmatpush.bf16.msra.mxu0 %v12904_v18  ;;  %v5677_v21 = vpop.f32.mrf.mxu1 }
 0x85a   : > { %v5772_v5 = vpop.f32.mrf.mxu3  ;;  %5828 = vmatmul.bf16.gmra.mxu0 %v12905_v16  ;;  %v5678_v2 = vadd.f32 %v5677_v21, %v5629_v57 }
 0x85b   : > { %v11785_v8 = vadd.f32 %v5772_v5, %v5724_v40  ;;  %5926 = vmatmul.bf16.gmra.mxu2 %v12906_v43  ;;  %v12919_v40 = vld [vmem:[#allocation143_spill] sm:$0xff] }
 0x85c   : > { %5872 = vmatmul.bf16.gmra.mxu1 %v12907_v31  ;;  %v5727_v42 = vadd.f32 %v5726_v23, %v5678_v2  ;;  %v12922_v2 = vld [vmem:[#allocation126_spill] sm:$0xff] }
 0x85d   : > { %6076 = vmatpush.bf16.msra.mxu0 %v6033_v54 }
 0x85e   : > { %v5635_v28 = vpop.f32.mrf.mxu0  ;;  %v5731_v48 = vpop.f32.mrf.mxu2 }
 0x85f   : > { %5970 = vmatmul.bf16.gmra.mxu3 %v12908_v37  ;;  %v5636_v9 = vadd.f32 %v5635_v28, %v12915_v34 }
 0x861   : > { %v5679_v46 = vpop.f32.mrf.mxu1 }
 0x862   : > { %v5775_v58 = vpop.f32.mrf.mxu3  ;;  %v5680_v55 = vadd.f32 %v5679_v46, %v5631_v47  ;;  %v12924_v47 = vld [vmem:[#allocation15_spill] sm:$0xff] }
 0x863   : > { %v11795_v7 = vadd.f32 %v5775_v58, %v5727_v42  ;;  %v12925_v58 = vld [vmem:[#allocation98_spill] sm:$0xff] }
 0x864   : > { %v5729_v63 = vadd.f32 %v5728_v0, %v5680_v55  ;;  %v12921_v0 = vld [vmem:[#allocation95_spill] sm:$0xff]  ;;  %v12926_v55 = vld [vmem:[#allocation112_spill] sm:$0xff] }
 0x866   : > { %v5638_v11 = vpop.f32.mrf.mxu0  ;;  %v5733_v20 = vpop.f32.mrf.mxu2 }
 0x867   : > { %v5639_v35 = vadd.f32 %v5638_v11, %v12916_v14  ;;  %v12932_v14 = vld [vmem:[#allocation89_spill] sm:$0xff] }
 0x869   : > { %v5682_v13 = vpop.f32.mrf.mxu1 }
 0x86a   : > { %v5777_v22 = vpop.f32.mrf.mxu3  ;;  %5833 = vmatmul.bf16.gmra.mxu0 %v12911_v29  ;;  %v5683_v44 = vadd.f32 %v5682_v13, %v5634_v30 }
 0x86b   : > { %v11801_v50 = vadd.f32 %v5777_v22, %v5729_v63  ;;  %5931 = vmatmul.bf16.gmra.mxu2 %v12912_v38 }
 0x86c   : > { %5877 = vmatmul.bf16.gmra.mxu1 %v12913_v12  ;;  %v5732_v32 = vadd.f32 %v5731_v48, %v5683_v44  ;;  %v12923_v48 = vld [vmem:[#allocation41_spill] sm:$0xff] }
 0x86d   : > { %v12928_v44 = vld [vmem:[#allocation49_spill] sm:$0xff] }
 0x86e   : > { %v5640_v3 = vpop.f32.mrf.mxu0  ;;  %v5736_v49 = vpop.f32.mrf.mxu2 }
 0x86f   : > { %5975 = vmatmul.bf16.gmra.mxu3 %v12914_v6  ;;  %v5641_v18 = vadd.f32 %v5640_v3, %v12921_v0  ;;  %v6101_v6 = vld [vmem:[%s11935_s7] sm:$0xff] }
 0x870   : > { %6105 = vperm.xlu1 %8570, %v6101_v6  }
 0x871   : > { %v5684_v51 = vpop.f32.mrf.mxu1 }
 0x872   : > { %v5780_v4 = vpop.f32.mrf.mxu3  ;;  %v5685_v1 = vadd.f32 %v5684_v51, %v5636_v9  ;;  %v12929_v9 = vld [vmem:[#allocation102_spill] sm:$0xff]  ;;  %v12930_v51 = vld [vmem:[#allocation87_spill] sm:$0xff] }
 0x873   : > { %v11808_v41 = vadd.f32 %v5780_v4, %v5732_v32 }
 0x874   : > { %v5734_v23 = vadd.f32 %v5733_v20, %v5685_v1  ;;  %v12931_v1 = vld [vmem:[#allocation46_spill] sm:$0xff] }
 0x876   : > { %v5643_v39 = vpop.f32.mrf.mxu0  ;;  %v5738_v61 = vpop.f32.mrf.mxu2 }
 0x877   : > { %v5644_v43 = vadd.f32 %v5643_v39, %v12922_v2 }
 0x879   : > { %v5687_v17 = vpop.f32.mrf.mxu1 }
 0x87a   : > { %v5782_v24 = vpop.f32.mrf.mxu3  ;;  %5838 = vmatmul.bf16.gmra.mxu0 %v12917_v25  ;;  %v5688_v45 = vadd.f32 %v5687_v17, %v5639_v35 }
 0x87b   : > { %v11811_v62 = vadd.f32 %v5782_v24, %v5734_v23  ;;  %5936 = vmatmul.bf16.gmra.mxu2 %v12918_v53  ;;  %v12933_v24 = vld [vmem:[#allocation101_spill] sm:$0xff] }
 0x87c   : > { %5882 = vmatmul.bf16.gmra.mxu1 %v12919_v40  ;;  %v5737_v60 = vadd.f32 %v5736_v49, %v5688_v45 }
 0x87e   : > { %v5645_v57 = vpop.f32.mrf.mxu0  ;;  %v5741_v59 = vpop.f32.mrf.mxu2 }
 0x87f   : > { %5980 = vmatmul.bf16.gmra.mxu3 %v12920_v10  ;;  %v5646_v30 = vadd.f32 %v5645_v57, %v12927_v19  ;;  %v11846_v10 = vld [vmem:[%s11933_s5] sm:$0xff]  ;;  %v12934_v57 = vld [vmem:[#allocation52_spill] sm:$0xff] }
 0x881   : > { %v5689_v21 = vpop.f32.mrf.mxu1 }
 0x882   : > { %v5785_v27 = vpop.f32.mrf.mxu3  ;;  %v5690_v16 = vadd.f32 %v5689_v21, %v5641_v18 }
 0x883   : > { %v11818_v5 = vadd.f32 %v5785_v27, %v5737_v60 }
 0x884   : > { %v5739_v54 = vadd.f32 %v5738_v61, %v5690_v16  ;;  %v6131_v61 = vld [vmem:[#allocation2] sm:$0x1] }
 0x885   : > { %6134 = vperm.xlu1 %8570, %v6131_v61  }
 0x886   : > { %v5648_v33 = vpop.f32.mrf.mxu0  ;;  %v5743_v31 = vpop.f32.mrf.mxu2 }
 0x887   : > { %v5649_v38 = vadd.f32 %v5648_v33, %v12928_v44 }
 0x889   : > { %v5692_v28 = vpop.f32.mrf.mxu1 }
 0x88a   : > { %v5787_v42 = vpop.f32.mrf.mxu3  ;;  %5843 = vmatmul.bf16.gmra.mxu0 %v12923_v48  ;;  %v5693_v36 = vadd.f32 %v5692_v28, %v5644_v43  ;;  %v12935_v43 = vld [vmem:[#allocation100_spill] sm:$0xff] }
 0x88b   : > { %v11821_v37 = vadd.f32 %v5787_v42, %v5739_v54  ;;  %5941 = vmatmul.bf16.gmra.mxu2 %v12924_v47 }
 0x88c   : > { %5887 = vmatmul.bf16.gmra.mxu1 %v12925_v58  ;;  %v5742_v46 = vadd.f32 %v5741_v59, %v5693_v36  ;;  %v12937_v36 = vld [vmem:[#allocation91_spill] sm:$0xff] }
 0x88e   : > { %v5650_v52 = vpop.f32.mrf.mxu0  ;;  %v5746_v63 = vpop.f32.mrf.mxu2 }
 0x88f   : > { %5985 = vmatmul.bf16.gmra.mxu3 %v12926_v55  ;;  %v5651_v17 = vadd.f32 %v5650_v52, %v12933_v24 }
 0x891   : > { %v5694_v22 = vpop.f32.mrf.mxu1 }
 0x892   : > { %v5790_v11 = vpop.f32.mrf.mxu3  ;;  %v5695_v13 = vadd.f32 %v5694_v22, %v5646_v30 }
 0x893   : > { %v11828_v20 = vadd.f32 %v5790_v11, %v5742_v46 }
 0x894   : > { %v5744_v29 = vadd.f32 %v5743_v31, %v5695_v13  ;;  %v12936_v31 = vld [vmem:[#allocation90_spill] sm:$0xff] }
 0x896   : > { %v5653_v12 = vpop.f32.mrf.mxu0  ;;  %v5748_v32 = vpop.f32.mrf.mxu2 }
 0x897   : > { %v5654_v59 = vadd.f32 %v5653_v12, %v12934_v57 }
 0x899   : > { %v5697_v34 = vpop.f32.mrf.mxu1 }
 0x89a   : > { %v5792_v3 = vpop.f32.mrf.mxu3  ;;  %5848 = vmatmul.bf16.gmra.mxu0 %v12929_v9  ;;  %v5698_v4 = vadd.f32 %v5697_v34, %v5649_v38 }
 0x89b   : > { %v11834_v49 = vadd.f32 %v5792_v3, %v5744_v29  ;;  %5946 = vmatmul.bf16.gmra.mxu2 %v12930_v51 }
 0x89c   : > { %5892 = vmatmul.bf16.gmra.mxu1 %v12931_v1  ;;  %v5747_v23 = vadd.f32 %v5746_v63, %v5698_v4 }
 0x89e   : > { %v5655_v35 = vpop.f32.mrf.mxu0  ;;  %v5751_v39 = vpop.f32.mrf.mxu2 }
 0x89f   : > { %5990 = vmatmul.bf16.gmra.mxu3 %v12932_v14  ;;  %v5656_v47 = vadd.f32 %v5655_v35, %v12937_v36 }
 0x8a1   : > { %v5699_v53 = vpop.f32.mrf.mxu1 }
 0x8a2   : > { %v5795_v25 = vpop.f32.mrf.mxu3  ;;  %v5700_v40 = vadd.f32 %v5699_v53, %v5651_v17 }
 0x8a3   : > { %v11841_v45 = vadd.f32 %v5795_v25, %v5747_v23 }
 0x8a4   : > { %v5749_v60 = vadd.f32 %v5748_v32, %v5700_v40 }
 0x8a6   : > { %v5814_v0 = vpop.f32.mrf.mxu0  ;;  %v5753_v18 = vpop.f32.mrf.mxu2 }
 0x8a7   : > { %v5815_v27 = vadd.f32 %v5814_v0, %v11758_v26 }
 0x8a9   : > { %v5702_v54 = vpop.f32.mrf.mxu1 }
 0x8aa   : > { %v5797_v21 = vpop.f32.mrf.mxu3  ;;  %6077 = vmatmul.bf16.vlgmr.msra.gmra.mxu0 %v11846_v10  ;;  %v5703_v2 = vadd.f32 %v5702_v54, %v5654_v59 }
 0x8ab   : > { %v11850_v16 = vadd.f32 %v5797_v21, %v5749_v60 }
 0x8ac   : > { %5897 = vmatmul.bf16.gmra.mxu1 %v12935_v43  ;;  %v5752_v33 = vadd.f32 %v5751_v39, %v5703_v2 }
 0x8ae   : > { %v5816_v42 = vpop.f32.mrf.mxu0  ;;  %v5912_v28 = vpop.f32.mrf.mxu2 }
 0x8af   : > { %5995 = vmatmul.bf16.gmra.mxu3 %v12936_v31  ;;  %v5817_v48 = vadd.f32 %v5816_v42, %v11764_v15 }
 0x8b1   : > { %v5704_v46 = vpop.f32.mrf.mxu1 }
 0x8b2   : > { %v5800_v58 = vpop.f32.mrf.mxu3  ;;  %v5705_v55 = vadd.f32 %v5704_v46, %v5656_v47 }
 0x8b3   : > { %v11857_v26 = vadd.f32 %v5800_v58, %v5752_v33 }
 0x8b4   : > { %v5754_v52 = vadd.f32 %v5753_v18, %v5705_v55 }
 0x8b6   : > { %v5819_v63 = vpop.f32.mrf.mxu0  ;;  %v5914_v19 = vpop.f32.mrf.mxu2 }
 0x8b7   : > { %v5820_v30 = vadd.f32 %v5819_v63, %v11775_v56 }
 0x8b9   : > { %v5863_v13 = vpop.f32.mrf.mxu1 }
 0x8ba   : > { %v5802_v11 = vpop.f32.mrf.mxu3  ;;  %v5864_v29 = vadd.f32 %v5863_v13, %v5815_v27 }
 0x8bb   : > { %v11860_v22 = vadd.f32 %v5802_v11, %v5754_v52 }
 0x8bc   : > { %v5913_v44 = vadd.f32 %v5912_v28, %v5864_v29 }
 0x8be   : > { %v5821_v38 = vpop.f32.mrf.mxu0  ;;  %v5917_v15 = vpop.f32.mrf.mxu2 }
 0x8bf   : > { %v5822_v12 = vadd.f32 %v5821_v38, %v11785_v8 }
 0x8c1   : > { %v5865_v3 = vpop.f32.mrf.mxu1 }
 0x8c2   : > { %v5961_v32 = vpop.f32.mrf.mxu3  ;;  %v5866_v34 = vadd.f32 %v5865_v3, %v5817_v48 }
 0x8c3   : > { %v5962_v6 = vadd.f32 %v5961_v32, %v5913_v44 }
 0x8c4   : > { %v5915_v9 = vadd.f32 %v5914_v19, %v5866_v34 }
 0x8c5   : > { %v6002_v39 = vmax.f32 %v5962_v6, 0.0 }
 0x8c6   : > { %v5919_v51 = vpop.f32.mrf.mxu2 }
 0x8c7   : > { %v5824_v4 = vpop.f32.mrf.mxu0 }
 0x8c8   : > { %v5825_v1 = vadd.f32 %v5824_v4, %v11795_v7 }
 0x8c9   : > { %v5868_v14 = vpop.f32.mrf.mxu1 }
 0x8ca   : > { %v5963_v56 = vpop.f32.mrf.mxu3  ;;  %v5869_v35 = vadd.f32 %v5868_v14, %v5820_v30 }
 0x8cb   : > { %v5964_v23 = vadd.f32 %v5963_v56, %v5915_v9 }
 0x8cc   : > { %v5918_v24 = vadd.f32 %v5917_v15, %v5869_v35 }
 0x8cd   : > { %v6004_v61 = vmax.f32 %v5964_v23, 0.0 }
 0x8ce   : > { %v5922_v8 = vpop.f32.mrf.mxu2 }
 0x8cf   : > { %v11864_v17 = vpack.c.bf16 %v6004_v61, %v6002_v39  ;;  %v5826_v25 = vpop.f32.mrf.mxu0 }
 0x8d0   : > { %v5827_v53 = vadd.f32 %v5826_v25, %v11801_v50 }
 0x8d1   : > { %v5870_v57 = vpop.f32.mrf.mxu1 }
 0x8d2   : > { %v5966_v40 = vpop.f32.mrf.mxu3  ;;  %v5871_v59 = vadd.f32 %v5870_v57, %v5822_v12 }
 0x8d3   : > { %v5967_v60 = vadd.f32 %v5966_v40, %v5918_v24 }
 0x8d4   : > { %v5920_v0 = vadd.f32 %v5919_v51, %v5871_v59 }
 0x8d5   : > { %v6006_v33 = vmax.f32 %v5967_v60, 0.0 }
 0x8d6   : > { %v5924_v7 = vpop.f32.mrf.mxu2 }
 0x8d7   : > { %v5829_v18 = vpop.f32.mrf.mxu0 }
 0x8d8   : > { %v5830_v27 = vadd.f32 %v5829_v18, %v11808_v41 }
 0x8d9   : > { %v5873_v2 = vpop.f32.mrf.mxu1 }
 0x8da   : > { %v5968_v21 = vpop.f32.mrf.mxu3  ;;  %v5874_v43 = vadd.f32 %v5873_v2, %v5825_v1 }
 0x8db   : > { %v5969_v54 = vadd.f32 %v5968_v21, %v5920_v0 }
 0x8dc   : > { %v5923_v42 = vadd.f32 %v5922_v8, %v5874_v43 }
 0x8dd   : > { %v6008_v31 = vmax.f32 %v5969_v54, 0.0 }
 0x8de   : > { %v5927_v50 = vpop.f32.mrf.mxu2 }
 0x8df   : > { %v11868_v28 = vpack.c.bf16 %v6008_v31, %v6006_v33  ;;  %v5831_v48 = vpop.f32.mrf.mxu0 }
 0x8e0   : > { %v5832_v36 = vadd.f32 %v5831_v48, %v11811_v62 }
 0x8e1   : > { %v5875_v46 = vpop.f32.mrf.mxu1 }
 0x8e2   : > { %v5971_v47 = vpop.f32.mrf.mxu3  ;;  %v5876_v55 = vadd.f32 %v5875_v46, %v5827_v53 }
 0x8e3   : > { %v5972_v58 = vadd.f32 %v5971_v47, %v5923_v42 }
 0x8e4   : > { %v5925_v52 = vadd.f32 %v5924_v7, %v5876_v55 }
 0x8e5   : > { %v6010_v44 = vmax.f32 %v5972_v58, 0.0 }
 0x8e6   : > { %v5929_v41 = vpop.f32.mrf.mxu2 }
 0x8e7   : > { %v5834_v63 = vpop.f32.mrf.mxu0 }
 0x8e8   : > { %v5835_v19 = vadd.f32 %v5834_v63, %v11818_v5 }
 0x8e9   : > { %v5878_v13 = vpop.f32.mrf.mxu1 }
 0x8ea   : > { %v5973_v30 = vpop.f32.mrf.mxu3  ;;  %v5879_v29 = vadd.f32 %v5878_v13, %v5830_v27 }
 0x8eb   : > { %v5974_v11 = vadd.f32 %v5973_v30, %v5925_v52 }
 0x8ec   : > { %v5928_v15 = vadd.f32 %v5927_v50, %v5879_v29 }
 0x8ed   : > { %v6012_v38 = vmax.f32 %v5974_v11, 0.0 }
 0x8ee   : > { %v5932_v62 = vpop.f32.mrf.mxu2 }
 0x8ef   : > { %v11872_v12 = vpack.c.bf16 %v6012_v38, %v6010_v44  ;;  %v5836_v34 = vpop.f32.mrf.mxu0 }
 0x8f0   : > { %v5837_v8 = vadd.f32 %v5836_v34, %v11821_v37 }
 0x8f1   : > { %v5880_v3 = vpop.f32.mrf.mxu1 }
 0x8f2   : > { %v5976_v32 = vpop.f32.mrf.mxu3  ;;  %v5881_v9 = vadd.f32 %v5880_v3, %v5832_v36 }
 0x8f3   : > { %v5977_v6 = vadd.f32 %v5976_v32, %v5928_v15 }
 0x8f4   : > { %v5930_v4 = vadd.f32 %v5929_v41, %v5881_v9 }
 0x8f5   : > { %v6014_v14 = vmax.f32 %v5977_v6, 0.0 }
 0x8f6   : > { %v5934_v23 = vpop.f32.mrf.mxu2 }
 0x8f7   : > { %v5839_v39 = vpop.f32.mrf.mxu0 }
 0x8f8   : > { %v5840_v33 = vadd.f32 %v5839_v39, %v11828_v20 }
 0x8f9   : > { %v5883_v56 = vpop.f32.mrf.mxu1 }
 0x8fa   : > { %v5978_v51 = vpop.f32.mrf.mxu3  ;;  %v5884_v5 = vadd.f32 %v5883_v56, %v5835_v19 }
 0x8fb   : > { %v5979_v1 = vadd.f32 %v5978_v51, %v5930_v4 }
 0x8fc   : > { %v5933_v61 = vadd.f32 %v5932_v62, %v5884_v5 }
 0x8fd   : > { %v6016_v35 = vmax.f32 %v5979_v1, 0.0 }
 0x8fe   : > { %v5937_v57 = vpop.f32.mrf.mxu2 }
 0x8ff   : > { %v11874_v24 = vpack.c.bf16 %v6016_v35, %v6014_v14  ;;  %v5841_v59 = vpop.f32.mrf.mxu0 }
 0x900   : > { %v5842_v48 = vadd.f32 %v5841_v59, %v11834_v49 }
 0x901   : > { %v5885_v40 = vpop.f32.mrf.mxu1 }
 0x902   : > { %v5981_v25 = vpop.f32.mrf.mxu3  ;;  %v5886_v60 = vadd.f32 %v5885_v40, %v5837_v8 }
 0x903   : > { %v5982_v53 = vadd.f32 %v5981_v25, %v5933_v61 }
 0x904   : > { %v5935_v0 = vadd.f32 %v5934_v23, %v5886_v60 }
 0x905   : > { %v6018_v21 = vmax.f32 %v5982_v53, 0.0 }
 0x906   : > { %v5939_v43 = vpop.f32.mrf.mxu2 }
 0x907   : > { %v5844_v31 = vpop.f32.mrf.mxu0 }
 0x908   : > { %v5845_v20 = vadd.f32 %v5844_v31, %v11841_v45 }
 0x909   : > { %v5888_v27 = vpop.f32.mrf.mxu1 }
 0x90a   : > { %v5983_v18 = vpop.f32.mrf.mxu3  ;;  %v5889_v37 = vadd.f32 %v5888_v27, %v5840_v33 }
 0x90b   : > { %v5984_v7 = vadd.f32 %v5983_v18, %v5935_v0 }
 0x90c   : > { %v5938_v47 = vadd.f32 %v5937_v57, %v5889_v37 }
 0x90d   : > { %v6020_v54 = vmax.f32 %v5984_v7, 0.0 }
 0x90e   : > { %v5942_v55 = vpop.f32.mrf.mxu2 }
 0x90f   : > { %v6042_v2 = vpack.c.bf16 %v6020_v54, %v6018_v21  ;;  %v5846_v19 = vpop.f32.mrf.mxu0 }
 0x910   : > { %v5847_v44 = vadd.f32 %v5846_v19, %v11850_v16 }
 0x911   : > { %v5890_v50 = vpop.f32.mrf.mxu1 }
 0x912   : > { %v5986_v42 = vpop.f32.mrf.mxu3  ;;  %v5891_v36 = vadd.f32 %v5890_v50, %v5842_v48 }
 0x913   : > { %v5987_v58 = vadd.f32 %v5986_v42, %v5938_v47 }
 0x914   : > { %v5940_v46 = vadd.f32 %v5939_v43, %v5891_v36 }
 0x915   : > { %v6022_v30 = vmax.f32 %v5987_v58, 0.0 }
 0x916   : > { %v5944_v15 = vpop.f32.mrf.mxu2 }
 0x917   : > { %v5849_v62 = vpop.f32.mrf.mxu0 }
 0x918   : > { %v5850_v45 = vadd.f32 %v5849_v62, %v11857_v26  ;;  %v6056_v26 = vpop.permute.xlu2 %6055 }
 0x919   : > { %v5893_v41 = vpop.f32.mrf.mxu1 }
 0x91a   : > { %v5988_v52 = vpop.f32.mrf.mxu3  ;;  %v5894_v49 = vadd.f32 %v5893_v41, %v5845_v20 }
 0x91b   : > { %v5989_v63 = vadd.f32 %v5988_v52, %v5940_v46 }
 0x91c   : > { %v5943_v6 = vadd.f32 %v5942_v55, %v5894_v49 }
 0x91d   : > { %v6024_v11 = vmax.f32 %v5989_v63, 0.0 }
 0x91e   : > { %v5947_v5 = vpop.f32.mrf.mxu2 }
 0x91f   : > { %v6044_v13 = vpack.c.bf16 %v6024_v11, %v6022_v30  ;;  %v5851_v14 = vpop.f32.mrf.mxu0 }
 0x920   : > { %v5852_v16 = vadd.f32 %v5851_v14, %v11860_v22  ;;  %v6061_v27 = vpop.permute.xlu2 %6060 }
 0x921   : > { %v5895_v38 = vpop.f32.mrf.mxu1 }
 0x922   : > { %v5991_v29 = vpop.f32.mrf.mxu3  ;;  %v5896_v32 = vadd.f32 %v5895_v38, %v5847_v44 }
 0x923   : > { %v5992_v3 = vadd.f32 %v5991_v29, %v5943_v6 }
 0x924   : > { %v5945_v34 = vadd.f32 %v5944_v15, %v5896_v32 }
 0x925   : > { %v6026_v1 = vmax.f32 %v5992_v3, 0.0 }
 0x926   : > { %v5949_v53 = vpop.f32.mrf.mxu2 }
 0x927   : > { %v6078_v22 = vpop.f32.mrf.mxu0 }
 0x928   : > { %v6079_v43 = vadd.f32 %v6078_v22, %v6056_v26  ;;  %v6111_v42 = vpop.permute.xlu2 %6110 }
 0x929   : > { %v5898_v51 = vpop.f32.mrf.mxu1 }
 0x92a   : > { %v5993_v9 = vpop.f32.mrf.mxu3  ;;  %v5899_v39 = vadd.f32 %v5898_v51, %v5850_v45  ;;  %v6097_v31 = vmax.f32 %v6079_v43, 0.0 }
 0x92b   : > { %v5994_v4 = vadd.f32 %v5993_v9, %v5945_v34 }
 0x92c   : > { %v5948_v8 = vadd.f32 %v5947_v5, %v5899_v39 }
 0x92d   : > { %v6028_v56 = vmax.f32 %v5994_v4, 0.0 }
 0x92f   : > { %v6046_v23 = vpack.c.bf16 %v6028_v56, %v6026_v1  ;;  %v6080_v21 = vpop.f32.mrf.mxu0 }
 0x930   : > { %v6081_v54 = vadd.f32 %v6080_v21, %v6061_v27 }
 0x931   : > { %v5900_v61 = vpop.f32.mrf.mxu1 }
 0x932   : > { %v5996_v35 = vpop.f32.mrf.mxu3  ;;  %v5901_v25 = vadd.f32 %v5900_v61, %v5852_v16  ;;  %v6099_v33 = vmax.f32 %v6081_v54, 0.0 }
 0x933   : > { %v5997_v40 = vadd.f32 %v5996_v35, %v5948_v8 }
 0x934   : > { %v5950_v60 = vadd.f32 %v5949_v53, %v5901_v25  ;;  %v6115_v48 = vmul.f32 %v6111_v42, %v6099_v33 }
 0x935   : > { %v6030_v0 = vmax.f32 %v5997_v40, 0.0 }
 0x93a   : > { %v5998_v57 = vpop.f32.mrf.mxu3 }
 0x93b   : > { %v5999_v59 = vadd.f32 %v5998_v57, %v5950_v60  ;;  %v6184_v57 = vlaneseq }
 0x93d   : > { %v6032_v18 = vmax.f32 %v5999_v59, 0.0  ;;  %vm6186_vm9 = vcmp.lt.s32.totalorder %v6184_v57, 256 }
 0x93f   : > { %v6048_v7 = vpack.c.bf16 %v6032_v18, %v6030_v0 }
 0x941   : > { %6083 = vmatpush.bf16.msra.mxu1 %v6048_v7 }
 0x945   : > { %6084 = vmatpush.bf16.msra.mxu1 %v6046_v23 }
 0x949   : > { %6085 = vmatpush.bf16.msra.mxu1 %v6044_v13 }
 0x94d   : > { %6086 = vmatpush.bf16.msra.mxu1 %v6042_v2  ;;  %v6106_v2 = vpop.permute.xlu1 %6105 }
 0x951   : > { %6087 = vmatpush.bf16.msra.mxu1 %v11874_v24  ;;  %v6113_v24 = vmul.f32 %v6106_v2, %v6097_v31 }
 0x953   : > { %v6117_v37 = vadd.f32 %v6115_v48, %v6113_v24 }
 0x955   : > { %6088 = vmatpush.bf16.msra.mxu1 %v11872_v12  ;;  %v6118_v12 = vrot.slane %v6117_v37, 4  ;;  %v6135_v58 = vpop.permute.xlu1 %6134 }
 0x956   : > { %v6137_v52 = vperm.slane %v6135_v58, 0 }
 0x957   : > { %v6119_v50 = vadd.f32 %v6118_v12, %v6117_v37 }
 0x959   : > { %6089 = vmatpush.bf16.msra.mxu1 %v11868_v28  ;;  %v6120_v28 = vrot.slane %v6119_v50, 2 }
 0x95b   : > { %v6121_v36 = vadd.f32 %v6120_v28, %v6119_v50 }
 0x95d   : > { %6090 = vmatpush.bf16.msra.mxu1 %v11864_v17  ;;  %v6122_v47 = vrot.slane %v6121_v36, 1 }
 0x95f   : > { %v6123_v46 = vadd.f32 %v6122_v47, %v6121_v36 }
 0x960   : > { %6091 = vmatmul.bf16.vlgmr.msra.gmra.mxu1 %v11846_v10 }
 0x961   : > { %v6138_v19 = vadd.f32 %v6137_v52, %v6123_v46 }
 0x963   : > { %v7334_v20 = vmul.f32 -1.442695, %v6138_v19 }
 0x965   : > { %8571 = vpow2.f32 %v7334_v20 }
 0x96b   : > { %v8572_v32 = vpop.eup %8571 }
 0x96c   : > { %v6146_v3 = vadd.f32 1.0, %v8572_v32 }
 0x96e   : > { %8573 = vrcp.f32 %v6146_v3  ;;  %vm6153_vm2 = vweird.f32 %v6146_v3  ;;  %v6159_v8 = vand.u32 2147483648, %v6146_v3  ;;  %v6157_v40 = vand.u32 2147483647, %v6146_v3 }
 0x970   : > { %v6160_v7 = vor.u32 1.1754944e-38, %v6159_v8  ;;  %vm6158_vm8 = vcmp.eq.f32.partialorder %v6157_v40, 8.507059e+37 }
 0x974   : > { %v8574_v4 = vpop.eup %8573 }
 0x975   : > { %v6149_v56 = vmul.f32 %v8574_v4, %v6146_v3  ;;  %vm6154_vm0 = vweird.f32 %v8574_v4 }
 0x976   : > { %vm11893_vm3 = vmor %vm6153_vm2, %vm6154_vm0 }
 0x977   : > { %v6150_v5 = vsub.f32 1.0, %v6149_v56 }
 0x979   : > { %v6151_v14 = vmul.f32 %v8574_v4, %v6150_v5 }
 0x97b   : > { %v6152_v39 = vadd.f32 %v8574_v4, %v6151_v14 }
 0x97d   : > { %v6156_v0 = vsel %vm11893_vm3, %v8574_v4, %v6152_v39 }
 0x9dd   : > { %v6092_v17 = vpop.f32.mrf.mxu1 }
 0x9de   : > { %v6093_v10 = vadd.f32 %v6092_v17, %v6056_v26 }
 0x9e0   : > { %v6098_v63 = vmax.f32 %v6093_v10, 0.0 }
 0x9e2   : > { %v6114_v11 = vmul.f32 %v6106_v2, %v6098_v63 }
 0x9e5   : > { %v6094_v55 = vpop.f32.mrf.mxu1 }
 0x9e6   : > { %v6095_v41 = vadd.f32 %v6094_v55, %v6061_v27  ;;  %v6161_v27 = vsel %vm6158_vm8, %v6160_v7, %v6156_v0 }
 0x9e8   : > { %v6100_v30 = vmax.f32 %v6095_v41, 0.0 }
 0x9ea   : > { %v6116_v13 = vmul.f32 %v6111_v42, %v6100_v30 }
 0x9ec   : > { %v6124_v29 = vadd.f32 %v6116_v13, %v6114_v11 }
 0x9ee   : > { %v6125_v44 = vrot.slane %v6124_v29, 4 }
 0x9f0   : > { %v6126_v49 = vadd.f32 %v6125_v44, %v6124_v29 }
 0x9f2   : > { %v6127_v38 = vrot.slane %v6126_v49, 2 }
 0x9f4   : > { %v6128_v15 = vadd.f32 %v6127_v38, %v6126_v49 }
 0x9f6   : > { %v6129_v62 = vrot.slane %v6128_v15, 1 }
 0x9f8   : > { %v6130_v6 = vadd.f32 %v6129_v62, %v6128_v15 }
 0x9fa   : > { %v6139_v34 = vadd.f32 %v6137_v52, %v6130_v6 }
 0x9fc   : > { %v7335_v9 = vmul.f32 -1.442695, %v6139_v34 }
 0x9fe   : > { %8575 = vpow2.f32 %v7335_v9 }
 0xa04   : > { %v8576_v51 = vpop.eup %8575 }
 0xa05   : > { %v6147_v1 = vadd.f32 1.0, %v8576_v51 }
 0xa07   : > { %8577 = vrcp.f32 %v6147_v1  ;;  %v6174_v16 = vand.u32 2147483648, %v6147_v1  ;;  %v6172_v25 = vand.u32 2147483647, %v6147_v1  ;;  %vm6168_vm4 = vweird.f32 %v6147_v1 }
 0xa09   : > { %v6175_v59 = vor.u32 1.1754944e-38, %v6174_v16  ;;  %vm6173_vm6 = vcmp.eq.f32.partialorder %v6172_v25, 8.507059e+37 }
 0xa0d   : > { %v8578_v23 = vpop.eup %8577 }
 0xa0e   : > { %v6164_v45 = vmul.f32 %v8578_v23, %v6147_v1  ;;  %vm6169_vm1 = vweird.f32 %v8578_v23 }
 0xa0f   : > { %vm6170_vm5 = vmor %vm6168_vm4, %vm6169_vm1 }
 0xa10   : > { %v6165_v35 = vsub.f32 1.0, %v6164_v45 }
 0xa12   : > { %v6166_v61 = vmul.f32 %v8578_v23, %v6165_v35 }
 0xa14   : > { %v6167_v60 = vadd.f32 %v8578_v23, %v6166_v61 }
 0xa16   : > { %v6171_v18 = vsel %vm6170_vm5, %v8578_v23, %v6167_v60 }
 0xa17   : > { %v6176_v26 = vsel %vm6173_vm6, %v6175_v59, %v6171_v18 }
 0xa18   : > { %v6180_v22 = vrot.slane %v6176_v26, 7 }
 0xa1a   : > { %v6182_v21 = vsel %vm6181_vm7, %v6161_v27, %v6180_v22 }
 0xa1b   : > { %6188 = vst.msk [vmem:[%s388_s8] sm:$0x3] %vm6186_vm9, %v6182_v21 }
 0xa1c   : > { %8699 = shalt.err (!%p8696_p10)
}
 0xa1d   : > { %7610 = dma.vmem_to_hbm [thread:$0]  (%p8870_p3), %s6203_s15, 32, %s6205_s26, %s6190_s27  }
 0xa1e PF: > { %s6216_s13 = sand.u32 1, %s8730_s11   ;;  %p12940_p12 = scmp.ge.s32.totalorder %s8742_s14, 2 }
 0xa1f   : > { %s6217_s21 = scalar_lea.sflag [#allocation5], %s6216_s13 }
 0xa20   : > { %p7624_p13 = pnand %p12940_p12, %p8839_p6 }
 0xa22   : > { %p7625_p0 = pneg %p7624_p13 }
 0xa24   : > { %8725 = dma.done.wait (%p7625_p0), %s6217_s21, 32  }
 0xa25   : > { %8727 = vsyncadd (%p7625_p0), %s6217_s21, 4294967264  ;;  %s12941_s25 = sld [smem:[#allocation13_spill]]  ;;  %p25_p5 = scmp.ge.s32.totalorder %s8860_s10, 4  }
 0xa26   : > { %s12942_s13 = sld [smem:[#allocation14_spill]]  ;;  %s12943_s11 = smov %s8734_s12 }
 0xa27   : > { %s12945_s14 = smov %s8860_s10  ;;  %27 = sbr.rel (!%p25_p5) target bundleno = 9 (0x9), region = 109 }
 0xa2b   : > { %s12944_s12 = smov %s12941_s25 }
 0xa2c   :  { %6223 = vsyncpa [#allocation4], 1 }
 0xa2d   :  { %6225 = vsyncpa [#allocation4 + $0x1], 1 }
 0xa2e   :  { %6226 = vsyncpa [#allocation7], 1 }
 0xa2f   :  { %6227 = vsyncpa [#allocation5], 1 }
 0xa30   :  { %6229 = vsyncpa [#allocation5 + $0x1], 1 }

</bundles_post_ra>
